<compile_context>
chip_gen: v6e
topology: v6e:2x2x1
jax: 0.10.0
libtpu: 0.0.40
codegen_flags: <defaults>
</compile_context>

<pallas_src>
import math
import functools

import jax
import jax.numpy as jnp
from jax.experimental import pallas as pl
from jax.experimental.pallas import tpu as pltpu


# ----------------------------------------------------------------------------
# Fused Pallas kernels
# ----------------------------------------------------------------------------

def _softmax_attend(qh, kh, vh, scale):
    """qh: (Sq, Dh) f32, kh/vh: (Sk, Dh) f32 -> (Sq, Dh) f32."""
    s = jnp.dot(qh.astype(jnp.bfloat16), kh.T.astype(jnp.bfloat16),
                preferred_element_type=jnp.float32) * scale
    s = s - jnp.max(s, axis=-1, keepdims=True)
    p = jnp.exp(s)
    p = p * pl.reciprocal(jnp.sum(p, axis=-1, keepdims=True), approx=True)
    return jnp.dot(p.astype(jnp.bfloat16), vh.astype(jnp.bfloat16),
                   preferred_element_type=jnp.float32)


def _mha_out_ln(x, q, k, v, wo_ref, bo_ref, g_ref, b_ref, o_ref, n_heads, scale):
    """Multi-head attention (all heads) + out-proj + residual + LayerNorm."""
    Sq, D = q.shape
    Dh = D // n_heads
    acc = jnp.zeros((Sq, D), jnp.float32)
    for h in range(n_heads):                    # static unroll over heads
        sl = slice(h * Dh, (h + 1) * Dh)
        oh = _softmax_attend(q[:, sl], k[:, sl], v[:, sl], scale)
        # out-proj merged into the head loop: sum_h o_h @ Wo[h*Dh:(h+1)*Dh, :]
        acc = acc + jnp.dot(oh.astype(jnp.bfloat16), wo_ref[sl, :],
                            preferred_element_type=jnp.float32)
    hres = x + acc + bo_ref[...]
    mean = jnp.mean(hres, axis=-1, keepdims=True)
    var = jnp.mean(jnp.square(hres - mean), axis=-1, keepdims=True)
    o_ref[0] = ((hres - mean) * jax.lax.rsqrt(var + 1e-5)) * g_ref[...] + b_ref[...]


def _self_attn_ln_kernel(x_ref, wqkv_ref, bqkv_ref, wo_ref, bo_ref,
                         g_ref, b_ref, o_ref, *, n_heads, scale):
    x = x_ref[0]                                   # (S, D) f32
    D = x.shape[-1]
    qkv = jnp.dot(x.astype(jnp.bfloat16), wqkv_ref[...],
                  preferred_element_type=jnp.float32) + bqkv_ref[...]
    q, k, v = qkv[:, :D], qkv[:, D:2 * D], qkv[:, 2 * D:]
    _mha_out_ln(x, q, k, v, wo_ref, bo_ref, g_ref, b_ref, o_ref, n_heads, scale)


def _cross_attn_ln_kernel(x_ref, m_ref, wqkv_ref, bqkv_ref, wo_ref, bo_ref,
                          g_ref, b_ref, o_ref, *, n_heads, scale):
    x = x_ref[0]                                   # (Sq, D) f32 (query / residual)
    m = m_ref[0]                                   # (Sk, D) f32 (memory)
    D = x.shape[-1]
    bqkv = bqkv_ref[...]
    q = jnp.dot(x.astype(jnp.bfloat16), wqkv_ref[:, :D],
                preferred_element_type=jnp.float32) + bqkv[:, :D]
    kv = jnp.dot(m.astype(jnp.bfloat16), wqkv_ref[:, D:],
                 preferred_element_type=jnp.float32) + bqkv[:, D:]
    k, v = kv[:, :D], kv[:, D:]
    _mha_out_ln(x, q, k, v, wo_ref, bo_ref, g_ref, b_ref, o_ref, n_heads, scale)


def _ffn_ln_kernel(x_ref, w1_ref, b1_ref, w2_ref, b2_ref, g_ref, b_ref, o_ref):
    """LayerNorm(x + W2 @ relu(W1 @ x + b1) + b2); intermediate stays on-chip."""
    x = x_ref[...]                                 # (tm, D) f32
    h = jnp.dot(x.astype(jnp.bfloat16), w1_ref[...],
                preferred_element_type=jnp.float32) + b1_ref[...]
    h = jnp.maximum(h, 0.0)
    f = jnp.dot(h.astype(jnp.bfloat16), w2_ref[...],
                preferred_element_type=jnp.float32) + b2_ref[...]
    hres = x + f
    mean = jnp.mean(hres, axis=-1, keepdims=True)
    var = jnp.mean(jnp.square(hres - mean), axis=-1, keepdims=True)
    o_ref[...] = ((hres - mean) * jax.lax.rsqrt(var + 1e-5)) * g_ref[...] + b_ref[...]


def _conv3x3_kernel(xp_ref, w_ref, b_ref, o_ref, *, H, W):
    """3x3 pad=1 conv as 9 shifted matmuls on the padded NHWC tile (per batch)."""
    xp = xp_ref[0]                                 # (H+2, W+2, C) f32
    C = xp.shape[-1]
    acc = jnp.zeros((H * W, w_ref.shape[-1]), jnp.float32)
    for kh in range(3):
        for kw in range(3):
            patch = xp[kh:kh + H, kw:kw + W, :].reshape(H * W, C)
            acc = acc + jnp.dot(patch.astype(jnp.bfloat16), w_ref[kh * 3 + kw],
                                preferred_element_type=jnp.float32)
    o_ref[0] = acc + b_ref[...]


# ----------------------------------------------------------------------------
# pallas_call wrappers
# ----------------------------------------------------------------------------

_PAR1 = pltpu.CompilerParams(dimension_semantics=("parallel",))


def self_attn_block(x, wqkv, bqkv, wo, bo, g, b, n_heads):
    B, S, D = x.shape
    scale = 1.0 / math.sqrt(D // n_heads)
    return pl.pallas_call(
        functools.partial(_self_attn_ln_kernel, n_heads=n_heads, scale=scale),
        out_shape=jax.ShapeDtypeStruct((B, S, D), jnp.float32),
        grid=(B,),
        in_specs=[
            pl.BlockSpec((1, S, D), lambda i: (i, 0, 0)),
            pl.BlockSpec((D, 3 * D), lambda i: (0, 0)),
            pl.BlockSpec((1, 3 * D), lambda i: (0, 0)),
            pl.BlockSpec((D, D), lambda i: (0, 0)),
            pl.BlockSpec((1, D), lambda i: (0, 0)),
            pl.BlockSpec((1, D), lambda i: (0, 0)),
            pl.BlockSpec((1, D), lambda i: (0, 0)),
        ],
        out_specs=pl.BlockSpec((1, S, D), lambda i: (i, 0, 0)),
        compiler_params=_PAR1,
    )(x, wqkv, bqkv, wo, bo, g, b)


def cross_attn_block(x, mem, wqkv, bqkv, wo, bo, g, b, n_heads):
    B, Sq, D = x.shape
    Sk = mem.shape[1]
    scale = 1.0 / math.sqrt(D // n_heads)
    return pl.pallas_call(
        functools.partial(_cross_attn_ln_kernel, n_heads=n_heads, scale=scale),
        out_shape=jax.ShapeDtypeStruct((B, Sq, D), jnp.float32),
        grid=(B,),
        in_specs=[
            pl.BlockSpec((1, Sq, D), lambda i: (i, 0, 0)),
            pl.BlockSpec((1, Sk, D), lambda i: (i, 0, 0)),
            pl.BlockSpec((D, 3 * D), lambda i: (0, 0)),
            pl.BlockSpec((1, 3 * D), lambda i: (0, 0)),
            pl.BlockSpec((D, D), lambda i: (0, 0)),
            pl.BlockSpec((1, D), lambda i: (0, 0)),
            pl.BlockSpec((1, D), lambda i: (0, 0)),
            pl.BlockSpec((1, D), lambda i: (0, 0)),
        ],
        out_specs=pl.BlockSpec((1, Sq, D), lambda i: (i, 0, 0)),
        compiler_params=_PAR1,
    )(x, mem, wqkv, bqkv, wo, bo, g, b)


def _row_tile(M):
    # single grid step for small M; at real sizes pick a 256-512 row tile.
    if M <= 512:
        return M
    for t in (512, 256, 128, 64, 32, 16, 8):
        if M % t == 0:
            return t
    return M


def ffn_block(x2d, w1, b1, w2, b2, g, b):
    M, D = x2d.shape
    F = w1.shape[1]
    tm = _row_tile(M)
    return pl.pallas_call(
        _ffn_ln_kernel,
        out_shape=jax.ShapeDtypeStruct((M, D), jnp.float32),
        grid=(M // tm,),
        in_specs=[
            pl.BlockSpec((tm, D), lambda i: (i, 0)),
            pl.BlockSpec((D, F), lambda i: (0, 0)),
            pl.BlockSpec((1, F), lambda i: (0, 0)),
            pl.BlockSpec((F, D), lambda i: (0, 0)),
            pl.BlockSpec((1, D), lambda i: (0, 0)),
            pl.BlockSpec((1, D), lambda i: (0, 0)),
            pl.BlockSpec((1, D), lambda i: (0, 0)),
        ],
        out_specs=pl.BlockSpec((tm, D), lambda i: (i, 0)),
        compiler_params=_PAR1,
    )(x2d, w1, b1, w2, b2, g, b)


def conv3x3(tokens, H, W, w, b):
    """tokens: (B, H*W, C) row-major over (H, W); returns NCHW (B, Cout, H, W)."""
    B, S, C = tokens.shape
    Cout = w.shape[-1]
    x = tokens.reshape(B, H, W, C)
    xp = jnp.pad(x, ((0, 0), (1, 1), (1, 1), (0, 0)))
    out = pl.pallas_call(
        functools.partial(_conv3x3_kernel, H=H, W=W),
        out_shape=jax.ShapeDtypeStruct((B, H * W, Cout), jnp.float32),
        grid=(B,),
        in_specs=[
            pl.BlockSpec((1, H + 2, W + 2, C), lambda i: (i, 0, 0, 0)),
            pl.BlockSpec((9, C, Cout), lambda i: (0, 0, 0)),
            pl.BlockSpec((1, Cout), lambda i: (0, 0)),
        ],
        out_specs=pl.BlockSpec((1, H * W, Cout), lambda i: (i, 0, 0)),
        compiler_params=_PAR1,
    )(xp, w, b)
    return jnp.transpose(out.reshape(B, H, W, Cout), (0, 3, 1, 2))


# ----------------------------------------------------------------------------
# Transformer layers (2-3 fused kernels each)
# ----------------------------------------------------------------------------

def encoder_layer(x, p, n_heads):
    B, S, D = x.shape
    x1 = self_attn_block(x, p["sa_wqkv"], p["sa_bqkv"], p["sa_wo"], p["sa_bo"],
                         p["ln1_g"], p["ln1_b"], n_heads)
    x2 = ffn_block(x1.reshape(B * S, D), p["w1"], p["b1"], p["w2"], p["b2"],
                   p["ln2_g"], p["ln2_b"])
    return x2.reshape(B, S, D)


def decoder_layer(tgt, memory, p, n_heads):
    B, S, D = tgt.shape
    t1 = self_attn_block(tgt, p["sa_wqkv"], p["sa_bqkv"], p["sa_wo"], p["sa_bo"],
                         p["ln1_g"], p["ln1_b"], n_heads)
    t2 = cross_attn_block(t1, memory, p["ca_wqkv"], p["ca_bqkv"], p["ca_wo"],
                          p["ca_bo"], p["ln2_g"], p["ln2_b"], n_heads)
    t3 = ffn_block(t2.reshape(B * S, D), p["w1"], p["b1"], p["w2"], p["b2"],
                   p["ln3_g"], p["ln3_b"])
    return t3.reshape(B, S, D)


def positional_encoding_2d(B, H, W, C):
    """PositionalEncoding2D (sinusoidal, interleaved sin/cos) on (B,H,W,C)."""
    ch = int(math.ceil(C / 4) * 2)
    inv_freq = 1.0 / (10000.0 ** (jnp.arange(0, ch, 2, dtype=jnp.float32) / ch))

    def get_emb(pos):
        s = pos[:, None] * inv_freq[None, :]
        return jnp.stack([jnp.sin(s), jnp.cos(s)], axis=-1).reshape(pos.shape[0], -1)

    emb_x = get_emb(jnp.arange(H, dtype=jnp.float32))[:, None, :]   # (H,1,ch)
    emb_y = get_emb(jnp.arange(W, dtype=jnp.float32))[None, :, :]   # (1,W,ch)
    emb = jnp.zeros((H, W, 2 * ch), jnp.float32)
    emb = emb.at[:, :, :ch].set(jnp.broadcast_to(emb_x, (H, W, ch)))
    emb = emb.at[:, :, ch:2 * ch].set(jnp.broadcast_to(emb_y, (H, W, ch)))
    emb = emb[:, :, :C]
    return jnp.broadcast_to(emb[None], (B, H, W, C))


# ----------------------------------------------------------------------------
# Parameter init (deterministic, synthetic). Matmul weights in bf16, rest f32.
# ----------------------------------------------------------------------------

def init_params(key, hidden, num_layers, ffn, out_dim, learn_len):
    keys = iter(jax.random.split(key, 1024))

    def w(shape, scale=0.02):
        return (jax.random.normal(next(keys), shape, jnp.float32) * scale
                ).astype(jnp.bfloat16)

    def zeros(shape):
        return jnp.zeros(shape, jnp.float32)

    def ones(shape):
        return jnp.ones(shape, jnp.float32)

    def attn(prefix):
        return {
            prefix + "wqkv": w((hidden, 3 * hidden)),   # packed Q|K|V projection
            prefix + "bqkv": zeros((1, 3 * hidden)),
            prefix + "wo": w((hidden, hidden)),
            prefix + "bo": zeros((1, hidden)),
        }

    def ln(name):
        return {name + "_g": ones((1, hidden)), name + "_b": zeros((1, hidden))}

    def ff():
        return {"w1": w((hidden, ffn)), "b1": zeros((1, ffn)),
                "w2": w((ffn, hidden)), "b2": zeros((1, hidden))}

    encoder = []
    for _ in range(num_layers):
        lyr = {}
        lyr.update(attn("sa_")); lyr.update(ln("ln1"))
        lyr.update(ff()); lyr.update(ln("ln2"))
        encoder.append(lyr)

    decoder = []
    for _ in range(num_layers):
        lyr = {}
        lyr.update(attn("sa_")); lyr.update(ln("ln1"))
        lyr.update(attn("ca_")); lyr.update(ln("ln2"))
        lyr.update(ff()); lyr.update(ln("ln3"))
        decoder.append(lyr)

    return {
        "encoder": encoder,
        "decoder": decoder,
        # TODO(synk): original module uses a fixed (1, 32*30, hidden) learnable
        # query, forcing H*W == 960; here it is tied to H*W for small shapes.
        "learnable": jax.random.normal(next(keys), (1, learn_len, hidden), jnp.float32),
        "conv_w": w((9, hidden, out_dim)),              # (tap, Cin, Cout)
        "conv_b": zeros((1, out_dim)),
    }


# ----------------------------------------------------------------------------
# Full forward
# ----------------------------------------------------------------------------

def transformer_full_bottleneck(x_nchw, params, n_heads):
    B, C, H, W = x_nchw.shape
    pos = positional_encoding_2d(B, H, W, C)                      # (B,H,W,C)
    x_nhwc = jnp.transpose(x_nchw, (0, 2, 3, 1)) + pos
    x = x_nhwc.reshape(B, H * W, C)                               # tokens (B,S,C)

    for lyr in params["encoder"]:
        x = encoder_layer(x, lyr, n_heads)

    tgt = params["learnable"] + pos.reshape(B, H * W, C)
    for lyr in params["decoder"]:
        tgt = decoder_layer(tgt, x, lyr, n_heads)

    return conv3x3(tgt, H, W, params["conv_w"], params["conv_b"])  # (B,Cout,H,W)


# ----------------------------------------------------------------------------
# main
# ----------------------------------------------------------------------------

if __name__ == "__main__":
    # Small, module-consistent shapes:
    B, hidden, H, W = 2, 32, 8, 8
    n_heads = 8            # module default (head_dim = 4 at this hidden size)
    num_layers = 2         # TODO(synk): original module uses 6 enc + 6 dec layers
    ffn = 64               # TODO(synk): PyTorch default dim_feedforward is 2048
    bottleneck_out_dim = 48

    key = jax.random.PRNGKey(0)
    kx, kp = jax.random.split(key)
    x = jax.random.normal(kx, (B, hidden, H, W), jnp.float32)

    params = init_params(kp, hidden, num_layers, ffn, bottleneck_out_dim,
                         learn_len=H * W)

    fwd = jax.jit(functools.partial(transformer_full_bottleneck, n_heads=n_heads))
    out = jax.block_until_ready(fwd(x, params))

    assert out.shape == (B, bottleneck_out_dim, H, W), out.shape
    assert bool(jnp.all(jnp.isfinite(out)))
    print("KERNEL_OK")
</pallas_src>

<mosaic_0001>
module attributes {stable_mosaic.version = 11 : i64} {
  func.func @_ffn_ln_kernel(%arg0: i32, %arg1: memref<128x32xf32, #tpu.memory_space<vmem>>, %arg2: memref<32x64xbf16, #tpu.memory_space<vmem>>, %arg3: memref<1x64xf32, #tpu.memory_space<vmem>>, %arg4: memref<64x32xbf16, #tpu.memory_space<vmem>>, %arg5: memref<1x32xf32, #tpu.memory_space<vmem>>, %arg6: memref<1x32xf32, #tpu.memory_space<vmem>>, %arg7: memref<1x32xf32, #tpu.memory_space<vmem>>, %arg8: memref<128x32xf32, #tpu.memory_space<vmem>>) attributes {dimension_semantics = [#tpu.dimension_semantics<parallel>], iteration_bounds = array<i64: 1>, scalar_prefetch = 0 : i64, scratch_operands = 0 : i64, tpu.core_type = #tpu.core_type<tc>, window_params = [{transform_indices = @transform_0, window_bounds = array<i64: 128, 32>}, {pipeline_mode = #tpu.pipeline_mode<synchronous>, transform_indices = @transform_1, window_bounds = array<i64: 32, 64>}, {pipeline_mode = #tpu.pipeline_mode<synchronous>, transform_indices = @transform_2, window_bounds = array<i64: 1, 64>}, {pipeline_mode = #tpu.pipeline_mode<synchronous>, transform_indices = @transform_3, window_bounds = array<i64: 64, 32>}, {pipeline_mode = #tpu.pipeline_mode<synchronous>, transform_indices = @transform_4, window_bounds = array<i64: 1, 32>}, {pipeline_mode = #tpu.pipeline_mode<synchronous>, transform_indices = @transform_5, window_bounds = array<i64: 1, 32>}, {pipeline_mode = #tpu.pipeline_mode<synchronous>, transform_indices = @transform_6, window_bounds = array<i64: 1, 32>}, {transform_indices = @transform_7, window_bounds = array<i64: 128, 32>}]} {
    %c0 = arith.constant 0 : index
    %c0_0 = arith.constant 0 : index
    %0 = vector.load %arg1[%c0, %c0_0] : memref<128x32xf32, #tpu.memory_space<vmem>>, vector<128x32xf32>
    %1 = arith.truncf %0 : vector<128x32xf32> to vector<128x32xbf16>
    %c0_1 = arith.constant 0 : index
    %c0_2 = arith.constant 0 : index
    %2 = vector.load %arg2[%c0_1, %c0_2] : memref<32x64xbf16, #tpu.memory_space<vmem>>, vector<32x64xbf16>
    %cst = arith.constant dense<0.000000e+00> : vector<128x64xf32>
    %3 = tpu.matmul %1, %2, %cst {dimension_numbers = #tpu.dot_dimension_numbers<[1], [0], [0], [1], [0, 0, 1, 1], [], []>} : vector<128x32xbf16>, vector<32x64xbf16>, vector<128x64xf32> -> vector<128x64xf32>
    %c0_3 = arith.constant 0 : index
    %c0_4 = arith.constant 0 : index
    %4 = vector.load %arg3[%c0_3, %c0_4] : memref<1x64xf32, #tpu.memory_space<vmem>>, vector<1x64xf32>
    %5 = vector.broadcast %4 : vector<1x64xf32> to vector<128x64xf32>
    %6 = arith.addf %3, %5 : vector<128x64xf32>
    %cst_5 = arith.constant 0.000000e+00 : f32
    %7 = vector.broadcast %cst_5 : f32 to vector<128x64xf32>
    %8 = arith.maximumf %6, %7 : vector<128x64xf32>
    %9 = arith.truncf %8 : vector<128x64xf32> to vector<128x64xbf16>
    %c0_6 = arith.constant 0 : index
    %c0_7 = arith.constant 0 : index
    %10 = vector.load %arg4[%c0_6, %c0_7] : memref<64x32xbf16, #tpu.memory_space<vmem>>, vector<64x32xbf16>
    %cst_8 = arith.constant dense<0.000000e+00> : vector<128x32xf32>
    %11 = tpu.matmul %9, %10, %cst_8 {dimension_numbers = #tpu.dot_dimension_numbers<[1], [0], [0], [1], [0, 0, 1, 1], [], []>} : vector<128x64xbf16>, vector<64x32xbf16>, vector<128x32xf32> -> vector<128x32xf32>
    %c0_9 = arith.constant 0 : index
    %c0_10 = arith.constant 0 : index
    %12 = vector.load %arg5[%c0_9, %c0_10] : memref<1x32xf32, #tpu.memory_space<vmem>>, vector<1x32xf32>
    %13 = vector.broadcast %12 : vector<1x32xf32> to vector<128x32xf32>
    %14 = arith.addf %11, %13 : vector<128x32xf32>
    %15 = arith.addf %0, %14 : vector<128x32xf32>
    %cst_11 = arith.constant dense<0.000000e+00> : vector<128xf32>
    %16 = vector.multi_reduction <add>, %15, %cst_11 [1] : vector<128x32xf32> to vector<128xf32>
    %17 = vector.shape_cast %16 : vector<128xf32> to vector<128x1xf32>
    %cst_12 = arith.constant 3.200000e+01 : f32
    %18 = vector.broadcast %cst_12 : f32 to vector<128x1xf32>
    %19 = arith.divf %17, %18 : vector<128x1xf32>
    %20 = vector.broadcast %19 : vector<128x1xf32> to vector<128x32xf32>
    %21 = arith.subf %15, %20 : vector<128x32xf32>
    %22 = arith.mulf %21, %21 : vector<128x32xf32>
    %cst_13 = arith.constant dense<0.000000e+00> : vector<128xf32>
    %23 = vector.multi_reduction <add>, %22, %cst_13 [1] : vector<128x32xf32> to vector<128xf32>
    %24 = vector.shape_cast %23 : vector<128xf32> to vector<128x1xf32>
    %cst_14 = arith.constant 3.200000e+01 : f32
    %25 = vector.broadcast %cst_14 : f32 to vector<128x1xf32>
    %26 = arith.divf %24, %25 : vector<128x1xf32>
    %27 = vector.broadcast %19 : vector<128x1xf32> to vector<128x32xf32>
    %28 = arith.subf %15, %27 : vector<128x32xf32>
    %cst_15 = arith.constant 9.99999974E-6 : f32
    %29 = vector.broadcast %cst_15 : f32 to vector<128x1xf32>
    %30 = arith.addf %26, %29 : vector<128x1xf32>
    %31 = math.rsqrt %30 : vector<128x1xf32>
    %32 = vector.broadcast %31 : vector<128x1xf32> to vector<128x32xf32>
    %33 = arith.mulf %28, %32 : vector<128x32xf32>
    %c0_16 = arith.constant 0 : index
    %c0_17 = arith.constant 0 : index
    %34 = vector.load %arg6[%c0_16, %c0_17] : memref<1x32xf32, #tpu.memory_space<vmem>>, vector<1x32xf32>
    %35 = vector.broadcast %34 : vector<1x32xf32> to vector<128x32xf32>
    %36 = arith.mulf %33, %35 : vector<128x32xf32>
    %c0_18 = arith.constant 0 : index
    %c0_19 = arith.constant 0 : index
    %37 = vector.load %arg7[%c0_18, %c0_19] : memref<1x32xf32, #tpu.memory_space<vmem>>, vector<1x32xf32>
    %38 = vector.broadcast %37 : vector<1x32xf32> to vector<128x32xf32>
    %39 = arith.addf %36, %38 : vector<128x32xf32>
    %c0_20 = arith.constant 0 : index
    %c0_21 = arith.constant 0 : index
    %40 = vector.load %arg8[%c0_20, %c0_21] : memref<128x32xf32, #tpu.memory_space<vmem>>, vector<128x32xf32>
    tpu.vector_store %arg8[%c0_20, %c0_21], %39 {strides = array<i32>} : memref<128x32xf32, #tpu.memory_space<vmem>>, vector<128x32xf32>,
    return
  }
  func.func @transform_0(%arg0: i32) -> (i32, i32) {
    %c0_i32 = arith.constant 0 : i32
    %c0_i32_0 = arith.constant 0 : i32
    return %arg0, %c0_i32 : i32, i32
  }
  func.func @transform_1(%arg0: i32) -> (i32, i32) {
    %c0_i32 = arith.constant 0 : i32
    %c0_i32_0 = arith.constant 0 : i32
    %c0_i32_1 = arith.constant 0 : i32
    return %c0_i32, %c0_i32_0 : i32, i32
  }
  func.func @transform_2(%arg0: i32) -> (i32, i32) {
    %c0_i32 = arith.constant 0 : i32
    %c0_i32_0 = arith.constant 0 : i32
    %c0_i32_1 = arith.constant 0 : i32
    return %c0_i32, %c0_i32_0 : i32, i32
  }
  func.func @transform_3(%arg0: i32) -> (i32, i32) {
    %c0_i32 = arith.constant 0 : i32
    %c0_i32_0 = arith.constant 0 : i32
    %c0_i32_1 = arith.constant 0 : i32
    return %c0_i32, %c0_i32_0 : i32, i32
  }
  func.func @transform_4(%arg0: i32) -> (i32, i32) {
    %c0_i32 = arith.constant 0 : i32
    %c0_i32_0 = arith.constant 0 : i32
    %c0_i32_1 = arith.constant 0 : i32
    return %c0_i32, %c0_i32_0 : i32, i32
  }
  func.func @transform_5(%arg0: i32) -> (i32, i32) {
    %c0_i32 = arith.constant 0 : i32
    %c0_i32_0 = arith.constant 0 : i32
    %c0_i32_1 = arith.constant 0 : i32
    return %c0_i32, %c0_i32_0 : i32, i32
  }
  func.func @transform_6(%arg0: i32) -> (i32, i32) {
    %c0_i32 = arith.constant 0 : i32
    %c0_i32_0 = arith.constant 0 : i32
    %c0_i32_1 = arith.constant 0 : i32
    return %c0_i32, %c0_i32_0 : i32, i32
  }
  func.func @transform_7(%arg0: i32) -> (i32, i32) {
    %c0_i32 = arith.constant 0 : i32
    %c0_i32_0 = arith.constant 0 : i32
    return %arg0, %c0_i32 : i32, i32
  }
}

module attributes {stable_mosaic.version = 11 : i64} {
  func.func @_self_attn_ln_kernel(%arg0: i32, %arg1: memref<1x64x32xf32, #tpu.memory_space<vmem>>, %arg2: memref<32x96xbf16, #tpu.memory_space<vmem>>, %arg3: memref<1x96xf32, #tpu.memory_space<vmem>>, %arg4: memref<32x32xbf16, #tpu.memory_space<vmem>>, %arg5: memref<1x32xf32, #tpu.memory_space<vmem>>, %arg6: memref<1x32xf32, #tpu.memory_space<vmem>>, %arg7: memref<1x32xf32, #tpu.memory_space<vmem>>, %arg8: memref<1x64x32xf32, #tpu.memory_space<vmem>>) attributes {dimension_semantics = [#tpu.dimension_semantics<parallel>], iteration_bounds = array<i64: 2>, scalar_prefetch = 0 : i64, scratch_operands = 0 : i64, tpu.core_type = #tpu.core_type<tc>, window_params = [{transform_indices = @transform_0, window_bounds = array<i64: 1, 64, 32>}, {pipeline_mode = #tpu.pipeline_mode<synchronous>, transform_indices = @transform_1, window_bounds = array<i64: 32, 96>}, {pipeline_mode = #tpu.pipeline_mode<synchronous>, transform_indices = @transform_2, window_bounds = array<i64: 1, 96>}, {pipeline_mode = #tpu.pipeline_mode<synchronous>, transform_indices = @transform_3, window_bounds = array<i64: 32, 32>}, {pipeline_mode = #tpu.pipeline_mode<synchronous>, transform_indices = @transform_4, window_bounds = array<i64: 1, 32>}, {pipeline_mode = #tpu.pipeline_mode<synchronous>, transform_indices = @transform_5, window_bounds = array<i64: 1, 32>}, {pipeline_mode = #tpu.pipeline_mode<synchronous>, transform_indices = @transform_6, window_bounds = array<i64: 1, 32>}, {transform_indices = @transform_7, window_bounds = array<i64: 1, 64, 32>}]} {
    %c0 = arith.constant 0 : index
    %c0_0 = arith.constant 0 : index
    %c0_1 = arith.constant 0 : index
    %0 = vector.load %arg1[%c0, %c0_0, %c0_1] : memref<1x64x32xf32, #tpu.memory_space<vmem>>, vector<1x64x32xf32>
    %1 = vector.shape_cast %0 : vector<1x64x32xf32> to vector<64x32xf32>
    %2 = arith.truncf %1 : vector<64x32xf32> to vector<64x32xbf16>
    %c0_2 = arith.constant 0 : index
    %c0_3 = arith.constant 0 : index
    %3 = vector.load %arg2[%c0_2, %c0_3] : memref<32x96xbf16, #tpu.memory_space<vmem>>, vector<32x96xbf16>
    %cst = arith.constant dense<0.000000e+00> : vector<64x96xf32>
    %4 = tpu.matmul %2, %3, %cst {dimension_numbers = #tpu.dot_dimension_numbers<[1], [0], [0], [1], [0, 0, 1, 1], [], []>} : vector<64x32xbf16>, vector<32x96xbf16>, vector<64x96xf32> -> vector<64x96xf32>
    %c0_4 = arith.constant 0 : index
    %c0_5 = arith.constant 0 : index
    %5 = vector.load %arg3[%c0_4, %c0_5] : memref<1x96xf32, #tpu.memory_space<vmem>>, vector<1x96xf32>
    %6 = vector.broadcast %5 : vector<1x96xf32> to vector<64x96xf32>
    %7 = arith.addf %4, %6 : vector<64x96xf32>
    %8 = vector.extract_strided_slice %7 {offsets = [0, 0], sizes = [64, 32], strides = [1, 1]} : vector<64x96xf32> to vector<64x32xf32>
    %9 = vector.extract_strided_slice %7 {offsets = [0, 32], sizes = [64, 32], strides = [1, 1]} : vector<64x96xf32> to vector<64x32xf32>
    %10 = vector.extract_strided_slice %7 {offsets = [0, 64], sizes = [64, 32], strides = [1, 1]} : vector<64x96xf32> to vector<64x32xf32>
    %cst_6 = arith.constant 0.000000e+00 : f32
    %11 = vector.broadcast %cst_6 : f32 to vector<64x32xf32>
    %12 = vector.extract_strided_slice %8 {offsets = [0, 0], sizes = [64, 4], strides = [1, 1]} : vector<64x32xf32> to vector<64x4xf32>
    %13 = vector.extract_strided_slice %9 {offsets = [0, 0], sizes = [64, 4], strides = [1, 1]} : vector<64x32xf32> to vector<64x4xf32>
    %14 = vector.extract_strided_slice %10 {offsets = [0, 0], sizes = [64, 4], strides = [1, 1]} : vector<64x32xf32> to vector<64x4xf32>
    %15 = arith.truncf %12 : vector<64x4xf32> to vector<64x4xbf16>
    %16 = tpu.transpose %13, [1, 0] : vector<64x4xf32> -> vector<4x64xf32>
    %17 = arith.truncf %16 : vector<4x64xf32> to vector<4x64xbf16>
    %cst_7 = arith.constant dense<0.000000e+00> : vector<64x64xf32>
    %18 = tpu.matmul %15, %17, %cst_7 {dimension_numbers = #tpu.dot_dimension_numbers<[1], [0], [0], [1], [0, 0, 1, 1], [], []>} : vector<64x4xbf16>, vector<4x64xbf16>, vector<64x64xf32> -> vector<64x64xf32>
    %cst_8 = arith.constant 5.000000e-01 : f32
    %19 = vector.broadcast %cst_8 : f32 to vector<64x64xf32>
    %20 = arith.mulf %18, %19 : vector<64x64xf32>
    %cst_9 = arith.constant dense<0xFF800000> : vector<64xf32>
    %21 = vector.multi_reduction <maximumf>, %20, %cst_9 [1] : vector<64x64xf32> to vector<64xf32>
    %22 = vector.shape_cast %21 : vector<64xf32> to vector<64x1xf32>
    %23 = vector.broadcast %22 : vector<64x1xf32> to vector<64x64xf32>
    %24 = arith.subf %20, %23 : vector<64x64xf32>
    %25 = math.exp %24 : vector<64x64xf32>
    %cst_10 = arith.constant dense<0.000000e+00> : vector<64xf32>
    %26 = vector.multi_reduction <add>, %25, %cst_10 [1] : vector<64x64xf32> to vector<64xf32>
    %27 = vector.shape_cast %26 : vector<64xf32> to vector<64x1xf32>
    %28 = tpu.reciprocal %27 {approx = true} : vector<64x1xf32> -> vector<64x1xf32>
    %29 = vector.broadcast %28 : vector<64x1xf32> to vector<64x64xf32>
    %30 = arith.mulf %25, %29 : vector<64x64xf32>
    %31 = arith.truncf %30 : vector<64x64xf32> to vector<64x64xbf16>
    %32 = arith.truncf %14 : vector<64x4xf32> to vector<64x4xbf16>
    %cst_11 = arith.constant dense<0.000000e+00> : vector<64x4xf32>
    %33 = tpu.matmul %31, %32, %cst_11 {dimension_numbers = #tpu.dot_dimension_numbers<[1], [0], [0], [1], [0, 0, 1, 1], [], []>} : vector<64x64xbf16>, vector<64x4xbf16>, vector<64x4xf32> -> vector<64x4xf32>
    %34 = arith.truncf %33 : vector<64x4xf32> to vector<64x4xbf16>
    %c0_12 = arith.constant 0 : index
    %c0_13 = arith.constant 0 : index
    %35 = vector.load %arg4[%c0_12, %c0_13] : memref<32x32xbf16, #tpu.memory_space<vmem>>, vector<4x32xbf16>
    %cst_14 = arith.constant dense<0.000000e+00> : vector<64x32xf32>
    %36 = tpu.matmul %34, %35, %cst_14 {dimension_numbers = #tpu.dot_dimension_numbers<[1], [0], [0], [1], [0, 0, 1, 1], [], []>} : vector<64x4xbf16>, vector<4x32xbf16>, vector<64x32xf32> -> vector<64x32xf32>
    %37 = arith.addf %11, %36 : vector<64x32xf32>
    %38 = vector.extract_strided_slice %8 {offsets = [0, 4], sizes = [64, 4], strides = [1, 1]} : vector<64x32xf32> to vector<64x4xf32>
    %39 = vector.extract_strided_slice %9 {offsets = [0, 4], sizes = [64, 4], strides = [1, 1]} : vector<64x32xf32> to vector<64x4xf32>
    %40 = vector.extract_strided_slice %10 {offsets = [0, 4], sizes = [64, 4], strides = [1, 1]} : vector<64x32xf32> to vector<64x4xf32>
    %41 = arith.truncf %38 : vector<64x4xf32> to vector<64x4xbf16>
    %42 = tpu.transpose %39, [1, 0] : vector<64x4xf32> -> vector<4x64xf32>
    %43 = arith.truncf %42 : vector<4x64xf32> to vector<4x64xbf16>
    %cst_15 = arith.constant dense<0.000000e+00> : vector<64x64xf32>
    %44 = tpu.matmul %41, %43, %cst_15 {dimension_numbers = #tpu.dot_dimension_numbers<[1], [0], [0], [1], [0, 0, 1, 1], [], []>} : vector<64x4xbf16>, vector<4x64xbf16>, vector<64x64xf32> -> vector<64x64xf32>
    %cst_16 = arith.constant 5.000000e-01 : f32
    %45 = vector.broadcast %cst_16 : f32 to vector<64x64xf32>
    %46 = arith.mulf %44, %45 : vector<64x64xf32>
    %cst_17 = arith.constant dense<0xFF800000> : vector<64xf32>
    %47 = vector.multi_reduction <maximumf>, %46, %cst_17 [1] : vector<64x64xf32> to vector<64xf32>
    %48 = vector.shape_cast %47 : vector<64xf32> to vector<64x1xf32>
    %49 = vector.broadcast %48 : vector<64x1xf32> to vector<64x64xf32>
    %50 = arith.subf %46, %49 : vector<64x64xf32>
    %51 = math.exp %50 : vector<64x64xf32>
    %cst_18 = arith.constant dense<0.000000e+00> : vector<64xf32>
    %52 = vector.multi_reduction <add>, %51, %cst_18 [1] : vector<64x64xf32> to vector<64xf32>
    %53 = vector.shape_cast %52 : vector<64xf32> to vector<64x1xf32>
    %54 = tpu.reciprocal %53 {approx = true} : vector<64x1xf32> -> vector<64x1xf32>
    %55 = vector.broadcast %54 : vector<64x1xf32> to vector<64x64xf32>
    %56 = arith.mulf %51, %55 : vector<64x64xf32>
    %57 = arith.truncf %56 : vector<64x64xf32> to vector<64x64xbf16>
    %58 = arith.truncf %40 : vector<64x4xf32> to vector<64x4xbf16>
    %cst_19 = arith.constant dense<0.000000e+00> : vector<64x4xf32>
    %59 = tpu.matmul %57, %58, %cst_19 {dimension_numbers = #tpu.dot_dimension_numbers<[1], [0], [0], [1], [0, 0, 1, 1], [], []>} : vector<64x64xbf16>, vector<64x4xbf16>, vector<64x4xf32> -> vector<64x4xf32>
    %60 = arith.truncf %59 : vector<64x4xf32> to vector<64x4xbf16>
    %c4 = arith.constant 4 : index
    %c0_20 = arith.constant 0 : index
    %61 = vector.load %arg4[%c4, %c0_20] : memref<32x32xbf16, #tpu.memory_space<vmem>>, vector<4x32xbf16>
    %cst_21 = arith.constant dense<0.000000e+00> : vector<64x32xf32>
    %62 = tpu.matmul %60, %61, %cst_21 {dimension_numbers = #tpu.dot_dimension_numbers<[1], [0], [0], [1], [0, 0, 1, 1], [], []>} : vector<64x4xbf16>, vector<4x32xbf16>, vector<64x32xf32> -> vector<64x32xf32>
    %63 = arith.addf %37, %62 : vector<64x32xf32>
    %64 = vector.extract_strided_slice %8 {offsets = [0, 8], sizes = [64, 4], strides = [1, 1]} : vector<64x32xf32> to vector<64x4xf32>
    %65 = vector.extract_strided_slice %9 {offsets = [0, 8], sizes = [64, 4], strides = [1, 1]} : vector<64x32xf32> to vector<64x4xf32>
    %66 = vector.extract_strided_slice %10 {offsets = [0, 8], sizes = [64, 4], strides = [1, 1]} : vector<64x32xf32> to vector<64x4xf32>
    %67 = arith.truncf %64 : vector<64x4xf32> to vector<64x4xbf16>
    %68 = tpu.transpose %65, [1, 0] : vector<64x4xf32> -> vector<4x64xf32>
    %69 = arith.truncf %68 : vector<4x64xf32> to vector<4x64xbf16>
    %cst_22 = arith.constant dense<0.000000e+00> : vector<64x64xf32>
    %70 = tpu.matmul %67, %69, %cst_22 {dimension_numbers = #tpu.dot_dimension_numbers<[1], [0], [0], [1], [0, 0, 1, 1], [], []>} : vector<64x4xbf16>, vector<4x64xbf16>, vector<64x64xf32> -> vector<64x64xf32>
    %cst_23 = arith.constant 5.000000e-01 : f32
    %71 = vector.broadcast %cst_23 : f32 to vector<64x64xf32>
    %72 = arith.mulf %70, %71 : vector<64x64xf32>
    %cst_24 = arith.constant dense<0xFF800000> : vector<64xf32>
    %73 = vector.multi_reduction <maximumf>, %72, %cst_24 [1] : vector<64x64xf32> to vector<64xf32>
    %74 = vector.shape_cast %73 : vector<64xf32> to vector<64x1xf32>
    %75 = vector.broadcast %74 : vector<64x1xf32> to vector<64x64xf32>
    %76 = arith.subf %72, %75 : vector<64x64xf32>
    %77 = math.exp %76 : vector<64x64xf32>
    %cst_25 = arith.constant dense<0.000000e+00> : vector<64xf32>
    %78 = vector.multi_reduction <add>, %77, %cst_25 [1] : vector<64x64xf32> to vector<64xf32>
    %79 = vector.shape_cast %78 : vector<64xf32> to vector<64x1xf32>
    %80 = tpu.reciprocal %79 {approx = true} : vector<64x1xf32> -> vector<64x1xf32>
    %81 = vector.broadcast %80 : vector<64x1xf32> to vector<64x64xf32>
    %82 = arith.mulf %77, %81 : vector<64x64xf32>
    %83 = arith.truncf %82 : vector<64x64xf32> to vector<64x64xbf16>
    %84 = arith.truncf %66 : vector<64x4xf32> to vector<64x4xbf16>
    %cst_26 = arith.constant dense<0.000000e+00> : vector<64x4xf32>
    %85 = tpu.matmul %83, %84, %cst_26 {dimension_numbers = #tpu.dot_dimension_numbers<[1], [0], [0], [1], [0, 0, 1, 1], [], []>} : vector<64x64xbf16>, vector<64x4xbf16>, vector<64x4xf32> -> vector<64x4xf32>
    %86 = arith.truncf %85 : vector<64x4xf32> to vector<64x4xbf16>
    %c8 = arith.constant 8 : index
    %c0_27 = arith.constant 0 : index
    %87 = vector.load %arg4[%c8, %c0_27] : memref<32x32xbf16, #tpu.memory_space<vmem>>, vector<4x32xbf16>
    %cst_28 = arith.constant dense<0.000000e+00> : vector<64x32xf32>
    %88 = tpu.matmul %86, %87, %cst_28 {dimension_numbers = #tpu.dot_dimension_numbers<[1], [0], [0], [1], [0, 0, 1, 1], [], []>} : vector<64x4xbf16>, vector<4x32xbf16>, vector<64x32xf32> -> vector<64x32xf32>
    %89 = arith.addf %63, %88 : vector<64x32xf32>
    %90 = vector.extract_strided_slice %8 {offsets = [0, 12], sizes = [64, 4], strides = [1, 1]} : vector<64x32xf32> to vector<64x4xf32>
    %91 = vector.extract_strided_slice %9 {offsets = [0, 12], sizes = [64, 4], strides = [1, 1]} : vector<64x32xf32> to vector<64x4xf32>
    %92 = vector.extract_strided_slice %10 {offsets = [0, 12], sizes = [64, 4], strides = [1, 1]} : vector<64x32xf32> to vector<64x4xf32>
    %93 = arith.truncf %90 : vector<64x4xf32> to vector<64x4xbf16>
    %94 = tpu.transpose %91, [1, 0] : vector<64x4xf32> -> vector<4x64xf32>
    %95 = arith.truncf %94 : vector<4x64xf32> to vector<4x64xbf16>
    %cst_29 = arith.constant dense<0.000000e+00> : vector<64x64xf32>
    %96 = tpu.matmul %93, %95, %cst_29 {dimension_numbers = #tpu.dot_dimension_numbers<[1], [0], [0], [1], [0, 0, 1, 1], [], []>} : vector<64x4xbf16>, vector<4x64xbf16>, vector<64x64xf32> -> vector<64x64xf32>
    %cst_30 = arith.constant 5.000000e-01 : f32
    %97 = vector.broadcast %cst_30 : f32 to vector<64x64xf32>
    %98 = arith.mulf %96, %97 : vector<64x64xf32>
    %cst_31 = arith.constant dense<0xFF800000> : vector<64xf32>
    %99 = vector.multi_reduction <maximumf>, %98, %cst_31 [1] : vector<64x64xf32> to vector<64xf32>
    %100 = vector.shape_cast %99 : vector<64xf32> to vector<64x1xf32>
    %101 = vector.broadcast %100 : vector<64x1xf32> to vector<64x64xf32>
    %102 = arith.subf %98, %101 : vector<64x64xf32>
    %103 = math.exp %102 : vector<64x64xf32>
    %cst_32 = arith.constant dense<0.000000e+00> : vector<64xf32>
    %104 = vector.multi_reduction <add>, %103, %cst_32 [1] : vector<64x64xf32> to vector<64xf32>
    %105 = vector.shape_cast %104 : vector<64xf32> to vector<64x1xf32>
    %106 = tpu.reciprocal %105 {approx = true} : vector<64x1xf32> -> vector<64x1xf32>
    %107 = vector.broadcast %106 : vector<64x1xf32> to vector<64x64xf32>
    %108 = arith.mulf %103, %107 : vector<64x64xf32>
    %109 = arith.truncf %108 : vector<64x64xf32> to vector<64x64xbf16>
    %110 = arith.truncf %92 : vector<64x4xf32> to vector<64x4xbf16>
    %cst_33 = arith.constant dense<0.000000e+00> : vector<64x4xf32>
    %111 = tpu.matmul %109, %110, %cst_33 {dimension_numbers = #tpu.dot_dimension_numbers<[1], [0], [0], [1], [0, 0, 1, 1], [], []>} : vector<64x64xbf16>, vector<64x4xbf16>, vector<64x4xf32> -> vector<64x4xf32>
    %112 = arith.truncf %111 : vector<64x4xf32> to vector<64x4xbf16>
    %c12 = arith.constant 12 : index
    %c0_34 = arith.constant 0 : index
    %113 = vector.load %arg4[%c12, %c0_34] : memref<32x32xbf16, #tpu.memory_space<vmem>>, vector<4x32xbf16>
    %cst_35 = arith.constant dense<0.000000e+00> : vector<64x32xf32>
    %114 = tpu.matmul %112, %113, %cst_35 {dimension_numbers = #tpu.dot_dimension_numbers<[1], [0], [0], [1], [0, 0, 1, 1], [], []>} : vector<64x4xbf16>, vector<4x32xbf16>, vector<64x32xf32> -> vector<64x32xf32>
    %115 = arith.addf %89, %114 : vector<64x32xf32>
    %116 = vector.extract_strided_slice %8 {offsets = [0, 16], sizes = [64, 4], strides = [1, 1]} : vector<64x32xf32> to vector<64x4xf32>
    %117 = vector.extract_strided_slice %9 {offsets = [0, 16], sizes = [64, 4], strides = [1, 1]} : vector<64x32xf32> to vector<64x4xf32>
    %118 = vector.extract_strided_slice %10 {offsets = [0, 16], sizes = [64, 4], strides = [1, 1]} : vector<64x32xf32> to vector<64x4xf32>
    %119 = arith.truncf %116 : vector<64x4xf32> to vector<64x4xbf16>
    %120 = tpu.transpose %117, [1, 0] : vector<64x4xf32> -> vector<4x64xf32>
    %121 = arith.truncf %120 : vector<4x64xf32> to vector<4x64xbf16>
    %cst_36 = arith.constant dense<0.000000e+00> : vector<64x64xf32>
    %122 = tpu.matmul %119, %121, %cst_36 {dimension_numbers = #tpu.dot_dimension_numbers<[1], [0], [0], [1], [0, 0, 1, 1], [], []>} : vector<64x4xbf16>, vector<4x64xbf16>, vector<64x64xf32> -> vector<64x64xf32>
    %cst_37 = arith.constant 5.000000e-01 : f32
    %123 = vector.broadcast %cst_37 : f32 to vector<64x64xf32>
    %124 = arith.mulf %122, %123 : vector<64x64xf32>
    %cst_38 = arith.constant dense<0xFF800000> : vector<64xf32>
    %125 = vector.multi_reduction <maximumf>, %124, %cst_38 [1] : vector<64x64xf32> to vector<64xf32>
    %126 = vector.shape_cast %125 : vector<64xf32> to vector<64x1xf32>
    %127 = vector.broadcast %126 : vector<64x1xf32> to vector<64x64xf32>
    %128 = arith.subf %124, %127 : vector<64x64xf32>
    %129 = math.exp %128 : vector<64x64xf32>
    %cst_39 = arith.constant dense<0.000000e+00> : vector<64xf32>
    %130 = vector.multi_reduction <add>, %129, %cst_39 [1] : vector<64x64xf32> to vector<64xf32>
    %131 = vector.shape_cast %130 : vector<64xf32> to vector<64x1xf32>
    %132 = tpu.reciprocal %131 {approx = true} : vector<64x1xf32> -> vector<64x1xf32>
    %133 = vector.broadcast %132 : vector<64x1xf32> to vector<64x64xf32>
    %134 = arith.mulf %129, %133 : vector<64x64xf32>
    %135 = arith.truncf %134 : vector<64x64xf32> to vector<64x64xbf16>
    %136 = arith.truncf %118 : vector<64x4xf32> to vector<64x4xbf16>
    %cst_40 = arith.constant dense<0.000000e+00> : vector<64x4xf32>
    %137 = tpu.matmul %135, %136, %cst_40 {dimension_numbers = #tpu.dot_dimension_numbers<[1], [0], [0], [1], [0, 0, 1, 1], [], []>} : vector<64x64xbf16>, vector<64x4xbf16>, vector<64x4xf32> -> vector<64x4xf32>
    %138 = arith.truncf %137 : vector<64x4xf32> to vector<64x4xbf16>
    %c16 = arith.constant 16 : index
    %c0_41 = arith.constant 0 : index
    %139 = vector.load %arg4[%c16, %c0_41] : memref<32x32xbf16, #tpu.memory_space<vmem>>, vector<4x32xbf16>
    %cst_42 = arith.constant dense<0.000000e+00> : vector<64x32xf32>
    %140 = tpu.matmul %138, %139, %cst_42 {dimension_numbers = #tpu.dot_dimension_numbers<[1], [0], [0], [1], [0, 0, 1, 1], [], []>} : vector<64x4xbf16>, vector<4x32xbf16>, vector<64x32xf32> -> vector<64x32xf32>
    %141 = arith.addf %115, %140 : vector<64x32xf32>
    %142 = vector.extract_strided_slice %8 {offsets = [0, 20], sizes = [64, 4], strides = [1, 1]} : vector<64x32xf32> to vector<64x4xf32>
    %143 = vector.extract_strided_slice %9 {offsets = [0, 20], sizes = [64, 4], strides = [1, 1]} : vector<64x32xf32> to vector<64x4xf32>
    %144 = vector.extract_strided_slice %10 {offsets = [0, 20], sizes = [64, 4], strides = [1, 1]} : vector<64x32xf32> to vector<64x4xf32>
    %145 = arith.truncf %142 : vector<64x4xf32> to vector<64x4xbf16>
    %146 = tpu.transpose %143, [1, 0] : vector<64x4xf32> -> vector<4x64xf32>
    %147 = arith.truncf %146 : vector<4x64xf32> to vector<4x64xbf16>
    %cst_43 = arith.constant dense<0.000000e+00> : vector<64x64xf32>
    %148 = tpu.matmul %145, %147, %cst_43 {dimension_numbers = #tpu.dot_dimension_numbers<[1], [0], [0], [1], [0, 0, 1, 1], [], []>} : vector<64x4xbf16>, vector<4x64xbf16>, vector<64x64xf32> -> vector<64x64xf32>
    %cst_44 = arith.constant 5.000000e-01 : f32
    %149 = vector.broadcast %cst_44 : f32 to vector<64x64xf32>
    %150 = arith.mulf %148, %149 : vector<64x64xf32>
    %cst_45 = arith.constant dense<0xFF800000> : vector<64xf32>
    %151 = vector.multi_reduction <maximumf>, %150, %cst_45 [1] : vector<64x64xf32> to vector<64xf32>
    %152 = vector.shape_cast %151 : vector<64xf32> to vector<64x1xf32>
    %153 = vector.broadcast %152 : vector<64x1xf32> to vector<64x64xf32>
    %154 = arith.subf %150, %153 : vector<64x64xf32>
    %155 = math.exp %154 : vector<64x64xf32>
    %cst_46 = arith.constant dense<0.000000e+00> : vector<64xf32>
    %156 = vector.multi_reduction <add>, %155, %cst_46 [1] : vector<64x64xf32> to vector<64xf32>
    %157 = vector.shape_cast %156 : vector<64xf32> to vector<64x1xf32>
    %158 = tpu.reciprocal %157 {approx = true} : vector<64x1xf32> -> vector<64x1xf32>
    %159 = vector.broadcast %158 : vector<64x1xf32> to vector<64x64xf32>
    %160 = arith.mulf %155, %159 : vector<64x64xf32>
    %161 = arith.truncf %160 : vector<64x64xf32> to vector<64x64xbf16>
    %162 = arith.truncf %144 : vector<64x4xf32> to vector<64x4xbf16>
    %cst_47 = arith.constant dense<0.000000e+00> : vector<64x4xf32>
    %163 = tpu.matmul %161, %162, %cst_47 {dimension_numbers = #tpu.dot_dimension_numbers<[1], [0], [0], [1], [0, 0, 1, 1], [], []>} : vector<64x64xbf16>, vector<64x4xbf16>, vector<64x4xf32> -> vector<64x4xf32>
    %164 = arith.truncf %163 : vector<64x4xf32> to vector<64x4xbf16>
    %c20 = arith.constant 20 : index
    %c0_48 = arith.constant 0 : index
    %165 = vector.load %arg4[%c20, %c0_48] : memref<32x32xbf16, #tpu.memory_space<vmem>>, vector<4x32xbf16>
    %cst_49 = arith.constant dense<0.000000e+00> : vector<64x32xf32>
    %166 = tpu.matmul %164, %165, %cst_49 {dimension_numbers = #tpu.dot_dimension_numbers<[1], [0], [0], [1], [0, 0, 1, 1], [], []>} : vector<64x4xbf16>, vector<4x32xbf16>, vector<64x32xf32> -> vector<64x32xf32>
    %167 = arith.addf %141, %166 : vector<64x32xf32>
    %168 = vector.extract_strided_slice %8 {offsets = [0, 24], sizes = [64, 4], strides = [1, 1]} : vector<64x32xf32> to vector<64x4xf32>
    %169 = vector.extract_strided_slice %9 {offsets = [0, 24], sizes = [64, 4], strides = [1, 1]} : vector<64x32xf32> to vector<64x4xf32>
    %170 = vector.extract_strided_slice %10 {offsets = [0, 24], sizes = [64, 4], strides = [1, 1]} : vector<64x32xf32> to vector<64x4xf32>
    %171 = arith.truncf %168 : vector<64x4xf32> to vector<64x4xbf16>
    %172 = tpu.transpose %169, [1, 0] : vector<64x4xf32> -> vector<4x64xf32>
    %173 = arith.truncf %172 : vector<4x64xf32> to vector<4x64xbf16>
    %cst_50 = arith.constant dense<0.000000e+00> : vector<64x64xf32>
    %174 = tpu.matmul %171, %173, %cst_50 {dimension_numbers = #tpu.dot_dimension_numbers<[1], [0], [0], [1], [0, 0, 1, 1], [], []>} : vector<64x4xbf16>, vector<4x64xbf16>, vector<64x64xf32> -> vector<64x64xf32>
    %cst_51 = arith.constant 5.000000e-01 : f32
    %175 = vector.broadcast %cst_51 : f32 to vector<64x64xf32>
    %176 = arith.mulf %174, %175 : vector<64x64xf32>
    %cst_52 = arith.constant dense<0xFF800000> : vector<64xf32>
    %177 = vector.multi_reduction <maximumf>, %176, %cst_52 [1] : vector<64x64xf32> to vector<64xf32>
    %178 = vector.shape_cast %177 : vector<64xf32> to vector<64x1xf32>
    %179 = vector.broadcast %178 : vector<64x1xf32> to vector<64x64xf32>
    %180 = arith.subf %176, %179 : vector<64x64xf32>
    %181 = math.exp %180 : vector<64x64xf32>
    %cst_53 = arith.constant dense<0.000000e+00> : vector<64xf32>
    %182 = vector.multi_reduction <add>, %181, %cst_53 [1] : vector<64x64xf32> to vector<64xf32>
    %183 = vector.shape_cast %182 : vector<64xf32> to vector<64x1xf32>
    %184 = tpu.reciprocal %183 {approx = true} : vector<64x1xf32> -> vector<64x1xf32>
    %185 = vector.broadcast %184 : vector<64x1xf32> to vector<64x64xf32>
    %186 = arith.mulf %181, %185 : vector<64x64xf32>
    %187 = arith.truncf %186 : vector<64x64xf32> to vector<64x64xbf16>
    %188 = arith.truncf %170 : vector<64x4xf32> to vector<64x4xbf16>
    %cst_54 = arith.constant dense<0.000000e+00> : vector<64x4xf32>
    %189 = tpu.matmul %187, %188, %cst_54 {dimension_numbers = #tpu.dot_dimension_numbers<[1], [0], [0], [1], [0, 0, 1, 1], [], []>} : vector<64x64xbf16>, vector<64x4xbf16>, vector<64x4xf32> -> vector<64x4xf32>
    %190 = arith.truncf %189 : vector<64x4xf32> to vector<64x4xbf16>
    %c24 = arith.constant 24 : index
    %c0_55 = arith.constant 0 : index
    %191 = vector.load %arg4[%c24, %c0_55] : memref<32x32xbf16, #tpu.memory_space<vmem>>, vector<4x32xbf16>
    %cst_56 = arith.constant dense<0.000000e+00> : vector<64x32xf32>
    %192 = tpu.matmul %190, %191, %cst_56 {dimension_numbers = #tpu.dot_dimension_numbers<[1], [0], [0], [1], [0, 0, 1, 1], [], []>} : vector<64x4xbf16>, vector<4x32xbf16>, vector<64x32xf32> -> vector<64x32xf32>
    %193 = arith.addf %167, %192 : vector<64x32xf32>
    %194 = vector.extract_strided_slice %8 {offsets = [0, 28], sizes = [64, 4], strides = [1, 1]} : vector<64x32xf32> to vector<64x4xf32>
    %195 = vector.extract_strided_slice %9 {offsets = [0, 28], sizes = [64, 4], strides = [1, 1]} : vector<64x32xf32> to vector<64x4xf32>
    %196 = vector.extract_strided_slice %10 {offsets = [0, 28], sizes = [64, 4], strides = [1, 1]} : vector<64x32xf32> to vector<64x4xf32>
    %197 = arith.truncf %194 : vector<64x4xf32> to vector<64x4xbf16>
    %198 = tpu.transpose %195, [1, 0] : vector<64x4xf32> -> vector<4x64xf32>
    %199 = arith.truncf %198 : vector<4x64xf32> to vector<4x64xbf16>
    %cst_57 = arith.constant dense<0.000000e+00> : vector<64x64xf32>
    %200 = tpu.matmul %197, %199, %cst_57 {dimension_numbers = #tpu.dot_dimension_numbers<[1], [0], [0], [1], [0, 0, 1, 1], [], []>} : vector<64x4xbf16>, vector<4x64xbf16>, vector<64x64xf32> -> vector<64x64xf32>
    %cst_58 = arith.constant 5.000000e-01 : f32
    %201 = vector.broadcast %cst_58 : f32 to vector<64x64xf32>
    %202 = arith.mulf %200, %201 : vector<64x64xf32>
    %cst_59 = arith.constant dense<0xFF800000> : vector<64xf32>
    %203 = vector.multi_reduction <maximumf>, %202, %cst_59 [1] : vector<64x64xf32> to vector<64xf32>
    %204 = vector.shape_cast %203 : vector<64xf32> to vector<64x1xf32>
    %205 = vector.broadcast %204 : vector<64x1xf32> to vector<64x64xf32>
    %206 = arith.subf %202, %205 : vector<64x64xf32>
    %207 = math.exp %206 : vector<64x64xf32>
    %cst_60 = arith.constant dense<0.000000e+00> : vector<64xf32>
    %208 = vector.multi_reduction <add>, %207, %cst_60 [1] : vector<64x64xf32> to vector<64xf32>
    %209 = vector.shape_cast %208 : vector<64xf32> to vector<64x1xf32>
    %210 = tpu.reciprocal %209 {approx = true} : vector<64x1xf32> -> vector<64x1xf32>
    %211 = vector.broadcast %210 : vector<64x1xf32> to vector<64x64xf32>
    %212 = arith.mulf %207, %211 : vector<64x64xf32>
    %213 = arith.truncf %212 : vector<64x64xf32> to vector<64x64xbf16>
    %214 = arith.truncf %196 : vector<64x4xf32> to vector<64x4xbf16>
    %cst_61 = arith.constant dense<0.000000e+00> : vector<64x4xf32>
    %215 = tpu.matmul %213, %214, %cst_61 {dimension_numbers = #tpu.dot_dimension_numbers<[1], [0], [0], [1], [0, 0, 1, 1], [], []>} : vector<64x64xbf16>, vector<64x4xbf16>, vector<64x4xf32> -> vector<64x4xf32>
    %216 = arith.truncf %215 : vector<64x4xf32> to vector<64x4xbf16>
    %c28 = arith.constant 28 : index
    %c0_62 = arith.constant 0 : index
    %217 = vector.load %arg4[%c28, %c0_62] : memref<32x32xbf16, #tpu.memory_space<vmem>>, vector<4x32xbf16>
    %cst_63 = arith.constant dense<0.000000e+00> : vector<64x32xf32>
    %218 = tpu.matmul %216, %217, %cst_63 {dimension_numbers = #tpu.dot_dimension_numbers<[1], [0], [0], [1], [0, 0, 1, 1], [], []>} : vector<64x4xbf16>, vector<4x32xbf16>, vector<64x32xf32> -> vector<64x32xf32>
    %219 = arith.addf %193, %218 : vector<64x32xf32>
    %220 = arith.addf %1, %219 : vector<64x32xf32>
    %c0_64 = arith.constant 0 : index
    %c0_65 = arith.constant 0 : index
    %221 = vector.load %arg5[%c0_64, %c0_65] : memref<1x32xf32, #tpu.memory_space<vmem>>, vector<1x32xf32>
    %222 = vector.broadcast %221 : vector<1x32xf32> to vector<64x32xf32>
    %223 = arith.addf %220, %222 : vector<64x32xf32>
    %cst_66 = arith.constant dense<0.000000e+00> : vector<64xf32>
    %224 = vector.multi_reduction <add>, %223, %cst_66 [1] : vector<64x32xf32> to vector<64xf32>
    %225 = vector.shape_cast %224 : vector<64xf32> to vector<64x1xf32>
    %cst_67 = arith.constant 3.200000e+01 : f32
    %226 = vector.broadcast %cst_67 : f32 to vector<64x1xf32>
    %227 = arith.divf %225, %226 : vector<64x1xf32>
    %228 = vector.broadcast %227 : vector<64x1xf32> to vector<64x32xf32>
    %229 = arith.subf %223, %228 : vector<64x32xf32>
    %230 = arith.mulf %229, %229 : vector<64x32xf32>
    %cst_68 = arith.constant dense<0.000000e+00> : vector<64xf32>
    %231 = vector.multi_reduction <add>, %230, %cst_68 [1] : vector<64x32xf32> to vector<64xf32>
    %232 = vector.shape_cast %231 : vector<64xf32> to vector<64x1xf32>
    %cst_69 = arith.constant 3.200000e+01 : f32
    %233 = vector.broadcast %cst_69 : f32 to vector<64x1xf32>
    %234 = arith.divf %232, %233 : vector<64x1xf32>
    %235 = vector.broadcast %227 : vector<64x1xf32> to vector<64x32xf32>
    %236 = arith.subf %223, %235 : vector<64x32xf32>
    %cst_70 = arith.constant 9.99999974E-6 : f32
    %237 = vector.broadcast %cst_70 : f32 to vector<64x1xf32>
    %238 = arith.addf %234, %237 : vector<64x1xf32>
    %239 = math.rsqrt %238 : vector<64x1xf32>
    %240 = vector.broadcast %239 : vector<64x1xf32> to vector<64x32xf32>
    %241 = arith.mulf %236, %240 : vector<64x32xf32>
    %c0_71 = arith.constant 0 : index
    %c0_72 = arith.constant 0 : index
    %242 = vector.load %arg6[%c0_71, %c0_72] : memref<1x32xf32, #tpu.memory_space<vmem>>, vector<1x32xf32>
    %243 = vector.broadcast %242 : vector<1x32xf32> to vector<64x32xf32>
    %244 = arith.mulf %241, %243 : vector<64x32xf32>
    %c0_73 = arith.constant 0 : index
    %c0_74 = arith.constant 0 : index
    %245 = vector.load %arg7[%c0_73, %c0_74] : memref<1x32xf32, #tpu.memory_space<vmem>>, vector<1x32xf32>
    %246 = vector.broadcast %245 : vector<1x32xf32> to vector<64x32xf32>
    %247 = arith.addf %244, %246 : vector<64x32xf32>
    %c0_75 = arith.constant 0 : index
    %c0_76 = arith.constant 0 : index
    %c0_77 = arith.constant 0 : index
    %248 = vector.load %arg8[%c0_75, %c0_76, %c0_77] : memref<1x64x32xf32, #tpu.memory_space<vmem>>, vector<1x64x32xf32>
    %249 = vector.shape_cast %248 : vector<1x64x32xf32> to vector<64x32xf32>
    %250 = vector.shape_cast %247 : vector<64x32xf32> to vector<1x64x32xf32>
    tpu.vector_store %arg8[%c0_75, %c0_76, %c0_77], %250 {strides = array<i32>} : memref<1x64x32xf32, #tpu.memory_space<vmem>>, vector<1x64x32xf32>,
    return
  }
  func.func @transform_0(%arg0: i32) -> (i32, i32, i32) {
    %c0_i32 = arith.constant 0 : i32
    %c0_i32_0 = arith.constant 0 : i32
    %c0_i32_1 = arith.constant 0 : i32
    return %arg0, %c0_i32, %c0_i32_0 : i32, i32, i32
  }
  func.func @transform_1(%arg0: i32) -> (i32, i32) {
    %c0_i32 = arith.constant 0 : i32
    %c0_i32_0 = arith.constant 0 : i32
    %c0_i32_1 = arith.constant 0 : i32
    return %c0_i32, %c0_i32_0 : i32, i32
  }
  func.func @transform_2(%arg0: i32) -> (i32, i32) {
    %c0_i32 = arith.constant 0 : i32
    %c0_i32_0 = arith.constant 0 : i32
    %c0_i32_1 = arith.constant 0 : i32
    return %c0_i32, %c0_i32_0 : i32, i32
  }
  func.func @transform_3(%arg0: i32) -> (i32, i32) {
    %c0_i32 = arith.constant 0 : i32
    %c0_i32_0 = arith.constant 0 : i32
    %c0_i32_1 = arith.constant 0 : i32
    return %c0_i32, %c0_i32_0 : i32, i32
  }
  func.func @transform_4(%arg0: i32) -> (i32, i32) {
    %c0_i32 = arith.constant 0 : i32
    %c0_i32_0 = arith.constant 0 : i32
    %c0_i32_1 = arith.constant 0 : i32
    return %c0_i32, %c0_i32_0 : i32, i32
  }
  func.func @transform_5(%arg0: i32) -> (i32, i32) {
    %c0_i32 = arith.constant 0 : i32
    %c0_i32_0 = arith.constant 0 : i32
    %c0_i32_1 = arith.constant 0 : i32
    return %c0_i32, %c0_i32_0 : i32, i32
  }
  func.func @transform_6(%arg0: i32) -> (i32, i32) {
    %c0_i32 = arith.constant 0 : i32
    %c0_i32_0 = arith.constant 0 : i32
    %c0_i32_1 = arith.constant 0 : i32
    return %c0_i32, %c0_i32_0 : i32, i32
  }
  func.func @transform_7(%arg0: i32) -> (i32, i32, i32) {
    %c0_i32 = arith.constant 0 : i32
    %c0_i32_0 = arith.constant 0 : i32
    %c0_i32_1 = arith.constant 0 : i32
    return %arg0, %c0_i32, %c0_i32_0 : i32, i32, i32
  }
}

module attributes {stable_mosaic.version = 11 : i64} {
  func.func @_cross_attn_ln_kernel(%arg0: i32, %arg1: memref<1x64x32xf32, #tpu.memory_space<vmem>>, %arg2: memref<1x64x32xf32, #tpu.memory_space<vmem>>, %arg3: memref<32x96xbf16, #tpu.memory_space<vmem>>, %arg4: memref<1x96xf32, #tpu.memory_space<vmem>>, %arg5: memref<32x32xbf16, #tpu.memory_space<vmem>>, %arg6: memref<1x32xf32, #tpu.memory_space<vmem>>, %arg7: memref<1x32xf32, #tpu.memory_space<vmem>>, %arg8: memref<1x32xf32, #tpu.memory_space<vmem>>, %arg9: memref<1x64x32xf32, #tpu.memory_space<vmem>>) attributes {dimension_semantics = [#tpu.dimension_semantics<parallel>], iteration_bounds = array<i64: 2>, scalar_prefetch = 0 : i64, scratch_operands = 0 : i64, tpu.core_type = #tpu.core_type<tc>, window_params = [{transform_indices = @transform_0, window_bounds = array<i64: 1, 64, 32>}, {transform_indices = @transform_1, window_bounds = array<i64: 1, 64, 32>}, {pipeline_mode = #tpu.pipeline_mode<synchronous>, transform_indices = @transform_2, window_bounds = array<i64: 32, 96>}, {pipeline_mode = #tpu.pipeline_mode<synchronous>, transform_indices = @transform_3, window_bounds = array<i64: 1, 96>}, {pipeline_mode = #tpu.pipeline_mode<synchronous>, transform_indices = @transform_4, window_bounds = array<i64: 32, 32>}, {pipeline_mode = #tpu.pipeline_mode<synchronous>, transform_indices = @transform_5, window_bounds = array<i64: 1, 32>}, {pipeline_mode = #tpu.pipeline_mode<synchronous>, transform_indices = @transform_6, window_bounds = array<i64: 1, 32>}, {pipeline_mode = #tpu.pipeline_mode<synchronous>, transform_indices = @transform_7, window_bounds = array<i64: 1, 32>}, {transform_indices = @transform_8, window_bounds = array<i64: 1, 64, 32>}]} {
    %c0 = arith.constant 0 : index
    %c0_0 = arith.constant 0 : index
    %c0_1 = arith.constant 0 : index
    %0 = vector.load %arg1[%c0, %c0_0, %c0_1] : memref<1x64x32xf32, #tpu.memory_space<vmem>>, vector<1x64x32xf32>
    %1 = vector.shape_cast %0 : vector<1x64x32xf32> to vector<64x32xf32>
    %c0_2 = arith.constant 0 : index
    %c0_3 = arith.constant 0 : index
    %c0_4 = arith.constant 0 : index
    %2 = vector.load %arg2[%c0_2, %c0_3, %c0_4] : memref<1x64x32xf32, #tpu.memory_space<vmem>>, vector<1x64x32xf32>
    %3 = vector.shape_cast %2 : vector<1x64x32xf32> to vector<64x32xf32>
    %c0_5 = arith.constant 0 : index
    %c0_6 = arith.constant 0 : index
    %4 = vector.load %arg4[%c0_5, %c0_6] : memref<1x96xf32, #tpu.memory_space<vmem>>, vector<1x96xf32>
    %5 = arith.truncf %1 : vector<64x32xf32> to vector<64x32xbf16>
    %c0_7 = arith.constant 0 : index
    %c0_8 = arith.constant 0 : index
    %6 = vector.load %arg3[%c0_7, %c0_8] : memref<32x96xbf16, #tpu.memory_space<vmem>>, vector<32x32xbf16>
    %cst = arith.constant dense<0.000000e+00> : vector<64x32xf32>
    %7 = tpu.matmul %5, %6, %cst {dimension_numbers = #tpu.dot_dimension_numbers<[1], [0], [0], [1], [0, 0, 1, 1], [], []>} : vector<64x32xbf16>, vector<32x32xbf16>, vector<64x32xf32> -> vector<64x32xf32>
    %8 = vector.extract_strided_slice %4 {offsets = [0, 0], sizes = [1, 32], strides = [1, 1]} : vector<1x96xf32> to vector<1x32xf32>
    %9 = vector.broadcast %8 : vector<1x32xf32> to vector<64x32xf32>
    %10 = arith.addf %7, %9 : vector<64x32xf32>
    %11 = arith.truncf %3 : vector<64x32xf32> to vector<64x32xbf16>
    %c0_9 = arith.constant 0 : index
    %c32 = arith.constant 32 : index
    %12 = vector.load %arg3[%c0_9, %c32] : memref<32x96xbf16, #tpu.memory_space<vmem>>, vector<32x64xbf16>
    %cst_10 = arith.constant dense<0.000000e+00> : vector<64x64xf32>
    %13 = tpu.matmul %11, %12, %cst_10 {dimension_numbers = #tpu.dot_dimension_numbers<[1], [0], [0], [1], [0, 0, 1, 1], [], []>} : vector<64x32xbf16>, vector<32x64xbf16>, vector<64x64xf32> -> vector<64x64xf32>
    %14 = vector.extract_strided_slice %4 {offsets = [0, 32], sizes = [1, 64], strides = [1, 1]} : vector<1x96xf32> to vector<1x64xf32>
    %15 = vector.broadcast %14 : vector<1x64xf32> to vector<64x64xf32>
    %16 = arith.addf %13, %15 : vector<64x64xf32>
    %17 = vector.extract_strided_slice %16 {offsets = [0, 0], sizes = [64, 32], strides = [1, 1]} : vector<64x64xf32> to vector<64x32xf32>
    %18 = vector.extract_strided_slice %16 {offsets = [0, 32], sizes = [64, 32], strides = [1, 1]} : vector<64x64xf32> to vector<64x32xf32>
    %cst_11 = arith.constant 0.000000e+00 : f32
    %19 = vector.broadcast %cst_11 : f32 to vector<64x32xf32>
    %20 = vector.extract_strided_slice %10 {offsets = [0, 0], sizes = [64, 4], strides = [1, 1]} : vector<64x32xf32> to vector<64x4xf32>
    %21 = vector.extract_strided_slice %17 {offsets = [0, 0], sizes = [64, 4], strides = [1, 1]} : vector<64x32xf32> to vector<64x4xf32>
    %22 = vector.extract_strided_slice %18 {offsets = [0, 0], sizes = [64, 4], strides = [1, 1]} : vector<64x32xf32> to vector<64x4xf32>
    %23 = arith.truncf %20 : vector<64x4xf32> to vector<64x4xbf16>
    %24 = tpu.transpose %21, [1, 0] : vector<64x4xf32> -> vector<4x64xf32>
    %25 = arith.truncf %24 : vector<4x64xf32> to vector<4x64xbf16>
    %cst_12 = arith.constant dense<0.000000e+00> : vector<64x64xf32>
    %26 = tpu.matmul %23, %25, %cst_12 {dimension_numbers = #tpu.dot_dimension_numbers<[1], [0], [0], [1], [0, 0, 1, 1], [], []>} : vector<64x4xbf16>, vector<4x64xbf16>, vector<64x64xf32> -> vector<64x64xf32>
    %cst_13 = arith.constant 5.000000e-01 : f32
    %27 = vector.broadcast %cst_13 : f32 to vector<64x64xf32>
    %28 = arith.mulf %26, %27 : vector<64x64xf32>
    %cst_14 = arith.constant dense<0xFF800000> : vector<64xf32>
    %29 = vector.multi_reduction <maximumf>, %28, %cst_14 [1] : vector<64x64xf32> to vector<64xf32>
    %30 = vector.shape_cast %29 : vector<64xf32> to vector<64x1xf32>
    %31 = vector.broadcast %30 : vector<64x1xf32> to vector<64x64xf32>
    %32 = arith.subf %28, %31 : vector<64x64xf32>
    %33 = math.exp %32 : vector<64x64xf32>
    %cst_15 = arith.constant dense<0.000000e+00> : vector<64xf32>
    %34 = vector.multi_reduction <add>, %33, %cst_15 [1] : vector<64x64xf32> to vector<64xf32>
    %35 = vector.shape_cast %34 : vector<64xf32> to vector<64x1xf32>
    %36 = tpu.reciprocal %35 {approx = true} : vector<64x1xf32> -> vector<64x1xf32>
    %37 = vector.broadcast %36 : vector<64x1xf32> to vector<64x64xf32>
    %38 = arith.mulf %33, %37 : vector<64x64xf32>
    %39 = arith.truncf %38 : vector<64x64xf32> to vector<64x64xbf16>
    %40 = arith.truncf %22 : vector<64x4xf32> to vector<64x4xbf16>
    %cst_16 = arith.constant dense<0.000000e+00> : vector<64x4xf32>
    %41 = tpu.matmul %39, %40, %cst_16 {dimension_numbers = #tpu.dot_dimension_numbers<[1], [0], [0], [1], [0, 0, 1, 1], [], []>} : vector<64x64xbf16>, vector<64x4xbf16>, vector<64x4xf32> -> vector<64x4xf32>
    %42 = arith.truncf %41 : vector<64x4xf32> to vector<64x4xbf16>
    %c0_17 = arith.constant 0 : index
    %c0_18 = arith.constant 0 : index
    %43 = vector.load %arg5[%c0_17, %c0_18] : memref<32x32xbf16, #tpu.memory_space<vmem>>, vector<4x32xbf16>
    %cst_19 = arith.constant dense<0.000000e+00> : vector<64x32xf32>
    %44 = tpu.matmul %42, %43, %cst_19 {dimension_numbers = #tpu.dot_dimension_numbers<[1], [0], [0], [1], [0, 0, 1, 1], [], []>} : vector<64x4xbf16>, vector<4x32xbf16>, vector<64x32xf32> -> vector<64x32xf32>
    %45 = arith.addf %19, %44 : vector<64x32xf32>
    %46 = vector.extract_strided_slice %10 {offsets = [0, 4], sizes = [64, 4], strides = [1, 1]} : vector<64x32xf32> to vector<64x4xf32>
    %47 = vector.extract_strided_slice %17 {offsets = [0, 4], sizes = [64, 4], strides = [1, 1]} : vector<64x32xf32> to vector<64x4xf32>
    %48 = vector.extract_strided_slice %18 {offsets = [0, 4], sizes = [64, 4], strides = [1, 1]} : vector<64x32xf32> to vector<64x4xf32>
    %49 = arith.truncf %46 : vector<64x4xf32> to vector<64x4xbf16>
    %50 = tpu.transpose %47, [1, 0] : vector<64x4xf32> -> vector<4x64xf32>
    %51 = arith.truncf %50 : vector<4x64xf32> to vector<4x64xbf16>
    %cst_20 = arith.constant dense<0.000000e+00> : vector<64x64xf32>
    %52 = tpu.matmul %49, %51, %cst_20 {dimension_numbers = #tpu.dot_dimension_numbers<[1], [0], [0], [1], [0, 0, 1, 1], [], []>} : vector<64x4xbf16>, vector<4x64xbf16>, vector<64x64xf32> -> vector<64x64xf32>
    %cst_21 = arith.constant 5.000000e-01 : f32
    %53 = vector.broadcast %cst_21 : f32 to vector<64x64xf32>
    %54 = arith.mulf %52, %53 : vector<64x64xf32>
    %cst_22 = arith.constant dense<0xFF800000> : vector<64xf32>
    %55 = vector.multi_reduction <maximumf>, %54, %cst_22 [1] : vector<64x64xf32> to vector<64xf32>
    %56 = vector.shape_cast %55 : vector<64xf32> to vector<64x1xf32>
    %57 = vector.broadcast %56 : vector<64x1xf32> to vector<64x64xf32>
    %58 = arith.subf %54, %57 : vector<64x64xf32>
    %59 = math.exp %58 : vector<64x64xf32>
    %cst_23 = arith.constant dense<0.000000e+00> : vector<64xf32>
    %60 = vector.multi_reduction <add>, %59, %cst_23 [1] : vector<64x64xf32> to vector<64xf32>
    %61 = vector.shape_cast %60 : vector<64xf32> to vector<64x1xf32>
    %62 = tpu.reciprocal %61 {approx = true} : vector<64x1xf32> -> vector<64x1xf32>
    %63 = vector.broadcast %62 : vector<64x1xf32> to vector<64x64xf32>
    %64 = arith.mulf %59, %63 : vector<64x64xf32>
    %65 = arith.truncf %64 : vector<64x64xf32> to vector<64x64xbf16>
    %66 = arith.truncf %48 : vector<64x4xf32> to vector<64x4xbf16>
    %cst_24 = arith.constant dense<0.000000e+00> : vector<64x4xf32>
    %67 = tpu.matmul %65, %66, %cst_24 {dimension_numbers = #tpu.dot_dimension_numbers<[1], [0], [0], [1], [0, 0, 1, 1], [], []>} : vector<64x64xbf16>, vector<64x4xbf16>, vector<64x4xf32> -> vector<64x4xf32>
    %68 = arith.truncf %67 : vector<64x4xf32> to vector<64x4xbf16>
    %c4 = arith.constant 4 : index
    %c0_25 = arith.constant 0 : index
    %69 = vector.load %arg5[%c4, %c0_25] : memref<32x32xbf16, #tpu.memory_space<vmem>>, vector<4x32xbf16>
    %cst_26 = arith.constant dense<0.000000e+00> : vector<64x32xf32>
    %70 = tpu.matmul %68, %69, %cst_26 {dimension_numbers = #tpu.dot_dimension_numbers<[1], [0], [0], [1], [0, 0, 1, 1], [], []>} : vector<64x4xbf16>, vector<4x32xbf16>, vector<64x32xf32> -> vector<64x32xf32>
    %71 = arith.addf %45, %70 : vector<64x32xf32>
    %72 = vector.extract_strided_slice %10 {offsets = [0, 8], sizes = [64, 4], strides = [1, 1]} : vector<64x32xf32> to vector<64x4xf32>
    %73 = vector.extract_strided_slice %17 {offsets = [0, 8], sizes = [64, 4], strides = [1, 1]} : vector<64x32xf32> to vector<64x4xf32>
    %74 = vector.extract_strided_slice %18 {offsets = [0, 8], sizes = [64, 4], strides = [1, 1]} : vector<64x32xf32> to vector<64x4xf32>
    %75 = arith.truncf %72 : vector<64x4xf32> to vector<64x4xbf16>
    %76 = tpu.transpose %73, [1, 0] : vector<64x4xf32> -> vector<4x64xf32>
    %77 = arith.truncf %76 : vector<4x64xf32> to vector<4x64xbf16>
    %cst_27 = arith.constant dense<0.000000e+00> : vector<64x64xf32>
    %78 = tpu.matmul %75, %77, %cst_27 {dimension_numbers = #tpu.dot_dimension_numbers<[1], [0], [0], [1], [0, 0, 1, 1], [], []>} : vector<64x4xbf16>, vector<4x64xbf16>, vector<64x64xf32> -> vector<64x64xf32>
    %cst_28 = arith.constant 5.000000e-01 : f32
    %79 = vector.broadcast %cst_28 : f32 to vector<64x64xf32>
    %80 = arith.mulf %78, %79 : vector<64x64xf32>
    %cst_29 = arith.constant dense<0xFF800000> : vector<64xf32>
    %81 = vector.multi_reduction <maximumf>, %80, %cst_29 [1] : vector<64x64xf32> to vector<64xf32>
    %82 = vector.shape_cast %81 : vector<64xf32> to vector<64x1xf32>
    %83 = vector.broadcast %82 : vector<64x1xf32> to vector<64x64xf32>
    %84 = arith.subf %80, %83 : vector<64x64xf32>
    %85 = math.exp %84 : vector<64x64xf32>
    %cst_30 = arith.constant dense<0.000000e+00> : vector<64xf32>
    %86 = vector.multi_reduction <add>, %85, %cst_30 [1] : vector<64x64xf32> to vector<64xf32>
    %87 = vector.shape_cast %86 : vector<64xf32> to vector<64x1xf32>
    %88 = tpu.reciprocal %87 {approx = true} : vector<64x1xf32> -> vector<64x1xf32>
    %89 = vector.broadcast %88 : vector<64x1xf32> to vector<64x64xf32>
    %90 = arith.mulf %85, %89 : vector<64x64xf32>
    %91 = arith.truncf %90 : vector<64x64xf32> to vector<64x64xbf16>
    %92 = arith.truncf %74 : vector<64x4xf32> to vector<64x4xbf16>
    %cst_31 = arith.constant dense<0.000000e+00> : vector<64x4xf32>
    %93 = tpu.matmul %91, %92, %cst_31 {dimension_numbers = #tpu.dot_dimension_numbers<[1], [0], [0], [1], [0, 0, 1, 1], [], []>} : vector<64x64xbf16>, vector<64x4xbf16>, vector<64x4xf32> -> vector<64x4xf32>
    %94 = arith.truncf %93 : vector<64x4xf32> to vector<64x4xbf16>
    %c8 = arith.constant 8 : index
    %c0_32 = arith.constant 0 : index
    %95 = vector.load %arg5[%c8, %c0_32] : memref<32x32xbf16, #tpu.memory_space<vmem>>, vector<4x32xbf16>
    %cst_33 = arith.constant dense<0.000000e+00> : vector<64x32xf32>
    %96 = tpu.matmul %94, %95, %cst_33 {dimension_numbers = #tpu.dot_dimension_numbers<[1], [0], [0], [1], [0, 0, 1, 1], [], []>} : vector<64x4xbf16>, vector<4x32xbf16>, vector<64x32xf32> -> vector<64x32xf32>
    %97 = arith.addf %71, %96 : vector<64x32xf32>
    %98 = vector.extract_strided_slice %10 {offsets = [0, 12], sizes = [64, 4], strides = [1, 1]} : vector<64x32xf32> to vector<64x4xf32>
    %99 = vector.extract_strided_slice %17 {offsets = [0, 12], sizes = [64, 4], strides = [1, 1]} : vector<64x32xf32> to vector<64x4xf32>
    %100 = vector.extract_strided_slice %18 {offsets = [0, 12], sizes = [64, 4], strides = [1, 1]} : vector<64x32xf32> to vector<64x4xf32>
    %101 = arith.truncf %98 : vector<64x4xf32> to vector<64x4xbf16>
    %102 = tpu.transpose %99, [1, 0] : vector<64x4xf32> -> vector<4x64xf32>
    %103 = arith.truncf %102 : vector<4x64xf32> to vector<4x64xbf16>
    %cst_34 = arith.constant dense<0.000000e+00> : vector<64x64xf32>
    %104 = tpu.matmul %101, %103, %cst_34 {dimension_numbers = #tpu.dot_dimension_numbers<[1], [0], [0], [1], [0, 0, 1, 1], [], []>} : vector<64x4xbf16>, vector<4x64xbf16>, vector<64x64xf32> -> vector<64x64xf32>
    %cst_35 = arith.constant 5.000000e-01 : f32
    %105 = vector.broadcast %cst_35 : f32 to vector<64x64xf32>
    %106 = arith.mulf %104, %105 : vector<64x64xf32>
    %cst_36 = arith.constant dense<0xFF800000> : vector<64xf32>
    %107 = vector.multi_reduction <maximumf>, %106, %cst_36 [1] : vector<64x64xf32> to vector<64xf32>
    %108 = vector.shape_cast %107 : vector<64xf32> to vector<64x1xf32>
    %109 = vector.broadcast %108 : vector<64x1xf32> to vector<64x64xf32>
    %110 = arith.subf %106, %109 : vector<64x64xf32>
    %111 = math.exp %110 : vector<64x64xf32>
    %cst_37 = arith.constant dense<0.000000e+00> : vector<64xf32>
    %112 = vector.multi_reduction <add>, %111, %cst_37 [1] : vector<64x64xf32> to vector<64xf32>
    %113 = vector.shape_cast %112 : vector<64xf32> to vector<64x1xf32>
    %114 = tpu.reciprocal %113 {approx = true} : vector<64x1xf32> -> vector<64x1xf32>
    %115 = vector.broadcast %114 : vector<64x1xf32> to vector<64x64xf32>
    %116 = arith.mulf %111, %115 : vector<64x64xf32>
    %117 = arith.truncf %116 : vector<64x64xf32> to vector<64x64xbf16>
    %118 = arith.truncf %100 : vector<64x4xf32> to vector<64x4xbf16>
    %cst_38 = arith.constant dense<0.000000e+00> : vector<64x4xf32>
    %119 = tpu.matmul %117, %118, %cst_38 {dimension_numbers = #tpu.dot_dimension_numbers<[1], [0], [0], [1], [0, 0, 1, 1], [], []>} : vector<64x64xbf16>, vector<64x4xbf16>, vector<64x4xf32> -> vector<64x4xf32>
    %120 = arith.truncf %119 : vector<64x4xf32> to vector<64x4xbf16>
    %c12 = arith.constant 12 : index
    %c0_39 = arith.constant 0 : index
    %121 = vector.load %arg5[%c12, %c0_39] : memref<32x32xbf16, #tpu.memory_space<vmem>>, vector<4x32xbf16>
    %cst_40 = arith.constant dense<0.000000e+00> : vector<64x32xf32>
    %122 = tpu.matmul %120, %121, %cst_40 {dimension_numbers = #tpu.dot_dimension_numbers<[1], [0], [0], [1], [0, 0, 1, 1], [], []>} : vector<64x4xbf16>, vector<4x32xbf16>, vector<64x32xf32> -> vector<64x32xf32>
    %123 = arith.addf %97, %122 : vector<64x32xf32>
    %124 = vector.extract_strided_slice %10 {offsets = [0, 16], sizes = [64, 4], strides = [1, 1]} : vector<64x32xf32> to vector<64x4xf32>
    %125 = vector.extract_strided_slice %17 {offsets = [0, 16], sizes = [64, 4], strides = [1, 1]} : vector<64x32xf32> to vector<64x4xf32>
    %126 = vector.extract_strided_slice %18 {offsets = [0, 16], sizes = [64, 4], strides = [1, 1]} : vector<64x32xf32> to vector<64x4xf32>
    %127 = arith.truncf %124 : vector<64x4xf32> to vector<64x4xbf16>
    %128 = tpu.transpose %125, [1, 0] : vector<64x4xf32> -> vector<4x64xf32>
    %129 = arith.truncf %128 : vector<4x64xf32> to vector<4x64xbf16>
    %cst_41 = arith.constant dense<0.000000e+00> : vector<64x64xf32>
    %130 = tpu.matmul %127, %129, %cst_41 {dimension_numbers = #tpu.dot_dimension_numbers<[1], [0], [0], [1], [0, 0, 1, 1], [], []>} : vector<64x4xbf16>, vector<4x64xbf16>, vector<64x64xf32> -> vector<64x64xf32>
    %cst_42 = arith.constant 5.000000e-01 : f32
    %131 = vector.broadcast %cst_42 : f32 to vector<64x64xf32>
    %132 = arith.mulf %130, %131 : vector<64x64xf32>
    %cst_43 = arith.constant dense<0xFF800000> : vector<64xf32>
    %133 = vector.multi_reduction <maximumf>, %132, %cst_43 [1] : vector<64x64xf32> to vector<64xf32>
    %134 = vector.shape_cast %133 : vector<64xf32> to vector<64x1xf32>
    %135 = vector.broadcast %134 : vector<64x1xf32> to vector<64x64xf32>
    %136 = arith.subf %132, %135 : vector<64x64xf32>
    %137 = math.exp %136 : vector<64x64xf32>
    %cst_44 = arith.constant dense<0.000000e+00> : vector<64xf32>
    %138 = vector.multi_reduction <add>, %137, %cst_44 [1] : vector<64x64xf32> to vector<64xf32>
    %139 = vector.shape_cast %138 : vector<64xf32> to vector<64x1xf32>
    %140 = tpu.reciprocal %139 {approx = true} : vector<64x1xf32> -> vector<64x1xf32>
    %141 = vector.broadcast %140 : vector<64x1xf32> to vector<64x64xf32>
    %142 = arith.mulf %137, %141 : vector<64x64xf32>
    %143 = arith.truncf %142 : vector<64x64xf32> to vector<64x64xbf16>
    %144 = arith.truncf %126 : vector<64x4xf32> to vector<64x4xbf16>
    %cst_45 = arith.constant dense<0.000000e+00> : vector<64x4xf32>
    %145 = tpu.matmul %143, %144, %cst_45 {dimension_numbers = #tpu.dot_dimension_numbers<[1], [0], [0], [1], [0, 0, 1, 1], [], []>} : vector<64x64xbf16>, vector<64x4xbf16>, vector<64x4xf32> -> vector<64x4xf32>
    %146 = arith.truncf %145 : vector<64x4xf32> to vector<64x4xbf16>
    %c16 = arith.constant 16 : index
    %c0_46 = arith.constant 0 : index
    %147 = vector.load %arg5[%c16, %c0_46] : memref<32x32xbf16, #tpu.memory_space<vmem>>, vector<4x32xbf16>
    %cst_47 = arith.constant dense<0.000000e+00> : vector<64x32xf32>
    %148 = tpu.matmul %146, %147, %cst_47 {dimension_numbers = #tpu.dot_dimension_numbers<[1], [0], [0], [1], [0, 0, 1, 1], [], []>} : vector<64x4xbf16>, vector<4x32xbf16>, vector<64x32xf32> -> vector<64x32xf32>
    %149 = arith.addf %123, %148 : vector<64x32xf32>
    %150 = vector.extract_strided_slice %10 {offsets = [0, 20], sizes = [64, 4], strides = [1, 1]} : vector<64x32xf32> to vector<64x4xf32>
    %151 = vector.extract_strided_slice %17 {offsets = [0, 20], sizes = [64, 4], strides = [1, 1]} : vector<64x32xf32> to vector<64x4xf32>
    %152 = vector.extract_strided_slice %18 {offsets = [0, 20], sizes = [64, 4], strides = [1, 1]} : vector<64x32xf32> to vector<64x4xf32>
    %153 = arith.truncf %150 : vector<64x4xf32> to vector<64x4xbf16>
    %154 = tpu.transpose %151, [1, 0] : vector<64x4xf32> -> vector<4x64xf32>
    %155 = arith.truncf %154 : vector<4x64xf32> to vector<4x64xbf16>
    %cst_48 = arith.constant dense<0.000000e+00> : vector<64x64xf32>
    %156 = tpu.matmul %153, %155, %cst_48 {dimension_numbers = #tpu.dot_dimension_numbers<[1], [0], [0], [1], [0, 0, 1, 1], [], []>} : vector<64x4xbf16>, vector<4x64xbf16>, vector<64x64xf32> -> vector<64x64xf32>
    %cst_49 = arith.constant 5.000000e-01 : f32
    %157 = vector.broadcast %cst_49 : f32 to vector<64x64xf32>
    %158 = arith.mulf %156, %157 : vector<64x64xf32>
    %cst_50 = arith.constant dense<0xFF800000> : vector<64xf32>
    %159 = vector.multi_reduction <maximumf>, %158, %cst_50 [1] : vector<64x64xf32> to vector<64xf32>
    %160 = vector.shape_cast %159 : vector<64xf32> to vector<64x1xf32>
    %161 = vector.broadcast %160 : vector<64x1xf32> to vector<64x64xf32>
    %162 = arith.subf %158, %161 : vector<64x64xf32>
    %163 = math.exp %162 : vector<64x64xf32>
    %cst_51 = arith.constant dense<0.000000e+00> : vector<64xf32>
    %164 = vector.multi_reduction <add>, %163, %cst_51 [1] : vector<64x64xf32> to vector<64xf32>
    %165 = vector.shape_cast %164 : vector<64xf32> to vector<64x1xf32>
    %166 = tpu.reciprocal %165 {approx = true} : vector<64x1xf32> -> vector<64x1xf32>
    %167 = vector.broadcast %166 : vector<64x1xf32> to vector<64x64xf32>
    %168 = arith.mulf %163, %167 : vector<64x64xf32>
    %169 = arith.truncf %168 : vector<64x64xf32> to vector<64x64xbf16>
    %170 = arith.truncf %152 : vector<64x4xf32> to vector<64x4xbf16>
    %cst_52 = arith.constant dense<0.000000e+00> : vector<64x4xf32>
    %171 = tpu.matmul %169, %170, %cst_52 {dimension_numbers = #tpu.dot_dimension_numbers<[1], [0], [0], [1], [0, 0, 1, 1], [], []>} : vector<64x64xbf16>, vector<64x4xbf16>, vector<64x4xf32> -> vector<64x4xf32>
    %172 = arith.truncf %171 : vector<64x4xf32> to vector<64x4xbf16>
    %c20 = arith.constant 20 : index
    %c0_53 = arith.constant 0 : index
    %173 = vector.load %arg5[%c20, %c0_53] : memref<32x32xbf16, #tpu.memory_space<vmem>>, vector<4x32xbf16>
    %cst_54 = arith.constant dense<0.000000e+00> : vector<64x32xf32>
    %174 = tpu.matmul %172, %173, %cst_54 {dimension_numbers = #tpu.dot_dimension_numbers<[1], [0], [0], [1], [0, 0, 1, 1], [], []>} : vector<64x4xbf16>, vector<4x32xbf16>, vector<64x32xf32> -> vector<64x32xf32>
    %175 = arith.addf %149, %174 : vector<64x32xf32>
    %176 = vector.extract_strided_slice %10 {offsets = [0, 24], sizes = [64, 4], strides = [1, 1]} : vector<64x32xf32> to vector<64x4xf32>
    %177 = vector.extract_strided_slice %17 {offsets = [0, 24], sizes = [64, 4], strides = [1, 1]} : vector<64x32xf32> to vector<64x4xf32>
    %178 = vector.extract_strided_slice %18 {offsets = [0, 24], sizes = [64, 4], strides = [1, 1]} : vector<64x32xf32> to vector<64x4xf32>
    %179 = arith.truncf %176 : vector<64x4xf32> to vector<64x4xbf16>
    %180 = tpu.transpose %177, [1, 0] : vector<64x4xf32> -> vector<4x64xf32>
    %181 = arith.truncf %180 : vector<4x64xf32> to vector<4x64xbf16>
    %cst_55 = arith.constant dense<0.000000e+00> : vector<64x64xf32>
    %182 = tpu.matmul %179, %181, %cst_55 {dimension_numbers = #tpu.dot_dimension_numbers<[1], [0], [0], [1], [0, 0, 1, 1], [], []>} : vector<64x4xbf16>, vector<4x64xbf16>, vector<64x64xf32> -> vector<64x64xf32>
    %cst_56 = arith.constant 5.000000e-01 : f32
    %183 = vector.broadcast %cst_56 : f32 to vector<64x64xf32>
    %184 = arith.mulf %182, %183 : vector<64x64xf32>
    %cst_57 = arith.constant dense<0xFF800000> : vector<64xf32>
    %185 = vector.multi_reduction <maximumf>, %184, %cst_57 [1] : vector<64x64xf32> to vector<64xf32>
    %186 = vector.shape_cast %185 : vector<64xf32> to vector<64x1xf32>
    %187 = vector.broadcast %186 : vector<64x1xf32> to vector<64x64xf32>
    %188 = arith.subf %184, %187 : vector<64x64xf32>
    %189 = math.exp %188 : vector<64x64xf32>
    %cst_58 = arith.constant dense<0.000000e+00> : vector<64xf32>
    %190 = vector.multi_reduction <add>, %189, %cst_58 [1] : vector<64x64xf32> to vector<64xf32>
    %191 = vector.shape_cast %190 : vector<64xf32> to vector<64x1xf32>
    %192 = tpu.reciprocal %191 {approx = true} : vector<64x1xf32> -> vector<64x1xf32>
    %193 = vector.broadcast %192 : vector<64x1xf32> to vector<64x64xf32>
    %194 = arith.mulf %189, %193 : vector<64x64xf32>
    %195 = arith.truncf %194 : vector<64x64xf32> to vector<64x64xbf16>
    %196 = arith.truncf %178 : vector<64x4xf32> to vector<64x4xbf16>
    %cst_59 = arith.constant dense<0.000000e+00> : vector<64x4xf32>
    %197 = tpu.matmul %195, %196, %cst_59 {dimension_numbers = #tpu.dot_dimension_numbers<[1], [0], [0], [1], [0, 0, 1, 1], [], []>} : vector<64x64xbf16>, vector<64x4xbf16>, vector<64x4xf32> -> vector<64x4xf32>
    %198 = arith.truncf %197 : vector<64x4xf32> to vector<64x4xbf16>
    %c24 = arith.constant 24 : index
    %c0_60 = arith.constant 0 : index
    %199 = vector.load %arg5[%c24, %c0_60] : memref<32x32xbf16, #tpu.memory_space<vmem>>, vector<4x32xbf16>
    %cst_61 = arith.constant dense<0.000000e+00> : vector<64x32xf32>
    %200 = tpu.matmul %198, %199, %cst_61 {dimension_numbers = #tpu.dot_dimension_numbers<[1], [0], [0], [1], [0, 0, 1, 1], [], []>} : vector<64x4xbf16>, vector<4x32xbf16>, vector<64x32xf32> -> vector<64x32xf32>
    %201 = arith.addf %175, %200 : vector<64x32xf32>
    %202 = vector.extract_strided_slice %10 {offsets = [0, 28], sizes = [64, 4], strides = [1, 1]} : vector<64x32xf32> to vector<64x4xf32>
    %203 = vector.extract_strided_slice %17 {offsets = [0, 28], sizes = [64, 4], strides = [1, 1]} : vector<64x32xf32> to vector<64x4xf32>
    %204 = vector.extract_strided_slice %18 {offsets = [0, 28], sizes = [64, 4], strides = [1, 1]} : vector<64x32xf32> to vector<64x4xf32>
    %205 = arith.truncf %202 : vector<64x4xf32> to vector<64x4xbf16>
    %206 = tpu.transpose %203, [1, 0] : vector<64x4xf32> -> vector<4x64xf32>
    %207 = arith.truncf %206 : vector<4x64xf32> to vector<4x64xbf16>
    %cst_62 = arith.constant dense<0.000000e+00> : vector<64x64xf32>
    %208 = tpu.matmul %205, %207, %cst_62 {dimension_numbers = #tpu.dot_dimension_numbers<[1], [0], [0], [1], [0, 0, 1, 1], [], []>} : vector<64x4xbf16>, vector<4x64xbf16>, vector<64x64xf32> -> vector<64x64xf32>
    %cst_63 = arith.constant 5.000000e-01 : f32
    %209 = vector.broadcast %cst_63 : f32 to vector<64x64xf32>
    %210 = arith.mulf %208, %209 : vector<64x64xf32>
    %cst_64 = arith.constant dense<0xFF800000> : vector<64xf32>
    %211 = vector.multi_reduction <maximumf>, %210, %cst_64 [1] : vector<64x64xf32> to vector<64xf32>
    %212 = vector.shape_cast %211 : vector<64xf32> to vector<64x1xf32>
    %213 = vector.broadcast %212 : vector<64x1xf32> to vector<64x64xf32>
    %214 = arith.subf %210, %213 : vector<64x64xf32>
    %215 = math.exp %214 : vector<64x64xf32>
    %cst_65 = arith.constant dense<0.000000e+00> : vector<64xf32>
    %216 = vector.multi_reduction <add>, %215, %cst_65 [1] : vector<64x64xf32> to vector<64xf32>
    %217 = vector.shape_cast %216 : vector<64xf32> to vector<64x1xf32>
    %218 = tpu.reciprocal %217 {approx = true} : vector<64x1xf32> -> vector<64x1xf32>
    %219 = vector.broadcast %218 : vector<64x1xf32> to vector<64x64xf32>
    %220 = arith.mulf %215, %219 : vector<64x64xf32>
    %221 = arith.truncf %220 : vector<64x64xf32> to vector<64x64xbf16>
    %222 = arith.truncf %204 : vector<64x4xf32> to vector<64x4xbf16>
    %cst_66 = arith.constant dense<0.000000e+00> : vector<64x4xf32>
    %223 = tpu.matmul %221, %222, %cst_66 {dimension_numbers = #tpu.dot_dimension_numbers<[1], [0], [0], [1], [0, 0, 1, 1], [], []>} : vector<64x64xbf16>, vector<64x4xbf16>, vector<64x4xf32> -> vector<64x4xf32>
    %224 = arith.truncf %223 : vector<64x4xf32> to vector<64x4xbf16>
    %c28 = arith.constant 28 : index
    %c0_67 = arith.constant 0 : index
    %225 = vector.load %arg5[%c28, %c0_67] : memref<32x32xbf16, #tpu.memory_space<vmem>>, vector<4x32xbf16>
    %cst_68 = arith.constant dense<0.000000e+00> : vector<64x32xf32>
    %226 = tpu.matmul %224, %225, %cst_68 {dimension_numbers = #tpu.dot_dimension_numbers<[1], [0], [0], [1], [0, 0, 1, 1], [], []>} : vector<64x4xbf16>, vector<4x32xbf16>, vector<64x32xf32> -> vector<64x32xf32>
    %227 = arith.addf %201, %226 : vector<64x32xf32>
    %228 = arith.addf %1, %227 : vector<64x32xf32>
    %c0_69 = arith.constant 0 : index
    %c0_70 = arith.constant 0 : index
    %229 = vector.load %arg6[%c0_69, %c0_70] : memref<1x32xf32, #tpu.memory_space<vmem>>, vector<1x32xf32>
    %230 = vector.broadcast %229 : vector<1x32xf32> to vector<64x32xf32>
    %231 = arith.addf %228, %230 : vector<64x32xf32>
    %cst_71 = arith.constant dense<0.000000e+00> : vector<64xf32>
    %232 = vector.multi_reduction <add>, %231, %cst_71 [1] : vector<64x32xf32> to vector<64xf32>
    %233 = vector.shape_cast %232 : vector<64xf32> to vector<64x1xf32>
    %cst_72 = arith.constant 3.200000e+01 : f32
    %234 = vector.broadcast %cst_72 : f32 to vector<64x1xf32>
    %235 = arith.divf %233, %234 : vector<64x1xf32>
    %236 = vector.broadcast %235 : vector<64x1xf32> to vector<64x32xf32>
    %237 = arith.subf %231, %236 : vector<64x32xf32>
    %238 = arith.mulf %237, %237 : vector<64x32xf32>
    %cst_73 = arith.constant dense<0.000000e+00> : vector<64xf32>
    %239 = vector.multi_reduction <add>, %238, %cst_73 [1] : vector<64x32xf32> to vector<64xf32>
    %240 = vector.shape_cast %239 : vector<64xf32> to vector<64x1xf32>
    %cst_74 = arith.constant 3.200000e+01 : f32
    %241 = vector.broadcast %cst_74 : f32 to vector<64x1xf32>
    %242 = arith.divf %240, %241 : vector<64x1xf32>
    %243 = vector.broadcast %235 : vector<64x1xf32> to vector<64x32xf32>
    %244 = arith.subf %231, %243 : vector<64x32xf32>
    %cst_75 = arith.constant 9.99999974E-6 : f32
    %245 = vector.broadcast %cst_75 : f32 to vector<64x1xf32>
    %246 = arith.addf %242, %245 : vector<64x1xf32>
    %247 = math.rsqrt %246 : vector<64x1xf32>
    %248 = vector.broadcast %247 : vector<64x1xf32> to vector<64x32xf32>
    %249 = arith.mulf %244, %248 : vector<64x32xf32>
    %c0_76 = arith.constant 0 : index
    %c0_77 = arith.constant 0 : index
    %250 = vector.load %arg7[%c0_76, %c0_77] : memref<1x32xf32, #tpu.memory_space<vmem>>, vector<1x32xf32>
    %251 = vector.broadcast %250 : vector<1x32xf32> to vector<64x32xf32>
    %252 = arith.mulf %249, %251 : vector<64x32xf32>
    %c0_78 = arith.constant 0 : index
    %c0_79 = arith.constant 0 : index
    %253 = vector.load %arg8[%c0_78, %c0_79] : memref<1x32xf32, #tpu.memory_space<vmem>>, vector<1x32xf32>
    %254 = vector.broadcast %253 : vector<1x32xf32> to vector<64x32xf32>
    %255 = arith.addf %252, %254 : vector<64x32xf32>
    %c0_80 = arith.constant 0 : index
    %c0_81 = arith.constant 0 : index
    %c0_82 = arith.constant 0 : index
    %256 = vector.load %arg9[%c0_80, %c0_81, %c0_82] : memref<1x64x32xf32, #tpu.memory_space<vmem>>, vector<1x64x32xf32>
    %257 = vector.shape_cast %256 : vector<1x64x32xf32> to vector<64x32xf32>
    %258 = vector.shape_cast %255 : vector<64x32xf32> to vector<1x64x32xf32>
    tpu.vector_store %arg9[%c0_80, %c0_81, %c0_82], %258 {strides = array<i32>} : memref<1x64x32xf32, #tpu.memory_space<vmem>>, vector<1x64x32xf32>,
    return
  }
  func.func @transform_0(%arg0: i32) -> (i32, i32, i32) {
    %c0_i32 = arith.constant 0 : i32
    %c0_i32_0 = arith.constant 0 : i32
    %c0_i32_1 = arith.constant 0 : i32
    return %arg0, %c0_i32, %c0_i32_0 : i32, i32, i32
  }
  func.func @transform_1(%arg0: i32) -> (i32, i32, i32) {
    %c0_i32 = arith.constant 0 : i32
    %c0_i32_0 = arith.constant 0 : i32
    %c0_i32_1 = arith.constant 0 : i32
    return %arg0, %c0_i32, %c0_i32_0 : i32, i32, i32
  }
  func.func @transform_2(%arg0: i32) -> (i32, i32) {
    %c0_i32 = arith.constant 0 : i32
    %c0_i32_0 = arith.constant 0 : i32
    %c0_i32_1 = arith.constant 0 : i32
    return %c0_i32, %c0_i32_0 : i32, i32
  }
  func.func @transform_3(%arg0: i32) -> (i32, i32) {
    %c0_i32 = arith.constant 0 : i32
    %c0_i32_0 = arith.constant 0 : i32
    %c0_i32_1 = arith.constant 0 : i32
    return %c0_i32, %c0_i32_0 : i32, i32
  }
  func.func @transform_4(%arg0: i32) -> (i32, i32) {
    %c0_i32 = arith.constant 0 : i32
    %c0_i32_0 = arith.constant 0 : i32
    %c0_i32_1 = arith.constant 0 : i32
    return %c0_i32, %c0_i32_0 : i32, i32
  }
  func.func @transform_5(%arg0: i32) -> (i32, i32) {
    %c0_i32 = arith.constant 0 : i32
    %c0_i32_0 = arith.constant 0 : i32
    %c0_i32_1 = arith.constant 0 : i32
    return %c0_i32, %c0_i32_0 : i32, i32
  }
  func.func @transform_6(%arg0: i32) -> (i32, i32) {
    %c0_i32 = arith.constant 0 : i32
    %c0_i32_0 = arith.constant 0 : i32
    %c0_i32_1 = arith.constant 0 : i32
    return %c0_i32, %c0_i32_0 : i32, i32
  }
  func.func @transform_7(%arg0: i32) -> (i32, i32) {
    %c0_i32 = arith.constant 0 : i32
    %c0_i32_0 = arith.constant 0 : i32
    %c0_i32_1 = arith.constant 0 : i32
    return %c0_i32, %c0_i32_0 : i32, i32
  }
  func.func @transform_8(%arg0: i32) -> (i32, i32, i32) {
    %c0_i32 = arith.constant 0 : i32
    %c0_i32_0 = arith.constant 0 : i32
    %c0_i32_1 = arith.constant 0 : i32
    return %arg0, %c0_i32, %c0_i32_0 : i32, i32, i32
  }
}

module attributes {stable_mosaic.version = 11 : i64} {
  func.func @_conv3x3_kernel(%arg0: i32, %arg1: memref<1x10x10x32xf32, #tpu.memory_space<vmem>>, %arg2: memref<9x32x48xbf16, #tpu.memory_space<vmem>>, %arg3: memref<1x48xf32, #tpu.memory_space<vmem>>, %arg4: memref<1x64x48xf32, #tpu.memory_space<vmem>>) attributes {dimension_semantics = [#tpu.dimension_semantics<parallel>], iteration_bounds = array<i64: 2>, scalar_prefetch = 0 : i64, scratch_operands = 0 : i64, tpu.core_type = #tpu.core_type<tc>, window_params = [{transform_indices = @transform_0, window_bounds = array<i64: 1, 10, 10, 32>}, {pipeline_mode = #tpu.pipeline_mode<synchronous>, transform_indices = @transform_1, window_bounds = array<i64: 9, 32, 48>}, {pipeline_mode = #tpu.pipeline_mode<synchronous>, transform_indices = @transform_2, window_bounds = array<i64: 1, 48>}, {transform_indices = @transform_3, window_bounds = array<i64: 1, 64, 48>}]} {
    %c0 = arith.constant 0 : index
    %c0_0 = arith.constant 0 : index
    %c0_1 = arith.constant 0 : index
    %c0_2 = arith.constant 0 : index
    %0 = vector.load %arg1[%c0, %c0_0, %c0_1, %c0_2] : memref<1x10x10x32xf32, #tpu.memory_space<vmem>>, vector<1x10x10x32xf32>
    %1 = vector.shape_cast %0 : vector<1x10x10x32xf32> to vector<10x10x32xf32>
    %cst = arith.constant 0.000000e+00 : f32
    %2 = vector.broadcast %cst : f32 to vector<64x48xf32>
    %3 = vector.extract_strided_slice %1 {offsets = [0, 0, 0], sizes = [8, 8, 32], strides = [1, 1, 1]} : vector<10x10x32xf32> to vector<8x8x32xf32>
    %4 = vector.shape_cast %3 : vector<8x8x32xf32> to vector<64x32xf32>
    %5 = arith.truncf %4 : vector<64x32xf32> to vector<64x32xbf16>
    %c0_3 = arith.constant 0 : index
    %c0_4 = arith.constant 0 : index
    %c0_5 = arith.constant 0 : index
    %6 = vector.load %arg2[%c0_3, %c0_4, %c0_5] : memref<9x32x48xbf16, #tpu.memory_space<vmem>>, vector<1x32x48xbf16>
    %7 = vector.shape_cast %6 : vector<1x32x48xbf16> to vector<32x48xbf16>
    %cst_6 = arith.constant dense<0.000000e+00> : vector<64x48xf32>
    %8 = tpu.matmul %5, %7, %cst_6 {dimension_numbers = #tpu.dot_dimension_numbers<[1], [0], [0], [1], [0, 0, 1, 1], [], []>} : vector<64x32xbf16>, vector<32x48xbf16>, vector<64x48xf32> -> vector<64x48xf32>
    %9 = arith.addf %2, %8 : vector<64x48xf32>
    %10 = vector.extract_strided_slice %1 {offsets = [0, 1, 0], sizes = [8, 8, 32], strides = [1, 1, 1]} : vector<10x10x32xf32> to vector<8x8x32xf32>
    %11 = vector.shape_cast %10 : vector<8x8x32xf32> to vector<64x32xf32>
    %12 = arith.truncf %11 : vector<64x32xf32> to vector<64x32xbf16>
    %c1 = arith.constant 1 : index
    %c0_7 = arith.constant 0 : index
    %c0_8 = arith.constant 0 : index
    %13 = vector.load %arg2[%c1, %c0_7, %c0_8] : memref<9x32x48xbf16, #tpu.memory_space<vmem>>, vector<1x32x48xbf16>
    %14 = vector.shape_cast %13 : vector<1x32x48xbf16> to vector<32x48xbf16>
    %cst_9 = arith.constant dense<0.000000e+00> : vector<64x48xf32>
    %15 = tpu.matmul %12, %14, %cst_9 {dimension_numbers = #tpu.dot_dimension_numbers<[1], [0], [0], [1], [0, 0, 1, 1], [], []>} : vector<64x32xbf16>, vector<32x48xbf16>, vector<64x48xf32> -> vector<64x48xf32>
    %16 = arith.addf %9, %15 : vector<64x48xf32>
    %17 = vector.extract_strided_slice %1 {offsets = [0, 2, 0], sizes = [8, 8, 32], strides = [1, 1, 1]} : vector<10x10x32xf32> to vector<8x8x32xf32>
    %18 = vector.shape_cast %17 : vector<8x8x32xf32> to vector<64x32xf32>
    %19 = arith.truncf %18 : vector<64x32xf32> to vector<64x32xbf16>
    %c2 = arith.constant 2 : index
    %c0_10 = arith.constant 0 : index
    %c0_11 = arith.constant 0 : index
    %20 = vector.load %arg2[%c2, %c0_10, %c0_11] : memref<9x32x48xbf16, #tpu.memory_space<vmem>>, vector<1x32x48xbf16>
    %21 = vector.shape_cast %20 : vector<1x32x48xbf16> to vector<32x48xbf16>
    %cst_12 = arith.constant dense<0.000000e+00> : vector<64x48xf32>
    %22 = tpu.matmul %19, %21, %cst_12 {dimension_numbers = #tpu.dot_dimension_numbers<[1], [0], [0], [1], [0, 0, 1, 1], [], []>} : vector<64x32xbf16>, vector<32x48xbf16>, vector<64x48xf32> -> vector<64x48xf32>
    %23 = arith.addf %16, %22 : vector<64x48xf32>
    %24 = vector.extract_strided_slice %1 {offsets = [1, 0, 0], sizes = [8, 8, 32], strides = [1, 1, 1]} : vector<10x10x32xf32> to vector<8x8x32xf32>
    %25 = vector.shape_cast %24 : vector<8x8x32xf32> to vector<64x32xf32>
    %26 = arith.truncf %25 : vector<64x32xf32> to vector<64x32xbf16>
    %c3 = arith.constant 3 : index
    %c0_13 = arith.constant 0 : index
    %c0_14 = arith.constant 0 : index
    %27 = vector.load %arg2[%c3, %c0_13, %c0_14] : memref<9x32x48xbf16, #tpu.memory_space<vmem>>, vector<1x32x48xbf16>
    %28 = vector.shape_cast %27 : vector<1x32x48xbf16> to vector<32x48xbf16>
    %cst_15 = arith.constant dense<0.000000e+00> : vector<64x48xf32>
    %29 = tpu.matmul %26, %28, %cst_15 {dimension_numbers = #tpu.dot_dimension_numbers<[1], [0], [0], [1], [0, 0, 1, 1], [], []>} : vector<64x32xbf16>, vector<32x48xbf16>, vector<64x48xf32> -> vector<64x48xf32>
    %30 = arith.addf %23, %29 : vector<64x48xf32>
    %31 = vector.extract_strided_slice %1 {offsets = [1, 1, 0], sizes = [8, 8, 32], strides = [1, 1, 1]} : vector<10x10x32xf32> to vector<8x8x32xf32>
    %32 = vector.shape_cast %31 : vector<8x8x32xf32> to vector<64x32xf32>
    %33 = arith.truncf %32 : vector<64x32xf32> to vector<64x32xbf16>
    %c4 = arith.constant 4 : index
    %c0_16 = arith.constant 0 : index
    %c0_17 = arith.constant 0 : index
    %34 = vector.load %arg2[%c4, %c0_16, %c0_17] : memref<9x32x48xbf16, #tpu.memory_space<vmem>>, vector<1x32x48xbf16>
    %35 = vector.shape_cast %34 : vector<1x32x48xbf16> to vector<32x48xbf16>
    %cst_18 = arith.constant dense<0.000000e+00> : vector<64x48xf32>
    %36 = tpu.matmul %33, %35, %cst_18 {dimension_numbers = #tpu.dot_dimension_numbers<[1], [0], [0], [1], [0, 0, 1, 1], [], []>} : vector<64x32xbf16>, vector<32x48xbf16>, vector<64x48xf32> -> vector<64x48xf32>
    %37 = arith.addf %30, %36 : vector<64x48xf32>
    %38 = vector.extract_strided_slice %1 {offsets = [1, 2, 0], sizes = [8, 8, 32], strides = [1, 1, 1]} : vector<10x10x32xf32> to vector<8x8x32xf32>
    %39 = vector.shape_cast %38 : vector<8x8x32xf32> to vector<64x32xf32>
    %40 = arith.truncf %39 : vector<64x32xf32> to vector<64x32xbf16>
    %c5 = arith.constant 5 : index
    %c0_19 = arith.constant 0 : index
    %c0_20 = arith.constant 0 : index
    %41 = vector.load %arg2[%c5, %c0_19, %c0_20] : memref<9x32x48xbf16, #tpu.memory_space<vmem>>, vector<1x32x48xbf16>
    %42 = vector.shape_cast %41 : vector<1x32x48xbf16> to vector<32x48xbf16>
    %cst_21 = arith.constant dense<0.000000e+00> : vector<64x48xf32>
    %43 = tpu.matmul %40, %42, %cst_21 {dimension_numbers = #tpu.dot_dimension_numbers<[1], [0], [0], [1], [0, 0, 1, 1], [], []>} : vector<64x32xbf16>, vector<32x48xbf16>, vector<64x48xf32> -> vector<64x48xf32>
    %44 = arith.addf %37, %43 : vector<64x48xf32>
    %45 = vector.extract_strided_slice %1 {offsets = [2, 0, 0], sizes = [8, 8, 32], strides = [1, 1, 1]} : vector<10x10x32xf32> to vector<8x8x32xf32>
    %46 = vector.shape_cast %45 : vector<8x8x32xf32> to vector<64x32xf32>
    %47 = arith.truncf %46 : vector<64x32xf32> to vector<64x32xbf16>
    %c6 = arith.constant 6 : index
    %c0_22 = arith.constant 0 : index
    %c0_23 = arith.constant 0 : index
    %48 = vector.load %arg2[%c6, %c0_22, %c0_23] : memref<9x32x48xbf16, #tpu.memory_space<vmem>>, vector<1x32x48xbf16>
    %49 = vector.shape_cast %48 : vector<1x32x48xbf16> to vector<32x48xbf16>
    %cst_24 = arith.constant dense<0.000000e+00> : vector<64x48xf32>
    %50 = tpu.matmul %47, %49, %cst_24 {dimension_numbers = #tpu.dot_dimension_numbers<[1], [0], [0], [1], [0, 0, 1, 1], [], []>} : vector<64x32xbf16>, vector<32x48xbf16>, vector<64x48xf32> -> vector<64x48xf32>
    %51 = arith.addf %44, %50 : vector<64x48xf32>
    %52 = vector.extract_strided_slice %1 {offsets = [2, 1, 0], sizes = [8, 8, 32], strides = [1, 1, 1]} : vector<10x10x32xf32> to vector<8x8x32xf32>
    %53 = vector.shape_cast %52 : vector<8x8x32xf32> to vector<64x32xf32>
    %54 = arith.truncf %53 : vector<64x32xf32> to vector<64x32xbf16>
    %c7 = arith.constant 7 : index
    %c0_25 = arith.constant 0 : index
    %c0_26 = arith.constant 0 : index
    %55 = vector.load %arg2[%c7, %c0_25, %c0_26] : memref<9x32x48xbf16, #tpu.memory_space<vmem>>, vector<1x32x48xbf16>
    %56 = vector.shape_cast %55 : vector<1x32x48xbf16> to vector<32x48xbf16>
    %cst_27 = arith.constant dense<0.000000e+00> : vector<64x48xf32>
    %57 = tpu.matmul %54, %56, %cst_27 {dimension_numbers = #tpu.dot_dimension_numbers<[1], [0], [0], [1], [0, 0, 1, 1], [], []>} : vector<64x32xbf16>, vector<32x48xbf16>, vector<64x48xf32> -> vector<64x48xf32>
    %58 = arith.addf %51, %57 : vector<64x48xf32>
    %59 = vector.extract_strided_slice %1 {offsets = [2, 2, 0], sizes = [8, 8, 32], strides = [1, 1, 1]} : vector<10x10x32xf32> to vector<8x8x32xf32>
    %60 = vector.shape_cast %59 : vector<8x8x32xf32> to vector<64x32xf32>
    %61 = arith.truncf %60 : vector<64x32xf32> to vector<64x32xbf16>
    %c8 = arith.constant 8 : index
    %c0_28 = arith.constant 0 : index
    %c0_29 = arith.constant 0 : index
    %62 = vector.load %arg2[%c8, %c0_28, %c0_29] : memref<9x32x48xbf16, #tpu.memory_space<vmem>>, vector<1x32x48xbf16>
    %63 = vector.shape_cast %62 : vector<1x32x48xbf16> to vector<32x48xbf16>
    %cst_30 = arith.constant dense<0.000000e+00> : vector<64x48xf32>
    %64 = tpu.matmul %61, %63, %cst_30 {dimension_numbers = #tpu.dot_dimension_numbers<[1], [0], [0], [1], [0, 0, 1, 1], [], []>} : vector<64x32xbf16>, vector<32x48xbf16>, vector<64x48xf32> -> vector<64x48xf32>
    %65 = arith.addf %58, %64 : vector<64x48xf32>
    %c0_31 = arith.constant 0 : index
    %c0_32 = arith.constant 0 : index
    %66 = vector.load %arg3[%c0_31, %c0_32] : memref<1x48xf32, #tpu.memory_space<vmem>>, vector<1x48xf32>
    %67 = vector.broadcast %66 : vector<1x48xf32> to vector<64x48xf32>
    %68 = arith.addf %65, %67 : vector<64x48xf32>
    %c0_33 = arith.constant 0 : index
    %c0_34 = arith.constant 0 : index
    %c0_35 = arith.constant 0 : index
    %69 = vector.load %arg4[%c0_33, %c0_34, %c0_35] : memref<1x64x48xf32, #tpu.memory_space<vmem>>, vector<1x64x48xf32>
    %70 = vector.shape_cast %69 : vector<1x64x48xf32> to vector<64x48xf32>
    %71 = vector.shape_cast %68 : vector<64x48xf32> to vector<1x64x48xf32>
    tpu.vector_store %arg4[%c0_33, %c0_34, %c0_35], %71 {strides = array<i32>} : memref<1x64x48xf32, #tpu.memory_space<vmem>>, vector<1x64x48xf32>,
    return
  }
  func.func @transform_0(%arg0: i32) -> (i32, i32, i32, i32) {
    %c0_i32 = arith.constant 0 : i32
    %c0_i32_0 = arith.constant 0 : i32
    %c0_i32_1 = arith.constant 0 : i32
    %c0_i32_2 = arith.constant 0 : i32
    return %arg0, %c0_i32, %c0_i32_0, %c0_i32_1 : i32, i32, i32, i32
  }
  func.func @transform_1(%arg0: i32) -> (i32, i32, i32) {
    %c0_i32 = arith.constant 0 : i32
    %c0_i32_0 = arith.constant 0 : i32
    %c0_i32_1 = arith.constant 0 : i32
    %c0_i32_2 = arith.constant 0 : i32
    return %c0_i32, %c0_i32_0, %c0_i32_1 : i32, i32, i32
  }
  func.func @transform_2(%arg0: i32) -> (i32, i32) {
    %c0_i32 = arith.constant 0 : i32
    %c0_i32_0 = arith.constant 0 : i32
    %c0_i32_1 = arith.constant 0 : i32
    return %c0_i32, %c0_i32_0 : i32, i32
  }
  func.func @transform_3(%arg0: i32) -> (i32, i32, i32) {
    %c0_i32 = arith.constant 0 : i32
    %c0_i32_0 = arith.constant 0 : i32
    %c0_i32_1 = arith.constant 0 : i32
    return %arg0, %c0_i32, %c0_i32_0 : i32, i32, i32
  }
}

</mosaic_0001>

<bundles_post_ra>
// kernel: transformer_full_bottleneck.12
= control target key start
LH: loop header
LB: loop body
LE: loop exit
PB: predicated region body
PF: predicated region fallthrough
CT: control target
= control target key end

     0   :  { %vm74_vm0 = vcmask 261120   ;;  %vm259_vm1 = vcmask 523264   ;;  %s1294_s1 = inlined_call_operand.vmem [shape: bf16[32,64], index: 1, kind: input, shape index: {}]   ;;  %s1295_s0 = inlined_call_operand.vmem [shape: f32[128,32], index: 0, kind: input, shape index: {}]   ;;  %s1296_s3 = inlined_call_operand.vmem [shape: bf16[64,32], index: 3, kind: input, shape index: {}]   ;;  %s1297_s2 = inlined_call_operand.vmem [shape: f32[1,64], index: 2, kind: input, shape index: {}]   ;;  %s1298_s4 = inlined_call_operand.vmem [shape: f32[1,32], index: 4, kind: input, shape index: {}]   ;;  %s1299_s5 = inlined_call_operand.vmem [shape: f32[1,32], index: 5, kind: input, shape index: {}]   ;;  %s1300_s6 = inlined_call_operand.vmem [shape: f32[1,32], index: 6, kind: input, shape index: {}]   ;;  %s1301_s7 = inlined_call_operand.vmem [shape: f32[128,32], index: 7, kind: output, shape index: {}]  }
   0x1   :  { %v764_v0 = vld [vmem:[%s1294_s1 + $0x8] sm:$0xff]   ;;  %v765_v1 = vld [vmem:[%s1294_s1] sm:$0xff]   ;;  %v863_v5 = vld [vmem:[%s1295_s0 + $0x10] sm:$0xff] }
   0x2   :  { %720 = vmatprep.subr.bf16.mxu0 %v764_v0  ;;  %v851_v2 = vld [vmem:[%s1295_s0] sm:$0xff]  ;;  %v856_v3 = vld [vmem:[%s1295_s0 + $0x8] sm:$0xff]  ;;  %v868_v6 = vld [vmem:[%s1295_s0 + $0x18] sm:$0xff] }
   0x3   :  { %721 = vmatpush3.bf16.msra.mxu0 %v764_v0  ;;  %v43_v4 = vpack.c.bf16 %v856_v3, %v851_v2  ;;  %v873_v7 = vld [vmem:[%s1295_s0 + $0x20] sm:$0xff]  ;;  %v878_v8 = vld [vmem:[%s1295_s0 + $0x28] sm:$0xff]  ;;  %v44_v9 = vpack.c.bf16 %v868_v6, %v863_v5  ;;  %v766_v11 = vld [vmem:[%s1296_s3 + $0x18] sm:$0xff]  }
   0x4   :  { %722 = vmatprep.subr.bf16.mxu0 %v765_v1  ;;  %v45_v10 = vpack.c.bf16 %v878_v8, %v873_v7  ;;  %740 = vmatprep.subr.bf16.mxu1 %v766_v11  ;;  %v893_v12 = vld [vmem:[%s1295_s0 + $0x30] sm:$0xff]  ;;  %v898_v13 = vld [vmem:[%s1295_s0 + $0x38] sm:$0xff]  ;;  %v903_v14 = vld [vmem:[%s1295_s0 + $0x40] sm:$0xff] }
   0x5   :  { %724 = vmatprep.mubr.msk.bf16.mxu0 %vm74_vm0, %v43_v4  ;;  %741 = vmatpush3.bf16.msra.mxu1 %v766_v11  ;;  %v908_v15 = vld [vmem:[%s1295_s0 + $0x48] sm:$0xff]  ;;  %v46_v16 = vpack.c.bf16 %v898_v13, %v893_v12  ;;  %v919_v18 = vld [vmem:[%s1295_s0 + $0x50] sm:$0xff]  ;;  %v924_v19 = vld [vmem:[%s1295_s0 + $0x58] sm:$0xff] }
   0x6   :  { %v47_v17 = vpack.c.bf16 %v908_v15, %v903_v14  ;;  %v929_v20 = vld [vmem:[%s1295_s0 + $0x60] sm:$0xff]  ;;  %v934_v21 = vld [vmem:[%s1295_s0 + $0x68] sm:$0xff]  ;;  %v48_v22 = vpack.c.bf16 %v924_v19, %v919_v18  ;;  %v945_v24 = vld [vmem:[%s1295_s0 + $0x70] sm:$0xff] }
   0x7   :  { %723 = vmatpush3.bf16.msra.mxu0 %v765_v1  ;;  %v49_v23 = vpack.c.bf16 %v934_v21, %v929_v20  ;;  %v950_v25 = vld [vmem:[%s1295_s0 + $0x78] sm:$0xff]  ;;  %v767_v27 = vld [vmem:[%s1296_s3 + $0x10] sm:$0xff]   ;;  %v768_v28 = vld [vmem:[%s1296_s3 + $0x8] sm:$0xff]  }
   0x8   :  { %v50_v26 = vpack.c.bf16 %v950_v25, %v945_v24  ;;  %742 = vmatprep.subr.bf16.mxu1 %v767_v27  ;;  %v769_v29 = vld [vmem:[%s1296_s3] sm:$0xff]  }
   0x9   :  { %743 = vmatpush3.bf16.msra.mxu1 %v767_v27  ;;  %v672_v32 = vld [vmem:[%s1297_s2] ss:$0 sm:$0xff] }
   0xa   :  { %725 = vmatmul.mubr.msk.bf16.vlgmr.msra.gmra.mxu0 %vm74_vm0, %v44_v9  ;;  %744 = vmatprep.subr.bf16.mxu1 %v768_v28 }
   0xb   :  { %728 = vmatprep.mubr.msk.bf16.mxu0 %vm74_vm0, %v45_v10 }
   0xd   :  { %745 = vmatpush3.bf16.msra.mxu1 %v768_v28 }
   0xe   :  { %746 = vmatprep.subr.bf16.mxu1 %v769_v29 }
  0x11   :  { %747 = vmatpush3.bf16.msra.mxu1 %v769_v29 }
  0x12   :  { %729 = vmatmul.mubr.msk.bf16.gmra.mxu0 %vm74_vm0, %v46_v16 }
  0x13   :  { %732 = vmatprep.mubr.msk.bf16.mxu0 %vm74_vm0, %v47_v17 }
  0x1a   :  { %733 = vmatmul.mubr.msk.bf16.gmra.mxu0 %vm74_vm0, %v48_v22 }
  0x1b   :  { %736 = vmatprep.mubr.msk.bf16.mxu0 %vm74_vm0, %v49_v23 }
  0x22   :  { %737 = vmatmul.mubr.msk.bf16.gmra.mxu0 %vm74_vm0, %v50_v26 }
  0xca   :  { %v726_v30 = vpop.f32.mrf.mxu0 }
  0xcb   :  { %v142_v36 = vadd.f32 %v726_v30, %v672_v32 }
  0xcc   :  { %v133_v31 = vpop.f32.mrf.mxu0 }
  0xcd   :  { %v134_v34 = vadd.f32 %v672_v32, %v133_v31  ;;  %v198_v43 = vmax.f32 %v142_v36, 0.0 }
  0xce   :  { %v727_v33 = vpop.f32.mrf.mxu0 }
  0xcf   :  { %v145_v35 = vadd.f32 %v727_v33, %v672_v32  ;;  %v196_v41 = vmax.f32 %v134_v34, 0.0 }
  0xd0   :  { %v136_v37 = vpop.f32.mrf.mxu0 }
  0xd1   :  { %v137_v38 = vadd.f32 %v672_v32, %v136_v37  ;;  %v199_v39 = vmax.f32 %v145_v35, 0.0 }
  0xd2   :  { %v730_v40 = vpop.f32.mrf.mxu0 }
  0xd3   :  { %v197_v42 = vmax.f32 %v137_v38, 0.0  ;;  %v213_v46 = vpack.c.bf16 %v199_v39, %v198_v43  ;;  %v158_v50 = vadd.f32 %v730_v40, %v672_v32  ;;  %v978_v40 = vld [vmem:[%s1298_s4] ss:$0 sm:$0xff] }
  0xd4   :  { %v149_v44 = vpop.f32.mrf.mxu0 }
  0xd5   :  { %v212_v45 = vpack.c.bf16 %v197_v42, %v196_v41  ;;  %v150_v48 = vadd.f32 %v672_v32, %v149_v44  ;;  %v202_v57 = vmax.f32 %v158_v50, 0.0 }
  0xd6   :  { %v731_v47 = vpop.f32.mrf.mxu0 }
  0xd7   :  { %v161_v49 = vadd.f32 %v731_v47, %v672_v32  ;;  %748 = vmatprep.mubr.msk.bf16.mxu1 %vm259_vm1, %v212_v45  ;;  %v200_v55 = vmax.f32 %v150_v48, 0.0 }
  0xd8   :  { %v152_v51 = vpop.f32.mrf.mxu0  ;;  %749 = vmatmul.mubr.msk.bf16.vlgmr.msra.gmra.mxu1 %vm259_vm1, %v213_v46 }
  0xd9   :  { %v153_v52 = vadd.f32 %v672_v32, %v152_v51  ;;  %v203_v53 = vmax.f32 %v161_v49, 0.0 }
  0xda   :  { %v734_v54 = vpop.f32.mrf.mxu0 }
  0xdb   :  { %v201_v56 = vmax.f32 %v153_v52, 0.0  ;;  %v215_v60 = vpack.c.bf16 %v203_v53, %v202_v57  ;;  %v174_v0 = vadd.f32 %v734_v54, %v672_v32 }
  0xdc   :  { %v165_v58 = vpop.f32.mrf.mxu0 }
  0xdd   :  { %v214_v59 = vpack.c.bf16 %v201_v56, %v200_v55  ;;  %v166_v62 = vadd.f32 %v672_v32, %v165_v58  ;;  %v206_v17 = vmax.f32 %v174_v0, 0.0 }
  0xde   :  { %v735_v61 = vpop.f32.mrf.mxu0 }
  0xdf   :  { %v177_v63 = vadd.f32 %v735_v61, %v672_v32  ;;  %752 = vmatprep.mubr.msk.bf16.mxu1 %vm259_vm1, %v214_v59  ;;  %v204_v11 = vmax.f32 %v166_v62, 0.0 }
  0xe0   :  { %v168_v1 = vpop.f32.mrf.mxu0  ;;  %753 = vmatmul.mubr.msk.bf16.gmra.mxu1 %vm259_vm1, %v215_v60 }
  0xe1   :  { %v169_v4 = vadd.f32 %v672_v32, %v168_v1  ;;  %v207_v9 = vmax.f32 %v177_v63, 0.0 }
  0xe2   :  { %v738_v10 = vpop.f32.mrf.mxu0 }
  0xe3   :  { %v205_v16 = vmax.f32 %v169_v4, 0.0  ;;  %v217_v26 = vpack.c.bf16 %v207_v9, %v206_v17  ;;  %v190_v30 = vadd.f32 %v738_v10, %v672_v32 }
  0xe4   :  { %v181_v22 = vpop.f32.mrf.mxu0 }
  0xe5   :  { %v216_v23 = vpack.c.bf16 %v205_v16, %v204_v11  ;;  %v182_v28 = vadd.f32 %v672_v32, %v181_v22  ;;  %v210_v37 = vmax.f32 %v190_v30, 0.0 }
  0xe6   :  { %v739_v27 = vpop.f32.mrf.mxu0 }
  0xe7   :  { %v193_v29 = vadd.f32 %v739_v27, %v672_v32  ;;  %756 = vmatprep.mubr.msk.bf16.mxu1 %vm259_vm1, %v216_v23  ;;  %v208_v35 = vmax.f32 %v182_v28, 0.0 }
  0xe8   :  { %v184_v31 = vpop.f32.mrf.mxu0  ;;  %757 = vmatmul.mubr.msk.bf16.gmra.mxu1 %vm259_vm1, %v217_v26 }
  0xe9   :  { %v185_v33 = vadd.f32 %v672_v32, %v184_v31  ;;  %v211_v34 = vmax.f32 %v193_v29, 0.0 }
  0xeb   :  { %v209_v36 = vmax.f32 %v185_v33, 0.0  ;;  %v219_v39 = vpack.c.bf16 %v211_v34, %v210_v37 }
  0xed   :  { %v218_v38 = vpack.c.bf16 %v209_v36, %v208_v35 }
  0xef   :  { %760 = vmatprep.mubr.msk.bf16.mxu1 %vm259_vm1, %v218_v38 }
  0xf0   :  { %761 = vmatmul.mubr.msk.bf16.gmra.mxu1 %vm259_vm1, %v219_v39 }
 0x198   :  { %v750_v41 = vpop.f32.mrf.mxu1 }
 0x199   :  { %v327_v42 = vadd.f32 %v750_v41, %v978_v40 }
 0x19a   :  { %v318_v43 = vpop.f32.mrf.mxu1 }
 0x19b   :  { %v319_v32 = vadd.f32 %v978_v40, %v318_v43  ;;  %v983_v44 = vadd.f32 %v327_v42, %v863_v5 }
 0x19c   :  { %v751_v45 = vpop.f32.mrf.mxu1 }
 0x19d   :  { %v330_v46 = vadd.f32 %v751_v45, %v978_v40  ;;  %v403_v47 = vsel %vm74_vm0, %v983_v44, 0.0  ;;  %v989_v48 = vadd.f32 %v319_v32, %v851_v2 }
 0x19e   :  { %404 = vadd.xlane.f32.xlu1 %v403_v47  ;;  %v321_v49 = vpop.f32.mrf.mxu1 }
 0x19f   :  { %v322_v50 = vadd.f32 %v978_v40, %v321_v49  ;;  %v397_v51 = vsel %vm74_vm0, %v989_v48, 0.0  ;;  %v995_v52 = vadd.f32 %v330_v46, %v868_v6 }
 0x1a0   :  { %v754_v5 = vpop.f32.mrf.mxu1  ;;  %398 = vadd.xlane.f32.xlu0 %v397_v51 }
 0x1a1   :  { %v343_v53 = vadd.f32 %v754_v5, %v978_v40  ;;  %v406_v54 = vsel %vm74_vm0, %v995_v52, 0.0  ;;  %v1001_v2 = vadd.f32 %v322_v50, %v856_v3 }
 0x1a2   :  { %407 = vadd.xlane.f32.xlu1 %v406_v54  ;;  %v334_v55 = vpop.f32.mrf.mxu1 }
 0x1a3   :  { %v335_v56 = vadd.f32 %v978_v40, %v334_v55  ;;  %v400_v57 = vsel %vm74_vm0, %v1001_v2, 0.0  ;;  %v1007_v6 = vadd.f32 %v343_v53, %v893_v12 }
 0x1a4   :  { %v755_v58 = vpop.f32.mrf.mxu1  ;;  %401 = vadd.xlane.f32.xlu0 %v400_v57 }
 0x1a5   :  { %v346_v59 = vadd.f32 %v755_v58, %v978_v40  ;;  %v415_v3 = vsel %vm74_vm0, %v1007_v6, 0.0  ;;  %v1017_v63 = vadd.f32 %v335_v56, %v873_v7 }
 0x1a6   :  { %v337_v60 = vpop.f32.mrf.mxu1 }
 0x1a7   :  { %v338_v61 = vadd.f32 %v978_v40, %v337_v60  ;;  %v1014_v62 = vadd.f32 %v346_v59, %v898_v13  ;;  %v409_v13 = vsel %vm74_vm0, %v1017_v63, 0.0 }
 0x1a8   :  { %v758_v0 = vpop.f32.mrf.mxu1  ;;  %416 = vadd.xlane.f32.xlu0 %v415_v3 }
 0x1a9   :  { %v359_v12 = vadd.f32 %v758_v0, %v978_v40  ;;  %v418_v1 = vsel %vm74_vm0, %v1014_v62, 0.0  ;;  %v1023_v4 = vadd.f32 %v338_v61, %v878_v8 }
 0x1aa   :  { %419 = vadd.xlane.f32.xlu1 %v418_v1  ;;  %v350_v9 = vpop.f32.mrf.mxu1 }
 0x1ab   :  { %v351_v10 = vadd.f32 %v978_v40, %v350_v9  ;;  %v1029_v7 = vadd.f32 %v359_v12, %v919_v18  ;;  %v412_v17 = vsel %vm74_vm0, %v1023_v4, 0.0 }
 0x1ac   :  { %v759_v11 = vpop.f32.mrf.mxu1  ;;  %410 = vadd.xlane.f32.xlu0 %v409_v13 }
 0x1ad   :  { %v362_v16 = vadd.f32 %v759_v11, %v978_v40  ;;  %v427_v23 = vsel %vm74_vm0, %v1029_v7, 0.0  ;;  %v1041_v18 = vadd.f32 %v351_v10, %v903_v14 }
 0x1ae   :  { %v353_v22 = vpop.f32.mrf.mxu1  ;;  %413 = vadd.xlane.f32.xlu1 %v412_v17 }
 0x1af   :  { %v354_v8 = vadd.f32 %v978_v40, %v353_v22  ;;  %v1038_v26 = vadd.f32 %v362_v16, %v924_v19  ;;  %v421_v19 = vsel %vm74_vm0, %v1041_v18, 0.0 }
 0x1b0   :  { %v762_v27 = vpop.f32.mrf.mxu1  ;;  %428 = vadd.xlane.f32.xlu0 %v427_v23 }
 0x1b1   :  { %v430_v28 = vsel %vm74_vm0, %v1038_v26, 0.0  ;;  %v1046_v29 = vadd.f32 %v354_v8, %v908_v15  ;;  %v375_v31 = vadd.f32 %v762_v27, %v978_v40 }
 0x1b2   :  { %v366_v30 = vpop.f32.mrf.mxu1  ;;  %431 = vadd.xlane.f32.xlu1 %v430_v28 }
 0x1b3   :  { %v367_v33 = vadd.f32 %v978_v40, %v366_v30  ;;  %v424_v14 = vsel %vm74_vm0, %v1046_v29, 0.0  ;;  %v1062_v39 = vadd.f32 %v375_v31, %v945_v24 }
 0x1b4   :  { %v763_v34 = vpop.f32.mrf.mxu1  ;;  %422 = vadd.xlane.f32.xlu0 %v421_v19 }
 0x1b5   :  { %v1055_v35 = vadd.f32 %v367_v33, %v929_v20  ;;  %v378_v15 = vadd.f32 %v763_v34, %v978_v40  ;;  %v439_v42 = vsel %vm74_vm0, %v1062_v39, 0.0 }
 0x1b6   :  { %v369_v36 = vpop.f32.mrf.mxu1  ;;  %425 = vadd.xlane.f32.xlu1 %v424_v14 }
 0x1b7   :  { %v370_v37 = vadd.f32 %v978_v40, %v369_v36  ;;  %v433_v38 = vsel %vm74_vm0, %v1055_v35, 0.0  ;;  %v1072_v43 = vadd.f32 %v378_v15, %v950_v25 }
 0x1b8   :  { %434 = vadd.xlane.f32.xlu0 %v433_v38 }
 0x1b9   :  { %v1065_v41 = vadd.f32 %v370_v37, %v934_v21  ;;  %v442_v40 = vsel %vm74_vm0, %v1072_v43, 0.0 }
 0x1bb   :  { %v436_v20 = vsel %vm74_vm0, %v1065_v41, 0.0 }
 0x1bc   :  { %437 = vadd.xlane.f32.xlu1 %v436_v20  ;;  %440 = vadd.xlane.f32.xlu0 %v439_v42 }
 0x1c0   :  { %443 = vadd.xlane.f32.xlu1 %v442_v40 }
 0x227   :  { %v405_v24 = vpop.xlane.xlu1 %404 }
 0x228   :  { %v448_v32 = vmul.f32 0.03125, %v405_v24 }
 0x229   :  { %v399_v45 = vpop.xlane.xlu0 %398 }
 0x22a   :  { %v1077_v21 = vsub.f32 %v983_v44, %v448_v32  ;;  %v446_v46 = vmul.f32 0.03125, %v399_v45 }
 0x22b   :  { %v408_v47 = vpop.xlane.xlu1 %407 }
 0x22c   :  { %v1080_v49 = vsub.f32 %v989_v48, %v446_v46  ;;  %v449_v50 = vmul.f32 0.03125, %v408_v47  ;;  %v480_v25 = vmul.f32 %v1077_v21, %v1077_v21 }
 0x22d   :  { %v402_v51 = vpop.xlane.xlu0 %401 }
 0x22e   :  { %v1085_v5 = vsub.f32 %v995_v52, %v449_v50  ;;  %v447_v53 = vmul.f32 0.03125, %v402_v51  ;;  %v500_v54 = vsel %vm74_vm0, %v480_v25, 0.0  ;;  %v478_v44 = vmul.f32 %v1080_v49, %v1080_v49 }
 0x22f   :  { %501 = vadd.xlane.f32.xlu0 %v500_v54 }
 0x230   :  { %v1091_v55 = vsub.f32 %v1001_v2, %v447_v53  ;;  %v481_v48 = vmul.f32 %v1085_v5, %v1085_v5  ;;  %v494_v52 = vsel %vm74_vm0, %v478_v44, 0.0 }
 0x231   :  { %v417_v56 = vpop.xlane.xlu0 %416 }
 0x232   :  { %v452_v57 = vmul.f32 0.03125, %v417_v56  ;;  %v503_v58 = vsel %vm74_vm0, %v481_v48, 0.0  ;;  %v479_v59 = vmul.f32 %v1091_v55, %v1091_v55 }
 0x233   :  { %v420_v60 = vpop.xlane.xlu1 %419  ;;  %504 = vadd.xlane.f32.xlu1 %v503_v58  ;;  %495 = vadd.xlane.f32.xlu0 %v494_v52 }
 0x234   :  { %v1100_v61 = vsub.f32 %v1007_v6, %v452_v57  ;;  %v453_v2 = vmul.f32 0.03125, %v420_v60  ;;  %v497_v1 = vsel %vm74_vm0, %v479_v59, 0.0 }
 0x235   :  { %v411_v3 = vpop.xlane.xlu0 %410 }
 0x236   :  { %v1103_v0 = vsub.f32 %v1014_v62, %v453_v2  ;;  %v450_v12 = vmul.f32 0.03125, %v411_v3  ;;  %v484_v9 = vmul.f32 %v1100_v61, %v1100_v61 }
 0x237   :  { %v414_v10 = vpop.xlane.xlu1 %413  ;;  %498 = vadd.xlane.f32.xlu1 %v497_v1 }
 0x238   :  { %v1109_v13 = vsub.f32 %v1017_v63, %v450_v12  ;;  %v451_v11 = vmul.f32 0.03125, %v414_v10  ;;  %v512_v6 = vsel %vm74_vm0, %v484_v9, 0.0  ;;  %v485_v16 = vmul.f32 %v1103_v0, %v1103_v0 }
 0x239   :  { %513 = vadd.xlane.f32.xlu0 %v512_v6  ;;  %v429_v62 = vpop.xlane.xlu0 %428 }
 0x23a   :  { %v1115_v17 = vsub.f32 %v1023_v4, %v451_v11  ;;  %v456_v22 = vmul.f32 0.03125, %v429_v62  ;;  %v515_v8 = vsel %vm74_vm0, %v485_v16, 0.0  ;;  %v482_v23 = vmul.f32 %v1109_v13, %v1109_v13 }
 0x23b   :  { %v432_v27 = vpop.xlane.xlu1 %431  ;;  %516 = vadd.xlane.f32.xlu1 %v515_v8 }
 0x23c   :  { %v1121_v63 = vsub.f32 %v1029_v7, %v456_v22  ;;  %v457_v28 = vmul.f32 0.03125, %v432_v27  ;;  %v506_v30 = vsel %vm74_vm0, %v482_v23, 0.0  ;;  %v483_v31 = vmul.f32 %v1115_v17, %v1115_v17 }
 0x23d   :  { %507 = vadd.xlane.f32.xlu0 %v506_v30  ;;  %v423_v4 = vpop.xlane.xlu0 %422 }
 0x23e   :  { %v1127_v33 = vsub.f32 %v1038_v26, %v457_v28  ;;  %v454_v19 = vmul.f32 0.03125, %v423_v4  ;;  %v509_v34 = vsel %vm74_vm0, %v483_v31, 0.0  ;;  %v488_v14 = vmul.f32 %v1121_v63, %v1121_v63 }
 0x23f   :  { %v426_v36 = vpop.xlane.xlu1 %425  ;;  %510 = vadd.xlane.f32.xlu1 %v509_v34 }
 0x240   :  { %v1133_v7 = vsub.f32 %v1041_v18, %v454_v19  ;;  %v455_v15 = vmul.f32 0.03125, %v426_v36  ;;  %v524_v37 = vsel %vm74_vm0, %v488_v14, 0.0  ;;  %v489_v38 = vmul.f32 %v1127_v33, %v1127_v33 }
 0x241   :  { %525 = vadd.xlane.f32.xlu0 %v524_v37  ;;  %v435_v26 = vpop.xlane.xlu0 %434 }
 0x242   :  { %v1139_v20 = vsub.f32 %v1046_v29, %v455_v15  ;;  %v458_v42 = vmul.f32 0.03125, %v435_v26  ;;  %v527_v40 = vsel %vm74_vm0, %v489_v38, 0.0  ;;  %v486_v24 = vmul.f32 %v1133_v7, %v1133_v7  ;;  %v1175_v15 = vld [vmem:[%s1299_s5] ss:$0 sm:$0xff] }
 0x243   :  { %528 = vadd.xlane.f32.xlu1 %v527_v40  ;;  %v1181_v40 = vld [vmem:[%s1300_s6] ss:$0 sm:$0xff] }
 0x244   :  { %v1145_v18 = vsub.f32 %v1055_v35, %v458_v42  ;;  %v518_v32 = vsel %vm74_vm0, %v486_v24, 0.0  ;;  %v487_v45 = vmul.f32 %v1139_v20, %v1139_v20 }
 0x245   :  { %v438_v46 = vpop.xlane.xlu1 %437  ;;  %519 = vadd.xlane.f32.xlu0 %v518_v32  ;;  %v441_v47 = vpop.xlane.xlu0 %440 }
 0x246   :  { %v459_v29 = vmul.f32 0.03125, %v438_v46  ;;  %v460_v50 = vmul.f32 0.03125, %v441_v47  ;;  %v521_v25 = vsel %vm74_vm0, %v487_v45, 0.0  ;;  %v490_v51 = vmul.f32 %v1145_v18, %v1145_v18 }
 0x247   :  { %522 = vadd.xlane.f32.xlu1 %v521_v25 }
 0x248   :  { %v1154_v53 = vsub.f32 %v1065_v41, %v459_v29  ;;  %v1157_v35 = vsub.f32 %v1062_v39, %v460_v50  ;;  %v530_v54 = vsel %vm74_vm0, %v490_v51, 0.0 }
 0x249   :  { %v444_v44 = vpop.xlane.xlu1 %443  ;;  %531 = vadd.xlane.f32.xlu0 %v530_v54 }
 0x24a   :  { %v461_v48 = vmul.f32 0.03125, %v444_v44  ;;  %v491_v56 = vmul.f32 %v1154_v53, %v1154_v53  ;;  %v492_v57 = vmul.f32 %v1157_v35, %v1157_v35 }
 0x24c   :  { %v1165_v58 = vsub.f32 %v1072_v43, %v461_v48  ;;  %v533_v41 = vsel %vm74_vm0, %v491_v56, 0.0  ;;  %v536_v52 = vsel %vm74_vm0, %v492_v57, 0.0 }
 0x24d   :  { %534 = vadd.xlane.f32.xlu1 %v533_v41  ;;  %537 = vadd.xlane.f32.xlu0 %v536_v52 }
 0x24e   :  { %v493_v39 = vmul.f32 %v1165_v58, %v1165_v58 }
 0x250   :  { %v539_v59 = vsel %vm74_vm0, %v493_v39, 0.0 }
 0x251   :  { %540 = vadd.xlane.f32.xlu1 %v539_v59 }
 0x2b8   :  { %v502_v60 = vpop.xlane.xlu0 %501 }
 0x2b9   :  { %v544_v2 = vmul.f32 0.03125, %v502_v60 }
 0x2bb   :  { %v560_v3 = vadd.f32 1e-05, %v544_v2 }
 0x2bc   :  { %v505_v12 = vpop.xlane.xlu1 %504  ;;  %v496_v1 = vpop.xlane.xlu0 %495 }
 0x2bd   :  { %770 = vrsqrt.f32 %v560_v3  ;;  %v545_v43 = vmul.f32 0.03125, %v505_v12  ;;  %v542_v9 = vmul.f32 0.03125, %v496_v1 }
 0x2bf   :  { %v561_v10 = vadd.f32 1e-05, %v545_v43  ;;  %v558_v11 = vadd.f32 1e-05, %v542_v9 }
 0x2c0   :  { %v499_v6 = vpop.xlane.xlu1 %498 }
 0x2c1   :  { %772 = vrsqrt.f32 %v561_v10  ;;  %v543_v16 = vmul.f32 0.03125, %v499_v6 }
 0x2c2   :  { %774 = vrsqrt.f32 %v558_v11  ;;  %v514_v62 = vpop.xlane.xlu0 %513 }
 0x2c3   :  { %v559_v22 = vadd.f32 1e-05, %v543_v16  ;;  %v548_v8 = vmul.f32 0.03125, %v514_v62 }
 0x2c4   :  { %v517_v23 = vpop.xlane.xlu1 %516 }
 0x2c5   :  { %776 = vrsqrt.f32 %v559_v22  ;;  %v564_v27 = vadd.f32 1e-05, %v548_v8  ;;  %v549_v28 = vmul.f32 0.03125, %v517_v23 }
 0x2c6   :  { %v508_v30 = vpop.xlane.xlu0 %507 }
 0x2c7   :  { %778 = vrsqrt.f32 %v564_v27  ;;  %v565_v31 = vadd.f32 1e-05, %v549_v28  ;;  %v546_v4 = vmul.f32 0.03125, %v508_v30 }
 0x2c8   :  { %v511_v19 = vpop.xlane.xlu1 %510 }
 0x2c9   :  { %780 = vrsqrt.f32 %v565_v31  ;;  %v562_v34 = vadd.f32 1e-05, %v546_v4  ;;  %v547_v14 = vmul.f32 0.03125, %v511_v19 }
 0x2ca   :  { %v771_v36 = vpop.eup %770  ;;  %v526_v37 = vpop.xlane.xlu0 %525 }
 0x2cb   :  { %v592_v38 = vmul.f32 %v771_v36, %v1077_v21  ;;  %782 = vrsqrt.f32 %v562_v34  ;;  %v563_v26 = vadd.f32 1e-05, %v547_v14  ;;  %v552_v42 = vmul.f32 0.03125, %v526_v37 }
 0x2cc   :  { %v529_v24 = vpop.xlane.xlu1 %528 }
 0x2cd   :  { %v615_v32 = vmul.f32 %v1175_v15, %v592_v38  ;;  %784 = vrsqrt.f32 %v563_v26  ;;  %v568_v45 = vadd.f32 1e-05, %v552_v42  ;;  %v553_v46 = vmul.f32 0.03125, %v529_v24 }
 0x2ce   :  { %v773_v47 = vpop.eup %772  ;;  %v520_v29 = vpop.xlane.xlu0 %519 }
 0x2cf   :  { %v775_v50 = vpop.eup %774  ;;  %v638_v25 = vadd.f32 %v1181_v40, %v615_v32  ;;  %v593_v21 = vmul.f32 %v773_v47, %v1085_v5  ;;  %786 = vrsqrt.f32 %v568_v45  ;;  %v569_v51 = vadd.f32 1e-05, %v553_v46 }
 0x2d0   :  { %v590_v54 = vmul.f32 %v775_v50, %v1080_v49  ;;  %v550_v44 = vmul.f32 0.03125, %v520_v29  ;;  %v523_v48 = vpop.xlane.xlu1 %522 }
 0x2d1   :  { %654 = vst.msk [vmem:[%s1301_s7 + $0x10] sm:$0xff] %vm74_vm0, %v638_v25  ;;  %v616_v56 = vmul.f32 %v1175_v15, %v593_v21  ;;  %788 = vrsqrt.f32 %v569_v51  ;;  %v551_v57 = vmul.f32 0.03125, %v523_v48 }
 0x2d2   :  { %v777_v41 = vpop.eup %776  ;;  %v613_v52 = vmul.f32 %v1175_v15, %v590_v54  ;;  %v566_v39 = vadd.f32 1e-05, %v550_v44  ;;  %v532_v5 = vpop.xlane.xlu0 %531 }
 0x2d3   :  { %v639_v59 = vadd.f32 %v1181_v40, %v616_v56  ;;  %v591_v49 = vmul.f32 %v777_v41, %v1091_v55  ;;  %v567_v60 = vadd.f32 1e-05, %v551_v57  ;;  %v554_v2 = vmul.f32 0.03125, %v532_v5 }
 0x2d4   :  { %v779_v3 = vpop.eup %778  ;;  %v636_v12 = vadd.f32 %v1181_v40, %v613_v52  ;;  %790 = vrsqrt.f32 %v566_v39 }
 0x2d5   :  { %655 = vst.msk [vmem:[%s1301_s7 + $0x18] sm:$0xff] %vm74_vm0, %v639_v59  ;;  %v614_v1 = vmul.f32 %v1175_v15, %v591_v49  ;;  %v596_v43 = vmul.f32 %v779_v3, %v1100_v61  ;;  %792 = vrsqrt.f32 %v567_v60  ;;  %v570_v9 = vadd.f32 1e-05, %v554_v2 }
 0x2d6   :  { %v781_v10 = vpop.eup %780  ;;  %652 = vst.msk [vmem:[%s1301_s7] sm:$0xff] %vm74_vm0, %v636_v12  ;;  %v535_v55 = vpop.xlane.xlu1 %534 }
 0x2d7   :  { %v538_v11 = vpop.xlane.xlu0 %537  ;;  %v637_v6 = vadd.f32 %v1181_v40, %v614_v1  ;;  %v619_v16 = vmul.f32 %v1175_v15, %v596_v43  ;;  %v597_v62 = vmul.f32 %v781_v10, %v1103_v0  ;;  %794 = vrsqrt.f32 %v570_v9 }
 0x2d8   :  { %v783_v22 = vpop.eup %782  ;;  %v555_v8 = vmul.f32 0.03125, %v535_v55  ;;  %v556_v61 = vmul.f32 0.03125, %v538_v11 }
 0x2d9   :  { %653 = vst.msk [vmem:[%s1301_s7 + $0x8] sm:$0xff] %vm74_vm0, %v637_v6  ;;  %v642_v23 = vadd.f32 %v1181_v40, %v619_v16  ;;  %v620_v27 = vmul.f32 %v1175_v15, %v597_v62  ;;  %v594_v28 = vmul.f32 %v783_v22, %v1109_v13 }
 0x2da   :  { %v785_v30 = vpop.eup %784  ;;  %v571_v31 = vadd.f32 1e-05, %v555_v8  ;;  %v572_v4 = vadd.f32 1e-05, %v556_v61  ;;  %v541_v19 = vpop.xlane.xlu1 %540 }
 0x2db   :  { %658 = vst.msk [vmem:[%s1301_s7 + $0x30] sm:$0xff] %vm74_vm0, %v642_v23  ;;  %v643_v0 = vadd.f32 %v1181_v40, %v620_v27  ;;  %v617_v34 = vmul.f32 %v1175_v15, %v594_v28  ;;  %v595_v14 = vmul.f32 %v785_v30, %v1115_v17  ;;  %v557_v36 = vmul.f32 0.03125, %v541_v19 }
 0x2dc   :  { %v787_v37 = vpop.eup %786  ;;  %796 = vrsqrt.f32 %v571_v31 }
 0x2dd   :  { %659 = vst.msk [vmem:[%s1301_s7 + $0x38] sm:$0xff] %vm74_vm0, %v643_v0  ;;  %v640_v13 = vadd.f32 %v1181_v40, %v617_v34  ;;  %v618_v38 = vmul.f32 %v1175_v15, %v595_v14  ;;  %v600_v26 = vmul.f32 %v787_v37, %v1121_v63  ;;  %798 = vrsqrt.f32 %v572_v4 }
 0x2de   :  { %v789_v42 = vpop.eup %788  ;;  %v573_v24 = vadd.f32 1e-05, %v557_v36 }
 0x2df   :  { %656 = vst.msk [vmem:[%s1301_s7 + $0x20] sm:$0xff] %vm74_vm0, %v640_v13  ;;  %v641_v17 = vadd.f32 %v1181_v40, %v618_v38  ;;  %v623_v32 = vmul.f32 %v1175_v15, %v600_v26  ;;  %v601_v45 = vmul.f32 %v789_v42, %v1127_v33 }
 0x2e0   :  { %800 = vrsqrt.f32 %v573_v24 }
 0x2e1   :  { %v791_v46 = vpop.eup %790  ;;  %657 = vst.msk [vmem:[%s1301_s7 + $0x28] sm:$0xff] %vm74_vm0, %v641_v17  ;;  %v646_v63 = vadd.f32 %v1181_v40, %v623_v32  ;;  %v624_v47 = vmul.f32 %v1175_v15, %v601_v45 }
 0x2e2   :  { %v793_v29 = vpop.eup %792  ;;  %v598_v50 = vmul.f32 %v791_v46, %v1133_v7 }
 0x2e3   :  { %662 = vst.msk [vmem:[%s1301_s7 + $0x50] sm:$0xff] %vm74_vm0, %v646_v63  ;;  %v647_v33 = vadd.f32 %v1181_v40, %v624_v47  ;;  %v599_v25 = vmul.f32 %v793_v29, %v1139_v20 }
 0x2e4   :  { %v795_v21 = vpop.eup %794  ;;  %v621_v51 = vmul.f32 %v1175_v15, %v598_v50 }
 0x2e5   :  { %663 = vst.msk [vmem:[%s1301_s7 + $0x58] sm:$0xff] %vm74_vm0, %v647_v33  ;;  %v622_v54 = vmul.f32 %v1175_v15, %v599_v25  ;;  %v602_v7 = vmul.f32 %v795_v21, %v1145_v18 }
 0x2e6   :  { %v644_v44 = vadd.f32 %v1181_v40, %v621_v51 }
 0x2e7   :  { %v645_v48 = vadd.f32 %v1181_v40, %v622_v54  ;;  %v625_v56 = vmul.f32 %v1175_v15, %v602_v7 }
 0x2e8   :  { %660 = vst.msk [vmem:[%s1301_s7 + $0x40] sm:$0xff] %vm74_vm0, %v644_v44 }
 0x2e9   :  { %v797_v20 = vpop.eup %796  ;;  %661 = vst.msk [vmem:[%s1301_s7 + $0x48] sm:$0xff] %vm74_vm0, %v645_v48  ;;  %v648_v57 = vadd.f32 %v1181_v40, %v625_v56 }
 0x2ea   :  { %v799_v18 = vpop.eup %798  ;;  %v603_v41 = vmul.f32 %v797_v20, %v1154_v53 }
 0x2eb   :  { %664 = vst.msk [vmem:[%s1301_s7 + $0x60] sm:$0xff] %vm74_vm0, %v648_v57  ;;  %v604_v52 = vmul.f32 %v799_v18, %v1157_v35 }
 0x2ec   :  { %v626_v39 = vmul.f32 %v1175_v15, %v603_v41 }
 0x2ed   :  { %v801_v5 = vpop.eup %800  ;;  %v627_v59 = vmul.f32 %v1175_v15, %v604_v52 }
 0x2ee   :  { %v649_v49 = vadd.f32 %v1181_v40, %v626_v39  ;;  %v605_v60 = vmul.f32 %v801_v5, %v1165_v58 }
 0x2ef   :  { %v650_v2 = vadd.f32 %v1181_v40, %v627_v59 }
 0x2f0   :  { %665 = vst.msk [vmem:[%s1301_s7 + $0x68] sm:$0xff] %vm74_vm0, %v649_v49  ;;  %v628_v53 = vmul.f32 %v1175_v15, %v605_v60 }
 0x2f1   :  { %666 = vst.msk [vmem:[%s1301_s7 + $0x70] sm:$0xff] %vm74_vm0, %v650_v2 }
 0x2f2   :  { %v651_v35 = vadd.f32 %v1181_v40, %v628_v53 }
 0x2f4   :  { %667 = vst.msk [vmem:[%s1301_s7 + $0x78] sm:$0xff] %vm74_vm0, %v651_v35 }

// kernel: transformer_full_bottleneck.21
= control target key start
LH: loop header
LB: loop body
LE: loop exit
PB: predicated region body
PF: predicated region fallthrough
CT: control target
= control target key end

     0   :  { %8 = vsyncpa [#allocation3], 0  ;;  %s2160_s0 = inlined_call_operand.vmem [shape: f32[2,10,10,32], index: 0, kind: input, shape index: {}]   ;;  %s2161_s1 = inlined_call_operand.vmem [shape: bf16[9,32,48], index: 1, kind: input, shape index: {}]   ;;  %s2162_s2 = inlined_call_operand.vmem [shape: f32[1,48], index: 2, kind: input, shape index: {}]   ;;  %s2163_s3 = inlined_call_operand.hbm [shape: f32[2,64,48], index: 3, kind: output, shape index: {}]  }
   0x1   :  { %10 = vsyncpa [#allocation3 + $0x1], 0  ;;  %s1704_s12 = smov 0   ;;  %s1706_s13 = smov 0  }
   0x2   :  { %s1708_s14 = smov 0   ;;  %s1710_s15 = smov 0  }
   0x3 LB: > { %s1725_s16 = sadd.s32 4294967295, %s1679_s15   ;;  %s1294_s17 = sadd.s32 4294967294, %s1679_s15   ;;  %s1679_s15 = sphi %s1710_s15, %s2169_s15   ;;  %s1675_s14 = sphi %s1708_s14, %s2168_s14   ;;  %s1671_s13 = sphi %s1706_s13, %s2167_s13   ;;  %s1667_s12 = sphi %s1704_s12, %s2166_s12  }
   0x4   : > { %s1729_s18 = sadd.s32 1, %s1679_s15   ;;  %s91_s19 = sadd.s32 1, %s1675_s14 }
   0x5   : > { %s88_s20 = ssub.s32 %s1679_s15, %s1729_s18  ;;  %p101_p0 = scmp.ne.s32.totalorder %s1675_s14, %s1671_s13 }
   0x6   : > { %p89_p1 = scmp.eq.s32.totalorder %s88_s20, 0  ;;  %p102_p2 = scmp.eq.s32.totalorder %s1725_s16, 1 }
   0x7   : > { %p107_p3 = scmp.ne.s32.totalorder %s1671_s13, %s1667_s12  ;;  %p108_p4 = scmp.eq.s32.totalorder %s1294_s17, 1 }
   0x8   : > { %s1740_s21 = scalar_select %p89_p1, %s1675_s14, %s91_s19  }
   0x9   : > { %p1742_p5 = por %p102_p2, %p101_p0  ;;  %p1746_p6 = por %p108_p4, %p107_p3 }
   0xa   : > { %p1297_p7 = scmp.ge.s32.totalorder %s1679_s15, 1  ;;  %p140_p8 = scmp.lt.s32.totalorder %s1679_s15, 3 }
   0xc   : > { %p141_p9 = pnand %p1297_p7, %p140_p8 }
   0xd   : > { %p164_p10 = scmp.lt.s32.totalorder (!%p141_p9), %s1725_s16, 1  ;;  %s161_s29 = sand.u32 (!%p141_p9), 1, %s1671_s13  }
   0xe   : > { %144 = sbr.rel (%p141_p9) target bundleno = 320 (0x140), region = 32  ;;  %s1298_s30 = sshll.u32 (!%p141_p9), %s161_s29, 6 }
   0xf   : > { %s2088_s6 = scalar_lea.vmem (!%p141_p9), [#allocation2], %s1298_s30  ;;  %s1392_s7 = sshll.u32 (!%p141_p9), %s1725_s16, 10 }
  0x10   : > { %s1232_s8 = sshll.u32 (!%p141_p9), %s2088_s6, 4  ;;  %s2110_s11 = scalar_lea.hbm (!%p141_p9), %s2163_s3, %s1392_s7  ;;  %s2112_s8 = int_to_ptr.vmem [resolvable:$true] %s1232_s8 }
  0x11   : > { %s1619_s17 = scalar_lea.vmem (!%p141_p9), %s2112_s8, 1024  ;;  %s1681_s19 = smov (!%p141_p9), [#allocation2]  }
  0x12   : > { %p1620_p11 = scmp.ne.s32.totalorder (!%p141_p9), %s2112_s8, %s1619_s17  ;;  %s1623_s20 = sshll.u32 (!%p141_p9), %s1681_s19, 4  ;;  %s1624_s20 = int_to_ptr.vmem [resolvable:$false] %s1623_s20 }
  0x13   : > { %v1601_v0 = vld [vmem:[%s2161_s1 + $0x18] sm:$0xff]   ;;  %v1602_v1 = vld [vmem:[%s2161_s1 + $0x10] sm:$0xff]   ;;  %s165_s28 = scalar_select %p164_p10, %s1725_s16, 1  ;;  %v1763_v2 = vld [vmem:[%s2161_s1 + $0x8] sm:$0xff]   ;;  %vm214_vm0 = vcmask 1046528   ;;  %vm268_vm1 = vcmask 261120  }
  0x14   : > { %1555 = vmatprep.subr.bf16.mxu1 %v1601_v0  ;;  %1447 = vmatprep.subr.bf16.mxu0 %v1601_v0  ;;  %v1768_v3 = vld [vmem:[%s2161_s1 + $0x28] sm:$0xff]   ;;  %vm435_vm2 = vcmask 1045504   ;;  %v1606_v51 = vld [vmem:[%s2161_s1 + $0x20] sm:$0xff]   ;;  %vm1209_vm3 = vcmask 392192   ;;  %s2120_s16 = scalar_lea.sflag [#allocation3], %s161_s29  ;;  %p1621_p12 = pnand %p1620_p11, %p1742_p5 }
  0x15   : > { %1557 = vmatpush3.bf16.msra.mxu1 %v1601_v0  ;;  %1448 = vmatpush3.bf16.msra.mxu0 %v1601_v0  ;;  %s1559_s4 = smul.u32 160, %s165_s28  ;;  %v1605_v58 = vld [vmem:[%s2161_s1] sm:$0xff]   ;;  %v1608_v0 = vld [vmem:[%s2161_s1 + $0x48] sm:$0xff]   ;;  %s1625_s24 = scalar_lea.vmem %s1624_s20, 2048 }
  0x16   : > { %1556 = vmatprep.subr.bf16.mxu1 %v1602_v1  ;;  %1449 = vmatprep.subr.bf16.mxu0 %v1602_v1  ;;  %p1622_p13 = pneg %p1621_p12  ;;  %p1626_p0 = scmp.lt.s32.totalorder %s2112_s8, %s1624_s20 }
  0x17   : > { %s1773_s9 = scalar_lea.vmem %s2160_s0, %s1559_s4  ;;  %p1627_p1 = scmp.lt.s32.totalorder %s1625_s24, %s1619_s17 }
  0x18   : > { %v1776_v4 = vld [vmem:[%s1773_s9] sm:$0xff]  ;;  %v1779_v5 = vld [vmem:[%s1773_s9 + $0x8] sm:$0x3]  ;;  %v1782_v6 = vld [vmem:[%s1773_s9 + $0x10] sm:$0xff] }
  0x19   : > { %1558 = vmatpush3.bf16.msra.mxu1 %v1602_v1  ;;  %1450 = vmatpush3.bf16.msra.mxu0 %v1602_v1  ;;  %v1785_v7 = vld [vmem:[%s1773_s9 + $0x18] sm:$0x3]  ;;  %v1788_v8 = vld [vmem:[%s1773_s9 + $0x20] sm:$0xff]  ;;  %v1791_v9 = vld [vmem:[%s1773_s9 + $0x28] sm:$0x3]  ;;  %v215_v10 = vrot.slane %v1776_v4, 1  ;;  %v190_v33 = vpack.c.bf16 %v1782_v6, %v1776_v4  ;;  %p1628_p2 = por %p1627_p1, %p1626_p0 }
  0x1a   : > { %1459 = vmatprep.subr.bf16.mxu1 %v1763_v2  ;;  %1471 = vmatprep.subr.bf16.mxu0 %v1768_v3  ;;  %v216_v11 = vrot.slane %v1779_v5, 1  ;;  %v218_v12 = vrot.slane %v1782_v6, 1  ;;  %v219_v13 = vrot.slane %v1785_v7, 1  ;;  %v221_v14 = vrot.slane %v1788_v8, 1  ;;  %v1801_v15 = vld [vmem:[%s1773_s9 + $0x30] sm:$0xff]  ;;  %v1808_v20 = vld [vmem:[%s1773_s9 + $0x40] sm:$0xff] }
  0x1b   : > { %v222_v16 = vrot.slane %v1791_v9, 1  ;;  %v436_v17 = vrot.slane %v1776_v4, 2  ;;  %v437_v18 = vrot.slane %v1779_v5, 2  ;;  %v177_v19 = vld [vmem:[%s1773_s9 + $0x38] sm:$0x3]  ;;  %v442_v23 = vrot.slane %v1788_v8, 2  ;;  %p1629_p3 = pnand %p1628_p2, %p1622_p13 }
  0x1c   : > { %v217_v21 = vsel %vm214_vm0, %v215_v10, %v216_v11  ;;  %v1812_v22 = vsel %vm214_vm0, %v218_v12, %v219_v13  ;;  %v443_v24 = vrot.slane %v1791_v9, 2  ;;  %v179_v25 = vld [vmem:[%s1773_s9 + $0x48] sm:$0x3]  ;;  %v1818_v26 = vld [vmem:[%s1773_s9 + $0x50] sm:$0xff]  ;;  %v1821_v27 = vld [vmem:[%s1773_s9 + $0x60] sm:$0xff]  ;;  %v224_v32 = vrot.slane %v1801_v15, 1 }
  0x1d   : > { %v247_v28 = vpack.c.bf16 %v1812_v22, %v217_v21  ;;  %v181_v29 = vld [vmem:[%s1773_s9 + $0x58] sm:$0x3]  ;;  %v1826_v30 = vld [vmem:[%s1773_s9 + $0x68] sm:$0x3]  ;;  %v1829_v31 = vld [vmem:[%s1773_s9 + $0x70] sm:$0xff]  ;;  %v1835_v34 = vsel %vm214_vm0, %v221_v14, %v222_v16  ;;  %v225_v36 = vrot.slane %v177_v19, 1  ;;  %v438_v60 = vsel %vm435_vm2, %v436_v17, %v437_v18 }
  0x1e   : > { %v1838_v35 = vld [vmem:[%s1773_s9 + $0x78] sm:$0x3]  ;;  %v227_v37 = vrot.slane %v1808_v20, 1  ;;  %v228_v38 = vrot.slane %v179_v25, 1  ;;  %v230_v39 = vrot.slane %v1818_v26, 1  ;;  %v231_v40 = vrot.slane %v181_v29, 1 }
  0x1f   : > { %1451 = vmatprep.mubr.msk.bf16.mxu0 %vm268_vm1, %v247_v28  ;;  %v233_v41 = vrot.slane %v1821_v27, 1  ;;  %v234_v42 = vrot.slane %v1826_v30, 1  ;;  %v1846_v43 = vsel %vm214_vm0, %v224_v32, %v225_v36  ;;  %v236_v45 = vrot.slane %v1829_v31, 1  ;;  %v1607_v9 = vld [vmem:[%s2161_s1 + $0x38] sm:$0xff]   ;;  %v1610_v18 = vld [vmem:[%s2161_s1 + $0x40] sm:$0xff]   ;;  %v1609_v21 = vld [vmem:[%s2161_s1 + $0x30] sm:$0xff]  }
  0x20   : > { %v1849_v44 = vsel %vm214_vm0, %v227_v37, %v228_v38  ;;  %v237_v46 = vrot.slane %v1838_v35, 1  ;;  %v1854_v47 = vsel %vm214_vm0, %v230_v39, %v231_v40  ;;  %v1861_v49 = vpack.c.bf16 %v1846_v43, %v1835_v34 }
  0x21   : > { %v1857_v48 = vsel %vm214_vm0, %v233_v41, %v234_v42  ;;  %v445_v50 = vrot.slane %v1801_v15, 2  ;;  %v440_v52 = vrot.slane %v1785_v7, 2  ;;  %v1873_v54 = vpack.c.bf16 %v1854_v47, %v1849_v44 }
  0x22   : > { %v1869_v53 = vsel %vm214_vm0, %v236_v45, %v237_v46  ;;  %v446_v55 = vrot.slane %v177_v19, 2  ;;  %v449_v57 = vrot.slane %v179_v25, 2  ;;  %1452 = vmatmul.mubr.msk.bf16.vlgmr.msra.gmra.mxu0 %vm268_vm1, %v1861_v49  ;;  %v452_v59 = vrot.slane %v181_v29, 2  ;;  %v1612_v29 = vld [vmem:[%s2161_s1 + $0x68] sm:$0xff]   ;;  %v1614_v45 = vld [vmem:[%s2161_s1 + $0x60] sm:$0xff]  }
  0x23   : > { %v1877_v56 = vpack.c.bf16 %v1869_v53, %v1857_v48  ;;  %1455 = vmatprep.mubr.msk.bf16.mxu1 %vm268_vm1, %v1873_v54  ;;  %1472 = vmatpush3.bf16.msra.mxu0 %v1768_v3  ;;  %v439_v61 = vrot.slane %v1782_v6, 2  ;;  %v1892_v62 = vsel %vm435_vm2, %v442_v23, %v443_v24  ;;  %v448_v1 = vrot.slane %v1808_v20, 2  ;;  %v1947_v23 = vld [vmem:[%s1773_s9 + $0x90] sm:$0xff] }
  0x24   : > { %1473 = vmatprep.subr.bf16.mxu0 %v1606_v51  ;;  %v1895_v63 = vsel %vm435_vm2, %v445_v50, %v446_v55  ;;  %v455_v3 = vrot.slane %v1826_v30, 2  ;;  %v451_v5 = vrot.slane %v1818_v26, 2  ;;  %v454_v11 = vrot.slane %v1821_v27, 2  ;;  %v1964_v30 = vld [vmem:[%s1773_s9 + $0x98] sm:$0x3] }
  0x25   : > { %1456 = vmatmul.mubr.msk.bf16.vlgmr.msra.gmra.mxu1 %vm268_vm1, %v1877_v56  ;;  %v1905_v4 = vsel %vm435_vm2, %v439_v61, %v440_v52  ;;  %v1914_v10 = vpack.c.bf16 %v1895_v63, %v1892_v62  ;;  %v457_v13 = vrot.slane %v1829_v31, 2  ;;  %v458_v14 = vrot.slane %v1838_v35, 2  ;;  %v1611_v35 = vld [vmem:[%s2161_s1 + $0x58] sm:$0xff]  }
  0x26   : > { %1460 = vmatpush3.bf16.msra.mxu1 %v1763_v2  ;;  %1463 = vmatprep.mubr.msk.bf16.mxu1 %vm268_vm1, %v190_v33  ;;  %v468_v7 = vpack.c.bf16 %v1905_v4, %v438_v60  ;;  %v1917_v2 = vsel %vm435_vm2, %v448_v1, %v449_v57  ;;  %v1921_v12 = vsel %vm435_vm2, %v451_v5, %v452_v59  ;;  %v998_v28 = vrot.slane %v1947_v23, 1 }
  0x27   : > { %1461 = vmatprep.subr.bf16.mxu1 %v1605_v58  ;;  %1474 = vmatpush3.bf16.msra.mxu0 %v1606_v51  ;;  %v1928_v16 = vpack.c.bf16 %v1801_v15, %v1788_v8  ;;  %v1932_v17 = vpack.c.bf16 %v1921_v12, %v1917_v2  ;;  %v1939_v19 = vpack.c.bf16 %v1818_v26, %v1808_v20  ;;  %v999_v32 = vrot.slane %v1964_v30, 1 }
  0x28   : > { %1475 = vmatprep.mubr.msk.bf16.mxu0 %vm268_vm1, %v468_v7  ;;  %1495 = vmatprep.subr.bf16.mxu0 %v1608_v0  ;;  %v1952_v24 = vsel %vm435_vm2, %v454_v11, %v455_v3  ;;  %v1955_v25 = vsel %vm435_vm2, %v457_v13, %v458_v14  ;;  %v686_v36 = vpack.c.bf16 %v1835_v34, %v1812_v22  ;;  %v186_v22 = vld [vmem:[%s1773_s9 + $0x80] sm:$0xff]  ;;  %v187_v34 = vld [vmem:[%s1773_s9 + $0x88] sm:$0x3]  ;;  %v1096_v59 = vrot.slane %v1947_v23, 2 }
  0x29   : > { %v1971_v33 = vpack.c.bf16 %v1955_v25, %v1952_v24  ;;  %v1979_v37 = vsel %vm214_vm0, %v998_v28, %v999_v32  ;;  %v193_v38 = vpack.c.bf16 %v1829_v31, %v1821_v27  ;;  %v574_v39 = vpack.c.bf16 %v1788_v8, %v1782_v6 }
  0x2a   : > { %1462 = vmatpush3.bf16.msra.mxu1 %v1605_v58  ;;  %1476 = vmatmul.mubr.msk.bf16.vlgmr.msra.gmra.mxu0 %vm268_vm1, %v1914_v10  ;;  %v687_v40 = vpack.c.bf16 %v1849_v44, %v1846_v43  ;;  %v688_v41 = vpack.c.bf16 %v1857_v48, %v1854_v47  ;;  %v682_v42 = vrot.slane %v186_v22, 1  ;;  %v683_v6 = vrot.slane %v187_v34, 1  ;;  %v1613_v43 = vld [vmem:[%s2161_s1 + $0x50] sm:$0xff]  }
  0x2b   : > { %1483 = vmatprep.subr.bf16.mxu1 %v1607_v9  ;;  %1496 = vmatpush3.bf16.msra.mxu0 %v1608_v0  ;;  %v575_v8 = vpack.c.bf16 %v1808_v20, %v1801_v15  ;;  %v576_v46 = vpack.c.bf16 %v1821_v27, %v1818_v26  ;;  %v1616_v15 = vld [vmem:[%s2161_s1 + $0x88] sm:$0xff]   ;;  %v1615_v26 = vld [vmem:[%s2161_s1 + $0x78] sm:$0xff]   ;;  %v577_v27 = vpack.c.bf16 %v186_v22, %v1829_v31  ;;  %v1618_v31 = vld [vmem:[%s2161_s1 + $0x80] sm:$0xff]   ;;  %v792_v51 = vrot.slane %v186_v22, 2 }
  0x2c   : > { %1479 = vmatprep.mubr.msk.bf16.mxu0 %vm268_vm1, %v1932_v17  ;;  %1497 = vmatprep.subr.bf16.mxu0 %v1610_v18  ;;  %v684_v44 = vsel %vm214_vm0, %v682_v42, %v683_v6  ;;  %v796_v47 = vpack.c.bf16 %v1892_v62, %v1905_v4  ;;  %v797_v48 = vpack.c.bf16 %v1917_v2, %v1895_v63  ;;  %v793_v52 = vrot.slane %v187_v34, 2 }
  0x2d   : > { %1464 = vmatmul.mubr.msk.bf16.vlgmr.msra.gmra.mxu1 %vm268_vm1, %v1928_v16  ;;  %v689_v20 = vpack.c.bf16 %v684_v44, %v1869_v53  ;;  %v798_v50 = vpack.c.bf16 %v1952_v24, %v1921_v12  ;;  %v1617_v53 = vld [vmem:[%s2161_s1 + $0x70] sm:$0xff]   ;;  %v902_v57 = vpack.c.bf16 %v1947_v23, %v186_v22  ;;  %v1097_v60 = vrot.slane %v1964_v30, 2 }
  0x2e   : > { %1484 = vmatpush3.bf16.msra.mxu1 %v1607_v9  ;;  %1467 = vmatprep.mubr.msk.bf16.mxu1 %vm268_vm1, %v1939_v19  ;;  %v794_v55 = vsel %vm435_vm2, %v792_v51, %v793_v52 }
  0x2f   : > { %1485 = vmatprep.subr.bf16.mxu1 %v1609_v21  ;;  %1498 = vmatpush3.bf16.msra.mxu0 %v1610_v18  ;;  %v799_v58 = vpack.c.bf16 %v794_v55, %v1955_v25  ;;  %v1098_v61 = vsel %vm435_vm2, %v1096_v59, %v1097_v60 }
  0x30   : > { %1519 = vmatprep.subr.bf16.mxu0 %v1612_v29  ;;  %v1100_v62 = vpack.c.bf16 %v1098_v61, %v794_v55 }
  0x32   : > { %1486 = vmatpush3.bf16.msra.mxu1 %v1609_v21  ;;  %1480 = vmatmul.mubr.msk.bf16.gmra.mxu0 %vm268_vm1, %v1971_v33 }
  0x33   : > { %1507 = vmatprep.subr.bf16.mxu1 %v1611_v35  ;;  %1499 = vmatprep.mubr.msk.bf16.mxu0 %vm268_vm1, %v686_v36 }
  0x35   : > { %1468 = vmatmul.mubr.msk.bf16.gmra.mxu1 %vm268_vm1, %v193_v38 }
  0x36   : > { %1487 = vmatprep.mubr.msk.bf16.mxu1 %vm268_vm1, %v574_v39 }
  0x3a   : > { %1500 = vmatmul.mubr.msk.bf16.vlgmr.msra.gmra.mxu0 %vm268_vm1, %v687_v40 }
  0x3b   : > { %1520 = vmatpush3.bf16.msra.mxu0 %v1612_v29  ;;  %1503 = vmatprep.mubr.msk.bf16.mxu0 %vm268_vm1, %v688_v41 }
  0x3c   : > { %1521 = vmatprep.subr.bf16.mxu0 %v1614_v45 }
  0x3d   : > { %1488 = vmatmul.mubr.msk.bf16.vlgmr.msra.gmra.mxu1 %vm268_vm1, %v575_v8 }
  0x3e   : > { %1508 = vmatpush3.bf16.msra.mxu1 %v1611_v35  ;;  %1491 = vmatprep.mubr.msk.bf16.mxu1 %vm268_vm1, %v576_v46 }
  0x3f   : > { %1509 = vmatprep.subr.bf16.mxu1 %v1613_v43  ;;  %1522 = vmatpush3.bf16.msra.mxu0 %v1614_v45 }
  0x40   : > { %1543 = vmatprep.subr.bf16.mxu0 %v1616_v15 }
  0x42   : > { %1510 = vmatpush3.bf16.msra.mxu1 %v1613_v43  ;;  %1504 = vmatmul.mubr.msk.bf16.gmra.mxu0 %vm268_vm1, %v689_v20 }
  0x43   : > { %1531 = vmatprep.subr.bf16.mxu1 %v1615_v26  ;;  %1523 = vmatprep.mubr.msk.bf16.mxu0 %vm268_vm1, %v1928_v16 }
  0x45   : > { %1492 = vmatmul.mubr.msk.bf16.gmra.mxu1 %vm268_vm1, %v577_v27 }
  0x46   : > { %1511 = vmatprep.mubr.msk.bf16.mxu1 %vm268_vm1, %v796_v47 }
  0x4a   : > { %1524 = vmatmul.mubr.msk.bf16.vlgmr.msra.gmra.mxu0 %vm268_vm1, %v1939_v19 }
  0x4b   : > { %1544 = vmatpush3.bf16.msra.mxu0 %v1616_v15  ;;  %1527 = vmatprep.mubr.msk.bf16.mxu0 %vm268_vm1, %v193_v38 }
  0x4c   : > { %1545 = vmatprep.subr.bf16.mxu0 %v1618_v31 }
  0x4d   : > { %1512 = vmatmul.mubr.msk.bf16.vlgmr.msra.gmra.mxu1 %vm268_vm1, %v797_v48 }
  0x4e   : > { %1532 = vmatpush3.bf16.msra.mxu1 %v1615_v26  ;;  %1515 = vmatprep.mubr.msk.bf16.mxu1 %vm268_vm1, %v798_v50 }
  0x4f   : > { %1533 = vmatprep.subr.bf16.mxu1 %v1617_v53  ;;  %1546 = vmatpush3.bf16.msra.mxu0 %v1618_v31 }
  0x52   : > { %1534 = vmatpush3.bf16.msra.mxu1 %v1617_v53  ;;  %1528 = vmatmul.mubr.msk.bf16.gmra.mxu0 %vm268_vm1, %v902_v57 }
  0x53   : > { %1547 = vmatprep.mubr.msk.bf16.mxu0 %vm268_vm1, %v1914_v10 }
  0x55   : > { %1516 = vmatmul.mubr.msk.bf16.gmra.mxu1 %vm268_vm1, %v799_v58 }
  0x56   : > { %1535 = vmatprep.mubr.msk.bf16.mxu1 %vm268_vm1, %v1861_v49  ;;  %v1002_v49 = vpack.c.bf16 %v1979_v37, %v684_v44 }
  0x5a   : > { %1548 = vmatmul.mubr.msk.bf16.vlgmr.msra.gmra.mxu0 %vm268_vm1, %v1932_v17 }
  0x5b   : > { %1551 = vmatprep.mubr.msk.bf16.mxu0 %vm268_vm1, %v1971_v33 }
  0x5d   : > { %1536 = vmatmul.mubr.msk.bf16.vlgmr.msra.gmra.mxu1 %vm268_vm1, %v1873_v54 }
  0x5e   : > { %1539 = vmatprep.mubr.msk.bf16.mxu1 %vm268_vm1, %v1877_v56 }
  0x62   : > { %1552 = vmatmul.mubr.msk.bf16.gmra.mxu0 %vm268_vm1, %v1100_v62 }
  0x65   : > { %1540 = vmatmul.mubr.msk.bf16.gmra.mxu1 %vm268_vm1, %v1002_v49 }
  0xe2   : > { %v1453_v63 = vpop.f32.mrf.mxu0 }
  0xe4   : > { %v315_v1 = vpop.f32.mrf.mxu0 }
  0xe5   : > { %v1457_v0 = vpop.f32.mrf.mxu1 }
  0xe6   : > { %v1454_v4 = vpop.f32.mrf.mxu0 }
  0xe7   : > { %v331_v3 = vpop.f32.mrf.mxu1 }
  0xe8   : > { %v318_v7 = vpop.f32.mrf.mxu0 }
  0xe9   : > { %v1458_v5 = vpop.f32.mrf.mxu1 }
  0xea   : > { %v1477_v54 = vpop.f32.mrf.mxu0 }
  0xeb   : > { %v2064_v9 = vpop.f32.mrf.mxu1 }
  0xec   : > { %v535_v2 = vpop.f32.mrf.mxu0 }
  0xed   : > { %v1465_v10 = vpop.f32.mrf.mxu1 }
  0xee   : > { %v1478_v11 = vpop.f32.mrf.mxu0  ;;  %v413_v45 = vadd.f32 %v1465_v10, %v1453_v63 }
  0xef   : > { %v404_v56 = vpop.f32.mrf.mxu1 }
  0xf0   : > { %v538_v13 = vpop.f32.mrf.mxu0  ;;  %v405_v44 = vadd.f32 %v404_v56, %v315_v1  ;;  %v568_v26 = vadd.f32 %v1477_v54, %v413_v45 }
  0xf1   : > { %v1466_v12 = vpop.f32.mrf.mxu1 }
  0xf2   : > { %v1481_v16 = vpop.f32.mrf.mxu0  ;;  %v416_v27 = vadd.f32 %v1466_v12, %v1454_v4  ;;  %v566_v31 = vadd.f32 %v535_v2, %v405_v44 }
  0xf3   : > { %v407_v14 = vpop.f32.mrf.mxu1 }
  0xf4   : > { %v551_v18 = vpop.f32.mrf.mxu0  ;;  %v408_v50 = vadd.f32 %v407_v14, %v318_v7  ;;  %v569_v57 = vadd.f32 %v1478_v11, %v416_v27 }
  0xf5   : > { %v1469_v17 = vpop.f32.mrf.mxu1 }
  0xf6   : > { %v1482_v21 = vpop.f32.mrf.mxu0  ;;  %v429_v52 = vadd.f32 %v1469_v17, %v1457_v0  ;;  %v567_v62 = vadd.f32 %v538_v13, %v408_v50 }
  0xf7   : > { %v420_v19 = vpop.f32.mrf.mxu1 }
  0xf8   : > { %v2066_v24 = vpop.f32.mrf.mxu0  ;;  %v421_v59 = vadd.f32 %v420_v19, %v331_v3  ;;  %v572_v1 = vadd.f32 %v1481_v16, %v429_v52 }
  0xf9   : > { %v1470_v23 = vpop.f32.mrf.mxu1 }
  0xfa   : > { %v1501_v28 = vpop.f32.mrf.mxu0  ;;  %v432_v54 = vadd.f32 %v1470_v23, %v1458_v5  ;;  %v570_v56 = vadd.f32 %v551_v18, %v421_v59 }
  0xfb   : > { %v423_v25 = vpop.f32.mrf.mxu1 }
  0xfc   : > { %v753_v30 = vpop.f32.mrf.mxu0  ;;  %v424_v11 = vadd.f32 %v423_v25, %v2064_v9  ;;  %v573_v19 = vadd.f32 %v1482_v21, %v432_v54 }
  0xfd   : > { %v1489_v29 = vpop.f32.mrf.mxu1 }
  0xfe   : > { %v1502_v33 = vpop.f32.mrf.mxu0  ;;  %v674_v51 = vadd.f32 %v1489_v29, %v568_v26 }
  0xff   : > { %v641_v32 = vpop.f32.mrf.mxu1 }
 0x100   : > { %v756_v36 = vpop.f32.mrf.mxu0  ;;  %v672_v58 = vadd.f32 %v641_v32, %v566_v31  ;;  %v786_v49 = vadd.f32 %v1501_v28, %v674_v51  ;;  %v571_v32 = vadd.f32 %v2066_v24, %v424_v11 }
 0x101   : > { %v1490_v35 = vpop.f32.mrf.mxu1 }
 0x102   : > { %v1505_v38 = vpop.f32.mrf.mxu0  ;;  %v675_v63 = vadd.f32 %v1490_v35, %v569_v57  ;;  %v784_v7 = vadd.f32 %v753_v30, %v672_v58 }
 0x103   : > { %v644_v37 = vpop.f32.mrf.mxu1 }
 0x104   : > { %v769_v22 = vpop.f32.mrf.mxu0  ;;  %v673_v2 = vadd.f32 %v644_v37, %v567_v62  ;;  %v787_v17 = vadd.f32 %v1502_v33, %v675_v63 }
 0x105   : > { %v1493_v39 = vpop.f32.mrf.mxu1 }
 0x106   : > { %v2068_v40 = vpop.f32.mrf.mxu0  ;;  %v678_v12 = vadd.f32 %v1493_v39, %v572_v1  ;;  %v785_v28 = vadd.f32 %v756_v36, %v673_v2  ;;  %v1386_v36 = vld [vmem:[%s2162_s2] ss:$0 sm:$0xff] }
 0x107   : > { %v657_v34 = vpop.f32.mrf.mxu1 }
 0x108   : > { %v2070_v42 = vpop.f32.mrf.mxu0  ;;  %v676_v16 = vadd.f32 %v657_v34, %v570_v56  ;;  %v790_v18 = vadd.f32 %v1505_v38, %v678_v12 }
 0x109   : > { %v1494_v41 = vpop.f32.mrf.mxu1 }
 0x10a   : > { %v1525_v8 = vpop.f32.mrf.mxu0  ;;  %v679_v35 = vadd.f32 %v1494_v41, %v573_v19  ;;  %v788_v21 = vadd.f32 %v769_v22, %v676_v16 }
 0x10b   : > { %v660_v6 = vpop.f32.mrf.mxu1 }
 0x10c   : > { %v957_v43 = vpop.f32.mrf.mxu0  ;;  %v677_v33 = vadd.f32 %v660_v6, %v571_v32  ;;  %v791_v41 = vadd.f32 %v2068_v40, %v679_v35 }
 0x10d   : > { %v1513_v46 = vpop.f32.mrf.mxu1 }
 0x10e   : > { %v1526_v20 = vpop.f32.mrf.mxu0  ;;  %v896_v0 = vadd.f32 %v1513_v46, %v786_v49  ;;  %v789_v31 = vadd.f32 %v2070_v42, %v677_v33 }
 0x10f   : > { %v863_v15 = vpop.f32.mrf.mxu1 }
 0x110   : > { %v960_v48 = vpop.f32.mrf.mxu0  ;;  %v894_v13 = vadd.f32 %v863_v15, %v784_v7  ;;  %v990_v29 = vadd.f32 %v1525_v8, %v896_v0 }
 0x111   : > { %v1514_v47 = vpop.f32.mrf.mxu1 }
 0x112   : > { %v1529_v55 = vpop.f32.mrf.mxu0  ;;  %v897_v30 = vadd.f32 %v1514_v47, %v787_v17  ;;  %v988_v37 = vadd.f32 %v957_v43, %v894_v13 }
 0x113   : > { %v866_v53 = vpop.f32.mrf.mxu1 }
 0x114   : > { %v2072_v61 = vpop.f32.mrf.mxu0  ;;  %v895_v39 = vadd.f32 %v866_v53, %v785_v28  ;;  %v991_v44 = vadd.f32 %v1526_v20, %v897_v30 }
 0x115   : > { %v1517_v60 = vpop.f32.mrf.mxu1 }
 0x116   : > { %v2074_v10 = vpop.f32.mrf.mxu0  ;;  %v900_v34 = vadd.f32 %v1517_v60, %v790_v18  ;;  %v989_v27 = vadd.f32 %v960_v48, %v895_v39 }
 0x117   : > { %v879_v4 = vpop.f32.mrf.mxu1 }
 0x118   : > { %v2077_v14 = vpop.f32.mrf.mxu0  ;;  %v898_v15 = vadd.f32 %v879_v4, %v788_v21  ;;  %v994_v50 = vadd.f32 %v1529_v55, %v900_v34 }
 0x119   : > { %v1518_v3 = vpop.f32.mrf.mxu1 }
 0x11a   : > { %v1549_v23 = vpop.f32.mrf.mxu0  ;;  %v901_v53 = vadd.f32 %v1518_v3, %v791_v41  ;;  %v992_v48 = vadd.f32 %v2072_v61, %v898_v15 }
 0x11b   : > { %v882_v5 = vpop.f32.mrf.mxu1 }
 0x11c   : > { %v1155_v25 = vpop.f32.mrf.mxu0  ;;  %v899_v42 = vadd.f32 %v882_v5, %v789_v31  ;;  %v995_v63 = vadd.f32 %v2074_v10, %v901_v53 }
 0x11d   : > { %v1537_v9 = vpop.f32.mrf.mxu1 }
 0x11e   : > { %v1090_v45 = vadd.f32 %v1537_v9, %v990_v29  ;;  %v1550_v46 = vpop.f32.mrf.mxu0  ;;  %v993_v2 = vadd.f32 %v2077_v14, %v899_v42 }
 0x11f   : > { %v1057_v8 = vpop.f32.mrf.mxu1 }
 0x120   : > { %v1188_v24 = vadd.f32 %v1549_v23, %v1090_v45  ;;  %v1088_v38 = vadd.f32 %v1057_v8, %v988_v37  ;;  %v1158_v26 = vpop.f32.mrf.mxu0 }
 0x121   : > { %v1538_v43 = vpop.f32.mrf.mxu1 }
 0x122   : > { %v1203_v47 = vadd.f32 %v1386_v36, %v1188_v24  ;;  %v1186_v22 = vadd.f32 %v1155_v25, %v1088_v38  ;;  %v1091_v6 = vadd.f32 %v1538_v43, %v991_v44  ;;  %v1553_v52 = vpop.f32.mrf.mxu0 }
 0x123   : > { %v1060_v51 = vpop.f32.mrf.mxu1 }
 0x124   : > { %1212 = vst.msk [vmem:[%s2088_s6 + $0x10] sm:$0xff] %vm1209_vm3, %v1203_v47  ;;  %v1201_v40 = vadd.f32 %v1386_v36, %v1186_v22  ;;  %v1189_v20 = vadd.f32 %v1550_v46, %v1091_v6  ;;  %v1089_v57 = vadd.f32 %v1060_v51, %v989_v27  ;;  %v1171_v59 = vpop.f32.mrf.mxu0 }
 0x125   : > { %v1541_v58 = vpop.f32.mrf.mxu1 }
 0x126   : > { %1210 = vst.msk [vmem:[%s2088_s6] sm:$0xff] %vm1209_vm3, %v1201_v40  ;;  %v1204_v55 = vadd.f32 %v1386_v36, %v1189_v20  ;;  %v1187_v60 = vadd.f32 %v1158_v26, %v1089_v57  ;;  %v1094_v62 = vadd.f32 %v1541_v58, %v994_v50  ;;  %v1554_v7 = vpop.f32.mrf.mxu0 }
 0x127   : > { %v1073_v49 = vpop.f32.mrf.mxu1 }
 0x128   : > { %1213 = vst.msk [vmem:[%s2088_s6 + $0x18] sm:$0xff] %vm1209_vm3, %v1204_v55  ;;  %v1202_v1 = vadd.f32 %v1386_v36, %v1187_v60  ;;  %v1192_v54 = vadd.f32 %v1553_v52, %v1094_v62  ;;  %v1092_v61 = vadd.f32 %v1073_v49, %v992_v48  ;;  %v1174_v13 = vpop.f32.mrf.mxu0 }
 0x129   : > { %v1542_v4 = vpop.f32.mrf.mxu1 }
 0x12a   : > { %1211 = vst.msk [vmem:[%s2088_s6 + $0x8] sm:$0xff] %vm1209_vm3, %v1202_v1  ;;  %v1207_v0 = vadd.f32 %v1386_v36, %v1192_v54  ;;  %v1190_v56 = vadd.f32 %v1171_v59, %v1092_v61  ;;  %v1095_v11 = vadd.f32 %v1542_v4, %v995_v63 }
 0x12b   : > { %v1076_v10 = vpop.f32.mrf.mxu1 }
 0x12c   : > { %1216 = vst.msk [vmem:[%s2088_s6 + $0x30] sm:$0xff] %vm1209_vm3, %v1207_v0  ;;  %v1205_v12 = vadd.f32 %v1386_v36, %v1190_v56  ;;  %v1193_v3 = vadd.f32 %v1554_v7, %v1095_v11  ;;  %v1093_v17 = vadd.f32 %v1076_v10, %v993_v2 }
 0x12e   : > { %1214 = vst.msk [vmem:[%s2088_s6 + $0x20] sm:$0xff] %vm1209_vm3, %v1205_v12  ;;  %v1208_v14 = vadd.f32 %v1386_v36, %v1193_v3  ;;  %v1191_v19 = vadd.f32 %v1174_v13, %v1093_v17 }
 0x130   : > { %1217 = vst.msk [vmem:[%s2088_s6 + $0x38] sm:$0xff] %vm1209_vm3, %v1208_v14  ;;  %v1206_v16 = vadd.f32 %v1386_v36, %v1191_v19 }
 0x132   : > { %1215 = vst.msk [vmem:[%s2088_s6 + $0x28] sm:$0xff] %vm1209_vm3, %v1206_v16 }
 0x133   : > { %1632 = shalt.err (!%p1629_p3)
}
 0x134   : > { %s1633_s25 = scalar_lea.hbm %s2110_s11, 1024  ;;  %s1637_s28 = scalar_lea.hbm %s2163_s3, 2048 }
 0x135   : > { %p1634_p4 = scmp.ne.s32.totalorder %s2110_s11, %s1633_s25  ;;  %p1638_p9 = scmp.lt.s32.totalorder %s2110_s11, %s2163_s3 }
 0x136   : > { %p1639_p10 = scmp.lt.s32.totalorder %s1637_s28, %s1633_s25 }
 0x137   : > { %p1635_p7 = pnand %p1634_p4, %p1742_p5 }
 0x138   : > { %p1640_p11 = por %p1639_p10, %p1638_p9 }
 0x139   : > { %p1636_p8 = pneg %p1635_p7 }
 0x13b   : > { %p1641_p12 = pnand %p1640_p11, %p1636_p8 }
 0x13d   : > { %1644 = shalt.err (!%p1641_p12)
}
 0x13e   : > { %s1682_s4 = smov 128   ;;  %s1683_s5 = smov 8  }
 0x13f   : > { %1560 = dma.vmem_to_hbm [thread:$0]  (%p1742_p5), %s2112_s8, 1024, %s2110_s11, %s2120_s16, %s1682_s4, %s1682_s4, %s1683_s5  }
 0x140 PF: > { %p1566_p13 = scmp.ge.s32.totalorder %s1679_s15, 2  ;;  %s1247_s6 = sand.u32 1, %s1667_s12  }
 0x141   : > { %s1248_s7 = scalar_lea.sflag [#allocation3], %s1247_s6 }
 0x142   : > { %p1563_p0 = pnand %p1566_p13, %p1746_p6 }
 0x144   : > { %p1564_p1 = pneg %p1563_p0 }
 0x146   : > { %1662 = dma.done.wait (%p1564_p1), %s1248_s7, 1024  }
 0x147   : > { %1664 = vsyncadd (%p1564_p1), %s1248_s7, 4294966272  ;;  %p13_p2 = scmp.ge.s32.totalorder %s1729_s18, 4   ;;  %s2166_s12 = smov %s1671_s13 }
 0x148   : > { %s2167_s13 = smov %s1675_s14  ;;  %s2168_s14 = smov %s1740_s21 }
 0x149   : > { %s2169_s15 = smov %s1729_s18  ;;  %15 = sbr.rel (!%p13_p2) target bundleno = 3 (0x3), region = 75 }
 0x14e   :  { %1253 = vsyncpa [#allocation3], 1 }
 0x14f   :  { %1255 = vsyncpa [#allocation3 + $0x1], 1 }

// kernel: transformer_full_bottleneck.11
= control target key start
LH: loop header
LB: loop body
LE: loop exit
PB: predicated region body
PF: predicated region fallthrough
CT: control target
= control target key end

     0   :  { %s5173_s24 = smov 0   ;;  %s6325_s0 = inlined_call_operand.vmem [shape: f32[2,64,32], index: 0, kind: input, shape index: {}]   ;;  %s6326_s1 = inlined_call_operand.vmem [shape: bf16[32,96], index: 1, kind: input, shape index: {}]   ;;  %s6327_s2 = inlined_call_operand.vmem [shape: f32[1,96], index: 2, kind: input, shape index: {}]   ;;  %s6328_s3 = inlined_call_operand.vmem [shape: bf16[32,32], index: 3, kind: input, shape index: {}]   ;;  %s6329_s4 = inlined_call_operand.vmem [shape: f32[1,32], index: 4, kind: input, shape index: {}]   ;;  %s6330_s5 = inlined_call_operand.vmem [shape: f32[1,32], index: 5, kind: input, shape index: {}]   ;;  %s6331_s6 = inlined_call_operand.vmem [shape: f32[1,32], index: 6, kind: input, shape index: {}]   ;;  %s6332_s7 = inlined_call_operand.vmem [shape: f32[2,64,32], index: 7, kind: output, shape index: {}]  }
   0x1 LB: > { %s4041_s25 = sadd.s32 4294967295, %s5108_s24   ;;  %p4045_p0 = scmp.ge.s32.totalorder %s5108_s24, 1  ;;  %s5108_s24 = sphi %s5173_s24, %s17_s24  }
   0x2   : > { %p237_p1 = scmp.lt.s32.totalorder %s5108_s24, 3 }
   0x4   : > { %p238_p2 = pnand %p4045_p0, %p237_p1 }
   0x5   : > { %p269_p3 = scmp.lt.s32.totalorder (!%p238_p2), %s4041_s25, 1  ;;  %s5110_s13 = smov (!%p238_p2), 92  }
   0x6   : > { %241 = sbr.rel (%p238_p2) target bundleno = 5554 (0x15b2), region = 48  ;;  %s5111_s14 = smov (!%p238_p2), 96  }
   0x7   : > { %s5112_s15 = smov (!%p238_p2), 124   ;;  %s5113_s16 = smov (!%p238_p2), 64  }
   0x8   : > { %s5114_s17 = smov (!%p238_p2), 60   ;;  %s5115_s18 = smov (!%p238_p2), 88  }
   0x9   : > { %s5116_s19 = smov (!%p238_p2), 120   ;;  %s5117_s20 = smov (!%p238_p2), 84  }
   0xa   : > { %s5118_s23 = smov (!%p238_p2), 56   ;;  %s5119_s28 = smov (!%p238_p2), 116  }
   0xb   : > { %v4816_v0 = vld [vmem:[%s6326_s1 + $0x8] sm:$0xff]   ;;  %v4817_v1 = vld [vmem:[%s6326_s1] sm:$0xff]   ;;  %s6334_s25 = smov (!%p269_p3, %s4041_s25), 1  ;;  %vm315_vm0 = vcmask 261120   ;;  %vm462_vm1 = vcmask 31744   ;;  %vm475_vm2 = vcmask 1041408  }
   0xc   : > { %4314 = vmatprep.subr.bf16.mxu0 %v4816_v0  ;;  %s4162_s30 = sshll.u32 %s6334_s25, 6  ;;  %v4050_v14 = vld [vmem:[%s6327_s2] ss:$0 sm:$0xff]  ;;  %vm552_vm3 = vcmask 523264   ;;  %s5120_s9 = smov 80  }
   0xd   : > { %4315 = vmatpush3.bf16.msra.mxu0 %v4816_v0  ;;  %s5195_s10 = scalar_lea.vmem %s6325_s0, %s4162_s30  ;;  %s5121_s11 = smov 52  }
   0xe   : > { %4316 = vmatprep.subr.bf16.mxu0 %v4817_v1  ;;  %v280_v2 = vld [vmem:[%s5195_s10] sm:$0xff]  ;;  %v281_v3 = vld [vmem:[%s5195_s10 + $0x8] sm:$0xff]  ;;  %v282_v4 = vld [vmem:[%s5195_s10 + $0x10] sm:$0xff]  ;;  %s5122_s12 = smov 112   ;;  %s5128_s22 = smov 104  }
   0xf   : > { %v288_v5 = vpack.c.bf16 %v281_v3, %v280_v2  ;;  %v283_v6 = vld [vmem:[%s5195_s10 + $0x18] sm:$0xff]  ;;  %v284_v7 = vld [vmem:[%s5195_s10 + $0x20] sm:$0xff]  ;;  %v285_v8 = vld [vmem:[%s5195_s10 + $0x28] sm:$0xff]  ;;  %s5129_s27 = smov 68   ;;  %s5131_s29 = smov 100  }
  0x10   : > { %v289_v9 = vpack.c.bf16 %v283_v6, %v282_v4  ;;  %v290_v10 = vpack.c.bf16 %v285_v8, %v284_v7  ;;  %v286_v11 = vld [vmem:[%s5195_s10 + $0x30] sm:$0xff]  ;;  %v287_v12 = vld [vmem:[%s5195_s10 + $0x38] sm:$0xff]  ;;  %s6297_s21 = scalar_lea.vmem %s6332_s7, %s4162_s30 }
  0x11   : > { %4317 = vmatpush3.bf16.msra.mxu0 %v4817_v1  ;;  %4318 = vmatprep.mubr.msk.bf16.mxu0 %vm315_vm0, %v288_v5  ;;  %v291_v13 = vpack.c.bf16 %v287_v12, %v286_v11 }
  0x14   : > { %4319 = vmatmul.mubr.msk.bf16.vlgmr.msra.gmra.mxu0 %vm315_vm0, %v289_v9 }
  0x15   : > { %4322 = vmatprep.mubr.msk.bf16.mxu0 %vm315_vm0, %v290_v10 }
  0x1c   : > { %4323 = vmatmul.mubr.msk.bf16.gmra.mxu0 %vm315_vm0, %v291_v13 }
  0xd4   : > { %v4320_v15 = vpop.f32.mrf.mxu0 }
  0xd5   : > { %v5212_v16 = vadd.f32 %v4320_v15, %v4050_v14 }
  0xd6   : > { %v362_v17 = vpop.f32.mrf.mxu0 }
  0xd7   : > { %747 = vrot.lane.b32.xlu1 %v5212_v16, %s5110_s13  ;;  %v5216_v20 = vadd.f32 %v4050_v14, %v362_v17 }
  0xd8   : > { %v4321_v18 = vpop.f32.mrf.mxu0 }
  0xd9   : > { %v5220_v23 = vadd.f32 %v4321_v18, %v4050_v14 }
  0xda   : > { %v365_v19 = vpop.f32.mrf.mxu0 }
  0xdb   : > { %v5218_v21 = vadd.f32 %v4050_v14, %v365_v19  ;;  %v5243_v31 = vpack.i.bf16 %v5220_v23, %v5212_v16  ;;  %v5276_v37 = vpack.c.bf16 %v5220_v23, %v5212_v16 }
  0xdc   : > { %v4324_v22 = vpop.f32.mrf.mxu0 }
  0xdd   : > { %v5224_v24 = vpack.c.bf16 %v5218_v21, %v5216_v20  ;;  %v5228_v25 = vpack.i.bf16 %v5218_v21, %v5216_v20  ;;  %v5237_v29 = vadd.f32 %v4324_v22, %v4050_v14 }
  0xde   : > { %v378_v26 = vpop.f32.mrf.mxu0 }
  0xdf   : > { %v5230_v27 = vadd.f32 %v4050_v14, %v378_v26  ;;  %4681 = vrot.lane.b32.xlu1 %v5228_v25, %s5110_s13  ;;  %4671 = vrot.lane.b32.xlu0 %v5228_v25, %s5111_s14 }
  0xe0   : > { %4328 = vmatprep.mubr.msk.bf16.mxu1 %vm462_vm1, %v5224_v24  ;;  %v4325_v28 = vpop.f32.mrf.mxu0 }
  0xe1   : > { %v5239_v30 = vadd.f32 %v4325_v28, %v4050_v14 }
  0xe2   : > { %v381_v32 = vpop.f32.mrf.mxu0 }
  0xe3   : > { %751 = vrot.lane.b32.xlu1 %v5230_v27, %s5110_s13  ;;  %4676 = vrot.lane.b32.xlu0 %v5243_v31, %s5111_s14  ;;  %v5248_v33 = vadd.f32 %v4050_v14, %v381_v32  ;;  %v5252_v34 = vpack.i.bf16 %v5239_v30, %v5237_v29  ;;  %v5281_v38 = vpack.c.bf16 %v5239_v30, %v5237_v29 }
  0xe5   : > { %v5259_v35 = vpack.i.bf16 %v5248_v33, %v5230_v27  ;;  %v5269_v36 = vpack.c.bf16 %v5248_v33, %v5230_v27 }
  0xe7   : > { %755 = vrot.lane.b32.xlu1 %v5237_v29, %s5110_s13  ;;  %4686 = vrot.lane.b32.xlu0 %v5252_v34, %s5111_s14 }
  0xeb   : > { %4691 = vrot.lane.b32.xlu1 %v5259_v35, %s5111_s14  ;;  %749 = vrot.lane.b32.xlu0 %v5220_v23, %s5110_s13 }
  0xef   : > { %753 = vrot.lane.b32.xlu0 %v5248_v33, %s5110_s13  ;;  %800 = vrot.lane.b32.xlu1 %v5224_v24, %s5112_s15 }
  0xf3   : > { %757 = vrot.lane.b32.xlu0 %v5239_v30, %s5110_s13  ;;  %804 = vrot.lane.b32.xlu1 %v5269_v36, %s5112_s15 }
  0xf7   : > { %802 = vrot.lane.b32.xlu0 %v5276_v37, %s5112_s15 }
  0xfb   : > { %806 = vrot.lane.b32.xlu0 %v5281_v38, %s5112_s15  ;;  %s5123_s15 = smov 76  }
  0xff   : > { %655 = vrot.lane.b32.xlu0 %v5281_v38, %s5113_s16 }
 0x149   : > { %v748_v39 = vpop.permute.xlu1 %747 }
 0x151   : > { %v4682_v40 = vpop.permute.xlu1 %4681  ;;  %v4672_v41 = vpop.permute.xlu0 %4671 }
 0x152   : > { %v4683_v42 = vunpack.i.l.bf16 %v4682_v40  ;;  %v4673_v43 = vunpack.i.l.bf16 %v4672_v41  ;;  %v4684_v44 = vunpack.i.h.bf16 %v4682_v40  ;;  %v4674_v45 = vunpack.i.h.bf16 %v4672_v41 }
 0x154   : > { %v4695_v46 = vpack.i.bf16 %v4683_v42, %v4673_v43  ;;  %v4697_v50 = vpack.i.bf16 %v4684_v44, %v4674_v45 }
 0x155   : > { %v752_v47 = vpop.permute.xlu1 %751  ;;  %v4677_v48 = vpop.permute.xlu0 %4676 }
 0x156   : > { %4696 = vxpose.xlu1.b32.start [1/8] (short) (narrow) %v4695_v46, 8  ;;  %v4678_v49 = vunpack.i.l.bf16 %v4677_v48  ;;  %v4679_v56 = vunpack.i.h.bf16 %v4677_v48 }
 0x158   : > { %v4699_v53 = vpack.i.bf16 %v748_v39, %v4678_v49 }
 0x159   : > { %v756_v51 = vpop.permute.xlu1 %755  ;;  %v4687_v52 = vpop.permute.xlu0 %4686 }
 0x15a   : > { %4698 = vxpose.xlu1.b32.cont [2/8] (short) (narrow) %v4697_v50, 8  ;;  %v4688_v63 = vunpack.i.l.bf16 %v4687_v52  ;;  %v4689_v3 = vunpack.i.h.bf16 %v4687_v52 }
 0x15c   : > { %v4707_v1 = vpack.i.bf16 %v756_v51, %v4688_v63 }
 0x15d   : > { %v4692_v54 = vpop.permute.xlu1 %4691  ;;  %v750_v55 = vpop.permute.xlu0 %749 }
 0x15e   : > { %4700 = vxpose.xlu1.b32.cont [3/8] (short) (narrow) %v4699_v53, 8  ;;  %v4693_v57 = vunpack.i.l.bf16 %v4692_v54  ;;  %v4701_v58 = vpack.i.bf16 %v750_v55, %v4679_v56  ;;  %v4694_v62 = vunpack.i.h.bf16 %v4692_v54 }
 0x160   : > { %v4703_v60 = vpack.i.bf16 %v752_v47, %v4693_v57 }
 0x161   : > { %v801_v59 = vpop.permute.xlu1 %800  ;;  %v754_v61 = vpop.permute.xlu0 %753 }
 0x162   : > { %4702 = vxpose.xlu1.b32.cont [4/8] (short) (narrow) %v4701_v58, 8  ;;  %4354 = vmatprep.mubr.msk.bf16.mxu0 %vm462_vm1, %v801_v59  ;;  %v4705_v0 = vpack.i.bf16 %v754_v61, %v4694_v62 }
 0x165   : > { %v758_v2 = vpop.permute.xlu0 %757  ;;  %v805_v6 = vpop.permute.xlu1 %804 }
 0x166   : > { %4704 = vxpose.xlu1.b32.cont [5/8] (short) (narrow) %v4703_v60, 8  ;;  %v4709_v4 = vpack.i.bf16 %v758_v2, %v4689_v3 }
 0x169   : > { %v803_v5 = vpop.permute.xlu0 %802 }
 0x16a   : > { %4706 = vxpose.xlu1.b32.cont [6/8] (short) (narrow) %v4705_v0, 8 }
 0x16d   : > { %v807_v7 = vpop.permute.xlu0 %806 }
 0x16e   : > { %4708 = vxpose.xlu1.b32.cont [7/8] (short) (narrow) %v4707_v1, 8 }
 0x171   : > { %v656_v15 = vpop.permute.xlu0 %655 }
 0x172   : > { %4710 = vxpose.xlu1.b32.end [8/8] (short) (narrow) %v4709_v4, 8 }
 0x1d2   : > { %v4711_v8 = vpop.trf.xlu1 }
 0x1d3   : > { %v4712_v9 = vunpack.i.l.bf16 %v4711_v8  ;;  %v4715_v10 = vunpack.i.h.bf16 %v4711_v8 }
 0x1d5   : > { %v461_v11 = vpack.c.bf16 %v4712_v9, %v4712_v9  ;;  %v799_v12 = vpack.c.bf16 %v4715_v10, %v4715_v10 }
 0x1d7   : > { %4622 = vmatprep.subr.msk.bf16.mxu1 %vm475_vm2, %v461_v11  ;;  %4623 = vmatprep.subr.msk.bf16.mxu0 %vm475_vm2, %v799_v12  ;;  %v477_v13 = vsel %vm475_vm2, %v461_v11, 0  ;;  %v821_v14 = vsel %vm475_vm2, %v799_v12, 0 }
 0x1d8   : > { %4327 = vmatpush3.bf16.msra.mxu1 %v477_v13  ;;  %4353 = vmatpush3.bf16.msra.mxu0 %v821_v14 }
 0x1d9   : > { %4336 = vmatprep.subr.bf16.mxu1 %v656_v15 }
 0x1db   : > { %4329 = vmatmul.mubr.msk.bf16.vlgmr.msra.gmra.mxu1 %vm462_vm1, %v5276_v37  ;;  %4355 = vmatmul.mubr.msk.bf16.vlgmr.msra.gmra.mxu0 %vm462_vm1, %v803_v5 }
 0x1dc   : > { %4332 = vmatprep.mubr.msk.bf16.mxu1 %vm462_vm1, %v5269_v36  ;;  %4337 = vmatpush3.bf16.msra.mxu1 %v656_v15 }
 0x1dd   : > { %4358 = vmatprep.mubr.msk.bf16.mxu0 %vm462_vm1, %v805_v6 }
 0x1e3   : > { %4333 = vmatmul.mubr.msk.bf16.gmra.mxu1 %vm462_vm1, %v5281_v38  ;;  %4359 = vmatmul.mubr.msk.bf16.gmra.mxu0 %vm462_vm1, %v807_v7 }
 0x29b   : > { %v4330_v17 = vpop.f32.mrf.mxu1  ;;  %v4356_v18 = vpop.f32.mrf.mxu0 }
 0x29c   : > { %v5300_v19 = vmul.f32 0.5, %v4330_v17  ;;  %v5302_v22 = vmul.f32 0.5, %v4356_v18 }
 0x29d   : > { %v513_v32 = vpop.f32.mrf.mxu1  ;;  %v857_v40 = vpop.f32.mrf.mxu0 }
 0x29e   : > { %v902_v26 = vsel %vm552_vm3, %v5302_v22, -inf  ;;  %v559_v28 = vsel %vm552_vm3, %v5300_v19, -inf  ;;  %v5316_v39 = vmul.f32 0.5, %v513_v32  ;;  %v5318_v41 = vmul.f32 0.5, %v857_v40 }
 0x29f   : > { %903 = vmax.xlane.f32.xlu1 %v902_v26  ;;  %560 = vmax.xlane.f32.xlu0 %v559_v28  ;;  %v4331_v43 = vpop.f32.mrf.mxu1  ;;  %v4357_v46 = vpop.f32.mrf.mxu0 }
 0x2a0   : > { %v553_v42 = vsel %vm552_vm3, %v5316_v39, -inf  ;;  %v5322_v44 = vmul.f32 0.5, %v4331_v43  ;;  %v896_v45 = vsel %vm552_vm3, %v5318_v41, -inf  ;;  %v5326_v47 = vmul.f32 0.5, %v4357_v46 }
 0x2a1   : > { %v516_v49 = vpop.f32.mrf.mxu1  ;;  %v860_v52 = vpop.f32.mrf.mxu0 }
 0x2a2   : > { %v562_v48 = vsel %vm552_vm3, %v5322_v44, -inf  ;;  %v5330_v50 = vmul.f32 0.5, %v516_v49  ;;  %v905_v51 = vsel %vm552_vm3, %v5326_v47, -inf  ;;  %v5334_v53 = vmul.f32 0.5, %v860_v52 }
 0x2a3   : > { %v4334_v55 = vpop.f32.mrf.mxu1  ;;  %v4360_v58 = vpop.f32.mrf.mxu0 }
 0x2a4   : > { %v556_v54 = vsel %vm552_vm3, %v5330_v50, -inf  ;;  %v5338_v56 = vmul.f32 0.5, %v4334_v55  ;;  %v899_v57 = vsel %vm552_vm3, %v5334_v53, -inf  ;;  %v5342_v59 = vmul.f32 0.5, %v4360_v58 }
 0x2a5   : > { %v529_v61 = vpop.f32.mrf.mxu1  ;;  %v873_v0 = vpop.f32.mrf.mxu0 }
 0x2a6   : > { %v571_v60 = vsel %vm552_vm3, %v5338_v56, -inf  ;;  %v5346_v62 = vmul.f32 0.5, %v529_v61  ;;  %v914_v63 = vsel %vm552_vm3, %v5342_v59, -inf  ;;  %v5350_v1 = vmul.f32 0.5, %v873_v0 }
 0x2a7   : > { %v4335_v3 = vpop.f32.mrf.mxu1  ;;  %v4361_v6 = vpop.f32.mrf.mxu0 }
 0x2a8   : > { %v565_v2 = vsel %vm552_vm3, %v5346_v62, -inf  ;;  %v5354_v4 = vmul.f32 0.5, %v4335_v3  ;;  %v908_v5 = vsel %vm552_vm3, %v5350_v1, -inf  ;;  %v5358_v7 = vmul.f32 0.5, %v4361_v6 }
 0x2a9   : > { %v532_v9 = vpop.f32.mrf.mxu1  ;;  %v876_v12 = vpop.f32.mrf.mxu0 }
 0x2aa   : > { %v574_v8 = vsel %vm552_vm3, %v5354_v4, -inf  ;;  %v5362_v10 = vmul.f32 0.5, %v532_v9  ;;  %v917_v11 = vsel %vm552_vm3, %v5358_v7, -inf  ;;  %v5366_v13 = vmul.f32 0.5, %v876_v12 }
 0x2ac   : > { %v568_v14 = vsel %vm552_vm3, %v5362_v10, -inf  ;;  %v911_v15 = vsel %vm552_vm3, %v5366_v13, -inf }
 0x2b0   : > { %653 = vrot.lane.b32.xlu1 %v5269_v36, %s5113_s16 }
 0x2b5   : > { %651 = vrot.lane.b32.xlu0 %v5276_v37, %s5113_s16 }
 0x2b9   : > { %994 = vrot.lane.b32.xlu0 %v5281_v38, %s5114_s17 }
 0x2bd   : > { %649 = vrot.lane.b32.xlu0 %v5224_v24, %s5113_s16  ;;  %s5124_s16 = smov 48  }
 0x2dc   : > { %554 = vmax.xlane.f32.xlu0 %v553_v42 }
 0x2e0   : > { %897 = vmax.xlane.f32.xlu0 %v896_v45 }
 0x2e4   : > { %563 = vmax.xlane.f32.xlu0 %v562_v48 }
 0x2e8   : > { %906 = vmax.xlane.f32.xlu0 %v905_v51 }
 0x2ec   : > { %557 = vmax.xlane.f32.xlu0 %v556_v54 }
 0x2f0   : > { %900 = vmax.xlane.f32.xlu0 %v899_v57 }
 0x2f4   : > { %572 = vmax.xlane.f32.xlu0 %v571_v60 }
 0x2f8   : > { %915 = vmax.xlane.f32.xlu0 %v914_v63 }
 0x2fc   : > { %566 = vmax.xlane.f32.xlu0 %v565_v2 }
 0x300   : > { %909 = vmax.xlane.f32.xlu0 %v908_v5 }
 0x304   : > { %575 = vmax.xlane.f32.xlu0 %v574_v8 }
 0x308   : > { %918 = vmax.xlane.f32.xlu0 %v917_v11 }
 0x30c   : > { %569 = vmax.xlane.f32.xlu0 %v568_v14 }
 0x310   : > { %912 = vmax.xlane.f32.xlu0 %v911_v15 }
 0x326   : > { %992 = vrot.lane.b32.xlu0 %v5269_v36, %s5114_s17 }
 0x328   : > { %v904_v17 = vpop.xlane.xlu1 %903  ;;  %v561_v18 = vpop.xlane.xlu0 %560 }
 0x329   : > { %v579_v26 = vsub.f32 %v5300_v19, %v561_v18  ;;  %v922_v40 = vsub.f32 %v5302_v22, %v904_v17 }
 0x32b   : > { %v589_v42 = vmul.f32 1.442695, %v579_v26  ;;  %v932_v45 = vmul.f32 1.442695, %v922_v40 }
 0x32c   : > { %v654_v28 = vpop.permute.xlu1 %653  ;;  %v652_v32 = vpop.permute.xlu0 %651 }
 0x32d   : > { %4338 = vmatprep.subr.bf16.mxu1 %v654_v28  ;;  %4822 = vpow2.f32 %v589_v42 }
 0x32e   : > { %4339 = vmatpush3.bf16.msra.mxu1 %v654_v28  ;;  %4824 = vpow2.f32 %v932_v45 }
 0x32f   : > { %4340 = vmatprep.subr.bf16.mxu1 %v652_v32 }
 0x330   : > { %v5376_v43 = vpop.permute.xlu0 %994 }
 0x331   : > { %4362 = vmatprep.subr.bf16.mxu0 %v5376_v43 }
 0x332   : > { %4341 = vmatpush3.bf16.msra.mxu1 %v652_v32  ;;  %4363 = vmatpush3.bf16.msra.mxu0 %v5376_v43 }
 0x334   : > { %v650_v46 = vpop.permute.xlu0 %649 }
 0x335   : > { %4342 = vmatprep.subr.bf16.mxu1 %v650_v46 }
 0x336   : > { %4343 = vmatpush3.bf16.msra.mxu1 %v650_v46 }
 0x337   : > { %4614 = vmatprep.subr.bf16.mxu1 %v5376_v43 }
 0x33a   : > { %v5381_v19 = vpop.eup %4822 }
 0x33b   : > { %v607_v22 = vsel %vm552_vm3, %v5381_v19, 0.0  ;;  %v5385_v48 = vpop.eup %4824 }
 0x33c   : > { %v950_v49 = vsel %vm552_vm3, %v5385_v48, 0.0 }
 0x345   : > { %608 = vadd.xlane.f32.xlu0 %v607_v22 }
 0x349   : > { %951 = vadd.xlane.f32.xlu0 %v950_v49 }
 0x365   : > { %v555_v51 = vpop.xlane.xlu0 %554 }
 0x366   : > { %v577_v52 = vsub.f32 %v5316_v39, %v555_v51 }
 0x368   : > { %v585_v54 = vmul.f32 1.442695, %v577_v52 }
 0x369   : > { %v898_v55 = vpop.xlane.xlu0 %897 }
 0x36a   : > { %4826 = vpow2.f32 %v585_v54  ;;  %v920_v57 = vsub.f32 %v5318_v41, %v898_v55 }
 0x36c   : > { %v928_v58 = vmul.f32 1.442695, %v920_v57 }
 0x36d   : > { %v564_v60 = vpop.xlane.xlu0 %563 }
 0x36e   : > { %4828 = vpow2.f32 %v928_v58  ;;  %v580_v61 = vsub.f32 %v5322_v44, %v564_v60 }
 0x370   : > { %v591_v63 = vmul.f32 1.442695, %v580_v61 }
 0x371   : > { %v907_v0 = vpop.xlane.xlu0 %906 }
 0x372   : > { %4830 = vpow2.f32 %v591_v63  ;;  %v923_v2 = vsub.f32 %v5326_v47, %v907_v0 }
 0x374   : > { %v934_v3 = vmul.f32 1.442695, %v923_v2 }
 0x375   : > { %v558_v5 = vpop.xlane.xlu0 %557 }
 0x376   : > { %4832 = vpow2.f32 %v934_v3  ;;  %v578_v39 = vsub.f32 %v5330_v50, %v558_v5 }
 0x377   : > { %v5394_v6 = vpop.eup %4826 }
 0x378   : > { %v587_v8 = vmul.f32 1.442695, %v578_v39  ;;  %v601_v41 = vsel %vm552_vm3, %v5394_v6, 0.0 }
 0x379   : > { %v901_v9 = vpop.xlane.xlu0 %900  ;;  %602 = vadd.xlane.f32.xlu0 %v601_v41 }
 0x37a   : > { %4834 = vpow2.f32 %v587_v8  ;;  %v921_v44 = vsub.f32 %v5334_v53, %v901_v9 }
 0x37b   : > { %v5399_v11 = vpop.eup %4828 }
 0x37c   : > { %v930_v12 = vmul.f32 1.442695, %v921_v44  ;;  %v944_v47 = vsel %vm552_vm3, %v5399_v11, 0.0 }
 0x37d   : > { %v573_v14 = vpop.xlane.xlu0 %572  ;;  %945 = vadd.xlane.f32.xlu0 %v944_v47 }
 0x37e   : > { %4836 = vpow2.f32 %v930_v12  ;;  %v583_v50 = vsub.f32 %v5338_v56, %v573_v14 }
 0x37f   : > { %v5404_v15 = vpop.eup %4830 }
 0x380   : > { %v597_v17 = vmul.f32 1.442695, %v583_v50  ;;  %v610_v18 = vsel %vm552_vm3, %v5404_v15, 0.0 }
 0x381   : > { %v916_v26 = vpop.xlane.xlu0 %915  ;;  %611 = vadd.xlane.f32.xlu0 %v610_v18 }
 0x382   : > { %4838 = vpow2.f32 %v597_v17  ;;  %v926_v53 = vsub.f32 %v5342_v59, %v916_v26 }
 0x383   : > { %v5409_v28 = vpop.eup %4832 }
 0x384   : > { %v940_v32 = vmul.f32 1.442695, %v926_v53  ;;  %v953_v40 = vsel %vm552_vm3, %v5409_v28, 0.0 }
 0x385   : > { %954 = vadd.xlane.f32.xlu1 %v953_v40  ;;  %v567_v42 = vpop.xlane.xlu0 %566 }
 0x386   : > { %4840 = vpow2.f32 %v940_v32  ;;  %v581_v56 = vsub.f32 %v5346_v62, %v567_v42 }
 0x387   : > { %v5414_v45 = vpop.eup %4834 }
 0x388   : > { %v593_v46 = vmul.f32 1.442695, %v581_v56  ;;  %v604_v22 = vsel %vm552_vm3, %v5414_v45, 0.0 }
 0x389   : > { %v910_v49 = vpop.xlane.xlu0 %909  ;;  %605 = vadd.xlane.f32.xlu0 %v604_v22 }
 0x38a   : > { %4842 = vpow2.f32 %v593_v46  ;;  %v924_v59 = vsub.f32 %v5350_v1, %v910_v49 }
 0x38b   : > { %v5419_v51 = vpop.eup %4836 }
 0x38c   : > { %v936_v52 = vmul.f32 1.442695, %v924_v59  ;;  %v947_v54 = vsel %vm552_vm3, %v5419_v51, 0.0 }
 0x38d   : > { %948 = vadd.xlane.f32.xlu1 %v947_v54  ;;  %v576_v55 = vpop.xlane.xlu0 %575 }
 0x38e   : > { %4844 = vpow2.f32 %v936_v52  ;;  %v584_v62 = vsub.f32 %v5354_v4, %v576_v55 }
 0x38f   : > { %v5424_v57 = vpop.eup %4838 }
 0x390   : > { %v599_v58 = vmul.f32 1.442695, %v584_v62  ;;  %v619_v60 = vsel %vm552_vm3, %v5424_v57, 0.0 }
 0x391   : > { %v919_v61 = vpop.xlane.xlu0 %918  ;;  %620 = vadd.xlane.f32.xlu0 %v619_v60 }
 0x392   : > { %4846 = vpow2.f32 %v599_v58  ;;  %v927_v1 = vsub.f32 %v5358_v7, %v919_v61 }
 0x393   : > { %v5429_v63 = vpop.eup %4840 }
 0x394   : > { %v942_v0 = vmul.f32 1.442695, %v927_v1  ;;  %v962_v2 = vsel %vm552_vm3, %v5429_v63, 0.0 }
 0x395   : > { %963 = vadd.xlane.f32.xlu1 %v962_v2  ;;  %v570_v3 = vpop.xlane.xlu0 %569 }
 0x396   : > { %4848 = vpow2.f32 %v942_v0  ;;  %v582_v4 = vsub.f32 %v5362_v10, %v570_v3 }
 0x397   : > { %v5434_v5 = vpop.eup %4842 }
 0x398   : > { %v595_v39 = vmul.f32 1.442695, %v582_v4  ;;  %v613_v8 = vsel %vm552_vm3, %v5434_v5, 0.0 }
 0x399   : > { %614 = vadd.xlane.f32.xlu0 %v613_v8  ;;  %v913_v41 = vpop.xlane.xlu0 %912 }
 0x39a   : > { %4850 = vpow2.f32 %v595_v39  ;;  %v925_v7 = vsub.f32 %v5366_v13, %v913_v41 }
 0x39b   : > { %v5439_v9 = vpop.eup %4844 }
 0x39c   : > { %v938_v44 = vmul.f32 1.442695, %v925_v7  ;;  %v956_v12 = vsel %vm552_vm3, %v5439_v9, 0.0 }
 0x39d   : > { %957 = vadd.xlane.f32.xlu1 %v956_v12  ;;  %v5443_v47 = vpop.permute.xlu0 %992 }
 0x39e   : > { %4852 = vpow2.f32 %v938_v44  ;;  %4364 = vmatprep.subr.bf16.mxu0 %v5443_v47 }
 0x39f   : > { %v5446_v10 = vpop.eup %4846  ;;  %4365 = vmatpush3.bf16.msra.mxu0 %v5443_v47 }
 0x3a0   : > { %v622_v14 = vsel %vm552_vm3, %v5446_v10, 0.0 }
 0x3a1   : > { %623 = vadd.xlane.f32.xlu1 %v622_v14 }
 0x3a3   : > { %v5451_v13 = vpop.eup %4848 }
 0x3a4   : > { %v965_v50 = vsel %vm552_vm3, %v5451_v13, 0.0 }
 0x3a5   : > { %966 = vadd.xlane.f32.xlu1 %v965_v50 }
 0x3a7   : > { %v5455_v17 = vpop.eup %4850 }
 0x3a8   : > { %v616_v18 = vsel %vm552_vm3, %v5455_v17, 0.0 }
 0x3a9   : > { %617 = vadd.xlane.f32.xlu1 %v616_v18 }
 0x3ab   : > { %v5459_v26 = vpop.eup %4852 }
 0x3ac   : > { %v959_v53 = vsel %vm552_vm3, %v5459_v26, 0.0 }
 0x3ad   : > { %960 = vadd.xlane.f32.xlu1 %v959_v53 }
 0x3af   : > { %988 = vrot.lane.b32.xlu0 %v5224_v24, %s5114_s17 }
 0x3b3   : > { %1248 = vrot.lane.b32.xlu0 %v5218_v21, %s5115_s18 }
 0x3b7   : > { %1252 = vrot.lane.b32.xlu0 %v5220_v23, %s5115_s18 }
 0x3bb   : > { %1256 = vrot.lane.b32.xlu0 %v5248_v33, %s5115_s18 }
 0x3be   : > { %990 = vrot.lane.b32.xlu1 %v5276_v37, %s5114_s17  ;;  %s5125_s17 = smov 108  }
 0x3bf   : > { %1260 = vrot.lane.b32.xlu0 %v5239_v30, %s5115_s18 }
 0x3c2   : > { %1246 = vrot.lane.b32.xlu1 %v5216_v20, %s5115_s18 }
 0x3c3   : > { %1305 = vrot.lane.b32.xlu0 %v5276_v37, %s5116_s19 }
 0x3c6   : > { %1250 = vrot.lane.b32.xlu1 %v5212_v16, %s5115_s18 }
 0x3c7   : > { %1309 = vrot.lane.b32.xlu0 %v5281_v38, %s5116_s19 }
 0x3ca   : > { %1254 = vrot.lane.b32.xlu1 %v5230_v27, %s5115_s18 }
 0x3cb   : > { %4717 = vrot.lane.b32.xlu0 %v5228_v25, %s5117_s20 }
 0x3ce   : > { %1258 = vrot.lane.b32.xlu1 %v5237_v29, %s5115_s18  ;;  %v609_v20 = vpop.xlane.xlu0 %608  ;;  %s5126_s18 = smov 72  }
 0x3d2   : > { %1303 = vrot.lane.b32.xlu1 %v5224_v24, %s5116_s19  ;;  %v952_v21 = vpop.xlane.xlu0 %951 }
 0x3d6   : > { %1307 = vrot.lane.b32.xlu1 %v5269_v36, %s5116_s19  ;;  %s5127_s19 = smov 44  }
 0x402   : > { %v603_v23 = vpop.xlane.xlu0 %602 }
 0x406   : > { %v946_v30 = vpop.xlane.xlu0 %945 }
 0x40a   : > { %v612_v33 = vpop.xlane.xlu0 %611 }
 0x40b   : > { %4854 = vrcp.f32 %v612_v33 }
 0x40c   : > { %4856 = vrcp.f32 %v603_v23 }
 0x40d   : > { %4858 = vrcp.f32 %v609_v20 }
 0x40e   : > { %v955_v16 = vpop.xlane.xlu1 %954 }
 0x412   : > { %v606_v27 = vpop.xlane.xlu0 %605 }
 0x413   : > { %4860 = vrcp.f32 %v606_v27 }
 0x414   : > { %4862 = vrcp.f32 %v946_v30 }
 0x416   : > { %v949_v32 = vpop.xlane.xlu1 %948 }
 0x417   : > { %4864 = vrcp.f32 %v949_v32 }
 0x418   : > { %v4855_v40 = vpop.eup %4854  ;;  %4866 = vrcp.f32 %v955_v16 }
 0x419   : > { %v4857_v29 = vpop.eup %4856  ;;  %v636_v46 = vmul.f32 %v4855_v40, %v5404_v15  ;;  %4868 = vrcp.f32 %v952_v21 }
 0x41a   : > { %v4859_v42 = vpop.eup %4858  ;;  %v633_v22 = vmul.f32 %v4857_v29, %v5394_v6 }
 0x41b   : > { %v635_v52 = vmul.f32 %v4859_v42, %v5381_v19  ;;  %v621_v19 = vpop.xlane.xlu0 %620 }
 0x41d   : > { %v642_v58 = vpack.c.bf16 %v636_v46, %v635_v52  ;;  %v4818_v46 = vld [vmem:[%s6328_s3] ss:$0 sps:$4 sm:$0xcc]  }
 0x41e   : > { %v964_v54 = vpop.xlane.xlu1 %963 }
 0x420   : > { %v4861_v56 = vpop.eup %4860 }
 0x421   : > { %v634_v49 = vmul.f32 %v4861_v56, %v5414_v45  ;;  %v4863_v59 = vpop.eup %4862 }
 0x422   : > { %v976_v60 = vmul.f32 %v4863_v59, %v5399_v11  ;;  %v615_v45 = vpop.xlane.xlu0 %614 }
 0x423   : > { %v641_v55 = vpack.c.bf16 %v634_v49, %v633_v22  ;;  %v1085_v22 = vrot.slane %v4818_v46, 2 }
 0x424   : > { %v4865_v62 = vpop.eup %4864 }
 0x425   : > { %4344 = vmatprep.mubr.msk.bf16.mxu1 %vm552_vm3, %v641_v55  ;;  %v977_v61 = vmul.f32 %v4865_v62, %v5419_v51  ;;  %v4867_v51 = vpop.eup %4866  ;;  %v1099_v49 = vsel %vm475_vm2, %v1085_v22, 0 }
 0x426   : > { %v958_v1 = vpop.xlane.xlu1 %957  ;;  %4345 = vmatmul.mubr.msk.bf16.vlgmr.msra.gmra.mxu1 %vm552_vm3, %v642_v58  ;;  %v4869_v3 = vpop.eup %4868  ;;  %v979_v8 = vmul.f32 %v4867_v51, %v5409_v28 }
 0x427   : > { %4618 = vmatpush3.bf16.msra.mxu1 %v5376_v43  ;;  %v984_v6 = vpack.c.bf16 %v977_v61, %v976_v60  ;;  %v989_v4 = vpop.permute.xlu0 %988  ;;  %v978_v12 = vmul.f32 %v4869_v3, %v5385_v48 }
 0x428   : > { %4615 = vmatprep.subr.bf16.mxu1 %v5443_v47 }
 0x429   : > { %4370 = vmatprep.mubr.msk.bf16.mxu0 %vm552_vm3, %v984_v6  ;;  %v985_v50 = vpack.c.bf16 %v979_v8, %v978_v12 }
 0x42a   : > { %v624_v15 = vpop.xlane.xlu1 %623 }
 0x42b   : > { %4619 = vmatpush3.bf16.msra.mxu1 %v5443_v47  ;;  %4870 = vrcp.f32 %v624_v15  ;;  %v1249_v28 = vpop.permute.xlu0 %1248 }
 0x42c   : > { %4872 = vrcp.f32 %v615_v45 }
 0x42d   : > { %4874 = vrcp.f32 %v621_v19 }
 0x42e   : > { %v967_v0 = vpop.xlane.xlu1 %966 }
 0x42f   : > { %v1253_v40 = vpop.permute.xlu0 %1252 }
 0x432   : > { %v618_v11 = vpop.xlane.xlu1 %617 }
 0x433   : > { %4876 = vrcp.f32 %v618_v11 }
 0x434   : > { %4878 = vrcp.f32 %v958_v1 }
 0x436   : > { %v961_v43 = vpop.xlane.xlu1 %960 }
 0x437   : > { %4880 = vrcp.f32 %v961_v43 }
 0x438   : > { %4882 = vrcp.f32 %v967_v0  ;;  %v4871_v39 = vpop.eup %4870 }
 0x439   : > { %4884 = vrcp.f32 %v964_v54  ;;  %v4873_v41 = vpop.eup %4872  ;;  %v640_v14 = vmul.f32 %v4871_v39, %v5446_v10 }
 0x43a   : > { %v991_v2 = vpop.permute.xlu1 %990  ;;  %v4875_v44 = vpop.eup %4874  ;;  %v637_v18 = vmul.f32 %v4873_v41, %v5434_v5 }
 0x43b   : > { %4366 = vmatprep.subr.bf16.mxu0 %v991_v2  ;;  %4616 = vmatprep.subr.bf16.mxu1 %v991_v2  ;;  %v639_v21 = vmul.f32 %v4875_v44, %v5424_v57 }
 0x43c   : > { %4367 = vmatpush3.bf16.msra.mxu0 %v991_v2  ;;  %4620 = vmatpush3.bf16.msra.mxu1 %v991_v2 }
 0x43d   : > { %4368 = vmatprep.subr.bf16.mxu0 %v989_v4  ;;  %4617 = vmatprep.subr.bf16.mxu1 %v989_v4  ;;  %v644_v30 = vpack.c.bf16 %v640_v14, %v639_v21 }
 0x43e   : > { %v1247_v7 = vpop.permute.xlu1 %1246 }
 0x43f   : > { %1270 = vxpose.xlu1.b32.start [1/8] (short) (narrow) %v1247_v7, 8 }
 0x440   : > { %v4877_v47 = vpop.eup %4876  ;;  %4369 = vmatpush3.bf16.msra.mxu0 %v989_v4  ;;  %4621 = vmatpush3.bf16.msra.mxu1 %v989_v4 }
 0x441   : > { %v638_v53 = vmul.f32 %v4877_v47, %v5455_v17  ;;  %v4879_v20 = vpop.eup %4878  ;;  %4624 = vmatprep.subr.msk.bf16.mxu0 %vm475_vm2, %v1085_v22 }
 0x442   : > { %v980_v10 = vmul.f32 %v4879_v20, %v5439_v9  ;;  %v1251_v5 = vpop.permute.xlu1 %1250  ;;  %v1257_v9 = vpop.permute.xlu0 %1256 }
 0x443   : > { %4371 = vmatmul.mubr.msk.bf16.vlgmr.msra.gmra.mxu0 %vm552_vm3, %v985_v50  ;;  %1271 = vxpose.xlu1.b32.cont [2/8] (short) (narrow) %v1249_v28, 8  ;;  %v643_v23 = vpack.c.bf16 %v638_v53, %v637_v18 }
 0x444   : > { %v4881_v48 = vpop.eup %4880  ;;  %4379 = vmatpush3.bf16.msra.mxu0 %v1099_v49 }
 0x445   : > { %v4883_v33 = vpop.eup %4882  ;;  %4348 = vmatprep.mubr.msk.bf16.mxu1 %vm552_vm3, %v643_v23  ;;  %v981_v16 = vmul.f32 %v4881_v48, %v5459_v26 }
 0x446   : > { %4349 = vmatmul.mubr.msk.bf16.gmra.mxu1 %vm552_vm3, %v644_v30  ;;  %v4885_v17 = vpop.eup %4884  ;;  %v983_v57 = vmul.f32 %v4883_v33, %v5451_v13  ;;  %v1255_v42 = vpop.permute.xlu1 %1254  ;;  %v742_v13 = vld [vmem:[%s6328_s3] sm:$0x3] }
 0x447   : > { %1272 = vxpose.xlu1.b32.cont [3/8] (short) (narrow) %v1251_v5, 8  ;;  %v986_v27 = vpack.c.bf16 %v981_v16, %v980_v10  ;;  %v982_v32 = vmul.f32 %v4885_v17, %v5429_v63  ;;  %v1261_v56 = vpop.permute.xlu0 %1260  ;;  %4625 = vmatprep.subr.msk.bf16.mxu1 %vm475_vm2, %v742_v13  ;;  %v1179_v63 = vsel %vm475_vm2, %v742_v13, 0 }
 0x449   : > { %4374 = vmatprep.mubr.msk.bf16.mxu1 %vm552_vm3, %v986_v27  ;;  %v987_v29 = vpack.c.bf16 %v983_v57, %v982_v32 }
 0x44a   : > { %v1259_v26 = vpop.permute.xlu1 %1258 }
 0x44b   : > { %1273 = vxpose.xlu1.b32.cont [4/8] (short) (narrow) %v1253_v40, 8  ;;  %v1306_v18 = vpop.permute.xlu0 %1305 }
 0x44e   : > { %4375 = vmatmul.mubr.msk.bf16.vlgmr.msra.gmra.mxu1 %vm552_vm3, %v987_v29  ;;  %v1304_v59 = vpop.permute.xlu1 %1303 }
 0x44f   : > { %1274 = vxpose.xlu1.b32.cont [5/8] (short) (narrow) %v1255_v42, 8  ;;  %4389 = vmatpush3.bf16.msra.mxu1 %v1179_v63  ;;  %v1310_v53 = vpop.permute.xlu0 %1309 }
 0x452   : > { %v1308_v52 = vpop.permute.xlu1 %1307 }
 0x453   : > { %1275 = vxpose.xlu1.b32.cont [6/8] (short) (narrow) %v1257_v9, 8 }
 0x457   : > { %1276 = vxpose.xlu1.b32.cont [7/8] (short) (narrow) %v1259_v26, 8 }
 0x45b   : > { %1277 = vxpose.xlu1.b32.end [8/8] (short) (narrow) %v1261_v56, 8 }
 0x479   : > { %4722 = vrot.lane.b32.xlu1 %v5243_v31, %s5117_s20 }
 0x47d   : > { %4732 = vrot.lane.b32.xlu1 %v5252_v34, %s5117_s20 }
 0x481   : > { %1495 = vrot.lane.b32.xlu1 %v5269_v36, %s5118_s23 }
 0x485   : > { %1493 = vrot.lane.b32.xlu1 %v5276_v37, %s5118_s23 }
 0x4bb   : > { %v1286_v54 = vpop.trf.xlu1 }
 0x4bc   : > { %v1302_v55 = vpack.c.bf16 %v1286_v54, %v1286_v54 }
 0x4be   : > { %4626 = vmatprep.subr.msk.bf16.mxu0 %vm475_vm2, %v1302_v55  ;;  %v1324_v4 = vsel %vm475_vm2, %v1302_v55, 0 }
 0x4e6   : > { %v4346_v62 = vpop.f32.mrf.mxu1 }
 0x4e8   : > { %v707_v58 = vpop.f32.mrf.mxu1 }
 0x4ea   : > { %v4347_v60 = vpop.f32.mrf.mxu1 }
 0x4eb   : > { %v739_v6 = vpack.c.bf16 %v4347_v60, %v4346_v62 }
 0x4ec   : > { %v710_v61 = vpop.f32.mrf.mxu1 }
 0x4ed   : > { %v738_v1 = vpack.c.bf16 %v710_v61, %v707_v58 }
 0x4ef   : > { %4390 = vmatprep.mubr.msk.bf16.mxu1 %vm462_vm1, %v738_v1 }
 0x4f0   : > { %4391 = vmatmul.mubr.msk.bf16.vlgmr.msra.gmra.mxu1 %vm462_vm1, %v739_v6 }
 0x503   : > { %v4372_v19 = vpop.f32.mrf.mxu0 }
 0x505   : > { %v1046_v15 = vpop.f32.mrf.mxu0 }
 0x506   : > { %v4350_v45 = vpop.f32.mrf.mxu1 }
 0x507   : > { %v4373_v0 = vpop.f32.mrf.mxu0 }
 0x508   : > { %v723_v11 = vpop.f32.mrf.mxu1  ;;  %v1078_v3 = vpack.c.bf16 %v4373_v0, %v4372_v19 }
 0x509   : > { %v1049_v43 = vpop.f32.mrf.mxu0 }
 0x50a   : > { %v1077_v51 = vpack.c.bf16 %v1049_v43, %v1046_v15  ;;  %v4351_v2 = vpop.f32.mrf.mxu1 }
 0x50b   : > { %v741_v41 = vpack.c.bf16 %v4351_v2, %v4350_v45 }
 0x50c   : > { %v726_v39 = vpop.f32.mrf.mxu1  ;;  %4380 = vmatprep.mubr.msk.bf16.mxu0 %vm462_vm1, %v1077_v51 }
 0x50d   : > { %v740_v8 = vpack.c.bf16 %v726_v39, %v723_v11  ;;  %4381 = vmatmul.mubr.msk.bf16.vlgmr.msra.gmra.mxu0 %vm462_vm1, %v1078_v3 }
 0x50e   : > { %v4376_v7 = vpop.f32.mrf.mxu1  ;;  %4399 = vmatpush3.bf16.msra.mxu0 %v1324_v4 }
 0x50f   : > { %4394 = vmatprep.mubr.msk.bf16.mxu1 %vm462_vm1, %v740_v8  ;;  %v5571_v8 = vpop.permute.xlu0 %4717 }
 0x510   : > { %v1062_v44 = vpop.f32.mrf.mxu1  ;;  %4395 = vmatmul.mubr.msk.bf16.gmra.mxu1 %vm462_vm1, %v741_v41 }
 0x512   : > { %v4377_v12 = vpop.f32.mrf.mxu1 }
 0x513   : > { %v1080_v50 = vpack.c.bf16 %v4377_v12, %v4376_v7 }
 0x514   : > { %v1065_v47 = vpop.f32.mrf.mxu1 }
 0x515   : > { %v1079_v14 = vpack.c.bf16 %v1065_v47, %v1062_v44 }
 0x517   : > { %4384 = vmatprep.mubr.msk.bf16.mxu0 %vm462_vm1, %v1079_v14 }
 0x518   : > { %4385 = vmatmul.mubr.msk.bf16.gmra.mxu0 %vm462_vm1, %v1080_v50 }
 0x519   : > { %4400 = vmatprep.mubr.msk.bf16.mxu0 %vm462_vm1, %v1304_v59 }
 0x520   : > { %4401 = vmatmul.mubr.msk.bf16.vlgmr.msra.gmra.mxu0 %vm462_vm1, %v1306_v18 }
 0x521   : > { %4404 = vmatprep.mubr.msk.bf16.mxu0 %vm462_vm1, %v1308_v52 }
 0x528   : > { %4405 = vmatmul.mubr.msk.bf16.gmra.mxu0 %vm462_vm1, %v1310_v53 }
 0x5b0   : > { %v4392_v20 = vpop.f32.mrf.mxu1 }
 0x5b2   : > { %v1215_v28 = vpop.f32.mrf.mxu1 }
 0x5b4   : > { %v4393_v23 = vpop.f32.mrf.mxu1 }
 0x5b6   : > { %v1218_v16 = vpop.f32.mrf.mxu1 }
 0x5cd   : > { %v4382_v21 = vpop.f32.mrf.mxu0 }
 0x5ce   : > { %v5540_v48 = vadd.f32 %v4392_v20, %v4382_v21 }
 0x5cf   : > { %v1135_v30 = vpop.f32.mrf.mxu0 }
 0x5d0   : > { %v5542_v33 = vadd.f32 %v1215_v28, %v1135_v30  ;;  %v4396_v27 = vpop.f32.mrf.mxu1 }
 0x5d1   : > { %v4383_v10 = vpop.f32.mrf.mxu0 }
 0x5d2   : > { %v5544_v5 = vadd.f32 %v4393_v23, %v4383_v10  ;;  %v1231_v32 = vpop.f32.mrf.mxu1 }
 0x5d3   : > { %v1138_v17 = vpop.f32.mrf.mxu0 }
 0x5d4   : > { %v5546_v57 = vadd.f32 %v1218_v16, %v1138_v17  ;;  %v4397_v26 = vpop.f32.mrf.mxu1 }
 0x5d8   : > { %v4386_v40 = vpop.f32.mrf.mxu0 }
 0x5d9   : > { %v5548_v29 = vadd.f32 %v4396_v27, %v4386_v40 }
 0x5da   : > { %v1151_v42 = vpop.f32.mrf.mxu0 }
 0x5db   : > { %v5550_v9 = vadd.f32 %v1231_v32, %v1151_v42 }
 0x5dc   : > { %v4387_v56 = vpop.f32.mrf.mxu0 }
 0x5dd   : > { %v5552_v13 = vadd.f32 %v4397_v26, %v4387_v56  ;;  %v4723_v56 = vpop.permute.xlu1 %4722 }
 0x5de   : > { %v5554_v63 = vpop.f32.mrf.mxu0 }
 0x5e0   : > { %v4402_v46 = vpop.f32.mrf.mxu0 }
 0x5e1   : > { %v1393_v22 = vmul.f32 0.5, %v4402_v46 }
 0x5e2   : > { %v1360_v49 = vpop.f32.mrf.mxu0 }
 0x5e3   : > { %v1391_v59 = vmul.f32 0.5, %v1360_v49  ;;  %v1405_v52 = vsel %vm552_vm3, %v1393_v22, -inf }
 0x5e4   : > { %1406 = vmax.xlane.f32.xlu0 %v1405_v52  ;;  %v4403_v54 = vpop.f32.mrf.mxu0 }
 0x5e5   : > { %v1394_v55 = vmul.f32 0.5, %v4403_v54  ;;  %v1399_v62 = vsel %vm552_vm3, %v1391_v59, -inf }
 0x5e6   : > { %v1363_v58 = vpop.f32.mrf.mxu0 }
 0x5e7   : > { %v1392_v60 = vmul.f32 0.5, %v1363_v58  ;;  %v1408_v61 = vsel %vm552_vm3, %v1394_v55, -inf }
 0x5e8   : > { %1400 = vmax.xlane.f32.xlu0 %v1399_v62  ;;  %v4406_v1 = vpop.f32.mrf.mxu0  ;;  %v5587_v62 = vpop.permute.xlu1 %4732 }
 0x5e9   : > { %v1397_v6 = vmul.f32 0.5, %v4406_v1  ;;  %v1402_v19 = vsel %vm552_vm3, %v1392_v60, -inf }
 0x5ea   : > { %v1376_v15 = vpop.f32.mrf.mxu0 }
 0x5eb   : > { %v1395_v45 = vmul.f32 0.5, %v1376_v15  ;;  %v1417_v0 = vsel %vm552_vm3, %v1397_v6, -inf }
 0x5ec   : > { %1409 = vmax.xlane.f32.xlu0 %v1408_v61  ;;  %v4407_v11 = vpop.f32.mrf.mxu0 }
 0x5ed   : > { %v1398_v43 = vmul.f32 0.5, %v4407_v11  ;;  %v1411_v51 = vsel %vm552_vm3, %v1395_v45, -inf }
 0x5ee   : > { %v1379_v2 = vpop.f32.mrf.mxu0 }
 0x5ef   : > { %v5562_v3 = vmul.f32 0.5, %v1379_v2  ;;  %v1420_v4 = vsel %vm552_vm3, %v1398_v43, -inf }
 0x5f0   : > { %1403 = vmax.xlane.f32.xlu0 %v1402_v19 }
 0x5f1   : > { %v1414_v39 = vsel %vm552_vm3, %v5562_v3, -inf }
 0x5f4   : > { %1418 = vmax.xlane.f32.xlu0 %v1417_v0 }
 0x5f8   : > { %1412 = vmax.xlane.f32.xlu0 %v1411_v51 }
 0x5fc   : > { %1421 = vmax.xlane.f32.xlu0 %v1420_v4  ;;  %v1584_v4 = vld [vmem:[%s6328_s3 + $0x4] sm:$0x3] }
 0x5fd   : > { %4627 = vmatprep.subr.msk.bf16.mxu0 %vm475_vm2, %v1584_v4 }
 0x600   : > { %1415 = vmax.xlane.f32.xlu0 %v1414_v39  ;;  %v1598_v39 = vsel %vm475_vm2, %v1584_v4, 0 }
 0x601   : > { %4425 = vmatpush3.bf16.msra.mxu0 %v1598_v39 }
 0x616   : > { %4727 = vrot.lane.b32.xlu0 %v5259_v35, %s5117_s20 }
 0x61a   : > { %1497 = vrot.lane.b32.xlu0 %v5281_v38, %s5118_s23 }
 0x66d   : > { %v1407_v41 = vpop.xlane.xlu0 %1406 }
 0x66e   : > { %v1425_v7 = vsub.f32 %v1393_v22, %v1407_v41 }
 0x670   : > { %v1435_v44 = vmul.f32 1.442695, %v1425_v7  ;;  %v4719_v7 = vunpack.i.l.bf16 %v5571_v8 }
 0x671   : > { %v1401_v12 = vpop.xlane.xlu0 %1400 }
 0x672   : > { %4886 = vpow2.f32 %v1435_v44  ;;  %v1423_v47 = vsub.f32 %v1391_v59, %v1401_v12  ;;  %v4720_v44 = vunpack.i.h.bf16 %v5571_v8  ;;  %v4724_v12 = vunpack.i.l.bf16 %v4723_v56 }
 0x674   : > { %v1431_v14 = vmul.f32 1.442695, %v1423_v47  ;;  %v4725_v47 = vunpack.i.h.bf16 %v4723_v56 }
 0x675   : > { %v1410_v50 = vpop.xlane.xlu0 %1409 }
 0x676   : > { %4888 = vpow2.f32 %v1431_v14  ;;  %v1426_v18 = vsub.f32 %v1394_v55, %v1410_v50 }
 0x678   : > { %v1437_v53 = vmul.f32 1.442695, %v1426_v18 }
 0x679   : > { %v1404_v20 = vpop.xlane.xlu0 %1403 }
 0x67a   : > { %4890 = vpow2.f32 %v1437_v53  ;;  %v1424_v28 = vsub.f32 %v1392_v60, %v1404_v20  ;;  %v4734_v20 = vunpack.i.l.bf16 %v5587_v62 }
 0x67c   : > { %v1433_v21 = vmul.f32 1.442695, %v1424_v28 }
 0x67d   : > { %v1419_v23 = vpop.xlane.xlu0 %1418 }
 0x67e   : > { %4892 = vpow2.f32 %v1433_v21  ;;  %v1429_v30 = vsub.f32 %v1397_v6, %v1419_v23  ;;  %v1496_v6 = vpop.permute.xlu1 %1495  ;;  %v4735_v21 = vunpack.i.h.bf16 %v5587_v62 }
 0x67f   : > { %v5573_v10 = vpop.eup %4886 }
 0x680   : > { %v1443_v16 = vmul.f32 1.442695, %v1429_v30  ;;  %v1453_v17 = vsel %vm552_vm3, %v5573_v10, 0.0 }
 0x681   : > { %1454 = vadd.xlane.f32.xlu0 %v1453_v17  ;;  %v1413_v27 = vpop.xlane.xlu0 %1412 }
 0x682   : > { %4894 = vpow2.f32 %v1443_v16  ;;  %v1427_v32 = vsub.f32 %v1395_v45, %v1413_v27  ;;  %v1494_v11 = vpop.permute.xlu1 %1493 }
 0x683   : > { %v5577_v40 = vpop.eup %4888 }
 0x684   : > { %v1439_v42 = vmul.f32 1.442695, %v1427_v32  ;;  %v1447_v26 = vsel %vm552_vm3, %v5577_v40, 0.0 }
 0x685   : > { %1448 = vadd.xlane.f32.xlu0 %v1447_v26  ;;  %v1422_v46 = vpop.xlane.xlu0 %1421 }
 0x686   : > { %4896 = vpow2.f32 %v1439_v42  ;;  %v1430_v22 = vsub.f32 %v1398_v43, %v1422_v46 }
 0x687   : > { %v5581_v49 = vpop.eup %4890 }
 0x688   : > { %v1445_v59 = vmul.f32 1.442695, %v1430_v22  ;;  %v1456_v52 = vsel %vm552_vm3, %v5581_v49, 0.0 }
 0x689   : > { %1457 = vadd.xlane.f32.xlu0 %v1456_v52  ;;  %v1416_v54 = vpop.xlane.xlu0 %1415 }
 0x68a   : > { %4898 = vpow2.f32 %v1445_v59  ;;  %v1428_v51 = vsub.f32 %v5562_v3, %v1416_v54 }
 0x68b   : > { %v5585_v55 = vpop.eup %4892 }
 0x68c   : > { %v1450_v58 = vsel %vm552_vm3, %v5585_v55, 0.0  ;;  %v1441_v2 = vmul.f32 1.442695, %v1428_v51 }
 0x68d   : > { %1451 = vadd.xlane.f32.xlu1 %v1450_v58  ;;  %v4728_v60 = vpop.permute.xlu0 %4727 }
 0x68e   : > { %4900 = vpow2.f32 %v1441_v2  ;;  %v4729_v14 = vunpack.i.l.bf16 %v4728_v60  ;;  %v4730_v18 = vunpack.i.h.bf16 %v4728_v60 }
 0x68f   : > { %v5591_v61 = vpop.eup %4894 }
 0x690   : > { %v1465_v1 = vsel %vm552_vm3, %v5591_v61, 0.0 }
 0x691   : > { %1466 = vadd.xlane.f32.xlu0 %v1465_v1  ;;  %v1498_v19 = vpop.permute.xlu0 %1497 }
 0x692   : > { %4408 = vmatprep.subr.bf16.mxu1 %v1498_v19 }
 0x693   : > { %v5595_v15 = vpop.eup %4896  ;;  %4409 = vmatpush3.bf16.msra.mxu1 %v1498_v19 }
 0x694   : > { %4410 = vmatprep.subr.bf16.mxu1 %v1496_v6  ;;  %v1459_v45 = vsel %vm552_vm3, %v5595_v15, 0.0 }
 0x695   : > { %1460 = vadd.xlane.f32.xlu0 %v1459_v45 }
 0x697   : > { %v5599_v0 = vpop.eup %4898  ;;  %4411 = vmatpush3.bf16.msra.mxu1 %v1496_v6 }
 0x698   : > { %4412 = vmatprep.subr.bf16.mxu1 %v1494_v11  ;;  %v1468_v43 = vsel %vm552_vm3, %v5599_v0, 0.0 }
 0x699   : > { %1469 = vadd.xlane.f32.xlu0 %v1468_v43 }
 0x69b   : > { %4413 = vmatpush3.bf16.msra.mxu1 %v1494_v11  ;;  %v5619_v3 = vpop.eup %4900 }
 0x69c   : > { %v1462_v41 = vsel %vm552_vm3, %v5619_v3, 0.0 }
 0x69e   : > { %1730 = vrot.lane.b32.xlu1 %v5224_v24, %s5119_s28 }
 0x6a2   : > { %1734 = vrot.lane.b32.xlu1 %v5269_v36, %s5119_s28 }
 0x6af   : > { %1491 = vrot.lane.b32.xlu0 %v5224_v24, %s5118_s23 }
 0x6b3   : > { %1732 = vrot.lane.b32.xlu0 %v5276_v37, %s5119_s28 }
 0x6b7   : > { %1736 = vrot.lane.b32.xlu0 %v5281_v38, %s5119_s28  ;;  %s5130_s28 = smov 40  }
 0x6bb   : > { %4737 = vrot.lane.b32.xlu0 %v5228_v25, %s5120_s9 }
 0x6bf   : > { %4747 = vrot.lane.b32.xlu0 %v5259_v35, %s5120_s9 }
 0x6c3   : > { %1924 = vrot.lane.b32.xlu0 %v5281_v38, %s5121_s11 }
 0x6c6   : > { %1463 = vadd.xlane.f32.xlu1 %v1462_v41 }
 0x6f9   : > { %1697 = vxpose.xlu1.b32.start [1/8] (short) (narrow) %v4719_v7, 8 }
 0x6fd   : > { %1698 = vxpose.xlu1.b32.cont [2/8] (short) (narrow) %v4720_v44, 8 }
 0x701   : > { %1699 = vxpose.xlu1.b32.cont [3/8] (short) (narrow) %v4724_v12, 8 }
 0x705   : > { %1700 = vxpose.xlu1.b32.cont [4/8] (short) (narrow) %v4725_v47, 8 }
 0x709   : > { %1701 = vxpose.xlu1.b32.cont [5/8] (short) (narrow) %v4729_v14, 8 }
 0x70a   : > { %v1455_v50 = vpop.xlane.xlu0 %1454 }
 0x70d   : > { %1702 = vxpose.xlu1.b32.cont [6/8] (short) (narrow) %v4730_v18, 8 }
 0x70e   : > { %v1449_v53 = vpop.xlane.xlu0 %1448 }
 0x70f   : > { %4902 = vrcp.f32 %v1449_v53 }
 0x711   : > { %1703 = vxpose.xlu1.b32.cont [7/8] (short) (narrow) %v4734_v20, 8 }
 0x712   : > { %v1458_v28 = vpop.xlane.xlu0 %1457 }
 0x713   : > { %4904 = vrcp.f32 %v1458_v28 }
 0x714   : > { %4906 = vrcp.f32 %v1455_v50 }
 0x715   : > { %1704 = vxpose.xlu1.b32.end [8/8] (short) (narrow) %v4735_v21, 8 }
 0x716   : > { %v1452_v8 = vpop.xlane.xlu1 %1451 }
 0x717   : > { %4908 = vrcp.f32 %v1452_v8 }
 0x71a   : > { %v1467_v23 = vpop.xlane.xlu0 %1466 }
 0x71c   : > { %v4903_v16 = vpop.eup %4902 }
 0x71d   : > { %v1479_v56 = vmul.f32 %v4903_v16, %v5577_v40 }
 0x71e   : > { %v1461_v30 = vpop.xlane.xlu0 %1460 }
 0x720   : > { %v4905_v17 = vpop.eup %4904 }
 0x721   : > { %v4907_v32 = vpop.eup %4906  ;;  %v1482_v26 = vmul.f32 %v4905_v17, %v5581_v49  ;;  %v1731_v49 = vpop.permute.xlu1 %1730 }
 0x722   : > { %v1470_v27 = vpop.xlane.xlu0 %1469  ;;  %v1481_v59 = vmul.f32 %v4907_v32, %v5573_v10 }
 0x723   : > { %4910 = vrcp.f32 %v1470_v27 }
 0x724   : > { %v4909_v42 = vpop.eup %4908  ;;  %v1488_v54 = vpack.c.bf16 %v1482_v26, %v1481_v59  ;;  %4912 = vrcp.f32 %v1461_v30 }
 0x725   : > { %v1480_v46 = vmul.f32 %v4909_v42, %v5585_v55  ;;  %v1735_v55 = vpop.permute.xlu1 %1734  ;;  %4914 = vrcp.f32 %v1467_v23 }
 0x726   : > { %v1492_v22 = vpop.permute.xlu0 %1491 }
 0x727   : > { %4414 = vmatprep.subr.bf16.mxu1 %v1492_v22  ;;  %v1487_v52 = vpack.c.bf16 %v1480_v46, %v1479_v56 }
 0x728   : > { %4415 = vmatpush3.bf16.msra.mxu1 %v1492_v22 }
 0x729   : > { %4416 = vmatprep.mubr.msk.bf16.mxu1 %vm552_vm3, %v1487_v52 }
 0x72a   : > { %v1733_v62 = vpop.permute.xlu0 %1732 }
 0x72b   : > { %4417 = vmatmul.mubr.msk.bf16.vlgmr.msra.gmra.mxu1 %vm552_vm3, %v1488_v54 }
 0x72e   : > { %v1737_v58 = vpop.permute.xlu0 %1736 }
 0x730   : > { %v4911_v6 = vpop.eup %4910 }
 0x731   : > { %v4913_v19 = vpop.eup %4912  ;;  %v1486_v43 = vmul.f32 %v4911_v6, %v5599_v0 }
 0x732   : > { %v5635_v60 = vpop.permute.xlu0 %4737  ;;  %v4915_v45 = vpop.eup %4914  ;;  %v1483_v51 = vmul.f32 %v4913_v19, %v5595_v15 }
 0x733   : > { %4742 = vrot.lane.b32.xlu1 %v5243_v31, %s5120_s9  ;;  %v1485_v4 = vmul.f32 %v4915_v45, %v5591_v61  ;;  %v5657_v61 = vpop.f32.mrf.mxu1 }
 0x735   : > { %v1490_v41 = vpack.c.bf16 %v1486_v43, %v1485_v4 }
 0x736   : > { %v5639_v40 = vpop.permute.xlu0 %4747 }
 0x737   : > { %4752 = vrot.lane.b32.xlu1 %v5252_v34, %s5120_s9 }
 0x73a   : > { %v1925_v10 = vpop.permute.xlu0 %1924 }
 0x73b   : > { %4444 = vmatprep.subr.bf16.mxu0 %v1925_v10  ;;  %1922 = vrot.lane.b32.xlu1 %v5269_v36, %s5121_s11 }
 0x74f   : > { %v1464_v1 = vpop.xlane.xlu1 %1463 }
 0x750   : > { %4916 = vrcp.f32 %v1464_v1 }
 0x75d   : > { %v4917_v11 = vpop.eup %4916 }
 0x75e   : > { %v1484_v2 = vmul.f32 %v4917_v11, %v5619_v3 }
 0x760   : > { %v1489_v39 = vpack.c.bf16 %v1484_v2, %v1483_v51 }
 0x762   : > { %4420 = vmatprep.mubr.msk.bf16.mxu1 %vm552_vm3, %v1489_v39 }
 0x763   : > { %4421 = vmatmul.mubr.msk.bf16.gmra.mxu1 %vm552_vm3, %v1490_v41 }
 0x764   : > { %4436 = vmatprep.mubr.msk.bf16.mxu1 %vm462_vm1, %v1731_v49 }
 0x775   : > { %v1713_v7 = vpop.trf.xlu1 }
 0x776   : > { %v1729_v44 = vpack.c.bf16 %v1713_v7, %v1713_v7 }
 0x778   : > { %4628 = vmatprep.subr.msk.bf16.mxu1 %vm475_vm2, %v1729_v44  ;;  %v1751_v0 = vsel %vm475_vm2, %v1729_v44, 0 }
 0x779   : > { %4435 = vmatpush3.bf16.msra.mxu1 %v1751_v0 }
 0x77c   : > { %4437 = vmatmul.mubr.msk.bf16.vlgmr.msra.gmra.mxu1 %vm462_vm1, %v1733_v62 }
 0x77d   : > { %4440 = vmatprep.mubr.msk.bf16.mxu1 %vm462_vm1, %v1735_v55 }
 0x784   : > { %4441 = vmatmul.mubr.msk.bf16.gmra.mxu1 %vm462_vm1, %v1737_v58 }
 0x7a5   : > { %v5659_v15 = vpop.permute.xlu1 %4742 }
 0x7a9   : > { %v5661_v14 = vpop.permute.xlu1 %4752 }
 0x7ad   : > { %v1923_v20 = vpop.permute.xlu1 %1922 }
 0x7eb   : > { %v4418_v3 = vpop.f32.mrf.mxu1 }
 0x7ed   : > { %v1549_v12 = vpop.f32.mrf.mxu1 }
 0x7ef   : > { %v4419_v47 = vpop.f32.mrf.mxu1 }
 0x7f0   : > { %v1581_v53 = vpack.c.bf16 %v4419_v47, %v4418_v3 }
 0x7f1   : > { %v1552_v50 = vpop.f32.mrf.mxu1 }
 0x7f2   : > { %v1580_v18 = vpack.c.bf16 %v1552_v50, %v1549_v12 }
 0x7f4   : > { %4426 = vmatprep.mubr.msk.bf16.mxu0 %vm462_vm1, %v1580_v18 }
 0x7f5   : > { %4427 = vmatmul.mubr.msk.bf16.vlgmr.msra.gmra.mxu0 %vm462_vm1, %v1581_v53 }
 0x7f6   : > { %4445 = vmatpush3.bf16.msra.mxu0 %v1925_v10 }
 0x7f7   : > { %4446 = vmatprep.subr.bf16.mxu0 %v1923_v20 }
 0x7fa   : > { %4447 = vmatpush3.bf16.msra.mxu0 %v1923_v20 }
 0x823   : > { %v4422_v28 = vpop.f32.mrf.mxu1 }
 0x825   : > { %v1565_v21 = vpop.f32.mrf.mxu1 }
 0x827   : > { %v4423_v8 = vpop.f32.mrf.mxu1 }
 0x828   : > { %v1583_v16 = vpack.c.bf16 %v4423_v8, %v4422_v28 }
 0x829   : > { %v1568_v23 = vpop.f32.mrf.mxu1 }
 0x82a   : > { %v1582_v30 = vpack.c.bf16 %v1568_v23, %v1565_v21 }
 0x82c   : > { %4430 = vmatprep.mubr.msk.bf16.mxu0 %vm462_vm1, %v1582_v30 }
 0x82d   : > { %4431 = vmatmul.mubr.msk.bf16.gmra.mxu0 %vm462_vm1, %v1583_v16 }
 0x83c   : > { %v4438_v17 = vpop.f32.mrf.mxu1 }
 0x83d   : > { %v1820_v27 = vmul.f32 0.5, %v4438_v17 }
 0x83e   : > { %v1787_v32 = vpop.f32.mrf.mxu1 }
 0x83f   : > { %v1818_v42 = vmul.f32 0.5, %v1787_v32  ;;  %v1832_v26 = vsel %vm552_vm3, %v1820_v27, -inf }
 0x840   : > { %1833 = vmax.xlane.f32.xlu0 %v1832_v26  ;;  %v4439_v56 = vpop.f32.mrf.mxu1 }
 0x841   : > { %v1821_v46 = vmul.f32 0.5, %v4439_v56  ;;  %v1826_v22 = vsel %vm552_vm3, %v1818_v42, -inf }
 0x842   : > { %v1790_v59 = vpop.f32.mrf.mxu1 }
 0x843   : > { %v1819_v52 = vmul.f32 0.5, %v1790_v59  ;;  %v1835_v54 = vsel %vm552_vm3, %v1821_v46, -inf }
 0x844   : > { %1827 = vmax.xlane.f32.xlu0 %v1826_v22  ;;  %v4442_v62 = vpop.f32.mrf.mxu1 }
 0x845   : > { %v1824_v58 = vmul.f32 0.5, %v4442_v62  ;;  %v1829_v10 = vsel %vm552_vm3, %v1819_v52, -inf }
 0x846   : > { %v1803_v49 = vpop.f32.mrf.mxu1 }
 0x847   : > { %v1822_v55 = vmul.f32 0.5, %v1803_v49  ;;  %v1844_v1 = vsel %vm552_vm3, %v1824_v58, -inf }
 0x848   : > { %1836 = vmax.xlane.f32.xlu0 %v1835_v54  ;;  %v4443_v6 = vpop.f32.mrf.mxu1 }
 0x849   : > { %v1825_v19 = vmul.f32 0.5, %v4443_v6  ;;  %v1838_v45 = vsel %vm552_vm3, %v1822_v55, -inf }
 0x84a   : > { %v1806_v11 = vpop.f32.mrf.mxu1 }
 0x84b   : > { %v1823_v43 = vmul.f32 0.5, %v1806_v11  ;;  %v1847_v51 = vsel %vm552_vm3, %v1825_v19, -inf }
 0x84c   : > { %1830 = vmax.xlane.f32.xlu0 %v1829_v10 }
 0x84d   : > { %v1841_v2 = vsel %vm552_vm3, %v1823_v43, -inf }
 0x850   : > { %1845 = vmax.xlane.f32.xlu0 %v1844_v1 }
 0x854   : > { %1839 = vmax.xlane.f32.xlu0 %v1838_v45 }
 0x858   : > { %1848 = vmax.xlane.f32.xlu0 %v1847_v51 }
 0x85c   : > { %1842 = vmax.xlane.f32.xlu0 %v1841_v2 }
 0x872   : > { %1920 = vrot.lane.b32.xlu0 %v5276_v37, %s5121_s11 }
 0x8b5   : > { %v4428_v4 = vpop.f32.mrf.mxu0 }
 0x8b6   : > { %v5678_v39 = vadd.f32 %v4428_v4, %v5540_v48 }
 0x8b7   : > { %v1634_v41 = vpop.f32.mrf.mxu0 }
 0x8b8   : > { %v5681_v7 = vadd.f32 %v1634_v41, %v5542_v33 }
 0x8b9   : > { %v4429_v44 = vpop.f32.mrf.mxu0 }
 0x8ba   : > { %v5684_v0 = vadd.f32 %v4429_v44, %v5544_v5 }
 0x8bb   : > { %v1637_v3 = vpop.f32.mrf.mxu0 }
 0x8bc   : > { %v5687_v12 = vadd.f32 %v1637_v3, %v5546_v57 }
 0x8c9   : > { %v1834_v47 = vpop.xlane.xlu0 %1833 }
 0x8ca   : > { %v1852_v50 = vsub.f32 %v1820_v27, %v1834_v47 }
 0x8cc   : > { %v1862_v18 = vmul.f32 1.442695, %v1852_v50 }
 0x8cd   : > { %v1828_v53 = vpop.xlane.xlu0 %1827 }
 0x8ce   : > { %4918 = vpow2.f32 %v1862_v18  ;;  %v1850_v20 = vsub.f32 %v1818_v42, %v1828_v53  ;;  %v4744_v53 = vunpack.i.l.bf16 %v5659_v15 }
 0x8d0   : > { %v1858_v48 = vmul.f32 1.442695, %v1850_v20  ;;  %v4745_v20 = vunpack.i.h.bf16 %v5659_v15 }
 0x8d1   : > { %v1837_v28 = vpop.xlane.xlu0 %1836 }
 0x8d2   : > { %4920 = vpow2.f32 %v1858_v48  ;;  %v1853_v21 = vsub.f32 %v1821_v46, %v1837_v28  ;;  %v4749_v48 = vunpack.i.l.bf16 %v5639_v40  ;;  %v4750_v28 = vunpack.i.h.bf16 %v5639_v40 }
 0x8d4   : > { %v1864_v33 = vmul.f32 1.442695, %v1853_v21  ;;  %v4754_v21 = vunpack.i.l.bf16 %v5661_v14 }
 0x8d5   : > { %v1831_v8 = vpop.xlane.xlu0 %1830 }
 0x8d6   : > { %4922 = vpow2.f32 %v1864_v33  ;;  %v1851_v23 = vsub.f32 %v1819_v52, %v1831_v8  ;;  %v4755_v33 = vunpack.i.h.bf16 %v5661_v14 }
 0x8d8   : > { %v1860_v5 = vmul.f32 1.442695, %v1851_v23 }
 0x8d9   : > { %v1846_v30 = vpop.xlane.xlu0 %1845 }
 0x8da   : > { %4924 = vpow2.f32 %v1860_v5  ;;  %v1856_v16 = vsub.f32 %v1824_v58, %v1846_v30 }
 0x8db   : > { %v5689_v57 = vpop.eup %4918 }
 0x8dc   : > { %v1870_v17 = vmul.f32 1.442695, %v1856_v16  ;;  %v1880_v27 = vsel %vm552_vm3, %v5689_v57, 0.0 }
 0x8dd   : > { %v1840_v32 = vpop.xlane.xlu0 %1839  ;;  %1881 = vadd.xlane.f32.xlu0 %v1880_v27 }
 0x8de   : > { %4926 = vpow2.f32 %v1870_v17  ;;  %v1854_v42 = vsub.f32 %v1822_v55, %v1840_v32 }
 0x8df   : > { %v5693_v26 = vpop.eup %4920 }
 0x8e0   : > { %v1866_v56 = vmul.f32 1.442695, %v1854_v42  ;;  %v1874_v46 = vsel %vm552_vm3, %v5693_v26, 0.0 }
 0x8e1   : > { %v1849_v22 = vpop.xlane.xlu0 %1848  ;;  %1875 = vadd.xlane.f32.xlu0 %v1874_v46 }
 0x8e2   : > { %4928 = vpow2.f32 %v1866_v56  ;;  %v1857_v59 = vsub.f32 %v1825_v19, %v1849_v22 }
 0x8e3   : > { %v5697_v52 = vpop.eup %4922 }
 0x8e4   : > { %v1872_v54 = vmul.f32 1.442695, %v1857_v59  ;;  %v1883_v62 = vsel %vm552_vm3, %v5697_v52, 0.0 }
 0x8e5   : > { %1884 = vadd.xlane.f32.xlu0 %v1883_v62  ;;  %v1843_v58 = vpop.xlane.xlu0 %1842 }
 0x8e6   : > { %4930 = vpow2.f32 %v1872_v54  ;;  %v1855_v10 = vsub.f32 %v1823_v43, %v1843_v58 }
 0x8e7   : > { %v5701_v49 = vpop.eup %4924 }
 0x8e8   : > { %v1868_v55 = vmul.f32 1.442695, %v1855_v10  ;;  %v1877_v1 = vsel %vm552_vm3, %v5701_v49, 0.0 }
 0x8e9   : > { %1878 = vadd.xlane.f32.xlu1 %v1877_v1  ;;  %v1921_v6 = vpop.permute.xlu0 %1920 }
 0x8ea   : > { %4932 = vpow2.f32 %v1868_v55  ;;  %4448 = vmatprep.subr.bf16.mxu0 %v1921_v6 }
 0x8eb   : > { %v5705_v19 = vpop.eup %4926  ;;  %4449 = vmatpush3.bf16.msra.mxu0 %v1921_v6 }
 0x8ec   : > { %v1892_v45 = vsel %vm552_vm3, %v5705_v19, 0.0 }
 0x8ed   : > { %v4432_v11 = vpop.f32.mrf.mxu0  ;;  %1893 = vadd.xlane.f32.xlu0 %v1892_v45 }
 0x8ee   : > { %v5710_v43 = vadd.f32 %v4432_v11, %v5548_v29 }
 0x8ef   : > { %v5712_v51 = vpop.eup %4928  ;;  %v1650_v2 = vpop.f32.mrf.mxu0 }
 0x8f0   : > { %v5715_v4 = vadd.f32 %v1650_v2, %v5550_v9  ;;  %v1886_v41 = vsel %vm552_vm3, %v5712_v51, 0.0  ;;  %v4739_v9 = vunpack.i.l.bf16 %v5635_v60 }
 0x8f1   : > { %v4433_v44 = vpop.f32.mrf.mxu0  ;;  %1887 = vadd.xlane.f32.xlu0 %v1886_v41 }
 0x8f2   : > { %v5720_v3 = vadd.f32 %v4433_v44, %v5552_v13  ;;  %v4740_v13 = vunpack.i.h.bf16 %v5635_v60 }
 0x8f3   : > { %v5722_v47 = vpop.eup %4930 }
 0x8f4   : > { %v1895_v29 = vsel %vm552_vm3, %v5722_v47, 0.0 }
 0x8f5   : > { %1896 = vadd.xlane.f32.xlu0 %v1895_v29  ;;  %v4819_v29 = vld [vmem:[%s6328_s3 + $0x4] ss:$0 sps:$4 sm:$0xcc]  }
 0x8f7   : > { %v4933_v50 = vpop.eup %4932 }
 0x8f8   : > { %v1889_v18 = vsel %vm552_vm3, %v4933_v50, 0.0 }
 0x8f9   : > { %1890 = vadd.xlane.f32.xlu1 %v1889_v18 }
 0x90a   : > { %1918 = vrot.lane.b32.xlu1 %v5224_v24, %s5121_s11  ;;  %s5132_s11 = smov 36  }
 0x90b   : > { %2161 = vrot.lane.b32.xlu0 %v5224_v24, %s5122_s12 }
 0x90e   : > { %2163 = vrot.lane.b32.xlu1 %v5276_v37, %s5122_s12 }
 0x90f   : > { %2165 = vrot.lane.b32.xlu0 %v5269_v36, %s5122_s12 }
 0x912   : > { %2167 = vrot.lane.b32.xlu1 %v5281_v38, %s5122_s12 }
 0x92d   : > { %2128 = vxpose.xlu0.b32.start [1/8] (short) (narrow) %v4739_v9, 8  ;;  %v5763_v9 = vpop.f32.mrf.mxu0 }
 0x931   : > { %2129 = vxpose.xlu0.b32.cont [2/8] (short) (narrow) %v4740_v13, 8 }
 0x935   : > { %2130 = vxpose.xlu0.b32.cont [3/8] (short) (narrow) %v4744_v53, 8 }
 0x939   : > { %2131 = vxpose.xlu0.b32.cont [4/8] (short) (narrow) %v4745_v20, 8 }
 0x93d   : > { %2132 = vxpose.xlu0.b32.cont [5/8] (short) (narrow) %v4749_v48, 8 }
 0x941   : > { %2133 = vxpose.xlu0.b32.cont [6/8] (short) (narrow) %v4750_v28, 8 }
 0x945   : > { %2134 = vxpose.xlu0.b32.cont [7/8] (short) (narrow) %v4754_v21, 8 }
 0x949   : > { %2135 = vxpose.xlu0.b32.end [8/8] (short) (narrow) %v4755_v33, 8 }
 0x966   : > { %v1882_v60 = vpop.xlane.xlu0 %1881 }
 0x96a   : > { %v1876_v8 = vpop.xlane.xlu0 %1875 }
 0x96b   : > { %4934 = vrcp.f32 %v1876_v8 }
 0x96e   : > { %v1885_v23 = vpop.xlane.xlu0 %1884 }
 0x972   : > { %v1879_v5 = vpop.xlane.xlu1 %1878 }
 0x973   : > { %4936 = vrcp.f32 %v1879_v5 }
 0x974   : > { %4938 = vrcp.f32 %v1885_v23 }
 0x975   : > { %4940 = vrcp.f32 %v1882_v60 }
 0x976   : > { %v1894_v15 = vpop.xlane.xlu0 %1893 }
 0x978   : > { %v4935_v16 = vpop.eup %4934 }
 0x979   : > { %v1906_v27 = vmul.f32 %v4935_v16, %v5693_v26 }
 0x97a   : > { %v1888_v30 = vpop.xlane.xlu0 %1887 }
 0x97e   : > { %v1897_v17 = vpop.xlane.xlu0 %1896 }
 0x97f   : > { %4942 = vrcp.f32 %v1897_v17 }
 0x980   : > { %v4937_v40 = vpop.eup %4936  ;;  %4944 = vrcp.f32 %v1888_v30 }
 0x981   : > { %v1907_v14 = vmul.f32 %v4937_v40, %v5701_v49  ;;  %v4939_v32 = vpop.eup %4938  ;;  %4946 = vrcp.f32 %v1894_v15 }
 0x982   : > { %v1891_v42 = vpop.xlane.xlu1 %1890  ;;  %v4941_v46 = vpop.eup %4940  ;;  %v1909_v22 = vmul.f32 %v4939_v32, %v5697_v52 }
 0x983   : > { %4948 = vrcp.f32 %v1891_v42  ;;  %v1914_v56 = vpack.c.bf16 %v1907_v14, %v1906_v27  ;;  %v1908_v54 = vmul.f32 %v4941_v46, %v5689_v57  ;;  %v2162_v57 = vpop.permute.xlu0 %2161 }
 0x985   : > { %4452 = vmatprep.mubr.msk.bf16.mxu0 %vm552_vm3, %v1914_v56  ;;  %v1915_v62 = vpack.c.bf16 %v1909_v22, %v1908_v54 }
 0x986   : > { %v1919_v59 = vpop.permute.xlu1 %1918 }
 0x987   : > { %4450 = vmatprep.subr.bf16.mxu0 %v1919_v59  ;;  %v2166_v2 = vpop.permute.xlu0 %2165 }
 0x988   : > { %4451 = vmatpush3.bf16.msra.mxu0 %v1919_v59 }
 0x98b   : > { %4453 = vmatmul.mubr.msk.bf16.vlgmr.msra.gmra.mxu0 %vm552_vm3, %v1915_v62 }
 0x98c   : > { %v4943_v26 = vpop.eup %4942 }
 0x98d   : > { %v4945_v58 = vpop.eup %4944  ;;  %v1913_v55 = vmul.f32 %v4943_v26, %v5722_v47 }
 0x98e   : > { %v4947_v10 = vpop.eup %4946  ;;  %v1910_v1 = vmul.f32 %v4945_v58, %v5712_v51  ;;  %v2164_v51 = vpop.permute.xlu1 %2163 }
 0x98f   : > { %v1912_v52 = vmul.f32 %v4947_v10, %v5705_v19 }
 0x990   : > { %v4949_v49 = vpop.eup %4948 }
 0x991   : > { %v1911_v6 = vmul.f32 %v4949_v49, %v4933_v50  ;;  %v1917_v11 = vpack.c.bf16 %v1913_v55, %v1912_v52  ;;  %v2015_v50 = vrot.slane %v4819_v29, 2 }
 0x992   : > { %v2168_v19 = vpop.permute.xlu1 %2167 }
 0x993   : > { %v1916_v45 = vpack.c.bf16 %v1911_v6, %v1910_v1  ;;  %4629 = vmatprep.subr.msk.bf16.mxu1 %vm475_vm2, %v2015_v50  ;;  %v2029_v18 = vsel %vm475_vm2, %v2015_v50, 0 }
 0x994   : > { %4461 = vmatpush3.bf16.msra.mxu1 %v2029_v18 }
 0x995   : > { %4456 = vmatprep.mubr.msk.bf16.mxu0 %vm552_vm3, %v1916_v45 }
 0x996   : > { %4457 = vmatmul.mubr.msk.bf16.gmra.mxu0 %vm552_vm3, %v1917_v11 }
 0x997   : > { %4472 = vmatprep.mubr.msk.bf16.mxu0 %vm462_vm1, %v2162_v57 }
 0x9a9   : > { %v2144_v41 = vpop.trf.xlu0 }
 0x9aa   : > { %v2160_v44 = vpack.c.bf16 %v2144_v41, %v2144_v41 }
 0x9ac   : > { %4630 = vmatprep.subr.msk.bf16.mxu0 %vm475_vm2, %v2160_v44  ;;  %v2182_v47 = vsel %vm475_vm2, %v2160_v44, 0 }
 0x9ad   : > { %4471 = vmatpush3.bf16.msra.mxu0 %v2182_v47 }
 0x9b0   : > { %4473 = vmatmul.mubr.msk.bf16.vlgmr.msra.gmra.mxu0 %vm462_vm1, %v2164_v51 }
 0x9b1   : > { %4476 = vmatprep.mubr.msk.bf16.mxu0 %vm462_vm1, %v2166_v2 }
 0x9b8   : > { %4477 = vmatmul.mubr.msk.bf16.gmra.mxu0 %vm462_vm1, %v2168_v19 }
 0xa4b   : > { %v4454_v13 = vpop.f32.mrf.mxu0 }
 0xa4d   : > { %v1976_v53 = vpop.f32.mrf.mxu0 }
 0xa4f   : > { %v4455_v20 = vpop.f32.mrf.mxu0 }
 0xa50   : > { %v2008_v21 = vpack.c.bf16 %v4455_v20, %v4454_v13 }
 0xa51   : > { %v1979_v48 = vpop.f32.mrf.mxu0 }
 0xa52   : > { %v2007_v28 = vpack.c.bf16 %v1979_v48, %v1976_v53 }
 0xa54   : > { %4462 = vmatprep.mubr.msk.bf16.mxu1 %vm462_vm1, %v2007_v28 }
 0xa55   : > { %4463 = vmatmul.mubr.msk.bf16.vlgmr.msra.gmra.mxu1 %vm462_vm1, %v2008_v21 }
 0xa56   : > { %v4458_v33 = vpop.f32.mrf.mxu0 }
 0xa58   : > { %v1992_v60 = vpop.f32.mrf.mxu0 }
 0xa5a   : > { %v4459_v8 = vpop.f32.mrf.mxu0 }
 0xa5b   : > { %v2010_v15 = vpack.c.bf16 %v4459_v8, %v4458_v33 }
 0xa5c   : > { %v1995_v23 = vpop.f32.mrf.mxu0 }
 0xa5d   : > { %v2009_v5 = vpack.c.bf16 %v1995_v23, %v1992_v60 }
 0xa5f   : > { %4466 = vmatprep.mubr.msk.bf16.mxu1 %vm462_vm1, %v2009_v5 }
 0xa60   : > { %4467 = vmatmul.mubr.msk.bf16.gmra.mxu1 %vm462_vm1, %v2010_v15 }
 0xa70   : > { %v4474_v30 = vpop.f32.mrf.mxu0 }
 0xa71   : > { %v2251_v16 = vmul.f32 0.5, %v4474_v30 }
 0xa72   : > { %v2218_v17 = vpop.f32.mrf.mxu0 }
 0xa73   : > { %v2249_v40 = vmul.f32 0.5, %v2218_v17  ;;  %v2263_v27 = vsel %vm552_vm3, %v2251_v16, -inf }
 0xa74   : > { %2264 = vmax.xlane.f32.xlu1 %v2263_v27  ;;  %v4475_v14 = vpop.f32.mrf.mxu0 }
 0xa75   : > { %v2252_v42 = vmul.f32 0.5, %v4475_v14  ;;  %v2257_v56 = vsel %vm552_vm3, %v2249_v40, -inf }
 0xa76   : > { %v2221_v32 = vpop.f32.mrf.mxu0 }
 0xa77   : > { %v2250_v59 = vmul.f32 0.5, %v2221_v32  ;;  %v2266_v54 = vsel %vm552_vm3, %v2252_v42, -inf }
 0xa78   : > { %2258 = vmax.xlane.f32.xlu1 %v2257_v56  ;;  %v4478_v46 = vpop.f32.mrf.mxu0 }
 0xa79   : > { %v2255_v58 = vmul.f32 0.5, %v4478_v46  ;;  %v2260_v10 = vsel %vm552_vm3, %v2250_v59, -inf }
 0xa7a   : > { %v2234_v22 = vpop.f32.mrf.mxu0 }
 0xa7b   : > { %v2253_v55 = vmul.f32 0.5, %v2234_v22  ;;  %v2275_v1 = vsel %vm552_vm3, %v2255_v58, -inf }
 0xa7c   : > { %2267 = vmax.xlane.f32.xlu1 %v2266_v54  ;;  %v4479_v62 = vpop.f32.mrf.mxu0 }
 0xa7d   : > { %v2256_v26 = vmul.f32 0.5, %v4479_v62  ;;  %v2269_v6 = vsel %vm552_vm3, %v2253_v55, -inf }
 0xa7e   : > { %v2237_v52 = vpop.f32.mrf.mxu0 }
 0xa7f   : > { %v2278_v49 = vsel %vm552_vm3, %v2256_v26, -inf  ;;  %v5784_v45 = vmul.f32 0.5, %v2237_v52 }
 0xa80   : > { %2261 = vmax.xlane.f32.xlu1 %v2260_v10  ;;  %2279 = vmax.xlane.f32.xlu0 %v2278_v49 }
 0xa81   : > { %v2272_v11 = vsel %vm552_vm3, %v5784_v45, -inf }
 0xa84   : > { %2276 = vmax.xlane.f32.xlu1 %v2275_v1 }
 0xa88   : > { %2270 = vmax.xlane.f32.xlu1 %v2269_v6 }
 0xa96   : > { %4767 = vrot.lane.b32.xlu0 %v5259_v35, %s5123_s15 }
 0xa99   : > { %4757 = vrot.lane.b32.xlu1 %v5228_v25, %s5123_s15 }
 0xa9a   : > { %2355 = vrot.lane.b32.xlu0 %v5281_v38, %s5124_s16 }
 0xa9d   : > { %4762 = vrot.lane.b32.xlu1 %v5243_v31, %s5123_s15 }
 0xaa1   : > { %4772 = vrot.lane.b32.xlu1 %v5252_v34, %s5123_s15 }
 0xaa5   : > { %2353 = vrot.lane.b32.xlu1 %v5269_v36, %s5124_s16 }
 0xac9   : > { %2273 = vmax.xlane.f32.xlu1 %v2272_v11 }
 0xada   : > { %2351 = vrot.lane.b32.xlu1 %v5276_v37, %s5124_s16 }
 0xafd   : > { %v2265_v57 = vpop.xlane.xlu1 %2264 }
 0xafe   : > { %v2283_v2 = vsub.f32 %v2251_v16, %v2265_v57 }
 0xb00   : > { %v2293_v41 = vmul.f32 1.442695, %v2283_v2 }
 0xb01   : > { %v2259_v44 = vpop.xlane.xlu1 %2258 }
 0xb02   : > { %4950 = vpow2.f32 %v2293_v41  ;;  %v2281_v47 = vsub.f32 %v2249_v40, %v2259_v44 }
 0xb04   : > { %v2289_v51 = vmul.f32 1.442695, %v2281_v47 }
 0xb05   : > { %v2268_v19 = vpop.xlane.xlu1 %2267 }
 0xb06   : > { %4952 = vpow2.f32 %v2289_v51  ;;  %v2284_v29 = vsub.f32 %v2252_v42, %v2268_v19 }
 0xb08   : > { %v2295_v50 = vmul.f32 1.442695, %v2284_v29 }
 0xb09   : > { %v2262_v18 = vpop.xlane.xlu1 %2261  ;;  %v2280_v13 = vpop.xlane.xlu0 %2279 }
 0xb0a   : > { %4954 = vpow2.f32 %v2295_v50  ;;  %v2282_v53 = vsub.f32 %v2250_v59, %v2262_v18  ;;  %v2288_v60 = vsub.f32 %v2256_v26, %v2280_v13 }
 0xb0c   : > { %v2291_v20 = vmul.f32 1.442695, %v2282_v53  ;;  %v2303_v17 = vmul.f32 1.442695, %v2288_v60 }
 0xb0d   : > { %v2277_v48 = vpop.xlane.xlu1 %2276  ;;  %v5790_v28 = vpop.permute.xlu0 %4767 }
 0xb0e   : > { %4956 = vpow2.f32 %v2291_v20  ;;  %v2287_v21 = vsub.f32 %v2255_v58, %v2277_v48  ;;  %v4770_v48 = vunpack.i.h.bf16 %v5790_v28 }
 0xb0f   : > { %v5792_v33 = vpop.eup %4950 }
 0xb10   : > { %v2301_v8 = vmul.f32 1.442695, %v2287_v21  ;;  %v2311_v23 = vsel %vm552_vm3, %v5792_v33, 0.0 }
 0xb11   : > { %v2271_v5 = vpop.xlane.xlu1 %2270  ;;  %2312 = vadd.xlane.f32.xlu0 %v2311_v23  ;;  %v2356_v15 = vpop.permute.xlu0 %2355 }
 0xb12   : > { %4958 = vpow2.f32 %v2301_v8  ;;  %v2285_v30 = vsub.f32 %v2253_v55, %v2271_v5  ;;  %4480 = vmatprep.subr.bf16.mxu1 %v2356_v15 }
 0xb13   : > { %v5796_v16 = vpop.eup %4952  ;;  %4481 = vmatpush3.bf16.msra.mxu1 %v2356_v15 }
 0xb14   : > { %v2297_v40 = vmul.f32 1.442695, %v2285_v30  ;;  %v2305_v27 = vsel %vm552_vm3, %v5796_v16, 0.0 }
 0xb15   : > { %v4464_v14 = vpop.f32.mrf.mxu1  ;;  %v4758_v32 = vpop.permute.xlu1 %4757  ;;  %2306 = vadd.xlane.f32.xlu1 %v2305_v27 }
 0xb16   : > { %4960 = vpow2.f32 %v2297_v40  ;;  %v5801_v42 = vadd.f32 %v4464_v14, %v5678_v39  ;;  %v4759_v50 = vunpack.i.l.bf16 %v4758_v32  ;;  %v4760_v13 = vunpack.i.h.bf16 %v4758_v32 }
 0xb17   : > { %v5803_v56 = vpop.eup %4954  ;;  %v2065_v46 = vpop.f32.mrf.mxu1  ;;  %4962 = vpow2.f32 %v2303_v17 }
 0xb18   : > { %v5806_v22 = vadd.f32 %v2065_v46, %v5681_v7  ;;  %v2314_v59 = vsel %vm552_vm3, %v5803_v56, 0.0 }
 0xb19   : > { %v4465_v54 = vpop.f32.mrf.mxu1  ;;  %v4763_v62 = vpop.permute.xlu1 %4762  ;;  %2315 = vadd.xlane.f32.xlu0 %v2314_v59 }
 0xb1a   : > { %v5811_v26 = vadd.f32 %v4465_v54, %v5684_v0  ;;  %v4764_v53 = vunpack.i.l.bf16 %v4763_v62  ;;  %v4765_v20 = vunpack.i.h.bf16 %v4763_v62 }
 0xb1b   : > { %v5813_v58 = vpop.eup %4956  ;;  %v2068_v39 = vpop.f32.mrf.mxu1 }
 0xb1c   : > { %v5816_v10 = vadd.f32 %v2068_v39, %v5687_v12  ;;  %v2308_v49 = vsel %vm552_vm3, %v5813_v58, 0.0 }
 0xb1d   : > { %v4773_v7 = vpop.permute.xlu1 %4772  ;;  %2309 = vadd.xlane.f32.xlu0 %v2308_v49 }
 0xb1e   : > { %v4774_v21 = vunpack.i.l.bf16 %v4773_v7  ;;  %v4775_v60 = vunpack.i.h.bf16 %v4773_v7 }
 0xb1f   : > { %v5820_v55 = vpop.eup %4958 }
 0xb20   : > { %v4468_v1 = vpop.f32.mrf.mxu1  ;;  %v2323_v6 = vsel %vm552_vm3, %v5820_v55, 0.0 }
 0xb21   : > { %v5825_v0 = vadd.f32 %v4468_v1, %v5710_v43  ;;  %v2354_v52 = vpop.permute.xlu1 %2353  ;;  %2324 = vadd.xlane.f32.xlu0 %v2323_v6 }
 0xb22   : > { %v2081_v11 = vpop.f32.mrf.mxu1  ;;  %4482 = vmatprep.subr.bf16.mxu1 %v2354_v52 }
 0xb23   : > { %v5827_v12 = vpop.eup %4960  ;;  %v5830_v57 = vadd.f32 %v2081_v11, %v5715_v4  ;;  %4483 = vmatpush3.bf16.msra.mxu1 %v2354_v52 }
 0xb24   : > { %v4469_v2 = vpop.f32.mrf.mxu1  ;;  %v2317_v41 = vsel %vm552_vm3, %v5827_v12, 0.0  ;;  %v5834_v44 = vpop.eup %4962 }
 0xb25   : > { %v5837_v47 = vadd.f32 %v4469_v2, %v5720_v3  ;;  %2318 = vadd.xlane.f32.xlu1 %v2317_v41  ;;  %v2326_v43 = vsel %vm552_vm3, %v5834_v44, 0.0 }
 0xb29   : > { %2327 = vadd.xlane.f32.xlu1 %v2326_v43 }
 0xb3a   : > { %2588 = vrot.lane.b32.xlu1 %v5224_v24, %s5125_s17 }
 0xb3e   : > { %2592 = vrot.lane.b32.xlu1 %v5269_v36, %s5125_s17 }
 0xb52   : > { %v2274_v4 = vpop.xlane.xlu1 %2273 }
 0xb53   : > { %v2286_v51 = vsub.f32 %v5784_v45, %v2274_v4  ;;  %v4769_v45 = vunpack.i.l.bf16 %v5790_v28 }
 0xb55   : > { %v2299_v19 = vmul.f32 1.442695, %v2286_v51 }
 0xb56   : > { %v2352_v29 = vpop.permute.xlu1 %2351 }
 0xb57   : > { %4964 = vpow2.f32 %v2299_v19  ;;  %4484 = vmatprep.subr.bf16.mxu1 %v2352_v29 }
 0xb58   : > { %4485 = vmatpush3.bf16.msra.mxu1 %v2352_v29 }
 0xb64   : > { %v5846_v3 = vpop.eup %4964 }
 0xb65   : > { %v2320_v18 = vsel %vm552_vm3, %v5846_v3, 0.0 }
 0xb66   : > { %2321 = vadd.xlane.f32.xlu0 %v2320_v18 }
 0xb67   : > { %2555 = vxpose.xlu1.b32.start [1/8] (short) (narrow) %v4759_v50, 8 }
 0xb6b   : > { %2556 = vxpose.xlu1.b32.cont [2/8] (short) (narrow) %v4760_v13, 8 }
 0xb6f   : > { %2557 = vxpose.xlu1.b32.cont [3/8] (short) (narrow) %v4764_v53, 8 }
 0xb73   : > { %2558 = vxpose.xlu1.b32.cont [4/8] (short) (narrow) %v4765_v20, 8 }
 0xb77   : > { %2559 = vxpose.xlu1.b32.cont [5/8] (short) (narrow) %v4769_v45, 8 }
 0xb7b   : > { %2560 = vxpose.xlu1.b32.cont [6/8] (short) (narrow) %v4770_v48, 8 }
 0xb7c   : > { %2349 = vrot.lane.b32.xlu0 %v5224_v24, %s5124_s16 }
 0xb7f   : > { %2561 = vxpose.xlu1.b32.cont [7/8] (short) (narrow) %v4774_v21, 8 }
 0xb80   : > { %2590 = vrot.lane.b32.xlu0 %v5276_v37, %s5125_s17 }
 0xb83   : > { %2562 = vxpose.xlu1.b32.end [8/8] (short) (narrow) %v4775_v60, 8 }
 0xb84   : > { %2594 = vrot.lane.b32.xlu0 %v5281_v38, %s5125_s17 }
 0xb88   : > { %4777 = vrot.lane.b32.xlu0 %v5228_v25, %s5126_s18 }
 0xb9a   : > { %v2313_v8 = vpop.xlane.xlu0 %2312 }
 0xb9e   : > { %v2307_v28 = vpop.xlane.xlu1 %2306 }
 0xb9f   : > { %4966 = vrcp.f32 %v2307_v28 }
 0xba1   : > { %4782 = vrot.lane.b32.xlu1 %v5243_v31, %s5126_s18 }
 0xba2   : > { %v2316_v23 = vpop.xlane.xlu0 %2315 }
 0xba5   : > { %4792 = vrot.lane.b32.xlu1 %v5252_v34, %s5126_s18 }
 0xba6   : > { %v2310_v5 = vpop.xlane.xlu0 %2309 }
 0xba7   : > { %4968 = vrcp.f32 %v2310_v5 }
 0xba8   : > { %4970 = vrcp.f32 %v2316_v23 }
 0xba9   : > { %2780 = vrot.lane.b32.xlu1 %v5269_v36, %s5127_s19  ;;  %4972 = vrcp.f32 %v2313_v8 }
 0xbaa   : > { %v2325_v59 = vpop.xlane.xlu0 %2324 }
 0xbac   : > { %v4967_v15 = vpop.eup %4966 }
 0xbad   : > { %2778 = vrot.lane.b32.xlu1 %v5276_v37, %s5127_s19  ;;  %v2337_v17 = vmul.f32 %v4967_v15, %v5796_v16 }
 0xbae   : > { %v2319_v14 = vpop.xlane.xlu1 %2318 }
 0xbb2   : > { %v2328_v32 = vpop.xlane.xlu1 %2327 }
 0xbb3   : > { %4974 = vrcp.f32 %v2328_v32 }
 0xbb4   : > { %v4969_v30 = vpop.eup %4968  ;;  %4976 = vrcp.f32 %v2319_v14 }
 0xbb5   : > { %v2338_v40 = vmul.f32 %v4969_v30, %v5813_v58  ;;  %v4971_v62 = vpop.eup %4970  ;;  %4978 = vrcp.f32 %v2325_v59 }
 0xbb6   : > { %v2589_v46 = vpop.permute.xlu1 %2588  ;;  %v4973_v16 = vpop.eup %4972  ;;  %v2340_v58 = vmul.f32 %v4971_v62, %v5803_v56 }
 0xbb7   : > { %v2345_v27 = vpack.c.bf16 %v2338_v40, %v2337_v17  ;;  %v2339_v6 = vmul.f32 %v4973_v16, %v5792_v33 }
 0xbb9   : > { %4488 = vmatprep.mubr.msk.bf16.mxu1 %vm552_vm3, %v2345_v27  ;;  %v2346_v52 = vpack.c.bf16 %v2340_v58, %v2339_v6 }
 0xbba   : > { %v2593_v54 = vpop.permute.xlu1 %2592 }
 0xbc0   : > { %v4975_v2 = vpop.eup %4974 }
 0xbc1   : > { %v4977_v41 = vpop.eup %4976  ;;  %v2344_v56 = vmul.f32 %v4975_v2, %v5834_v44 }
 0xbc2   : > { %v4979_v43 = vpop.eup %4978  ;;  %v2341_v51 = vmul.f32 %v4977_v41, %v5827_v12 }
 0xbc3   : > { %v2343_v19 = vmul.f32 %v4979_v43, %v5820_v55  ;;  %v2442_v55 = vld [vmem:[%s6328_s3 + $0x8] sm:$0x3] }
 0xbc4   : > { %4631 = vmatprep.subr.msk.bf16.mxu0 %vm475_vm2, %v2442_v55  ;;  %v2456_v12 = vsel %vm475_vm2, %v2442_v55, 0 }
 0xbc5   : > { %v2348_v50 = vpack.c.bf16 %v2344_v56, %v2343_v19  ;;  %4497 = vmatpush3.bf16.msra.mxu0 %v2456_v12 }
 0xbe3   : > { %v2571_v49 = vpop.trf.xlu1 }
 0xbe4   : > { %v2587_v7 = vpack.c.bf16 %v2571_v49, %v2571_v49 }
 0xbe6   : > { %v2609_v11 = vsel %vm475_vm2, %v2587_v7, 0 }
 0xbef   : > { %v2322_v39 = vpop.xlane.xlu0 %2321 }
 0xbf0   : > { %4980 = vrcp.f32 %v2322_v39 }
 0xbf3   : > { %v2350_v1 = vpop.permute.xlu0 %2349 }
 0xbf4   : > { %4486 = vmatprep.subr.bf16.mxu1 %v2350_v1 }
 0xbf5   : > { %4487 = vmatpush3.bf16.msra.mxu1 %v2350_v1 }
 0xbf6   : > { %4632 = vmatprep.subr.msk.bf16.mxu1 %vm475_vm2, %v2587_v7 }
 0xbf7   : > { %v2591_v18 = vpop.permute.xlu0 %2590 }
 0xbf8   : > { %4489 = vmatmul.mubr.msk.bf16.vlgmr.msra.gmra.mxu1 %vm552_vm3, %v2346_v52 }
 0xbf9   : > { %4507 = vmatpush3.bf16.msra.mxu1 %v2609_v11 }
 0xbfb   : > { %v2595_v44 = vpop.permute.xlu0 %2594 }
 0xbfd   : > { %v4981_v4 = vpop.eup %4980 }
 0xbfe   : > { %v2342_v33 = vmul.f32 %v4981_v4, %v5846_v3  ;;  %v5891_v3 = vpop.f32.mrf.mxu1 }
 0xc00   : > { %v2347_v29 = vpack.c.bf16 %v2342_v33, %v2341_v51  ;;  %v5912_v51 = vpop.permute.xlu0 %4777 }
 0xc02   : > { %4492 = vmatprep.mubr.msk.bf16.mxu1 %vm552_vm3, %v2347_v29 }
 0xc03   : > { %4493 = vmatmul.mubr.msk.bf16.gmra.mxu1 %vm552_vm3, %v2348_v50 }
 0xc04   : > { %4508 = vmatprep.mubr.msk.bf16.mxu1 %vm462_vm1, %v2589_v46 }
 0xc0b   : > { %4509 = vmatmul.mubr.msk.bf16.vlgmr.msra.gmra.mxu1 %vm462_vm1, %v2591_v18 }
 0xc0c   : > { %4512 = vmatprep.mubr.msk.bf16.mxu1 %vm462_vm1, %v2593_v54 }
 0xc13   : > { %4513 = vmatmul.mubr.msk.bf16.gmra.mxu1 %vm462_vm1, %v2595_v44 }
 0xcb8   : > { %v4490_v13 = vpop.f32.mrf.mxu1 }
 0xcba   : > { %v2407_v53 = vpop.f32.mrf.mxu1 }
 0xcbc   : > { %v4491_v20 = vpop.f32.mrf.mxu1 }
 0xcbd   : > { %v2439_v21 = vpack.c.bf16 %v4491_v20, %v4490_v13 }
 0xcbe   : > { %v2410_v45 = vpop.f32.mrf.mxu1 }
 0xcbf   : > { %v2438_v48 = vpack.c.bf16 %v2410_v45, %v2407_v53 }
 0xcc1   : > { %4498 = vmatprep.mubr.msk.bf16.mxu0 %vm462_vm1, %v2438_v48 }
 0xcc2   : > { %4499 = vmatmul.mubr.msk.bf16.vlgmr.msra.gmra.mxu0 %vm462_vm1, %v2439_v21 }
 0xcc3   : > { %v4494_v60 = vpop.f32.mrf.mxu1 }
 0xcc5   : > { %v2423_v8 = vpop.f32.mrf.mxu1 }
 0xcc7   : > { %v4495_v28 = vpop.f32.mrf.mxu1 }
 0xcc8   : > { %v2441_v15 = vpack.c.bf16 %v4495_v28, %v4494_v60 }
 0xcc9   : > { %v2426_v23 = vpop.f32.mrf.mxu1 }
 0xcca   : > { %v2440_v5 = vpack.c.bf16 %v2426_v23, %v2423_v8 }
 0xccb   : > { %v4510_v30 = vpop.f32.mrf.mxu1 }
 0xccc   : > { %v2678_v17 = vmul.f32 0.5, %v4510_v30  ;;  %4502 = vmatprep.mubr.msk.bf16.mxu0 %vm462_vm1, %v2440_v5 }
 0xccd   : > { %4503 = vmatmul.mubr.msk.bf16.gmra.mxu0 %vm462_vm1, %v2441_v15  ;;  %v2645_v40 = vpop.f32.mrf.mxu1 }
 0xcce   : > { %v2676_v27 = vmul.f32 0.5, %v2645_v40  ;;  %v2690_v14 = vsel %vm552_vm3, %v2678_v17, -inf  ;;  %v5922_v40 = vpop.permute.xlu1 %4782 }
 0xccf   : > { %2691 = vmax.xlane.f32.xlu0 %v2690_v14  ;;  %v4511_v32 = vpop.f32.mrf.mxu1 }
 0xcd0   : > { %v2679_v46 = vmul.f32 0.5, %v4511_v32  ;;  %v2684_v59 = vsel %vm552_vm3, %v2676_v27, -inf }
 0xcd1   : > { %v2648_v54 = vpop.f32.mrf.mxu1 }
 0xcd2   : > { %v2677_v62 = vmul.f32 0.5, %v2648_v54  ;;  %v2693_v39 = vsel %vm552_vm3, %v2679_v46, -inf }
 0xcd3   : > { %2685 = vmax.xlane.f32.xlu0 %v2684_v59  ;;  %v4514_v49 = vpop.f32.mrf.mxu1 }
 0xcd4   : > { %v2682_v16 = vmul.f32 0.5, %v4514_v49  ;;  %v2687_v58 = vsel %vm552_vm3, %v2677_v62, -inf }
 0xcd5   : > { %v2661_v7 = vpop.f32.mrf.mxu1 }
 0xcd6   : > { %v2680_v1 = vmul.f32 0.5, %v2661_v7  ;;  %v2702_v6 = vsel %vm552_vm3, %v2682_v16, -inf }
 0xcd7   : > { %2694 = vmax.xlane.f32.xlu0 %v2693_v39  ;;  %v4515_v52 = vpop.f32.mrf.mxu1  ;;  %v5930_v39 = vpop.permute.xlu1 %4792 }
 0xcd8   : > { %v2683_v11 = vmul.f32 0.5, %v4515_v52  ;;  %v2696_v2 = vsel %vm552_vm3, %v2680_v1, -inf }
 0xcd9   : > { %v2664_v41 = vpop.f32.mrf.mxu1 }
 0xcda   : > { %v5903_v43 = vmul.f32 0.5, %v2664_v41  ;;  %v2705_v4 = vsel %vm552_vm3, %v2683_v11, -inf }
 0xcdb   : > { %2688 = vmax.xlane.f32.xlu0 %v2687_v58 }
 0xcdc   : > { %v2699_v56 = vsel %vm552_vm3, %v5903_v43, -inf }
 0xcdf   : > { %2703 = vmax.xlane.f32.xlu0 %v2702_v6 }
 0xce3   : > { %2697 = vmax.xlane.f32.xlu0 %v2696_v2 }
 0xce7   : > { %2706 = vmax.xlane.f32.xlu0 %v2705_v4 }
 0xceb   : > { %2700 = vmax.xlane.f32.xlu0 %v2699_v56 }
 0xd01   : > { %4787 = vrot.lane.b32.xlu0 %v5259_v35, %s5126_s18 }
 0xd05   : > { %2782 = vrot.lane.b32.xlu0 %v5281_v38, %s5127_s19 }
 0xd58   : > { %v2692_v33 = vpop.xlane.xlu0 %2691 }
 0xd59   : > { %v2710_v19 = vsub.f32 %v2678_v17, %v2692_v33 }
 0xd5b   : > { %v2720_v29 = vmul.f32 1.442695, %v2710_v19 }
 0xd5c   : > { %v2686_v50 = vpop.xlane.xlu0 %2685 }
 0xd5d   : > { %4982 = vpow2.f32 %v2720_v29  ;;  %v2708_v18 = vsub.f32 %v2676_v27, %v2686_v50 }
 0xd5f   : > { %v2716_v44 = vmul.f32 1.442695, %v2708_v18 }
 0xd60   : > { %v2695_v55 = vpop.xlane.xlu0 %2694 }
 0xd61   : > { %4984 = vpow2.f32 %v2716_v44  ;;  %v2711_v12 = vsub.f32 %v2679_v46, %v2695_v55 }
 0xd63   : > { %v2722_v13 = vmul.f32 1.442695, %v2711_v12 }
 0xd64   : > { %v2689_v53 = vpop.xlane.xlu0 %2688 }
 0xd65   : > { %4986 = vpow2.f32 %v2722_v13  ;;  %v2709_v20 = vsub.f32 %v2677_v62, %v2689_v53 }
 0xd67   : > { %v2718_v45 = vmul.f32 1.442695, %v2709_v20 }
 0xd68   : > { %v2704_v48 = vpop.xlane.xlu0 %2703 }
 0xd69   : > { %4988 = vpow2.f32 %v2718_v45  ;;  %v2714_v21 = vsub.f32 %v2682_v16, %v2704_v48  ;;  %v4780_v48 = vunpack.i.h.bf16 %v5912_v51 }
 0xd6a   : > { %v5914_v60 = vpop.eup %4982 }
 0xd6b   : > { %v2728_v8 = vmul.f32 1.442695, %v2714_v21  ;;  %v2738_v28 = vsel %vm552_vm3, %v5914_v60, 0.0  ;;  %v4784_v21 = vunpack.i.l.bf16 %v5922_v40 }
 0xd6c   : > { %v2698_v23 = vpop.xlane.xlu0 %2697  ;;  %2739 = vadd.xlane.f32.xlu0 %v2738_v28 }
 0xd6d   : > { %4990 = vpow2.f32 %v2728_v8  ;;  %v2712_v5 = vsub.f32 %v2680_v1, %v2698_v23  ;;  %v2781_v1 = vpop.permute.xlu1 %2780 }
 0xd6e   : > { %v5918_v15 = vpop.eup %4984 }
 0xd6f   : > { %v2724_v30 = vmul.f32 1.442695, %v2712_v5  ;;  %v2732_v17 = vsel %vm552_vm3, %v5918_v15, 0.0 }
 0xd70   : > { %v2707_v27 = vpop.xlane.xlu0 %2706  ;;  %2733 = vadd.xlane.f32.xlu0 %v2732_v17 }
 0xd71   : > { %4992 = vpow2.f32 %v2724_v30  ;;  %v2715_v14 = vsub.f32 %v2683_v11, %v2707_v27  ;;  %v2779_v41 = vpop.permute.xlu1 %2778  ;;  %v4794_v30 = vunpack.i.l.bf16 %v5930_v39 }
 0xd72   : > { %v5924_v32 = vpop.eup %4986 }
 0xd73   : > { %v2730_v46 = vmul.f32 1.442695, %v2715_v14  ;;  %v2741_v59 = vsel %vm552_vm3, %v5924_v32, 0.0 }
 0xd74   : > { %2742 = vadd.xlane.f32.xlu0 %v2741_v59  ;;  %v2701_v54 = vpop.xlane.xlu0 %2700 }
 0xd75   : > { %4994 = vpow2.f32 %v2730_v46 }
 0xd76   : > { %v5928_v62 = vpop.eup %4988 }
 0xd77   : > { %v2735_v49 = vsel %vm552_vm3, %v5928_v62, 0.0 }
 0xd78   : > { %2736 = vadd.xlane.f32.xlu1 %v2735_v49  ;;  %v5934_v16 = vpop.permute.xlu0 %4787 }
 0xd79   : > { %v4789_v8 = vunpack.i.l.bf16 %v5934_v16  ;;  %v4790_v23 = vunpack.i.h.bf16 %v5934_v16 }
 0xd7a   : > { %v5936_v58 = vpop.eup %4990 }
 0xd7b   : > { %v2750_v7 = vsel %vm552_vm3, %v5936_v58, 0.0 }
 0xd7c   : > { %2751 = vadd.xlane.f32.xlu0 %v2750_v7  ;;  %v2783_v6 = vpop.permute.xlu0 %2782 }
 0xd7d   : > { %4516 = vmatprep.subr.bf16.mxu0 %v2783_v6 }
 0xd7e   : > { %v5940_v52 = vpop.eup %4992  ;;  %4517 = vmatpush3.bf16.msra.mxu0 %v2783_v6 }
 0xd7f   : > { %4518 = vmatprep.subr.bf16.mxu0 %v2781_v1  ;;  %v2744_v11 = vsel %vm552_vm3, %v5940_v52, 0.0 }
 0xd80   : > { %2745 = vadd.xlane.f32.xlu0 %v2744_v11 }
 0xd82   : > { %v5944_v2 = vpop.eup %4994  ;;  %v4500_v4 = vpop.f32.mrf.mxu0  ;;  %4519 = vmatpush3.bf16.msra.mxu0 %v2781_v1 }
 0xd83   : > { %v5947_v56 = vadd.f32 %v4500_v4, %v5801_v42  ;;  %4520 = vmatprep.subr.bf16.mxu0 %v2779_v41  ;;  %v2753_v33 = vsel %vm552_vm3, %v5944_v2, 0.0 }
 0xd84   : > { %v2492_v19 = vpop.f32.mrf.mxu0  ;;  %2754 = vadd.xlane.f32.xlu0 %v2753_v33 }
 0xd85   : > { %v5952_v29 = vadd.f32 %v2492_v19, %v5806_v22 }
 0xd86   : > { %v4501_v50 = vpop.f32.mrf.mxu0  ;;  %4521 = vmatpush3.bf16.msra.mxu0 %v2779_v41 }
 0xd87   : > { %v5955_v18 = vadd.f32 %v4501_v50, %v5811_v26 }
 0xd88   : > { %v2495_v44 = vpop.f32.mrf.mxu0 }
 0xd89   : > { %v5958_v55 = vadd.f32 %v2495_v44, %v5816_v10  ;;  %3019 = vrot.lane.b32.xlu1 %v5224_v24, %s5128_s22  ;;  %v2713_v10 = vsub.f32 %v5903_v43, %v2701_v54 }
 0xd8b   : > { %v2726_v20 = vmul.f32 1.442695, %v2713_v10 }
 0xd8d   : > { %v4504_v42 = vpop.f32.mrf.mxu0  ;;  %3023 = vrot.lane.b32.xlu1 %v5269_v36, %s5128_s22  ;;  %4996 = vpow2.f32 %v2726_v20 }
 0xd8e   : > { %v5963_v12 = vadd.f32 %v4504_v42, %v5825_v0  ;;  %v4820_v0 = vld [vmem:[%s6328_s3 + $0x8] ss:$0 sps:$4 sm:$0xcc]  }
 0xd8f   : > { %v2508_v22 = vpop.f32.mrf.mxu0 }
 0xd90   : > { %v5966_v13 = vadd.f32 %v2508_v22, %v5830_v57  ;;  %v2873_v57 = vrot.slane %v4820_v0, 2 }
 0xd91   : > { %v4505_v53 = vpop.f32.mrf.mxu0 }
 0xd92   : > { %v5969_v26 = vadd.f32 %v4505_v53, %v5837_v47  ;;  %4633 = vmatprep.subr.msk.bf16.mxu1 %vm475_vm2, %v2873_v57  ;;  %v2887_v47 = vsel %vm475_vm2, %v2873_v57, 0 }
 0xd93   : > { %4533 = vmatpush3.bf16.msra.mxu1 %v2887_v47 }
 0xd9a   : > { %2776 = vrot.lane.b32.xlu0 %v5224_v24, %s5127_s19  ;;  %v5985_v43 = vpop.eup %4996 }
 0xd9b   : > { %v2747_v45 = vsel %vm552_vm3, %v5985_v43, 0.0 }
 0xd9e   : > { %3021 = vrot.lane.b32.xlu0 %v5276_v37, %s5128_s22 }
 0xda2   : > { %3025 = vrot.lane.b32.xlu0 %v5281_v38, %s5128_s22 }
 0xda6   : > { %4797 = vrot.lane.b32.xlu0 %v5228_v25, %s5129_s27  ;;  %v4779_v25 = vunpack.i.l.bf16 %v5912_v51  ;;  %v4795_v51 = vunpack.i.h.bf16 %v5930_v39 }
 0xdaa   : > { %4807 = vrot.lane.b32.xlu0 %v5259_v35, %s5129_s27  ;;  %v4785_v35 = vunpack.i.h.bf16 %v5922_v40 }
 0xdae   : > { %3213 = vrot.lane.b32.xlu0 %v5281_v38, %s5130_s28 }
 0xdb1   : > { %2748 = vadd.xlane.f32.xlu1 %v2747_v45 }
 0xde4   : > { %2986 = vxpose.xlu1.b32.start [1/8] (short) (narrow) %v4779_v25, 8 }
 0xde8   : > { %2987 = vxpose.xlu1.b32.cont [2/8] (short) (narrow) %v4780_v48, 8 }
 0xdec   : > { %2988 = vxpose.xlu1.b32.cont [3/8] (short) (narrow) %v4784_v21, 8 }
 0xdf0   : > { %2989 = vxpose.xlu1.b32.cont [4/8] (short) (narrow) %v4785_v35, 8 }
 0xdf4   : > { %2990 = vxpose.xlu1.b32.cont [5/8] (short) (narrow) %v4789_v8, 8 }
 0xdf5   : > { %v2740_v28 = vpop.xlane.xlu0 %2739 }
 0xdf8   : > { %2991 = vxpose.xlu1.b32.cont [6/8] (short) (narrow) %v4790_v23, 8 }
 0xdf9   : > { %v2734_v5 = vpop.xlane.xlu0 %2733 }
 0xdfa   : > { %4998 = vrcp.f32 %v2734_v5 }
 0xdfc   : > { %2992 = vxpose.xlu1.b32.cont [7/8] (short) (narrow) %v4794_v30, 8 }
 0xdfd   : > { %v2743_v17 = vpop.xlane.xlu0 %2742 }
 0xdfe   : > { %5000 = vrcp.f32 %v2743_v17 }
 0xdff   : > { %5002 = vrcp.f32 %v2740_v28 }
 0xe00   : > { %2993 = vxpose.xlu1.b32.end [8/8] (short) (narrow) %v4795_v51, 8 }
 0xe01   : > { %v2737_v40 = vpop.xlane.xlu1 %2736 }
 0xe02   : > { %5004 = vrcp.f32 %v2737_v40 }
 0xe05   : > { %v2752_v27 = vpop.xlane.xlu0 %2751 }
 0xe07   : > { %v4999_v46 = vpop.eup %4998 }
 0xe08   : > { %v2764_v1 = vmul.f32 %v4999_v46, %v5918_v15 }
 0xe09   : > { %v2746_v14 = vpop.xlane.xlu0 %2745 }
 0xe0b   : > { %v5001_v59 = vpop.eup %5000 }
 0xe0c   : > { %v5003_v49 = vpop.eup %5002  ;;  %v2767_v7 = vmul.f32 %v5001_v59, %v5924_v32  ;;  %v3020_v32 = vpop.permute.xlu1 %3019 }
 0xe0d   : > { %v2755_v54 = vpop.xlane.xlu0 %2754  ;;  %v2766_v11 = vmul.f32 %v5003_v49, %v5914_v60 }
 0xe0e   : > { %5006 = vrcp.f32 %v2755_v54 }
 0xe0f   : > { %v5005_v16 = vpop.eup %5004  ;;  %v2773_v4 = vpack.c.bf16 %v2767_v7, %v2766_v11  ;;  %5008 = vrcp.f32 %v2746_v14 }
 0xe10   : > { %v2765_v6 = vmul.f32 %v5005_v16, %v5928_v62  ;;  %v3024_v62 = vpop.permute.xlu1 %3023  ;;  %5010 = vrcp.f32 %v2752_v27 }
 0xe11   : > { %v2777_v39 = vpop.permute.xlu0 %2776 }
 0xe12   : > { %4522 = vmatprep.subr.bf16.mxu0 %v2777_v39  ;;  %v2772_v41 = vpack.c.bf16 %v2765_v6, %v2764_v1 }
 0xe13   : > { %4523 = vmatpush3.bf16.msra.mxu0 %v2777_v39 }
 0xe14   : > { %4524 = vmatprep.mubr.msk.bf16.mxu0 %vm552_vm3, %v2772_v41 }
 0xe15   : > { %v3022_v33 = vpop.permute.xlu0 %3021 }
 0xe16   : > { %4525 = vmatmul.mubr.msk.bf16.vlgmr.msra.gmra.mxu0 %vm552_vm3, %v2773_v4 }
 0xe19   : > { %v3026_v19 = vpop.permute.xlu0 %3025 }
 0xe1b   : > { %v5007_v42 = vpop.eup %5006 }
 0xe1c   : > { %v5009_v22 = vpop.eup %5008  ;;  %v2771_v10 = vmul.f32 %v5007_v42, %v5944_v2 }
 0xe1d   : > { %v6005_v50 = vpop.permute.xlu0 %4797 }
 0xe1e   : > { %4802 = vrot.lane.b32.xlu1 %v5243_v31, %s5129_s27  ;;  %v5011_v31 = vpop.eup %5010 }
 0xe1f   : > { %v2770_v0 = vmul.f32 %v5011_v31, %v5936_v58  ;;  %v6027_v58 = vpop.f32.mrf.mxu0 }
 0xe21   : > { %v6009_v15 = vpop.permute.xlu0 %4807  ;;  %v2775_v47 = vpack.c.bf16 %v2771_v10, %v2770_v0 }
 0xe22   : > { %4812 = vrot.lane.b32.xlu1 %v5252_v34, %s5129_s27  ;;  %v2768_v34 = vmul.f32 %v5009_v22, %v5940_v52 }
 0xe25   : > { %v3214_v60 = vpop.permute.xlu0 %3213 }
 0xe26   : > { %4552 = vmatprep.subr.bf16.mxu1 %v3214_v60  ;;  %3211 = vrot.lane.b32.xlu1 %v5269_v36, %s5130_s28 }
 0xe3a   : > { %v2749_v44 = vpop.xlane.xlu1 %2748 }
 0xe3b   : > { %5012 = vrcp.f32 %v2749_v44 }
 0xe48   : > { %v5013_v53 = vpop.eup %5012 }
 0xe49   : > { %v2769_v20 = vmul.f32 %v5013_v53, %v5985_v43 }
 0xe4b   : > { %v2774_v57 = vpack.c.bf16 %v2769_v20, %v2768_v34 }
 0xe4d   : > { %4528 = vmatprep.mubr.msk.bf16.mxu0 %vm552_vm3, %v2774_v57 }
 0xe4e   : > { %4529 = vmatmul.mubr.msk.bf16.gmra.mxu0 %vm552_vm3, %v2775_v47 }
 0xe4f   : > { %4544 = vmatprep.mubr.msk.bf16.mxu0 %vm462_vm1, %v3020_v32 }
 0xe60   : > { %v3002_v45 = vpop.trf.xlu1 }
 0xe61   : > { %v3018_v25 = vpack.c.bf16 %v3002_v45, %v3002_v45 }
 0xe63   : > { %v3040_v48 = vsel %vm475_vm2, %v3018_v25, 0  ;;  %4634 = vmatprep.subr.msk.bf16.mxu0 %vm475_vm2, %v3018_v25 }
 0xe64   : > { %4543 = vmatpush3.bf16.msra.mxu0 %v3040_v48 }
 0xe67   : > { %4545 = vmatmul.mubr.msk.bf16.vlgmr.msra.gmra.mxu0 %vm462_vm1, %v3022_v33 }
 0xe68   : > { %4548 = vmatprep.mubr.msk.bf16.mxu0 %vm462_vm1, %v3024_v62 }
 0xe6f   : > { %4549 = vmatmul.mubr.msk.bf16.gmra.mxu0 %vm462_vm1, %v3026_v19 }
 0xe90   : > { %v6029_v52 = vpop.permute.xlu1 %4802 }
 0xe94   : > { %v6031_v35 = vpop.permute.xlu1 %4812 }
 0xe98   : > { %v3212_v5 = vpop.permute.xlu1 %3211 }
 0xed6   : > { %v4526_v2 = vpop.f32.mrf.mxu0 }
 0xed8   : > { %v2834_v43 = vpop.f32.mrf.mxu0 }
 0xeda   : > { %v4527_v21 = vpop.f32.mrf.mxu0 }
 0xedb   : > { %v2866_v23 = vpack.c.bf16 %v4527_v21, %v4526_v2 }
 0xedc   : > { %v2837_v8 = vpop.f32.mrf.mxu0 }
 0xedd   : > { %v2865_v28 = vpack.c.bf16 %v2837_v8, %v2834_v43 }
 0xedf   : > { %4534 = vmatprep.mubr.msk.bf16.mxu1 %vm462_vm1, %v2865_v28 }
 0xee0   : > { %4535 = vmatmul.mubr.msk.bf16.vlgmr.msra.gmra.mxu1 %vm462_vm1, %v2866_v23 }
 0xee1   : > { %4553 = vmatpush3.bf16.msra.mxu1 %v3214_v60 }
 0xee2   : > { %4554 = vmatprep.subr.bf16.mxu1 %v3212_v5 }
 0xee5   : > { %4555 = vmatpush3.bf16.msra.mxu1 %v3212_v5 }
 0xf0e   : > { %v4530_v30 = vpop.f32.mrf.mxu0 }
 0xf10   : > { %v2850_v17 = vpop.f32.mrf.mxu0 }
 0xf12   : > { %v4531_v51 = vpop.f32.mrf.mxu0 }
 0xf13   : > { %v2868_v14 = vpack.c.bf16 %v4531_v51, %v4530_v30 }
 0xf14   : > { %v2853_v40 = vpop.f32.mrf.mxu0 }
 0xf15   : > { %v2867_v27 = vpack.c.bf16 %v2853_v40, %v2850_v17 }
 0xf17   : > { %4538 = vmatprep.mubr.msk.bf16.mxu1 %vm462_vm1, %v2867_v27 }
 0xf18   : > { %4539 = vmatmul.mubr.msk.bf16.gmra.mxu1 %vm462_vm1, %v2868_v14 }
 0xf27   : > { %v4546_v46 = vpop.f32.mrf.mxu0 }
 0xf28   : > { %v3109_v59 = vmul.f32 0.5, %v4546_v46 }
 0xf29   : > { %v3076_v54 = vpop.f32.mrf.mxu0 }
 0xf2a   : > { %v3107_v49 = vmul.f32 0.5, %v3076_v54  ;;  %v3121_v16 = vsel %vm552_vm3, %v3109_v59, -inf }
 0xf2b   : > { %3122 = vmax.xlane.f32.xlu0 %v3121_v16  ;;  %v4547_v7 = vpop.f32.mrf.mxu0 }
 0xf2c   : > { %v3110_v1 = vmul.f32 0.5, %v4547_v7  ;;  %v3115_v6 = vsel %vm552_vm3, %v3107_v49, -inf }
 0xf2d   : > { %v3079_v39 = vpop.f32.mrf.mxu0 }
 0xf2e   : > { %v3108_v11 = vmul.f32 0.5, %v3079_v39  ;;  %v3124_v41 = vsel %vm552_vm3, %v3110_v1, -inf }
 0xf2f   : > { %3116 = vmax.xlane.f32.xlu0 %v3115_v6  ;;  %v4550_v4 = vpop.f32.mrf.mxu0 }
 0xf30   : > { %v3113_v33 = vmul.f32 0.5, %v4550_v4  ;;  %v3118_v19 = vsel %vm552_vm3, %v3108_v11, -inf }
 0xf31   : > { %v3092_v60 = vpop.f32.mrf.mxu0 }
 0xf32   : > { %v3111_v32 = vmul.f32 0.5, %v3092_v60  ;;  %v3133_v62 = vsel %vm552_vm3, %v3113_v33, -inf }
 0xf33   : > { %3125 = vmax.xlane.f32.xlu0 %v3124_v41  ;;  %v4551_v44 = vpop.f32.mrf.mxu0 }
 0xf34   : > { %v3114_v42 = vmul.f32 0.5, %v4551_v44  ;;  %v3127_v22 = vsel %vm552_vm3, %v3111_v32, -inf }
 0xf35   : > { %v3095_v31 = vpop.f32.mrf.mxu0 }
 0xf36   : > { %v3112_v53 = vmul.f32 0.5, %v3095_v31  ;;  %v3136_v10 = vsel %vm552_vm3, %v3114_v42, -inf }
 0xf37   : > { %3119 = vmax.xlane.f32.xlu0 %v3118_v19 }
 0xf38   : > { %v3130_v34 = vsel %vm552_vm3, %v3112_v53, -inf }
 0xf3b   : > { %3134 = vmax.xlane.f32.xlu0 %v3133_v62 }
 0xf3f   : > { %3128 = vmax.xlane.f32.xlu0 %v3127_v22 }
 0xf43   : > { %3137 = vmax.xlane.f32.xlu0 %v3136_v10 }
 0xf47   : > { %3131 = vmax.xlane.f32.xlu0 %v3130_v34 }
 0xf5d   : > { %3209 = vrot.lane.b32.xlu0 %v5276_v37, %s5130_s28 }
 0xfa0   : > { %v4536_v20 = vpop.f32.mrf.mxu1 }
 0xfa1   : > { %v6048_v0 = vadd.f32 %v4536_v20, %v5947_v56 }
 0xfa2   : > { %v2923_v57 = vpop.f32.mrf.mxu1 }
 0xfa3   : > { %v6051_v47 = vadd.f32 %v2923_v57, %v5952_v29 }
 0xfa4   : > { %v4537_v45 = vpop.f32.mrf.mxu1 }
 0xfa5   : > { %v6054_v25 = vadd.f32 %v4537_v45, %v5955_v18 }
 0xfa6   : > { %v2926_v48 = vpop.f32.mrf.mxu1 }
 0xfa7   : > { %v6057_v2 = vadd.f32 %v2926_v48, %v5958_v55 }
 0xfb4   : > { %v3123_v43 = vpop.xlane.xlu0 %3122 }
 0xfb5   : > { %v3141_v21 = vsub.f32 %v3109_v59, %v3123_v43 }
 0xfb7   : > { %v3151_v8 = vmul.f32 1.442695, %v3141_v21 }
 0xfb8   : > { %v3117_v28 = vpop.xlane.xlu0 %3116 }
 0xfb9   : > { %5014 = vpow2.f32 %v3151_v8  ;;  %v3139_v23 = vsub.f32 %v3107_v49, %v3117_v28  ;;  %v4804_v8 = vunpack.i.l.bf16 %v6029_v52  ;;  %v4805_v28 = vunpack.i.h.bf16 %v6029_v52 }
 0xfbb   : > { %v3147_v56 = vmul.f32 1.442695, %v3139_v23  ;;  %v4809_v23 = vunpack.i.l.bf16 %v6009_v15 }
 0xfbc   : > { %v3126_v5 = vpop.xlane.xlu0 %3125 }
 0xfbd   : > { %5016 = vpow2.f32 %v3147_v56  ;;  %v3142_v30 = vsub.f32 %v3110_v1, %v3126_v5  ;;  %v4810_v56 = vunpack.i.h.bf16 %v6009_v15  ;;  %v4814_v5 = vunpack.i.l.bf16 %v6031_v35 }
 0xfbf   : > { %v3153_v29 = vmul.f32 1.442695, %v3142_v30  ;;  %v4815_v30 = vunpack.i.h.bf16 %v6031_v35 }
 0xfc0   : > { %v3120_v17 = vpop.xlane.xlu0 %3119 }
 0xfc1   : > { %5018 = vpow2.f32 %v3153_v29  ;;  %v3140_v51 = vsub.f32 %v3108_v11, %v3120_v17 }
 0xfc3   : > { %v3149_v18 = vmul.f32 1.442695, %v3140_v51 }
 0xfc4   : > { %v3135_v40 = vpop.xlane.xlu0 %3134 }
 0xfc5   : > { %5020 = vpow2.f32 %v3149_v18  ;;  %v3145_v27 = vsub.f32 %v3113_v33, %v3135_v40 }
 0xfc6   : > { %v6059_v55 = vpop.eup %5014 }
 0xfc7   : > { %v3159_v14 = vmul.f32 1.442695, %v3145_v27  ;;  %v3169_v46 = vsel %vm552_vm3, %v6059_v55, 0.0 }
 0xfc8   : > { %v3129_v59 = vpop.xlane.xlu0 %3128  ;;  %3170 = vadd.xlane.f32.xlu0 %v3169_v46 }
 0xfc9   : > { %5022 = vpow2.f32 %v3159_v14  ;;  %v3143_v54 = vsub.f32 %v3111_v32, %v3129_v59 }
 0xfca   : > { %v6063_v49 = vpop.eup %5016 }
 0xfcb   : > { %v3155_v16 = vmul.f32 1.442695, %v3143_v54  ;;  %v3163_v7 = vsel %vm552_vm3, %v6063_v49, 0.0 }
 0xfcc   : > { %v3138_v1 = vpop.xlane.xlu0 %3137  ;;  %3164 = vadd.xlane.f32.xlu0 %v3163_v7 }
 0xfcd   : > { %5024 = vpow2.f32 %v3155_v16  ;;  %v3146_v6 = vsub.f32 %v3114_v42, %v3138_v1 }
 0xfce   : > { %v6067_v39 = vpop.eup %5018 }
 0xfcf   : > { %v3161_v11 = vmul.f32 1.442695, %v3146_v6  ;;  %v3172_v41 = vsel %vm552_vm3, %v6067_v39, 0.0 }
 0xfd0   : > { %3173 = vadd.xlane.f32.xlu0 %v3172_v41  ;;  %v3132_v4 = vpop.xlane.xlu0 %3131 }
 0xfd1   : > { %5026 = vpow2.f32 %v3161_v11  ;;  %v3144_v33 = vsub.f32 %v3112_v53, %v3132_v4 }
 0xfd2   : > { %v6071_v19 = vpop.eup %5020 }
 0xfd3   : > { %v3157_v60 = vmul.f32 1.442695, %v3144_v33  ;;  %v3166_v32 = vsel %vm552_vm3, %v6071_v19, 0.0 }
 0xfd4   : > { %3167 = vadd.xlane.f32.xlu1 %v3166_v32  ;;  %v3210_v62 = vpop.permute.xlu0 %3209 }
 0xfd5   : > { %5028 = vpow2.f32 %v3157_v60  ;;  %4556 = vmatprep.subr.bf16.mxu1 %v3210_v62 }
 0xfd6   : > { %v6075_v44 = vpop.eup %5022  ;;  %4557 = vmatpush3.bf16.msra.mxu1 %v3210_v62 }
 0xfd7   : > { %v3181_v42 = vsel %vm552_vm3, %v6075_v44, 0.0 }
 0xfd8   : > { %v4540_v22 = vpop.f32.mrf.mxu1  ;;  %3182 = vadd.xlane.f32.xlu0 %v3181_v42 }
 0xfd9   : > { %v6080_v31 = vadd.f32 %v4540_v22, %v5963_v12 }
 0xfda   : > { %v6082_v53 = vpop.eup %5024  ;;  %v2939_v10 = vpop.f32.mrf.mxu1 }
 0xfdb   : > { %v6085_v34 = vadd.f32 %v2939_v10, %v5966_v13  ;;  %v3175_v20 = vsel %vm552_vm3, %v6082_v53, 0.0  ;;  %v4799_v13 = vunpack.i.l.bf16 %v6005_v50 }
 0xfdc   : > { %v4541_v57 = vpop.f32.mrf.mxu1  ;;  %3176 = vadd.xlane.f32.xlu0 %v3175_v20 }
 0xfdd   : > { %v6090_v45 = vadd.f32 %v4541_v57, %v5969_v26  ;;  %v4800_v26 = vunpack.i.h.bf16 %v6005_v50 }
 0xfde   : > { %v6092_v48 = vpop.eup %5026 }
 0xfdf   : > { %v3184_v12 = vsel %vm552_vm3, %v6092_v48, 0.0 }
 0xfe0   : > { %3185 = vadd.xlane.f32.xlu0 %v3184_v12 }
 0xfe2   : > { %v5029_v43 = vpop.eup %5028 }
 0xfe3   : > { %v3178_v21 = vsel %vm552_vm3, %v5029_v43, 0.0 }
 0xfe4   : > { %3179 = vadd.xlane.f32.xlu1 %v3178_v21 }
 0xff5   : > { %3207 = vrot.lane.b32.xlu1 %v5224_v24, %s5130_s28 }
 0xff6   : > { %3446 = vrot.lane.b32.xlu0 %v5224_v24, %s5131_s29 }
 0xff9   : > { %3448 = vrot.lane.b32.xlu1 %v5276_v37, %s5131_s29 }
 0xffa   : > { %3450 = vrot.lane.b32.xlu0 %v5269_v36, %s5131_s29 }
 0xffd   : > { %3452 = vrot.lane.b32.xlu1 %v5281_v38, %s5131_s29 }
0x1018   : > { %3413 = vxpose.xlu0.b32.start [1/8] (short) (narrow) %v4799_v13, 8 }
0x101c   : > { %3414 = vxpose.xlu0.b32.cont [2/8] (short) (narrow) %v4800_v26, 8 }
0x1020   : > { %3415 = vxpose.xlu0.b32.cont [3/8] (short) (narrow) %v4804_v8, 8 }
0x1024   : > { %3416 = vxpose.xlu0.b32.cont [4/8] (short) (narrow) %v4805_v28, 8 }
0x1028   : > { %3417 = vxpose.xlu0.b32.cont [5/8] (short) (narrow) %v4809_v23, 8 }
0x102c   : > { %3418 = vxpose.xlu0.b32.cont [6/8] (short) (narrow) %v4810_v56, 8 }
0x1030   : > { %3419 = vxpose.xlu0.b32.cont [7/8] (short) (narrow) %v4814_v5, 8 }
0x1034   : > { %3420 = vxpose.xlu0.b32.end [8/8] (short) (narrow) %v4815_v30, 8 }
0x1051   : > { %v3171_v50 = vpop.xlane.xlu0 %3170 }
0x1055   : > { %v3165_v29 = vpop.xlane.xlu0 %3164 }
0x1056   : > { %5030 = vrcp.f32 %v3165_v29 }
0x1059   : > { %v3174_v17 = vpop.xlane.xlu0 %3173 }
0x105d   : > { %v3168_v51 = vpop.xlane.xlu1 %3167 }
0x105e   : > { %5032 = vrcp.f32 %v3168_v51 }
0x105f   : > { %5034 = vrcp.f32 %v3174_v17 }
0x1060   : > { %5036 = vrcp.f32 %v3171_v50 }
0x1061   : > { %v3183_v52 = vpop.xlane.xlu0 %3182 }
0x1063   : > { %v5031_v40 = vpop.eup %5030 }
0x1064   : > { %v3195_v14 = vmul.f32 %v5031_v40, %v6063_v49 }
0x1065   : > { %v3177_v18 = vpop.xlane.xlu0 %3176 }
0x1069   : > { %v3186_v27 = vpop.xlane.xlu0 %3185 }
0x106a   : > { %5038 = vrcp.f32 %v3186_v27 }
0x106b   : > { %v5033_v15 = vpop.eup %5032  ;;  %5040 = vrcp.f32 %v3177_v18 }
0x106c   : > { %v3196_v35 = vmul.f32 %v5033_v15, %v6071_v19  ;;  %v5035_v46 = vpop.eup %5034  ;;  %5042 = vrcp.f32 %v3183_v52 }
0x106d   : > { %v3180_v59 = vpop.xlane.xlu1 %3179  ;;  %v5037_v16 = vpop.eup %5036  ;;  %v3198_v7 = vmul.f32 %v5035_v46, %v6067_v39 }
0x106e   : > { %5044 = vrcp.f32 %v3180_v59  ;;  %v3203_v54 = vpack.c.bf16 %v3196_v35, %v3195_v14  ;;  %v3197_v6 = vmul.f32 %v5037_v16, %v6059_v55  ;;  %v3447_v55 = vpop.permute.xlu0 %3446 }
0x1070   : > { %4560 = vmatprep.mubr.msk.bf16.mxu1 %vm552_vm3, %v3203_v54  ;;  %v3204_v11 = vpack.c.bf16 %v3198_v7, %v3197_v6 }
0x1071   : > { %v3208_v1 = vpop.permute.xlu1 %3207 }
0x1072   : > { %4558 = vmatprep.subr.bf16.mxu1 %v3208_v1  ;;  %v3451_v22 = vpop.permute.xlu0 %3450 }
0x1073   : > { %4559 = vmatpush3.bf16.msra.mxu1 %v3208_v1 }
0x1076   : > { %4561 = vmatmul.mubr.msk.bf16.vlgmr.msra.gmra.mxu1 %vm552_vm3, %v3204_v11 }
0x1077   : > { %v5039_v49 = vpop.eup %5038 }
0x1078   : > { %v5041_v41 = vpop.eup %5040  ;;  %v3202_v19 = vmul.f32 %v5039_v49, %v6092_v48  ;;  %v3300_v48 = vld [vmem:[%s6328_s3 + $0xc] sm:$0x3] }
0x1079   : > { %v5043_v4 = vpop.eup %5042  ;;  %v3199_v60 = vmul.f32 %v5041_v41, %v6082_v53  ;;  %v3449_v53 = vpop.permute.xlu1 %3448  ;;  %4635 = vmatprep.subr.msk.bf16.mxu0 %vm475_vm2, %v3300_v48  ;;  %v3314_v12 = vsel %vm475_vm2, %v3300_v48, 0 }
0x107a   : > { %v3201_v39 = vmul.f32 %v5043_v4, %v6075_v44  ;;  %4569 = vmatpush3.bf16.msra.mxu0 %v3314_v12 }
0x107b   : > { %v5045_v33 = vpop.eup %5044 }
0x107c   : > { %v3200_v32 = vmul.f32 %v5045_v33, %v5029_v43  ;;  %v3206_v42 = vpack.c.bf16 %v3202_v19, %v3201_v39  ;;  %v6133_v43 = vpop.f32.mrf.mxu1 }
0x107d   : > { %v3453_v44 = vpop.permute.xlu1 %3452 }
0x107e   : > { %v3205_v62 = vpack.c.bf16 %v3200_v32, %v3199_v60 }
0x1080   : > { %4564 = vmatprep.mubr.msk.bf16.mxu1 %vm552_vm3, %v3205_v62 }
0x1081   : > { %4565 = vmatmul.mubr.msk.bf16.gmra.mxu1 %vm552_vm3, %v3206_v42 }
0x1082   : > { %4580 = vmatprep.mubr.msk.bf16.mxu1 %vm462_vm1, %v3447_v55 }
0x1094   : > { %v3429_v10 = vpop.trf.xlu0 }
0x1095   : > { %v3445_v20 = vpack.c.bf16 %v3429_v10, %v3429_v10 }
0x1097   : > { %v3467_v57 = vsel %vm475_vm2, %v3445_v20, 0  ;;  %4636 = vmatprep.subr.msk.bf16.mxu1 %vm475_vm2, %v3445_v20 }
0x1098   : > { %4579 = vmatpush3.bf16.msra.mxu1 %v3467_v57 }
0x109b   : > { %4581 = vmatmul.mubr.msk.bf16.vlgmr.msra.gmra.mxu1 %vm462_vm1, %v3449_v53 }
0x109c   : > { %4584 = vmatprep.mubr.msk.bf16.mxu1 %vm462_vm1, %v3451_v22 }
0x10a3   : > { %4585 = vmatmul.mubr.msk.bf16.gmra.mxu1 %vm462_vm1, %v3453_v44 }
0x1136   : > { %v4562_v21 = vpop.f32.mrf.mxu1 }
0x1138   : > { %v3265_v13 = vpop.f32.mrf.mxu1 }
0x113a   : > { %v4563_v26 = vpop.f32.mrf.mxu1 }
0x113b   : > { %v3297_v23 = vpack.c.bf16 %v4563_v26, %v4562_v21 }
0x113c   : > { %v3268_v8 = vpop.f32.mrf.mxu1 }
0x113d   : > { %v3296_v28 = vpack.c.bf16 %v3268_v8, %v3265_v13 }
0x113f   : > { %4570 = vmatprep.mubr.msk.bf16.mxu0 %vm462_vm1, %v3296_v28 }
0x1140   : > { %4571 = vmatmul.mubr.msk.bf16.vlgmr.msra.gmra.mxu0 %vm462_vm1, %v3297_v23 }
0x1141   : > { %v4566_v56 = vpop.f32.mrf.mxu1 }
0x1143   : > { %v3281_v5 = vpop.f32.mrf.mxu1 }
0x1145   : > { %v4567_v30 = vpop.f32.mrf.mxu1 }
0x1146   : > { %v3299_v17 = vpack.c.bf16 %v4567_v30, %v4566_v56 }
0x1147   : > { %v3284_v50 = vpop.f32.mrf.mxu1 }
0x1148   : > { %v3298_v29 = vpack.c.bf16 %v3284_v50, %v3281_v5 }
0x114a   : > { %4574 = vmatprep.mubr.msk.bf16.mxu0 %vm462_vm1, %v3298_v29 }
0x114b   : > { %4575 = vmatmul.mubr.msk.bf16.gmra.mxu0 %vm462_vm1, %v3299_v17 }
0x115b   : > { %v4582_v51 = vpop.f32.mrf.mxu1 }
0x115c   : > { %v3536_v52 = vmul.f32 0.5, %v4582_v51 }
0x115d   : > { %v3503_v18 = vpop.f32.mrf.mxu1 }
0x115e   : > { %v3534_v40 = vmul.f32 0.5, %v3503_v18  ;;  %v3548_v27 = vsel %vm552_vm3, %v3536_v52, -inf }
0x115f   : > { %3549 = vmax.xlane.f32.xlu1 %v3548_v27  ;;  %v4583_v15 = vpop.f32.mrf.mxu1 }
0x1160   : > { %v3537_v35 = vmul.f32 0.5, %v4583_v15  ;;  %v3542_v46 = vsel %vm552_vm3, %v3534_v40, -inf }
0x1161   : > { %v3506_v14 = vpop.f32.mrf.mxu1 }
0x1162   : > { %v3535_v16 = vmul.f32 0.5, %v3506_v14  ;;  %v3551_v7 = vsel %vm552_vm3, %v3537_v35, -inf }
0x1163   : > { %3543 = vmax.xlane.f32.xlu1 %v3542_v46  ;;  %v4586_v59 = vpop.f32.mrf.mxu1 }
0x1164   : > { %v3540_v11 = vmul.f32 0.5, %v4586_v59  ;;  %v3545_v49 = vsel %vm552_vm3, %v3535_v16, -inf }
0x1165   : > { %v3519_v54 = vpop.f32.mrf.mxu1 }
0x1166   : > { %v3538_v4 = vmul.f32 0.5, %v3519_v54  ;;  %v3560_v33 = vsel %vm552_vm3, %v3540_v11, -inf }
0x1167   : > { %3552 = vmax.xlane.f32.xlu1 %v3551_v7  ;;  %v4587_v1 = vpop.f32.mrf.mxu1 }
0x1168   : > { %v3541_v6 = vmul.f32 0.5, %v4587_v1  ;;  %v3554_v19 = vsel %vm552_vm3, %v3538_v4, -inf }
0x1169   : > { %v3522_v60 = vpop.f32.mrf.mxu1 }
0x116a   : > { %v3563_v41 = vsel %vm552_vm3, %v3541_v6, -inf  ;;  %v6150_v32 = vmul.f32 0.5, %v3522_v60 }
0x116b   : > { %3546 = vmax.xlane.f32.xlu1 %v3545_v49  ;;  %3564 = vmax.xlane.f32.xlu0 %v3563_v41 }
0x116c   : > { %v3557_v39 = vsel %vm552_vm3, %v6150_v32, -inf }
0x116f   : > { %3561 = vmax.xlane.f32.xlu1 %v3560_v33 }
0x1173   : > { %3555 = vmax.xlane.f32.xlu1 %v3554_v19 }
0x1181   : > { %3638 = vrot.lane.b32.xlu0 %v5269_v36, %s5132_s11 }
0x1184   : > { %3640 = vrot.lane.b32.xlu1 %v5281_v38, %s5132_s11 }
0x11a8   : > { %3558 = vmax.xlane.f32.xlu1 %v3557_v39 }
0x11b9   : > { %3636 = vrot.lane.b32.xlu1 %v5276_v37, %s5132_s11 }
0x11e8   : > { %v3550_v62 = vpop.xlane.xlu1 %3549 }
0x11e9   : > { %v3568_v42 = vsub.f32 %v3536_v52, %v3550_v62 }
0x11eb   : > { %v3578_v55 = vmul.f32 1.442695, %v3568_v42 }
0x11ec   : > { %v3544_v22 = vpop.xlane.xlu1 %3543 }
0x11ed   : > { %5046 = vpow2.f32 %v3578_v55  ;;  %v3566_v10 = vsub.f32 %v3534_v40, %v3544_v22 }
0x11ef   : > { %v3574_v36 = vmul.f32 1.442695, %v3566_v10 }
0x11f0   : > { %v3553_v20 = vpop.xlane.xlu1 %3552 }
0x11f1   : > { %5048 = vpow2.f32 %v3574_v36  ;;  %v3569_v38 = vsub.f32 %v3537_v35, %v3553_v20 }
0x11f3   : > { %v3580_v57 = vmul.f32 1.442695, %v3569_v38 }
0x11f4   : > { %v3547_v53 = vpop.xlane.xlu1 %3546  ;;  %v3565_v12 = vpop.xlane.xlu0 %3564 }
0x11f5   : > { %5050 = vpow2.f32 %v3580_v57  ;;  %v3567_v44 = vsub.f32 %v3535_v16, %v3547_v53  ;;  %v3573_v26 = vsub.f32 %v3541_v6, %v3565_v12 }
0x11f7   : > { %v3576_v48 = vmul.f32 1.442695, %v3567_v44  ;;  %v3588_v30 = vmul.f32 1.442695, %v3573_v26 }
0x11f8   : > { %v3562_v21 = vpop.xlane.xlu1 %3561  ;;  %v3639_v40 = vpop.permute.xlu0 %3638 }
0x11f9   : > { %5052 = vpow2.f32 %v3576_v48  ;;  %v3572_v13 = vsub.f32 %v3540_v11, %v3562_v21 }
0x11fa   : > { %v6156_v37 = vpop.eup %5046 }
0x11fb   : > { %v3586_v8 = vmul.f32 1.442695, %v3572_v13  ;;  %v3596_v28 = vsel %vm552_vm3, %v6156_v37, 0.0 }
0x11fc   : > { %v3556_v23 = vpop.xlane.xlu1 %3555  ;;  %3597 = vadd.xlane.f32.xlu1 %v3596_v28 }
0x11fd   : > { %5054 = vpow2.f32 %v3586_v8  ;;  %v3570_v56 = vsub.f32 %v3538_v4, %v3556_v23 }
0x11fe   : > { %v5049_v5 = vpop.eup %5048 }
0x11ff   : > { %v3582_v50 = vmul.f32 1.442695, %v3570_v56  ;;  %v3590_v29 = vsel %vm552_vm3, %v5049_v5, 0.0 }
0x1200   : > { %v4572_v17 = vpop.f32.mrf.mxu0  ;;  %v3641_v51 = vpop.permute.xlu1 %3640  ;;  %3591 = vadd.xlane.f32.xlu1 %v3590_v29 }
0x1201   : > { %5056 = vpow2.f32 %v3582_v50  ;;  %v6162_v52 = vadd.f32 %v4572_v17, %v6048_v0  ;;  %4588 = vmatprep.subr.bf16.mxu0 %v3641_v51 }
0x1202   : > { %v6164_v18 = vpop.eup %5050  ;;  %v3350_v27 = vpop.f32.mrf.mxu0  ;;  %4589 = vmatpush3.bf16.msra.mxu0 %v3641_v51  ;;  %5058 = vpow2.f32 %v3588_v30 }
0x1203   : > { %v6167_v15 = vadd.f32 %v3350_v27, %v6051_v47  ;;  %4590 = vmatprep.subr.bf16.mxu0 %v3639_v40  ;;  %v3599_v14 = vsel %vm552_vm3, %v6164_v18, 0.0 }
0x1204   : > { %v4573_v35 = vpop.f32.mrf.mxu0  ;;  %3600 = vadd.xlane.f32.xlu1 %v3599_v14 }
0x1205   : > { %v6172_v46 = vadd.f32 %v4573_v35, %v6054_v25 }
0x1206   : > { %v5053_v0 = vpop.eup %5052  ;;  %v3353_v59 = vpop.f32.mrf.mxu0  ;;  %4591 = vmatpush3.bf16.msra.mxu0 %v3639_v40 }
0x1207   : > { %v6175_v54 = vadd.f32 %v3353_v59, %v6057_v2  ;;  %v3593_v16 = vsel %vm552_vm3, %v5053_v0, 0.0 }
0x1208   : > { %3594 = vadd.xlane.f32.xlu1 %v3593_v16 }
0x120a   : > { %v6178_v47 = vpop.eup %5054 }
0x120b   : > { %v4576_v7 = vpop.f32.mrf.mxu0  ;;  %v3608_v1 = vsel %vm552_vm3, %v6178_v47, 0.0 }
0x120c   : > { %v6183_v6 = vadd.f32 %v4576_v7, %v6080_v31  ;;  %3609 = vadd.xlane.f32.xlu1 %v3608_v1 }
0x120d   : > { %v3366_v25 = vpop.f32.mrf.mxu0 }
0x120e   : > { %v5057_v11 = vpop.eup %5056  ;;  %v6186_v49 = vadd.f32 %v3366_v25, %v6085_v34 }
0x120f   : > { %v4577_v2 = vpop.f32.mrf.mxu0  ;;  %v3602_v41 = vsel %vm552_vm3, %v5057_v11, 0.0  ;;  %v5059_v4 = vpop.eup %5058 }
0x1210   : > { %v6190_v33 = vadd.f32 %v4577_v2, %v6090_v45  ;;  %3603 = vadd.xlane.f32.xlu1 %v3602_v41  ;;  %v3611_v19 = vsel %vm552_vm3, %v5059_v4, 0.0 }
0x1211   : > { %v3369_v35 = vpop.f32.mrf.mxu0 }
0x1214   : > { %3612 = vadd.xlane.f32.xlu1 %v3611_v19 }
0x1231   : > { %v3559_v60 = vpop.xlane.xlu1 %3558 }
0x1232   : > { %v3571_v31 = vsub.f32 %v6150_v32, %v3559_v60 }
0x1234   : > { %v3584_v39 = vmul.f32 1.442695, %v3571_v31 }
0x1235   : > { %v3637_v62 = vpop.permute.xlu1 %3636 }
0x1236   : > { %5060 = vpow2.f32 %v3584_v39  ;;  %4592 = vmatprep.subr.bf16.mxu0 %v3637_v62 }
0x1237   : > { %4593 = vmatpush3.bf16.msra.mxu0 %v3637_v62  ;;  %v4157_v62 = vld [vmem:[%s6329_s4] ss:$0 sm:$0xff] }
0x1243   : > { %v5061_v34 = vpop.eup %5060 }
0x1244   : > { %v3605_v42 = vsel %vm552_vm3, %v5061_v34, 0.0 }
0x1245   : > { %3606 = vadd.xlane.f32.xlu1 %v3605_v42 }
0x1256   : > { %3634 = vrot.lane.b32.xlu1 %v5224_v24, %s5132_s11 }
0x1285   : > { %v3598_v45 = vpop.xlane.xlu1 %3597 }
0x1289   : > { %v3592_v55 = vpop.xlane.xlu1 %3591 }
0x128a   : > { %5062 = vrcp.f32 %v3592_v55 }
0x128d   : > { %v3601_v22 = vpop.xlane.xlu1 %3600 }
0x1291   : > { %v3595_v10 = vpop.xlane.xlu1 %3594 }
0x1292   : > { %5064 = vrcp.f32 %v3595_v10 }
0x1293   : > { %5066 = vrcp.f32 %v3601_v22  ;;  %v5095_v22 = vld [vmem:[%s5195_s10] sm:$0xff] }
0x1294   : > { %5068 = vrcp.f32 %v3598_v45 }
0x1295   : > { %v3610_v53 = vpop.xlane.xlu1 %3609 }
0x1297   : > { %v5063_v36 = vpop.eup %5062 }
0x1298   : > { %v3622_v20 = vmul.f32 %v5063_v36, %v5049_v5 }
0x1299   : > { %v3604_v44 = vpop.xlane.xlu1 %3603 }
0x129d   : > { %v3613_v48 = vpop.xlane.xlu1 %3612 }
0x129e   : > { %5070 = vrcp.f32 %v3613_v48 }
0x129f   : > { %v5065_v32 = vpop.eup %5064  ;;  %5072 = vrcp.f32 %v3604_v44 }
0x12a0   : > { %v3623_v38 = vmul.f32 %v5065_v32, %v5053_v0  ;;  %v5067_v24 = vpop.eup %5066  ;;  %5074 = vrcp.f32 %v3610_v53 }
0x12a1   : > { %v5069_v21 = vpop.eup %5068  ;;  %v3625_v13 = vmul.f32 %v5067_v24, %v6164_v18 }
0x12a2   : > { %v3630_v57 = vpack.c.bf16 %v3623_v38, %v3622_v20  ;;  %v3624_v8 = vmul.f32 %v5069_v21, %v6156_v37  ;;  %v4821_v37 = vld [vmem:[%s6328_s3 + $0xc] ss:$0 sps:$4 sm:$0xcc]   ;;  %v1235_v20 = vadd.f32 %v5657_v61, %v5554_v63  ;;  %v5096_v38 = vld [vmem:[%s5195_s10 + $0x18] sm:$0xff] }
0x12a3   : > { %v3731_v18 = vrot.slane %v4821_v37, 2 }
0x12a4   : > { %4596 = vmatprep.mubr.msk.bf16.mxu0 %vm552_vm3, %v3630_v57  ;;  %v3631_v28 = vpack.c.bf16 %v3625_v13, %v3624_v8  ;;  %v1670_v24 = vadd.f32 %v5763_v9, %v1235_v20 }
0x12a5   : > { %4637 = vmatprep.subr.msk.bf16.mxu1 %vm475_vm2, %v3731_v18  ;;  %v3745_v14 = vsel %vm475_vm2, %v3731_v18, 0 }
0x12a6   : > { %4605 = vmatpush3.bf16.msra.mxu1 %v3745_v14 }
0x12ab   : > { %v5071_v23 = vpop.eup %5070 }
0x12ac   : > { %v5073_v56 = vpop.eup %5072  ;;  %v3629_v50 = vmul.f32 %v5071_v23, %v5059_v4 }
0x12ad   : > { %v5075_v5 = vpop.eup %5074  ;;  %v3626_v29 = vmul.f32 %v5073_v56, %v5057_v11 }
0x12ae   : > { %v3628_v51 = vmul.f32 %v5075_v5, %v6178_v47 }
0x12b0   : > { %v3633_v27 = vpack.c.bf16 %v3629_v50, %v3628_v51 }
0x12ce   : > { %v3607_v12 = vpop.xlane.xlu1 %3606 }
0x12cf   : > { %5076 = vrcp.f32 %v3607_v12 }
0x12d2   : > { %v3635_v26 = vpop.permute.xlu1 %3634 }
0x12d3   : > { %4594 = vmatprep.subr.bf16.mxu0 %v3635_v26 }
0x12d4   : > { %4595 = vmatpush3.bf16.msra.mxu0 %v3635_v26 }
0x12d7   : > { %4597 = vmatmul.mubr.msk.bf16.vlgmr.msra.gmra.mxu0 %vm552_vm3, %v3631_v28 }
0x12dc   : > { %v5077_v30 = vpop.eup %5076 }
0x12dd   : > { %v3627_v17 = vmul.f32 %v5077_v30, %v5061_v34  ;;  %v5094_v34 = vld [vmem:[%s5195_s10 + $0x10] sm:$0xff] }
0x12de   : > { %v5098_v30 = vld [vmem:[%s5195_s10 + $0x30] sm:$0xff] }
0x12df   : > { %v3632_v40 = vpack.c.bf16 %v3627_v17, %v3626_v29  ;;  %v5099_v29 = vld [vmem:[%s5195_s10 + $0x20] sm:$0xff] }
0x12e1   : > { %4600 = vmatprep.mubr.msk.bf16.mxu0 %vm552_vm3, %v3632_v40 }
0x12e2   : > { %4601 = vmatmul.mubr.msk.bf16.gmra.mxu0 %vm552_vm3, %v3633_v27  ;;  %v5100_v27 = vld [vmem:[%s5195_s10 + $0x38] sm:$0xff] }
0x1397   : > { %v4598_v0 = vpop.f32.mrf.mxu0 }
0x1399   : > { %v3692_v59 = vpop.f32.mrf.mxu0 }
0x139b   : > { %v4599_v16 = vpop.f32.mrf.mxu0 }
0x139c   : > { %v3724_v1 = vpack.c.bf16 %v4599_v16, %v4598_v0 }
0x139d   : > { %v3695_v47 = vpop.f32.mrf.mxu0 }
0x139e   : > { %v3723_v7 = vpack.c.bf16 %v3695_v47, %v3692_v59 }
0x13a0   : > { %4606 = vmatprep.mubr.msk.bf16.mxu1 %vm462_vm1, %v3723_v7 }
0x13a1   : > { %4607 = vmatmul.mubr.msk.bf16.vlgmr.msra.gmra.mxu1 %vm462_vm1, %v3724_v1 }
0x13a2   : > { %v4602_v25 = vpop.f32.mrf.mxu0 }
0x13a4   : > { %v3708_v11 = vpop.f32.mrf.mxu0 }
0x13a6   : > { %v4603_v2 = vpop.f32.mrf.mxu0 }
0x13a7   : > { %v3726_v19 = vpack.c.bf16 %v4603_v2, %v4602_v25 }
0x13a8   : > { %v3711_v41 = vpop.f32.mrf.mxu0 }
0x13a9   : > { %v3725_v4 = vpack.c.bf16 %v3711_v41, %v3708_v11 }
0x13ab   : > { %4610 = vmatprep.mubr.msk.bf16.mxu1 %vm462_vm1, %v3725_v4 }
0x13ac   : > { %4611 = vmatmul.mubr.msk.bf16.gmra.mxu1 %vm462_vm1, %v3726_v19 }
0x1461   : > { %v4608_v60 = vpop.f32.mrf.mxu1 }
0x1462   : > { %v3814_v31 = vadd.f32 %v4608_v60, %v6162_v52 }
0x1463   : > { %v3781_v39 = vpop.f32.mrf.mxu1 }
0x1464   : > { %v3822_v42 = vadd.f32 %v5094_v34, %v3814_v31  ;;  %v3812_v45 = vadd.f32 %v3781_v39, %v6167_v15  ;;  %v5097_v15 = vld [vmem:[%s5195_s10 + $0x8] sm:$0xff] }
0x1465   : > { %v4609_v55 = vpop.f32.mrf.mxu1 }
0x1466   : > { %v3820_v10 = vadd.f32 %v5095_v22, %v3812_v45  ;;  %v3815_v36 = vadd.f32 %v4609_v55, %v6172_v46  ;;  %v3837_v32 = vadd.f32 %v4157_v62, %v3822_v42  ;;  %v2101_v46 = vadd.f32 %v5891_v3, %v1670_v24 }
0x1467   : > { %v3784_v52 = vpop.f32.mrf.mxu1 }
0x1468   : > { %v3823_v57 = vadd.f32 %v5096_v38, %v3815_v36  ;;  %v3813_v53 = vadd.f32 %v3784_v52, %v6175_v54  ;;  %v3849_v44 = vsel %vm315_vm0, %v3837_v32, 0.0  ;;  %v3835_v48 = vadd.f32 %v4157_v62, %v3820_v10 }
0x1469   : > { %3850 = vadd.xlane.f32.xlu1 %v3849_v44  ;;  %v2528_v54 = vadd.f32 %v6027_v58, %v2101_v46 }
0x146a   : > { %v3821_v12 = vadd.f32 %v5097_v15, %v3813_v53  ;;  %v3838_v21 = vadd.f32 %v4157_v62, %v3823_v57  ;;  %v3843_v63 = vsel %vm315_vm0, %v3835_v48, 0.0 }
0x146b   : > { %v2959_v28 = vadd.f32 %v6133_v43, %v2528_v54  ;;  %v5101_v43 = vld [vmem:[%s5195_s10 + $0x28] sm:$0xff] }
0x146c   : > { %v4612_v13 = vpop.f32.mrf.mxu1  ;;  %v3852_v61 = vsel %vm315_vm0, %v3838_v21, 0.0  ;;  %v3836_v26 = vadd.f32 %v4157_v62, %v3821_v12 }
0x146d   : > { %v3818_v8 = vadd.f32 %v4612_v13, %v6183_v6  ;;  %3844 = vadd.xlane.f32.xlu1 %v3843_v63  ;;  %3853 = vadd.xlane.f32.xlu0 %v3852_v61  ;;  %v3386_v5 = vadd.f32 %v3369_v35, %v2959_v28 }
0x146e   : > { %v3797_v9 = vpop.f32.mrf.mxu1  ;;  %v3846_v56 = vsel %vm315_vm0, %v3836_v26, 0.0 }
0x146f   : > { %v3816_v3 = vadd.f32 %v3797_v9, %v6186_v49  ;;  %v3826_v50 = vadd.f32 %v5098_v30, %v3818_v8 }
0x1470   : > { %v4613_v23 = vpop.f32.mrf.mxu1 }
0x1471   : > { %v3824_v17 = vadd.f32 %v5099_v29, %v3816_v3  ;;  %v3819_v58 = vadd.f32 %v4613_v23, %v6190_v33  ;;  %3847 = vadd.xlane.f32.xlu0 %v3846_v56  ;;  %v3841_v14 = vadd.f32 %v4157_v62, %v3826_v50 }
0x1472   : > { %v3800_v6 = vpop.f32.mrf.mxu1 }
0x1473   : > { %v3817_v51 = vadd.f32 %v3800_v6, %v3386_v5  ;;  %v3839_v40 = vadd.f32 %v4157_v62, %v3824_v17  ;;  %v3827_v37 = vadd.f32 %v5100_v27, %v3819_v58  ;;  %v3861_v35 = vsel %vm315_vm0, %v3841_v14, 0.0 }
0x1475   : > { %v3825_v18 = vadd.f32 %v5101_v43, %v3817_v51  ;;  %v3855_v49 = vsel %vm315_vm0, %v3839_v40, 0.0  ;;  %v3842_v16 = vadd.f32 %v4157_v62, %v3827_v37 }
0x1476   : > { %3856 = vadd.xlane.f32.xlu1 %v3855_v49 }
0x1477   : > { %v3840_v0 = vadd.f32 %v4157_v62, %v3825_v18  ;;  %v3864_v33 = vsel %vm315_vm0, %v3842_v16, 0.0 }
0x1479   : > { %v3858_v59 = vsel %vm315_vm0, %v3840_v0, 0.0 }
0x147a   : > { %3862 = vadd.xlane.f32.xlu1 %v3861_v35  ;;  %3859 = vadd.xlane.f32.xlu0 %v3858_v59 }
0x147e   : > { %3865 = vadd.xlane.f32.xlu0 %v3864_v33 }
0x14f2   : > { %v3851_v47 = vpop.xlane.xlu1 %3850 }
0x14f3   : > { %v3870_v7 = vmul.f32 0.03125, %v3851_v47 }
0x14f5   : > { %v6245_v1 = vsub.f32 %v3837_v32, %v3870_v7 }
0x14f6   : > { %v3845_v25 = vpop.xlane.xlu1 %3844  ;;  %v3854_v11 = vpop.xlane.xlu0 %3853 }
0x14f7   : > { %v3868_v2 = vmul.f32 0.03125, %v3845_v25  ;;  %v3871_v41 = vmul.f32 0.03125, %v3854_v11  ;;  %v3886_v4 = vmul.f32 %v6245_v1, %v6245_v1 }
0x14f9   : > { %v6249_v19 = vsub.f32 %v3835_v48, %v3868_v2  ;;  %v6251_v60 = vsub.f32 %v3838_v21, %v3871_v41  ;;  %v3898_v31 = vsel %vm315_vm0, %v3886_v4, 0.0 }
0x14fa   : > { %v3848_v39 = vpop.xlane.xlu0 %3847  ;;  %3899 = vadd.xlane.f32.xlu1 %v3898_v31 }
0x14fb   : > { %v3869_v62 = vmul.f32 0.03125, %v3848_v39  ;;  %v3884_v34 = vmul.f32 %v6249_v19, %v6249_v19  ;;  %v3887_v42 = vmul.f32 %v6251_v60, %v6251_v60 }
0x14fd   : > { %v6258_v45 = vsub.f32 %v3836_v26, %v3869_v62  ;;  %v3892_v55 = vsel %vm315_vm0, %v3884_v34, 0.0  ;;  %v3901_v22 = vsel %vm315_vm0, %v3887_v42, 0.0 }
0x14fe   : > { %3893 = vadd.xlane.f32.xlu1 %v3892_v55  ;;  %3902 = vadd.xlane.f32.xlu0 %v3901_v22 }
0x14ff   : > { %v3857_v10 = vpop.xlane.xlu1 %3856  ;;  %v3885_v36 = vmul.f32 %v6258_v45, %v6258_v45 }
0x1500   : > { %v3872_v32 = vmul.f32 0.03125, %v3857_v10 }
0x1501   : > { %v3895_v20 = vsel %vm315_vm0, %v3885_v36, 0.0 }
0x1502   : > { %v6265_v52 = vsub.f32 %v3839_v40, %v3872_v32  ;;  %3896 = vadd.xlane.f32.xlu0 %v3895_v20 }
0x1503   : > { %v3863_v38 = vpop.xlane.xlu1 %3862  ;;  %v3860_v57 = vpop.xlane.xlu0 %3859 }
0x1504   : > { %v3874_v53 = vmul.f32 0.03125, %v3863_v38  ;;  %v3873_v44 = vmul.f32 0.03125, %v3860_v57  ;;  %v3888_v48 = vmul.f32 %v6265_v52, %v6265_v52 }
0x1506   : > { %v6269_v24 = vsub.f32 %v3841_v14, %v3874_v53  ;;  %v6271_v15 = vsub.f32 %v3840_v0, %v3873_v44  ;;  %v3904_v12 = vsel %vm315_vm0, %v3888_v48, 0.0  ;;  %v4158_v14 = vld [vmem:[%s6330_s5] ss:$0 sm:$0xff] }
0x1507   : > { %3905 = vadd.xlane.f32.xlu1 %v3904_v12  ;;  %v3866_v21 = vpop.xlane.xlu0 %3865 }
0x1508   : > { %v3875_v46 = vmul.f32 0.03125, %v3866_v21  ;;  %v3890_v13 = vmul.f32 %v6269_v24, %v6269_v24  ;;  %v3889_v63 = vmul.f32 %v6271_v15, %v6271_v15 }
0x150a   : > { %v6278_v61 = vsub.f32 %v3842_v16, %v3875_v46  ;;  %v3910_v26 = vsel %vm315_vm0, %v3890_v13, 0.0  ;;  %v3907_v54 = vsel %vm315_vm0, %v3889_v63, 0.0  ;;  %v4159_v16 = vld [vmem:[%s6331_s6] ss:$0 sm:$0xff] }
0x150b   : > { %3911 = vadd.xlane.f32.xlu1 %v3910_v26  ;;  %3908 = vadd.xlane.f32.xlu0 %v3907_v54 }
0x150c   : > { %v3891_v8 = vmul.f32 %v6278_v61, %v6278_v61 }
0x150e   : > { %v3913_v9 = vsel %vm315_vm0, %v3891_v8, 0.0 }
0x150f   : > { %3914 = vadd.xlane.f32.xlu0 %v3913_v9 }
0x1583   : > { %v3900_v28 = vpop.xlane.xlu1 %3899 }
0x1584   : > { %v3918_v3 = vmul.f32 0.03125, %v3900_v28 }
0x1586   : > { %v3926_v23 = vadd.f32 1e-05, %v3918_v3 }
0x1587   : > { %v3894_v56 = vpop.xlane.xlu1 %3893  ;;  %v3903_v5 = vpop.xlane.xlu0 %3902 }
0x1588   : > { %5078 = vrsqrt.f32 %v3926_v23  ;;  %v3916_v30 = vmul.f32 0.03125, %v3894_v56  ;;  %v3919_v50 = vmul.f32 0.03125, %v3903_v5 }
0x158a   : > { %v3924_v29 = vadd.f32 1e-05, %v3916_v30  ;;  %v3927_v17 = vadd.f32 1e-05, %v3919_v50 }
0x158b   : > { %v3897_v58 = vpop.xlane.xlu0 %3896 }
0x158c   : > { %5080 = vrsqrt.f32 %v3924_v29  ;;  %v3917_v6 = vmul.f32 0.03125, %v3897_v58 }
0x158d   : > { %5082 = vrsqrt.f32 %v3927_v17 }
0x158e   : > { %v3925_v51 = vadd.f32 1e-05, %v3917_v6 }
0x1590   : > { %5084 = vrsqrt.f32 %v3925_v51  ;;  %v3906_v40 = vpop.xlane.xlu1 %3905 }
0x1591   : > { %v3920_v27 = vmul.f32 0.03125, %v3906_v40 }
0x1593   : > { %v3928_v37 = vadd.f32 1e-05, %v3920_v27 }
0x1594   : > { %v3912_v43 = vpop.xlane.xlu1 %3911  ;;  %v3909_v18 = vpop.xlane.xlu0 %3908 }
0x1595   : > { %v5079_v49 = vpop.eup %5078  ;;  %5086 = vrsqrt.f32 %v3928_v37  ;;  %v3922_v0 = vmul.f32 0.03125, %v3912_v43  ;;  %v3921_v35 = vmul.f32 0.03125, %v3909_v18 }
0x1596   : > { %v3942_v59 = vmul.f32 %v5079_v49, %v6245_v1 }
0x1597   : > { %v3930_v33 = vadd.f32 1e-05, %v3922_v0  ;;  %v3929_v47 = vadd.f32 1e-05, %v3921_v35 }
0x1598   : > { %v3957_v7 = vmul.f32 %v4158_v14, %v3942_v59  ;;  %v3915_v25 = vpop.xlane.xlu0 %3914 }
0x1599   : > { %v5081_v11 = vpop.eup %5080  ;;  %5088 = vrsqrt.f32 %v3930_v33  ;;  %v3923_v2 = vmul.f32 0.03125, %v3915_v25 }
0x159a   : > { %v5083_v1 = vpop.eup %5082  ;;  %v3972_v41 = vadd.f32 %v4159_v16, %v3957_v7  ;;  %v3940_v4 = vmul.f32 %v5081_v11, %v6249_v19  ;;  %5090 = vrsqrt.f32 %v3929_v47 }
0x159b   : > { %v3943_v31 = vmul.f32 %v5083_v1, %v6251_v60  ;;  %v3931_v39 = vadd.f32 1e-05, %v3923_v2 }
0x159c   : > { %3980 = vst.msk [vmem:[%s6297_s21 + $0x10] sm:$0xff] %vm315_vm0, %v3972_v41  ;;  %v3955_v62 = vmul.f32 %v4158_v14, %v3940_v4 }
0x159d   : > { %v5085_v34 = vpop.eup %5084  ;;  %v3958_v42 = vmul.f32 %v4158_v14, %v3943_v31  ;;  %5092 = vrsqrt.f32 %v3931_v39 }
0x159e   : > { %v3970_v55 = vadd.f32 %v4159_v16, %v3955_v62  ;;  %v3941_v22 = vmul.f32 %v5085_v34, %v6258_v45 }
0x159f   : > { %v3973_v10 = vadd.f32 %v4159_v16, %v3958_v42 }
0x15a0   : > { %3978 = vst.msk [vmem:[%s6297_s21] sm:$0xff] %vm315_vm0, %v3970_v55  ;;  %v3956_v36 = vmul.f32 %v4158_v14, %v3941_v22 }
0x15a1   : > { %3981 = vst.msk [vmem:[%s6297_s21 + $0x18] sm:$0xff] %vm315_vm0, %v3973_v10 }
0x15a2   : > { %v5087_v19 = vpop.eup %5086  ;;  %v3971_v60 = vadd.f32 %v4159_v16, %v3956_v36 }
0x15a3   : > { %v3944_v32 = vmul.f32 %v5087_v19, %v6265_v52 }
0x15a4   : > { %3979 = vst.msk [vmem:[%s6297_s21 + $0x8] sm:$0xff] %vm315_vm0, %v3971_v60 }
0x15a5   : > { %v3959_v20 = vmul.f32 %v4158_v14, %v3944_v32 }
0x15a6   : > { %v5089_v38 = vpop.eup %5088 }
0x15a7   : > { %v5091_v57 = vpop.eup %5090  ;;  %v3974_v53 = vadd.f32 %v4159_v16, %v3959_v20  ;;  %v3946_v45 = vmul.f32 %v5089_v38, %v6269_v24 }
0x15a8   : > { %v3945_v44 = vmul.f32 %v5091_v57, %v6271_v15 }
0x15a9   : > { %3982 = vst.msk [vmem:[%s6297_s21 + $0x20] sm:$0xff] %vm315_vm0, %v3974_v53  ;;  %v3961_v48 = vmul.f32 %v4158_v14, %v3946_v45 }
0x15aa   : > { %v5093_v12 = vpop.eup %5092  ;;  %v3960_v21 = vmul.f32 %v4158_v14, %v3945_v44 }
0x15ab   : > { %v3976_v46 = vadd.f32 %v4159_v16, %v3961_v48  ;;  %v3947_v52 = vmul.f32 %v5093_v12, %v6278_v61 }
0x15ac   : > { %v3975_v13 = vadd.f32 %v4159_v16, %v3960_v21 }
0x15ad   : > { %3984 = vst.msk [vmem:[%s6297_s21 + $0x30] sm:$0xff] %vm315_vm0, %v3976_v46  ;;  %v3962_v63 = vmul.f32 %v4158_v14, %v3947_v52 }
0x15ae   : > { %3983 = vst.msk [vmem:[%s6297_s21 + $0x28] sm:$0xff] %vm315_vm0, %v3975_v13 }
0x15af   : > { %v3977_v26 = vadd.f32 %v4159_v16, %v3962_v63 }
0x15b1   : > { %3985 = vst.msk [vmem:[%s6297_s21 + $0x38] sm:$0xff] %vm315_vm0, %v3977_v26 }
0x15b2 PF: > { %s17_s24 = sadd.s32 1, %s5108_s24  }
0x15b3   : > { %p14_p4 = scmp.ge.s32.totalorder %s17_s24, 4  }
0x15b5   :  { %16 = sbr.rel (!%p14_p4) target bundleno = 1 (0x1), region = 78 }

// kernel: transformer_full_bottleneck.16
= control target key start
LH: loop header
LB: loop body
LE: loop exit
PB: predicated region body
PF: predicated region fallthrough
CT: control target
= control target key end

     0   :  { %s5315_s27 = smov 0   ;;  %s6498_s0 = inlined_call_operand.vmem [shape: f32[2,64,32], index: 0, kind: input, shape index: {}]   ;;  %s6499_s1 = inlined_call_operand.vmem [shape: f32[2,64,32], index: 1, kind: input, shape index: {}]   ;;  %s6500_s2 = inlined_call_operand.vmem [shape: bf16[32,96], index: 2, kind: input, shape index: {}]   ;;  %s6501_s3 = inlined_call_operand.vmem [shape: f32[1,96], index: 3, kind: input, shape index: {}]   ;;  %s6502_s4 = inlined_call_operand.vmem [shape: bf16[32,32], index: 4, kind: input, shape index: {}]   ;;  %s6503_s5 = inlined_call_operand.vmem [shape: f32[1,32], index: 5, kind: input, shape index: {}]   ;;  %s6504_s6 = inlined_call_operand.vmem [shape: f32[1,32], index: 6, kind: input, shape index: {}]   ;;  %s6505_s7 = inlined_call_operand.vmem [shape: f32[1,32], index: 7, kind: input, shape index: {}]   ;;  %s6506_s8 = inlined_call_operand.vmem [shape: f32[2,64,32], index: 8, kind: output, shape index: {}]  }
   0x1 LB: > { %s4182_s28 = sadd.s32 4294967295, %s5253_s27   ;;  %p4186_p0 = scmp.ge.s32.totalorder %s5253_s27, 1  ;;  %s5253_s27 = sphi %s5315_s27, %s18_s27  }
   0x2   : > { %p272_p1 = scmp.lt.s32.totalorder %s5253_s27, 3 }
   0x4   : > { %p273_p2 = pnand %p4186_p0, %p272_p1 }
   0x5   : > { %p311_p3 = scmp.lt.s32.totalorder (!%p273_p2), %s4182_s28, 1  ;;  %s5255_s9 = smov (!%p273_p2), 96  }
   0x6   : > { %276 = sbr.rel (%p273_p2) target bundleno = 5609 (0x15e9), region = 52  ;;  %s5256_s21 = smov (!%p273_p2), 124  }
   0x7   : > { %s5257_s22 = smov (!%p273_p2), 92   ;;  %s5258_s23 = smov (!%p273_p2), 120  }
   0x8   : > { %s5259_s24 = smov (!%p273_p2), 116   ;;  %s5261_s11 = smov (!%p273_p2), 112  }
   0x9   : > { %s5262_s13 = smov (!%p273_p2), 84   ;;  %s5263_s16 = smov (!%p273_p2), 108  }
   0xa   : > { %s5265_s18 = smov (!%p273_p2), 104   ;;  %s5266_s19 = smov (!%p273_p2), 76  }
   0xb   : > { %v4961_v0 = vld [vmem:[%s6500_s2 + $0x8] sm:$0xff]   ;;  %v4962_v1 = vld [vmem:[%s6500_s2] sm:$0xff]   ;;  %s6508_s28 = smov (!%p311_p3, %s4182_s28), 1  ;;  %vm370_vm0 = vcmask 261120   ;;  %vm575_vm1 = vcmask 31744   ;;  %vm588_vm2 = vcmask 1041408  }
   0xc   : > { %454 = vrot.lane.b32.xlu0 %v4961_v0, %s5255_s9  ;;  %4468 = vmatprep.subr.bf16.mxu0 %v4961_v0  ;;  %s5330_s12 = sshll.u32 %s6508_s28, 6  ;;  %v5335_v2 = vld [vmem:[%s6501_s3] ss:$0 sm:$0xff]  ;;  %vm665_vm3 = vcmask 523264   ;;  %s5260_s28 = smov 88  }
   0xd   : > { %4469 = vmatpush3.bf16.msra.mxu0 %v4961_v0  ;;  %s5342_s17 = scalar_lea.vmem %s6499_s1, %s5330_s12  ;;  %458 = vrot.lane.b32.xlu1 %v5335_v2, %s5255_s9  ;;  %s5352_s20 = scalar_lea.vmem %s6498_s0, %s5330_s12 }
   0xe   : > { %4470 = vmatprep.subr.bf16.mxu0 %v4962_v1  ;;  %v335_v3 = vld [vmem:[%s5342_s17] sm:$0xff]  ;;  %v336_v4 = vld [vmem:[%s5342_s17 + $0x8] sm:$0xff]  ;;  %v329_v9 = vld [vmem:[%s5352_s20 + $0x10] sm:$0xff]  ;;  %s5267_s25 = smov 100   ;;  %s5268_s26 = smov 72  }
   0xf   : > { %v448_v5 = vpack.c.bf16 %v336_v4, %v335_v3  ;;  %v327_v6 = vld [vmem:[%s5352_s20] sm:$0xff]  ;;  %v328_v7 = vld [vmem:[%s5352_s20 + $0x8] sm:$0xff]  ;;  %v330_v10 = vld [vmem:[%s5352_s20 + $0x18] sm:$0xff]  ;;  %s5269_s30 = smov 68  }
  0x10   : > { %452 = vrot.lane.b32.xlu0 %v4962_v1, %s5255_s9  ;;  %v344_v8 = vpack.c.bf16 %v328_v7, %v327_v6  ;;  %v345_v11 = vpack.c.bf16 %v330_v10, %v329_v9  ;;  %v331_v12 = vld [vmem:[%s5352_s20 + $0x20] sm:$0xff]  ;;  %v332_v13 = vld [vmem:[%s5352_s20 + $0x28] sm:$0xff]  ;;  %v333_v15 = vld [vmem:[%s5352_s20 + $0x30] sm:$0xff] }
  0x11   : > { %4471 = vmatpush3.bf16.msra.mxu0 %v4962_v1  ;;  %4484 = vmatprep.mubr.msk.bf16.mxu1 %vm370_vm0, %v448_v5  ;;  %v346_v14 = vpack.c.bf16 %v332_v13, %v331_v12  ;;  %v334_v16 = vld [vmem:[%s5352_s20 + $0x38] sm:$0xff]  ;;  %v337_v19 = vld [vmem:[%s5342_s17 + $0x10] sm:$0xff]  ;;  %v339_v21 = vld [vmem:[%s5342_s17 + $0x20] sm:$0xff] }
  0x12   : > { %4472 = vmatprep.mubr.msk.bf16.mxu0 %vm370_vm0, %v344_v8  ;;  %v347_v17 = vpack.c.bf16 %v334_v16, %v333_v15  ;;  %v338_v20 = vld [vmem:[%s5342_s17 + $0x18] sm:$0xff]  ;;  %v340_v22 = vld [vmem:[%s5342_s17 + $0x28] sm:$0xff]  ;;  %v341_v26 = vld [vmem:[%s5342_s17 + $0x30] sm:$0xff] }
  0x13   : > { %v449_v24 = vpack.c.bf16 %v338_v20, %v337_v19  ;;  %v450_v25 = vpack.c.bf16 %v340_v22, %v339_v21  ;;  %v342_v27 = vld [vmem:[%s5342_s17 + $0x38] sm:$0xff]  ;;  %s5264_s17 = smov 80  }
  0x14   : > { %4473 = vmatmul.mubr.msk.bf16.vlgmr.msra.gmra.mxu0 %vm370_vm0, %v345_v11  ;;  %v451_v28 = vpack.c.bf16 %v342_v27, %v341_v26 }
  0x15   : > { %4476 = vmatprep.mubr.msk.bf16.mxu0 %vm370_vm0, %v346_v14 }
  0x1c   : > { %4477 = vmatmul.mubr.msk.bf16.gmra.mxu0 %vm370_vm0, %v347_v17 }
  0x7e   : > { %v455_v18 = vpop.permute.xlu0 %454 }
  0x7f   : > { %4480 = vmatprep.subr.bf16.mxu1 %v455_v18  ;;  %v459_v40 = vpop.permute.xlu1 %458 }
  0x80   : > { %4481 = vmatpush3.bf16.msra.mxu1 %v455_v18 }
  0x82   : > { %v453_v23 = vpop.permute.xlu0 %452 }
  0x83   : > { %4482 = vmatprep.subr.bf16.mxu1 %v453_v23 }
  0x84   : > { %4483 = vmatpush3.bf16.msra.mxu1 %v453_v23 }
  0x87   : > { %4485 = vmatmul.mubr.msk.bf16.vlgmr.msra.gmra.mxu1 %vm370_vm0, %v449_v24 }
  0x88   : > { %4488 = vmatprep.mubr.msk.bf16.mxu1 %vm370_vm0, %v450_v25 }
  0x8f   : > { %4489 = vmatmul.mubr.msk.bf16.gmra.mxu1 %vm370_vm0, %v451_v28 }
  0xd4   : > { %v4474_v29 = vpop.f32.mrf.mxu0 }
  0xd5   : > { %v426_v31 = vadd.f32 %v4474_v29, %v5335_v2 }
  0xd6   : > { %v417_v30 = vpop.f32.mrf.mxu0 }
  0xd7   : > { %v418_v33 = vadd.f32 %v5335_v2, %v417_v30 }
  0xd8   : > { %v4475_v32 = vpop.f32.mrf.mxu0 }
  0xd9   : > { %v429_v34 = vadd.f32 %v4475_v32, %v5335_v2 }
  0xda   : > { %v420_v35 = vpop.f32.mrf.mxu0 }
  0xdb   : > { %v5379_v36 = vpack.c.bf16 %v429_v34, %v426_v31  ;;  %v421_v37 = vadd.f32 %v5335_v2, %v420_v35 }
  0xdc   : > { %v4478_v42 = vpop.f32.mrf.mxu0 }
  0xdd   : > { %v5382_v38 = vpack.c.bf16 %v421_v37, %v418_v33  ;;  %v442_v3 = vadd.f32 %v4478_v42, %v5335_v2 }
  0xde   : > { %v433_v47 = vpop.f32.mrf.mxu0 }
  0xdf   : > { %4494 = vmatprep.mubr.msk.bf16.mxu0 %vm575_vm1, %v5382_v38  ;;  %v434_v63 = vadd.f32 %v5335_v2, %v433_v47 }
  0xe0   : > { %v4479_v54 = vpop.f32.mrf.mxu0 }
  0xe1   : > { %v445_v4 = vadd.f32 %v4479_v54, %v5335_v2 }
  0xe2   : > { %v436_v59 = vpop.f32.mrf.mxu0 }
  0xe3   : > { %v437_v1 = vadd.f32 %v5335_v2, %v436_v59  ;;  %v5430_v6 = vpack.c.bf16 %v445_v4, %v442_v3 }
  0xe5   : > { %v5427_v5 = vpack.c.bf16 %v437_v1, %v434_v63 }
 0x147   : > { %v4486_v39 = vpop.f32.mrf.mxu1 }
 0x148   : > { %v5386_v44 = vadd.f32 %v4486_v39, %v459_v40 }
 0x149   : > { %v507_v41 = vpop.f32.mrf.mxu1 }
 0x14a   : > { %v5390_v48 = vadd.f32 %v507_v41, %v459_v40 }
 0x14b   : > { %v4487_v43 = vpop.f32.mrf.mxu1 }
 0x14c   : > { %v5388_v45 = vadd.f32 %v4487_v43, %v459_v40 }
 0x14d   : > { %v510_v46 = vpop.f32.mrf.mxu1 }
 0x14e   : > { %v5392_v49 = vadd.f32 %v510_v46, %v459_v40  ;;  %v5396_v50 = vpack.i.bf16 %v5388_v45, %v5386_v44  ;;  %v5442_v2 = vpack.c.bf16 %v5388_v45, %v5386_v44 }
 0x14f   : > { %v4490_v51 = vpop.f32.mrf.mxu1 }
 0x150   : > { %4821 = vrot.lane.b32.xlu0 %v5396_v50, %s5256_s21  ;;  %v5401_v52 = vpack.i.bf16 %v5392_v49, %v5390_v48  ;;  %v5404_v56 = vadd.f32 %v4490_v51, %v459_v40  ;;  %v5448_v8 = vpack.c.bf16 %v5392_v49, %v5390_v48 }
 0x151   : > { %v523_v53 = vpop.f32.mrf.mxu1 }
 0x152   : > { %4826 = vrot.lane.b32.xlu1 %v5401_v52, %s5256_s21  ;;  %v5408_v60 = vadd.f32 %v523_v53, %v459_v40 }
 0x153   : > { %v4491_v55 = vpop.f32.mrf.mxu1 }
 0x154   : > { %v5406_v57 = vadd.f32 %v4491_v55, %v459_v40 }
 0x155   : > { %v526_v58 = vpop.f32.mrf.mxu1 }
 0x156   : > { %v5410_v61 = vadd.f32 %v526_v58, %v459_v40  ;;  %929 = vrot.lane.b32.xlu1 %v5382_v38, %s5256_s21  ;;  %v5415_v62 = vpack.i.bf16 %v5406_v57, %v5404_v56  ;;  %v5436_v7 = vpack.c.bf16 %v5406_v57, %v5404_v56 }
 0x158   : > { %4831 = vrot.lane.b32.xlu0 %v5415_v62, %s5256_s21  ;;  %v5421_v0 = vpack.i.bf16 %v5410_v61, %v5408_v60  ;;  %v5462_v34 = vpack.c.bf16 %v5410_v61, %v5408_v60 }
 0x15a   : > { %4836 = vrot.lane.b32.xlu1 %v5421_v0, %s5256_s21 }
 0x15c   : > { %931 = vrot.lane.b32.xlu0 %v5379_v36, %s5256_s21 }
 0x160   : > { %933 = vrot.lane.b32.xlu0 %v5427_v5, %s5256_s21 }
 0x164   : > { %935 = vrot.lane.b32.xlu0 %v5430_v6, %s5256_s21 }
 0x168   : > { %772 = vrot.lane.b32.xlu0 %v5436_v7, %s5255_s9 }
 0x16c   : > { %768 = vrot.lane.b32.xlu0 %v5442_v2, %s5255_s9 }
 0x170   : > { %766 = vrot.lane.b32.xlu0 %v5448_v8, %s5255_s9 }
 0x1c2   : > { %v4822_v11 = vpop.permute.xlu0 %4821 }
 0x1c3   : > { %v4823_v16 = vunpack.i.l.bf16 %v4822_v11  ;;  %v4824_v19 = vunpack.i.h.bf16 %v4822_v11 }
 0x1c4   : > { %v4827_v9 = vpop.permute.xlu1 %4826 }
 0x1c5   : > { %v4828_v10 = vunpack.i.l.bf16 %v4827_v9  ;;  %v4829_v12 = vunpack.i.h.bf16 %v4827_v9  ;;  %v4844_v20 = vpack.i.bf16 %v4823_v16, %v5386_v44  ;;  %v4846_v24 = vpack.i.bf16 %v4824_v19, %v5388_v45 }
 0x1c7   : > { %v4840_v13 = vpack.i.bf16 %v4828_v10, %v5390_v48  ;;  %v4842_v17 = vpack.i.bf16 %v4829_v12, %v5392_v49 }
 0x1c8   : > { %v930_v14 = vpop.permute.xlu1 %929 }
 0x1c9   : > { %4841 = vxpose.xlu1.b32.start [1/8] (short) (narrow) %v4840_v13, 8 }
 0x1ca   : > { %v4832_v15 = vpop.permute.xlu0 %4831 }
 0x1cb   : > { %v4833_v29 = vunpack.i.l.bf16 %v4832_v15  ;;  %v4834_v31 = vunpack.i.h.bf16 %v4832_v15 }
 0x1cc   : > { %v4837_v21 = vpop.permute.xlu1 %4836 }
 0x1cd   : > { %4843 = vxpose.xlu1.b32.cont [2/8] (short) (narrow) %v4842_v17, 8  ;;  %v4838_v23 = vunpack.i.l.bf16 %v4837_v21  ;;  %v4839_v26 = vunpack.i.h.bf16 %v4837_v21  ;;  %v4852_v32 = vpack.i.bf16 %v4833_v29, %v5404_v56  ;;  %v4854_v33 = vpack.i.bf16 %v4834_v31, %v5406_v57 }
 0x1ce   : > { %v932_v18 = vpop.permute.xlu0 %931 }
 0x1cf   : > { %v4848_v27 = vpack.i.bf16 %v4838_v23, %v5408_v60  ;;  %v4850_v30 = vpack.i.bf16 %v4839_v26, %v5410_v61 }
 0x1d1   : > { %4845 = vxpose.xlu1.b32.cont [3/8] (short) (narrow) %v4844_v20, 8 }
 0x1d2   : > { %v934_v22 = vpop.permute.xlu0 %933 }
 0x1d5   : > { %4847 = vxpose.xlu1.b32.cont [4/8] (short) (narrow) %v4846_v24, 8 }
 0x1d6   : > { %v936_v25 = vpop.permute.xlu0 %935 }
 0x1d9   : > { %4849 = vxpose.xlu1.b32.cont [5/8] (short) (narrow) %v4848_v27, 8 }
 0x1da   : > { %v773_v28 = vpop.permute.xlu0 %772 }
 0x1db   : > { %4502 = vmatprep.subr.bf16.mxu1 %v773_v28 }
 0x1dc   : > { %4503 = vmatpush3.bf16.msra.mxu1 %v773_v28 }
 0x1dd   : > { %4851 = vxpose.xlu1.b32.cont [6/8] (short) (narrow) %v4850_v30, 8 }
 0x1de   : > { %v769_v46 = vpop.permute.xlu0 %768 }
 0x1e1   : > { %4853 = vxpose.xlu1.b32.cont [7/8] (short) (narrow) %v4852_v32, 8 }
 0x1e2   : > { %v767_v51 = vpop.permute.xlu0 %766 }
 0x1e5   : > { %4855 = vxpose.xlu1.b32.end [8/8] (short) (narrow) %v4854_v33, 8 }
 0x203   : > { %770 = vrot.lane.b32.xlu1 %v5462_v34, %s5255_s9 }
 0x245   : > { %v4856_v35 = vpop.trf.xlu1 }
 0x246   : > { %v4857_v37 = vunpack.i.l.bf16 %v4856_v35  ;;  %v4860_v39 = vunpack.i.h.bf16 %v4856_v35 }
 0x248   : > { %v574_v40 = vpack.c.bf16 %v4857_v37, %v4857_v37  ;;  %v924_v42 = vpack.c.bf16 %v4860_v39, %v4860_v39 }
 0x24a   : > { %4780 = vmatprep.subr.msk.bf16.mxu0 %vm588_vm2, %v574_v40  ;;  %v590_v41 = vsel %vm588_vm2, %v574_v40, 0  ;;  %v950_v43 = vsel %vm588_vm2, %v924_v42, 0 }
 0x24b   : > { %4493 = vmatpush3.bf16.msra.mxu0 %v590_v41 }
 0x24c   : > { %4781 = vmatprep.subr.msk.bf16.mxu0 %vm588_vm2, %v924_v42 }
 0x24e   : > { %4495 = vmatmul.mubr.msk.bf16.vlgmr.msra.gmra.mxu0 %vm575_vm1, %v5379_v36 }
 0x24f   : > { %4498 = vmatprep.mubr.msk.bf16.mxu0 %vm575_vm1, %v5427_v5  ;;  %4519 = vmatpush3.bf16.msra.mxu0 %v950_v43 }
 0x256   : > { %4499 = vmatmul.mubr.msk.bf16.gmra.mxu0 %vm575_vm1, %v5430_v6 }
 0x257   : > { %4520 = vmatprep.mubr.msk.bf16.mxu0 %vm575_vm1, %v930_v14 }
 0x25e   : > { %4521 = vmatmul.mubr.msk.bf16.vlgmr.msra.gmra.mxu0 %vm575_vm1, %v932_v18 }
 0x25f   : > { %4524 = vmatprep.mubr.msk.bf16.mxu0 %vm575_vm1, %v934_v22 }
 0x266   : > { %4525 = vmatmul.mubr.msk.bf16.gmra.mxu0 %vm575_vm1, %v936_v25 }
 0x275   : > { %v771_v47 = vpop.permute.xlu1 %770 }
 0x276   : > { %4504 = vmatprep.subr.bf16.mxu1 %v771_v47 }
 0x277   : > { %4505 = vmatpush3.bf16.msra.mxu1 %v771_v47 }
 0x278   : > { %4506 = vmatprep.subr.bf16.mxu1 %v769_v46 }
 0x27b   : > { %4507 = vmatpush3.bf16.msra.mxu1 %v769_v46 }
 0x27c   : > { %4508 = vmatprep.subr.bf16.mxu1 %v767_v51 }
 0x27f   : > { %4509 = vmatpush3.bf16.msra.mxu1 %v767_v51 }
 0x30e   : > { %v4496_v53 = vpop.f32.mrf.mxu0 }
 0x30f   : > { %v5480_v54 = vmul.f32 0.5, %v4496_v53 }
 0x310   : > { %v626_v55 = vpop.f32.mrf.mxu0 }
 0x311   : > { %v5482_v58 = vmul.f32 0.5, %v626_v55  ;;  %v672_v59 = vsel %vm665_vm3, %v5480_v54, -inf }
 0x312   : > { %673 = vmax.xlane.f32.xlu0 %v672_v59  ;;  %v4497_v63 = vpop.f32.mrf.mxu0 }
 0x313   : > { %v5486_v3 = vmul.f32 0.5, %v4497_v63  ;;  %v666_v4 = vsel %vm665_vm3, %v5482_v58, -inf }
 0x314   : > { %v629_v1 = vpop.f32.mrf.mxu0 }
 0x315   : > { %v5490_v11 = vmul.f32 0.5, %v629_v1  ;;  %v675_v12 = vsel %vm665_vm3, %v5486_v3, -inf }
 0x316   : > { %667 = vmax.xlane.f32.xlu0 %v666_v4  ;;  %v4500_v9 = vpop.f32.mrf.mxu0 }
 0x317   : > { %v5494_v15 = vmul.f32 0.5, %v4500_v9  ;;  %v669_v16 = vsel %vm665_vm3, %v5490_v11, -inf }
 0x318   : > { %v642_v10 = vpop.f32.mrf.mxu0 }
 0x319   : > { %v5498_v19 = vmul.f32 0.5, %v642_v10  ;;  %v684_v21 = vsel %vm665_vm3, %v5494_v15, -inf }
 0x31a   : > { %676 = vmax.xlane.f32.xlu0 %v675_v12  ;;  %v4501_v13 = vpop.f32.mrf.mxu0 }
 0x31b   : > { %v5506_v23 = vmul.f32 0.5, %v4501_v13  ;;  %v678_v24 = vsel %vm665_vm3, %v5498_v19, -inf }
 0x31c   : > { %v645_v14 = vpop.f32.mrf.mxu0 }
 0x31d   : > { %v5510_v25 = vmul.f32 0.5, %v645_v14  ;;  %v687_v26 = vsel %vm665_vm3, %v5506_v23, -inf }
 0x31e   : > { %670 = vmax.xlane.f32.xlu0 %v669_v16  ;;  %v4522_v17 = vpop.f32.mrf.mxu0 }
 0x31f   : > { %v5514_v27 = vmul.f32 0.5, %v4522_v17  ;;  %v681_v28 = vsel %vm665_vm3, %v5510_v25, -inf }
 0x320   : > { %v986_v18 = vpop.f32.mrf.mxu0 }
 0x321   : > { %v5500_v20 = vmul.f32 0.5, %v986_v18  ;;  %v1031_v31 = vsel %vm665_vm3, %v5514_v27, -inf }
 0x322   : > { %685 = vmax.xlane.f32.xlu0 %v684_v21  ;;  %v4523_v29 = vpop.f32.mrf.mxu0 }
 0x323   : > { %v1025_v22 = vsel %vm665_vm3, %v5500_v20, -inf  ;;  %v5518_v30 = vmul.f32 0.5, %v4523_v29 }
 0x324   : > { %1026 = vmax.xlane.f32.xlu1 %v1025_v22  ;;  %v989_v32 = vpop.f32.mrf.mxu0 }
 0x325   : > { %v5522_v33 = vmul.f32 0.5, %v989_v32  ;;  %v1034_v35 = vsel %vm665_vm3, %v5518_v30, -inf }
 0x326   : > { %679 = vmax.xlane.f32.xlu0 %v678_v24  ;;  %v4526_v37 = vpop.f32.mrf.mxu0 }
 0x327   : > { %v5528_v39 = vmul.f32 0.5, %v4526_v37  ;;  %v1028_v40 = vsel %vm665_vm3, %v5522_v33, -inf }
 0x328   : > { %v1002_v41 = vpop.f32.mrf.mxu0 }
 0x329   : > { %v5532_v42 = vmul.f32 0.5, %v1002_v41  ;;  %v1043_v43 = vsel %vm665_vm3, %v5528_v39, -inf }
 0x32a   : > { %688 = vmax.xlane.f32.xlu0 %v687_v26  ;;  %v4527_v46 = vpop.f32.mrf.mxu0 }
 0x32b   : > { %v5536_v47 = vmul.f32 0.5, %v4527_v46  ;;  %v1037_v51 = vsel %vm665_vm3, %v5532_v42, -inf }
 0x32c   : > { %v1005_v53 = vpop.f32.mrf.mxu0 }
 0x32d   : > { %v5540_v55 = vmul.f32 0.5, %v1005_v53  ;;  %v1046_v59 = vsel %vm665_vm3, %v5536_v47, -inf }
 0x32e   : > { %682 = vmax.xlane.f32.xlu0 %v681_v28 }
 0x32f   : > { %v1040_v63 = vsel %vm665_vm3, %v5540_v55, -inf }
 0x332   : > { %1032 = vmax.xlane.f32.xlu0 %v1031_v31 }
 0x335   : > { %1123 = vrot.lane.b32.xlu1 %v5436_v7, %s5257_s22 }
 0x336   : > { %1035 = vmax.xlane.f32.xlu0 %v1034_v35 }
 0x33a   : > { %1029 = vmax.xlane.f32.xlu0 %v1028_v40 }
 0x33e   : > { %1044 = vmax.xlane.f32.xlu0 %v1043_v43 }
 0x342   : > { %1038 = vmax.xlane.f32.xlu0 %v1037_v51 }
 0x346   : > { %1047 = vmax.xlane.f32.xlu0 %v1046_v59 }
 0x34a   : > { %1041 = vmax.xlane.f32.xlu0 %v1040_v63 }
 0x360   : > { %1121 = vrot.lane.b32.xlu0 %v5462_v34, %s5257_s22 }
 0x39b   : > { %v674_v1 = vpop.xlane.xlu0 %673 }
 0x39c   : > { %v692_v4 = vsub.f32 %v5480_v54, %v674_v1 }
 0x39e   : > { %v702_v9 = vmul.f32 1.442695, %v692_v4 }
 0x39f   : > { %v668_v10 = vpop.xlane.xlu0 %667 }
 0x3a0   : > { %4967 = vpow2.f32 %v702_v9  ;;  %v690_v12 = vsub.f32 %v5482_v58, %v668_v10 }
 0x3a2   : > { %v698_v13 = vmul.f32 1.442695, %v690_v12 }
 0x3a3   : > { %v677_v14 = vpop.xlane.xlu0 %676 }
 0x3a4   : > { %4969 = vpow2.f32 %v698_v13  ;;  %v693_v16 = vsub.f32 %v5486_v3, %v677_v14 }
 0x3a6   : > { %v704_v17 = vmul.f32 1.442695, %v693_v16 }
 0x3a7   : > { %v671_v18 = vpop.xlane.xlu0 %670 }
 0x3a8   : > { %4971 = vpow2.f32 %v704_v17  ;;  %v691_v21 = vsub.f32 %v5490_v11, %v671_v18 }
 0x3aa   : > { %v700_v22 = vmul.f32 1.442695, %v691_v21 }
 0x3ab   : > { %v686_v24 = vpop.xlane.xlu0 %685 }
 0x3ac   : > { %4973 = vpow2.f32 %v700_v22  ;;  %v696_v54 = vsub.f32 %v5494_v15, %v686_v24 }
 0x3ad   : > { %v5553_v26 = vpop.eup %4967  ;;  %v1027_v28 = vpop.xlane.xlu1 %1026 }
 0x3ae   : > { %v710_v29 = vmul.f32 1.442695, %v696_v54  ;;  %v720_v58 = vsel %vm665_vm3, %v5553_v26, 0.0  ;;  %v1049_v59 = vsub.f32 %v5500_v20, %v1027_v28 }
 0x3af   : > { %v680_v31 = vpop.xlane.xlu0 %679  ;;  %721 = vadd.xlane.f32.xlu0 %v720_v58 }
 0x3b0   : > { %4975 = vpow2.f32 %v710_v29  ;;  %v694_v3 = vsub.f32 %v5498_v19, %v680_v31  ;;  %v1057_v10 = vmul.f32 1.442695, %v1049_v59 }
 0x3b1   : > { %v5558_v32 = vpop.eup %4969  ;;  %v5560_v11 = vpop.permute.xlu1 %1123 }
 0x3b2   : > { %v706_v35 = vmul.f32 1.442695, %v694_v3  ;;  %4528 = vmatprep.subr.bf16.mxu1 %v5560_v11  ;;  %v714_v15 = vsel %vm665_vm3, %v5558_v32, 0.0 }
 0x3b3   : > { %v689_v37 = vpop.xlane.xlu0 %688  ;;  %715 = vadd.xlane.f32.xlu0 %v714_v15 }
 0x3b4   : > { %4977 = vpow2.f32 %v706_v35  ;;  %v697_v40 = vsub.f32 %v5506_v23, %v689_v37 }
 0x3b5   : > { %v5566_v41 = vpop.eup %4971 }
 0x3b6   : > { %v712_v43 = vmul.f32 1.442695, %v697_v40  ;;  %v723_v19 = vsel %vm665_vm3, %v5566_v41, 0.0 }
 0x3b7   : > { %724 = vadd.xlane.f32.xlu1 %v723_v19  ;;  %v683_v46 = vpop.xlane.xlu0 %682 }
 0x3b8   : > { %4979 = vpow2.f32 %v712_v43  ;;  %v695_v51 = vsub.f32 %v5510_v25, %v683_v46 }
 0x3b9   : > { %v5571_v53 = vpop.eup %4973 }
 0x3ba   : > { %v708_v63 = vmul.f32 1.442695, %v695_v51  ;;  %v717_v1 = vsel %vm665_vm3, %v5571_v53, 0.0 }
 0x3bb   : > { %718 = vadd.xlane.f32.xlu0 %v717_v1  ;;  %v1033_v23 = vpop.xlane.xlu0 %1032 }
 0x3bc   : > { %4981 = vpow2.f32 %v708_v63  ;;  %v1051_v4 = vsub.f32 %v5514_v27, %v1033_v23 }
 0x3bd   : > { %v5577_v9 = vpop.eup %4975 }
 0x3be   : > { %v1061_v12 = vmul.f32 1.442695, %v1051_v4  ;;  %v732_v25 = vsel %vm665_vm3, %v5577_v9, 0.0 }
 0x3bf   : > { %733 = vadd.xlane.f32.xlu0 %v732_v25  ;;  %v1036_v13 = vpop.xlane.xlu0 %1035 }
 0x3c0   : > { %4983 = vpow2.f32 %v1061_v12  ;;  %v1052_v20 = vsub.f32 %v5518_v30, %v1036_v13 }
 0x3c1   : > { %v5582_v14 = vpop.eup %4977  ;;  %4985 = vpow2.f32 %v1057_v10 }
 0x3c2   : > { %v1063_v16 = vmul.f32 1.442695, %v1052_v20  ;;  %v726_v17 = vsel %vm665_vm3, %v5582_v14, 0.0 }
 0x3c3   : > { %727 = vadd.xlane.f32.xlu0 %v726_v17  ;;  %v1030_v27 = vpop.xlane.xlu0 %1029 }
 0x3c4   : > { %v1050_v18 = vsub.f32 %v5522_v33, %v1030_v27  ;;  %4987 = vpow2.f32 %v1063_v16 }
 0x3c5   : > { %v5587_v21 = vpop.eup %4979 }
 0x3c6   : > { %v1059_v22 = vmul.f32 1.442695, %v1050_v18  ;;  %v735_v24 = vsel %vm665_vm3, %v5587_v21, 0.0 }
 0x3c7   : > { %736 = vadd.xlane.f32.xlu1 %v735_v24  ;;  %v1045_v30 = vpop.xlane.xlu0 %1044 }
 0x3c8   : > { %v1055_v54 = vsub.f32 %v5528_v39, %v1045_v30  ;;  %4989 = vpow2.f32 %v1059_v22 }
 0x3c9   : > { %v5592_v28 = vpop.eup %4981 }
 0x3ca   : > { %v1069_v29 = vmul.f32 1.442695, %v1055_v54  ;;  %v729_v58 = vsel %vm665_vm3, %v5592_v28, 0.0 }
 0x3cb   : > { %730 = vadd.xlane.f32.xlu1 %v729_v58  ;;  %v1039_v33 = vpop.xlane.xlu0 %1038 }
 0x3cc   : > { %4991 = vpow2.f32 %v1069_v29  ;;  %v1053_v31 = vsub.f32 %v5532_v42, %v1039_v33 }
 0x3cd   : > { %v5597_v3 = vpop.eup %4983 }
 0x3ce   : > { %v1065_v35 = vmul.f32 1.442695, %v1053_v31  ;;  %v1079_v15 = vsel %vm665_vm3, %v5597_v3, 0.0  ;;  %v5601_v37 = vpop.eup %4985 }
 0x3cf   : > { %1080 = vadd.xlane.f32.xlu1 %v1079_v15  ;;  %v1048_v39 = vpop.xlane.xlu0 %1047  ;;  %v1073_v19 = vsel %vm665_vm3, %v5601_v37, 0.0 }
 0x3d0   : > { %4993 = vpow2.f32 %v1065_v35  ;;  %v1056_v40 = vsub.f32 %v5536_v47, %v1048_v39 }
 0x3d1   : > { %v5606_v46 = vpop.eup %4987 }
 0x3d2   : > { %v1071_v43 = vmul.f32 1.442695, %v1056_v40  ;;  %v1082_v63 = vsel %vm665_vm3, %v5606_v46, 0.0 }
 0x3d3   : > { %1074 = vadd.xlane.f32.xlu1 %v1073_v19  ;;  %v1042_v42 = vpop.xlane.xlu0 %1041 }
 0x3d4   : > { %4995 = vpow2.f32 %v1071_v43  ;;  %v1054_v51 = vsub.f32 %v5540_v55, %v1042_v42 }
 0x3d5   : > { %v5611_v1 = vpop.eup %4989 }
 0x3d6   : > { %v1067_v59 = vmul.f32 1.442695, %v1054_v51  ;;  %v1076_v23 = vsel %vm665_vm3, %v5611_v1, 0.0 }
 0x3d7   : > { %1083 = vadd.xlane.f32.xlu1 %v1082_v63 }
 0x3d8   : > { %4997 = vpow2.f32 %v1067_v59 }
 0x3d9   : > { %v5613_v47 = vpop.eup %4991 }
 0x3da   : > { %v1091_v4 = vsel %vm665_vm3, %v5613_v47, 0.0 }
 0x3db   : > { %1077 = vadd.xlane.f32.xlu1 %v1076_v23  ;;  %1092 = vadd.xlane.f32.xlu0 %v1091_v4 }
 0x3dd   : > { %v5619_v10 = vpop.eup %4993 }
 0x3de   : > { %v1085_v55 = vsel %vm665_vm3, %v5619_v10, 0.0 }
 0x3df   : > { %1086 = vadd.xlane.f32.xlu0 %v1085_v55 }
 0x3e1   : > { %v5623_v12 = vpop.eup %4995 }
 0x3e2   : > { %v1094_v25 = vsel %vm665_vm3, %v5623_v12, 0.0 }
 0x3e3   : > { %1095 = vadd.xlane.f32.xlu0 %v1094_v25 }
 0x3e5   : > { %v5627_v13 = vpop.eup %4997 }
 0x3e6   : > { %v1088_v20 = vsel %vm665_vm3, %v5627_v13, 0.0 }
 0x3e7   : > { %1089 = vadd.xlane.f32.xlu1 %v1088_v20 }
 0x3f8   : > { %1119 = vrot.lane.b32.xlu1 %v5442_v2, %s5257_s22 }
 0x3f9   : > { %1117 = vrot.lane.b32.xlu0 %v5448_v8, %s5257_s22 }
 0x3fc   : > { %1375 = vrot.lane.b32.xlu1 %v5390_v48, %s5258_s23 }
 0x3fd   : > { %1377 = vrot.lane.b32.xlu0 %v5392_v49, %s5258_s23 }
 0x400   : > { %1379 = vrot.lane.b32.xlu1 %v5386_v44, %s5258_s23  ;;  %v1122_v44 = vpop.permute.xlu0 %1121 }
 0x401   : > { %1381 = vrot.lane.b32.xlu0 %v5388_v45, %s5258_s23 }
 0x404   : > { %1383 = vrot.lane.b32.xlu1 %v5408_v60, %s5258_s23 }
 0x405   : > { %1385 = vrot.lane.b32.xlu0 %v5410_v61, %s5258_s23 }
 0x408   : > { %1387 = vrot.lane.b32.xlu1 %v5404_v56, %s5258_s23 }
 0x409   : > { %1389 = vrot.lane.b32.xlu0 %v5406_v57, %s5258_s23 }
 0x40c   : > { %1432 = vrot.lane.b32.xlu1 %v5382_v38, %s5258_s23 }
 0x40d   : > { %1434 = vrot.lane.b32.xlu0 %v5379_v36, %s5258_s23 }
 0x410   : > { %1436 = vrot.lane.b32.xlu1 %v5427_v5, %s5258_s23 }
 0x411   : > { %1438 = vrot.lane.b32.xlu0 %v5430_v6, %s5258_s23 }
 0x415   : > { %4862 = vrot.lane.b32.xlu0 %v5401_v52, %s5259_s24 }
 0x438   : > { %v722_v45 = vpop.xlane.xlu0 %721 }
 0x43c   : > { %v716_v48 = vpop.xlane.xlu0 %715 }
 0x440   : > { %v725_v49 = vpop.xlane.xlu1 %724 }
 0x441   : > { %4999 = vrcp.f32 %v725_v49 }
 0x442   : > { %5001 = vrcp.f32 %v716_v48 }
 0x443   : > { %5003 = vrcp.f32 %v722_v45 }
 0x444   : > { %v719_v56 = vpop.xlane.xlu0 %718 }
 0x445   : > { %5005 = vrcp.f32 %v719_v56 }
 0x448   : > { %v734_v57 = vpop.xlane.xlu0 %733 }
 0x44c   : > { %v728_v16 = vpop.xlane.xlu0 %727 }
 0x44e   : > { %v5000_v60 = vpop.eup %4999 }
 0x44f   : > { %v5002_v61 = vpop.eup %5001  ;;  %v749_v22 = vmul.f32 %v5000_v60, %v5566_v41 }
 0x450   : > { %v737_v17 = vpop.xlane.xlu1 %736  ;;  %v5004_v27 = vpop.eup %5003  ;;  %v746_v24 = vmul.f32 %v5002_v61, %v5558_v32 }
 0x451   : > { %5007 = vrcp.f32 %v737_v17  ;;  %v748_v54 = vmul.f32 %v5004_v27, %v5553_v26 }
 0x452   : > { %v5006_v18 = vpop.eup %5005  ;;  %5009 = vrcp.f32 %v728_v16 }
 0x453   : > { %v747_v30 = vmul.f32 %v5006_v18, %v5571_v53  ;;  %5011 = vrcp.f32 %v734_v57  ;;  %v755_v33 = vpack.c.bf16 %v749_v22, %v748_v54 }
 0x454   : > { %v731_v29 = vpop.xlane.xlu1 %730 }
 0x455   : > { %5013 = vrcp.f32 %v731_v29  ;;  %v754_v58 = vpack.c.bf16 %v747_v30, %v746_v24 }
 0x457   : > { %4510 = vmatprep.mubr.msk.bf16.mxu1 %vm665_vm3, %v754_v58  ;;  %v4963_v58 = vld [vmem:[%s6502_s4] ss:$0 sps:$4 sm:$0xcc]  }
 0x458   : > { %v1081_v31 = vpop.xlane.xlu1 %1080  ;;  %4511 = vmatmul.mubr.msk.bf16.vlgmr.msra.gmra.mxu1 %vm665_vm3, %v755_v33  ;;  %v1214_v33 = vrot.slane %v4963_v58, 2 }
 0x459   : > { %4529 = vmatpush3.bf16.msra.mxu1 %v5560_v11 }
 0x45a   : > { %4530 = vmatprep.subr.bf16.mxu1 %v1122_v44  ;;  %4782 = vmatprep.subr.msk.bf16.mxu0 %vm588_vm2, %v1214_v33 }
 0x45c   : > { %v1075_v41 = vpop.xlane.xlu1 %1074 }
 0x45d   : > { %4531 = vmatpush3.bf16.msra.mxu1 %v1122_v44  ;;  %5015 = vrcp.f32 %v1075_v41 }
 0x45e   : > { %v5008_v32 = vpop.eup %5007 }
 0x45f   : > { %v5010_v35 = vpop.eup %5009  ;;  %v753_v39 = vmul.f32 %v5008_v32, %v5587_v21 }
 0x460   : > { %v1084_v53 = vpop.xlane.xlu1 %1083  ;;  %v5012_v15 = vpop.eup %5011  ;;  %v750_v40 = vmul.f32 %v5010_v35, %v5582_v14 }
 0x461   : > { %v752_v51 = vmul.f32 %v5012_v15, %v5577_v9 }
 0x462   : > { %v5014_v26 = vpop.eup %5013 }
 0x463   : > { %v751_v43 = vmul.f32 %v5014_v26, %v5592_v28  ;;  %v757_v59 = vpack.c.bf16 %v753_v39, %v752_v51 }
 0x464   : > { %v1078_v19 = vpop.xlane.xlu1 %1077  ;;  %v1093_v42 = vpop.xlane.xlu0 %1092 }
 0x465   : > { %5017 = vrcp.f32 %v1078_v19  ;;  %v756_v11 = vpack.c.bf16 %v751_v43, %v750_v40 }
 0x466   : > { %5019 = vrcp.f32 %v1084_v53 }
 0x467   : > { %4514 = vmatprep.mubr.msk.bf16.mxu1 %vm665_vm3, %v756_v11  ;;  %5021 = vrcp.f32 %v1081_v31  ;;  %v1228_v31 = vsel %vm588_vm2, %v1214_v33, 0 }
 0x468   : > { %4515 = vmatmul.mubr.msk.bf16.gmra.mxu1 %vm665_vm3, %v757_v59  ;;  %v1087_v63 = vpop.xlane.xlu0 %1086  ;;  %4545 = vmatpush3.bf16.msra.mxu0 %v1228_v31 }
 0x469   : > { %5023 = vrcp.f32 %v1087_v63 }
 0x46a   : > { %v5016_v14 = vpop.eup %5015 }
 0x46b   : > { %v1105_v9 = vmul.f32 %v5016_v14, %v5601_v37 }
 0x46c   : > { %v1096_v21 = vpop.xlane.xlu0 %1095 }
 0x46d   : > { %5025 = vrcp.f32 %v1096_v21 }
 0x46e   : > { %5027 = vrcp.f32 %v1093_v42 }
 0x470   : > { %v1090_v28 = vpop.xlane.xlu1 %1089  ;;  %v1118_v45 = vpop.permute.xlu0 %1117 }
 0x471   : > { %5029 = vrcp.f32 %v1090_v28 }
 0x472   : > { %v5018_v23 = vpop.eup %5017 }
 0x473   : > { %v1106_v4 = vmul.f32 %v5018_v23, %v5611_v1  ;;  %v5020_v55 = vpop.eup %5019 }
 0x474   : > { %v1120_v25 = vpop.permute.xlu1 %1119  ;;  %v5022_v44 = vpop.eup %5021  ;;  %v1108_v48 = vmul.f32 %v5020_v55, %v5606_v46 }
 0x475   : > { %4532 = vmatprep.subr.bf16.mxu1 %v1120_v25  ;;  %v1113_v20 = vpack.c.bf16 %v1106_v4, %v1105_v9  ;;  %v1107_v56 = vmul.f32 %v5022_v44, %v5597_v3  ;;  %v1378_v60 = vpop.permute.xlu0 %1377 }
 0x476   : > { %4533 = vmatpush3.bf16.msra.mxu1 %v1120_v25  ;;  %v5024_v37 = vpop.eup %5023 }
 0x477   : > { %4534 = vmatprep.subr.bf16.mxu1 %v1118_v45  ;;  %4536 = vmatprep.mubr.msk.bf16.mxu1 %vm665_vm3, %v1113_v20  ;;  %v1114_v57 = vpack.c.bf16 %v1108_v48, %v1107_v56  ;;  %v1109_v17 = vmul.f32 %v5024_v37, %v5619_v10 }
 0x478   : > { %v1376_v49 = vpop.permute.xlu1 %1375 }
 0x479   : > { %1399 = vxpose.xlu1.b32.start [1/8] (short) (narrow) %v1376_v49, 8  ;;  %v1382_v30 = vpop.permute.xlu0 %1381 }
 0x47a   : > { %4535 = vmatpush3.bf16.msra.mxu1 %v1118_v45  ;;  %v5026_v1 = vpop.eup %5025 }
 0x47b   : > { %v5028_v61 = vpop.eup %5027  ;;  %v1112_v27 = vmul.f32 %v5026_v1, %v5623_v12  ;;  %v859_v12 = vld [vmem:[%s6502_s4] sm:$0x3] }
 0x47c   : > { %v1380_v18 = vpop.permute.xlu1 %1379  ;;  %v1111_v22 = vmul.f32 %v5028_v61, %v5613_v47  ;;  %4783 = vmatprep.subr.msk.bf16.mxu1 %vm588_vm2, %v859_v12  ;;  %v1308_v47 = vsel %vm588_vm2, %v859_v12, 0 }
 0x47d   : > { %4537 = vmatmul.mubr.msk.bf16.vlgmr.msra.gmra.mxu1 %vm665_vm3, %v1114_v57  ;;  %1400 = vxpose.xlu1.b32.cont [2/8] (short) (narrow) %v1378_v60, 8  ;;  %v1386_v29 = vpop.permute.xlu0 %1385 }
 0x47e   : > { %v5030_v16 = vpop.eup %5029  ;;  %v1116_v24 = vpack.c.bf16 %v1112_v27, %v1111_v22  ;;  %4555 = vmatpush3.bf16.msra.mxu1 %v1308_v47 }
 0x47f   : > { %v1110_v46 = vmul.f32 %v5030_v16, %v5627_v13 }
 0x480   : > { %v1384_v54 = vpop.permute.xlu1 %1383 }
 0x481   : > { %1401 = vxpose.xlu1.b32.cont [3/8] (short) (narrow) %v1380_v18, 8  ;;  %v1115_v3 = vpack.c.bf16 %v1110_v46, %v1109_v17  ;;  %v1390_v13 = vpop.permute.xlu0 %1389 }
 0x483   : > { %4540 = vmatprep.mubr.msk.bf16.mxu1 %vm665_vm3, %v1115_v3 }
 0x484   : > { %v1388_v10 = vpop.permute.xlu1 %1387 }
 0x485   : > { %4541 = vmatmul.mubr.msk.bf16.gmra.mxu1 %vm665_vm3, %v1116_v24  ;;  %1402 = vxpose.xlu1.b32.cont [4/8] (short) (narrow) %v1382_v30, 8  ;;  %v1435_v37 = vpop.permute.xlu0 %1434 }
 0x488   : > { %v1433_v41 = vpop.permute.xlu1 %1432 }
 0x489   : > { %1403 = vxpose.xlu1.b32.cont [5/8] (short) (narrow) %v1384_v54, 8  ;;  %v1439_v57 = vpop.permute.xlu0 %1438 }
 0x48c   : > { %v1437_v32 = vpop.permute.xlu1 %1436 }
 0x48d   : > { %1404 = vxpose.xlu1.b32.cont [6/8] (short) (narrow) %v1386_v29, 8 }
 0x491   : > { %1405 = vxpose.xlu1.b32.cont [7/8] (short) (narrow) %v1388_v10, 8 }
 0x495   : > { %1406 = vxpose.xlu1.b32.end [8/8] (short) (narrow) %v1390_v13, 8 }
 0x4b3   : > { %4867 = vrot.lane.b32.xlu1 %v5396_v50, %s5259_s24 }
 0x4b7   : > { %4877 = vrot.lane.b32.xlu1 %v5415_v62, %s5259_s24 }
 0x4bb   : > { %1624 = vrot.lane.b32.xlu1 %v5462_v34, %s5260_s28 }
 0x4bf   : > { %1622 = vrot.lane.b32.xlu1 %v5442_v2, %s5260_s28 }
 0x4f5   : > { %v1415_v35 = vpop.trf.xlu1 }
 0x4f6   : > { %v1431_v53 = vpack.c.bf16 %v1415_v35, %v1415_v35 }
 0x4f8   : > { %4784 = vmatprep.subr.msk.bf16.mxu0 %vm588_vm2, %v1431_v53  ;;  %v1453_v20 = vsel %vm588_vm2, %v1431_v53, 0 }
 0x518   : > { %v4512_v15 = vpop.f32.mrf.mxu1 }
 0x51a   : > { %v824_v26 = vpop.f32.mrf.mxu1 }
 0x51c   : > { %v4513_v39 = vpop.f32.mrf.mxu1 }
 0x51d   : > { %v856_v19 = vpack.c.bf16 %v4513_v39, %v4512_v15 }
 0x51e   : > { %v827_v40 = vpop.f32.mrf.mxu1 }
 0x51f   : > { %v855_v43 = vpack.c.bf16 %v827_v40, %v824_v26 }
 0x521   : > { %4556 = vmatprep.mubr.msk.bf16.mxu1 %vm575_vm1, %v855_v43 }
 0x522   : > { %4557 = vmatmul.mubr.msk.bf16.vlgmr.msra.gmra.mxu1 %vm575_vm1, %v856_v19 }
 0x528   : > { %v4516_v42 = vpop.f32.mrf.mxu1 }
 0x52a   : > { %v840_v51 = vpop.f32.mrf.mxu1 }
 0x52c   : > { %v4517_v11 = vpop.f32.mrf.mxu1 }
 0x52d   : > { %v858_v21 = vpack.c.bf16 %v4517_v11, %v4516_v42 }
 0x52e   : > { %v843_v59 = vpop.f32.mrf.mxu1 }
 0x52f   : > { %v857_v63 = vpack.c.bf16 %v843_v59, %v840_v51 }
 0x531   : > { %4560 = vmatprep.mubr.msk.bf16.mxu1 %vm575_vm1, %v857_v63 }
 0x532   : > { %4561 = vmatmul.mubr.msk.bf16.gmra.mxu1 %vm575_vm1, %v858_v21 }
 0x53d   : > { %v4538_v14 = vpop.f32.mrf.mxu1 }
 0x53f   : > { %v1175_v28 = vpop.f32.mrf.mxu1 }
 0x541   : > { %v4539_v23 = vpop.f32.mrf.mxu1 }
 0x542   : > { %v1207_v55 = vpack.c.bf16 %v4539_v23, %v4538_v14 }
 0x543   : > { %v1178_v9 = vpop.f32.mrf.mxu1 }
 0x544   : > { %v1206_v4 = vpack.c.bf16 %v1178_v9, %v1175_v28 }
 0x545   : > { %v4542_v25 = vpop.f32.mrf.mxu1 }
 0x546   : > { %4546 = vmatprep.mubr.msk.bf16.mxu0 %vm575_vm1, %v1206_v4 }
 0x547   : > { %v1191_v44 = vpop.f32.mrf.mxu1  ;;  %4547 = vmatmul.mubr.msk.bf16.vlgmr.msra.gmra.mxu0 %vm575_vm1, %v1207_v55 }
 0x548   : > { %4565 = vmatpush3.bf16.msra.mxu0 %v1453_v20 }
 0x549   : > { %v4543_v45 = vpop.f32.mrf.mxu1 }
 0x54a   : > { %v1209_v56 = vpack.c.bf16 %v4543_v45, %v4542_v25  ;;  %v5737_v45 = vpop.permute.xlu0 %4862 }
 0x54b   : > { %v1194_v48 = vpop.f32.mrf.mxu1 }
 0x54c   : > { %v1208_v49 = vpack.c.bf16 %v1194_v48, %v1191_v44 }
 0x54e   : > { %4550 = vmatprep.mubr.msk.bf16.mxu0 %vm575_vm1, %v1208_v49 }
 0x54f   : > { %4551 = vmatmul.mubr.msk.bf16.gmra.mxu0 %vm575_vm1, %v1209_v56 }
 0x550   : > { %4566 = vmatprep.mubr.msk.bf16.mxu0 %vm575_vm1, %v1433_v41 }
 0x557   : > { %4567 = vmatmul.mubr.msk.bf16.vlgmr.msra.gmra.mxu0 %vm575_vm1, %v1435_v37 }
 0x558   : > { %4570 = vmatprep.mubr.msk.bf16.mxu0 %vm575_vm1, %v1437_v32 }
 0x55f   : > { %4571 = vmatmul.mubr.msk.bf16.gmra.mxu0 %vm575_vm1, %v1439_v57 }
 0x5e2   : > { %v4558_v1 = vpop.f32.mrf.mxu1 }
 0x5e4   : > { %v1344_v60 = vpop.f32.mrf.mxu1 }
 0x5e6   : > { %v4559_v61 = vpop.f32.mrf.mxu1 }
 0x5e8   : > { %v1347_v46 = vpop.f32.mrf.mxu1 }
 0x5f2   : > { %v4562_v3 = vpop.f32.mrf.mxu1 }
 0x5f4   : > { %v1360_v29 = vpop.f32.mrf.mxu1 }
 0x5f6   : > { %v4563_v58 = vpop.f32.mrf.mxu1 }
 0x607   : > { %v4548_v16 = vpop.f32.mrf.mxu0 }
 0x608   : > { %v5706_v17 = vadd.f32 %v4558_v1, %v4548_v16 }
 0x609   : > { %v1264_v27 = vpop.f32.mrf.mxu0 }
 0x60a   : > { %v5708_v18 = vadd.f32 %v1344_v60, %v1264_v27 }
 0x60b   : > { %v4549_v22 = vpop.f32.mrf.mxu0 }
 0x60c   : > { %v5710_v24 = vadd.f32 %v4559_v61, %v4549_v22 }
 0x60d   : > { %v1267_v30 = vpop.f32.mrf.mxu0 }
 0x60e   : > { %v5712_v54 = vadd.f32 %v1347_v46, %v1267_v30 }
 0x60f   : > { %v4552_v10 = vpop.f32.mrf.mxu0 }
 0x610   : > { %v5714_v13 = vadd.f32 %v4562_v3, %v4552_v10 }
 0x611   : > { %v1280_v12 = vpop.f32.mrf.mxu0 }
 0x612   : > { %v5716_v47 = vadd.f32 %v1360_v29, %v1280_v12 }
 0x613   : > { %v4553_v33 = vpop.f32.mrf.mxu0 }
 0x614   : > { %v5718_v31 = vadd.f32 %v4563_v58, %v4553_v33 }
 0x615   : > { %v5720_v41 = vpop.f32.mrf.mxu0 }
 0x617   : > { %v4568_v32 = vpop.f32.mrf.mxu0 }
 0x618   : > { %v1522_v35 = vmul.f32 0.5, %v4568_v32 }
 0x619   : > { %v1489_v53 = vpop.f32.mrf.mxu0 }
 0x61a   : > { %v1520_v15 = vmul.f32 0.5, %v1489_v53  ;;  %v1534_v26 = vsel %vm665_vm3, %v1522_v35, -inf }
 0x61b   : > { %1535 = vmax.xlane.f32.xlu0 %v1534_v26  ;;  %v4569_v39 = vpop.f32.mrf.mxu0 }
 0x61c   : > { %v1523_v40 = vmul.f32 0.5, %v4569_v39  ;;  %v1528_v43 = vsel %vm665_vm3, %v1520_v15, -inf }
 0x61d   : > { %v1492_v19 = vpop.f32.mrf.mxu0 }
 0x61e   : > { %v1521_v42 = vmul.f32 0.5, %v1492_v19  ;;  %v1537_v51 = vsel %vm665_vm3, %v1523_v40, -inf }
 0x61f   : > { %1529 = vmax.xlane.f32.xlu0 %v1528_v43  ;;  %v4572_v11 = vpop.f32.mrf.mxu0 }
 0x620   : > { %v1526_v59 = vmul.f32 0.5, %v4572_v11  ;;  %v1531_v63 = vsel %vm665_vm3, %v1521_v42, -inf }
 0x621   : > { %v1505_v21 = vpop.f32.mrf.mxu0 }
 0x622   : > { %v1524_v14 = vmul.f32 0.5, %v1505_v21  ;;  %v1546_v28 = vsel %vm665_vm3, %v1526_v59, -inf }
 0x623   : > { %1538 = vmax.xlane.f32.xlu0 %v1537_v51  ;;  %v4573_v23 = vpop.f32.mrf.mxu0 }
 0x624   : > { %v1527_v9 = vmul.f32 0.5, %v4573_v23  ;;  %v1540_v4 = vsel %vm665_vm3, %v1524_v14, -inf }
 0x625   : > { %v1508_v55 = vpop.f32.mrf.mxu0 }
 0x626   : > { %v5728_v25 = vmul.f32 0.5, %v1508_v55  ;;  %v1549_v20 = vsel %vm665_vm3, %v1527_v9, -inf }
 0x627   : > { %1532 = vmax.xlane.f32.xlu0 %v1531_v63 }
 0x628   : > { %v1543_v44 = vsel %vm665_vm3, %v5728_v25, -inf }
 0x62b   : > { %1547 = vmax.xlane.f32.xlu0 %v1546_v28 }
 0x62f   : > { %1541 = vmax.xlane.f32.xlu0 %v1540_v4 }
 0x633   : > { %1550 = vmax.xlane.f32.xlu0 %v1549_v20 }
 0x637   : > { %1544 = vmax.xlane.f32.xlu0 %v1543_v44 }
 0x64d   : > { %4872 = vrot.lane.b32.xlu0 %v5421_v0, %s5259_s24 }
 0x651   : > { %1626 = vrot.lane.b32.xlu0 %v5436_v7, %s5260_s28 }
 0x6a4   : > { %v1536_v48 = vpop.xlane.xlu0 %1535 }
 0x6a5   : > { %v1554_v49 = vsub.f32 %v1522_v35, %v1536_v48 }
 0x6a7   : > { %v1564_v56 = vmul.f32 1.442695, %v1554_v49 }
 0x6a8   : > { %v1530_v37 = vpop.xlane.xlu0 %1529 }
 0x6a9   : > { %5031 = vpow2.f32 %v1564_v56  ;;  %v1552_v57 = vsub.f32 %v1520_v15, %v1530_v37  ;;  %v4868_v15 = vpop.permute.xlu1 %4867  ;;  %v1713_v56 = vld [vmem:[%s6502_s4 + $0x4] sm:$0x3] }
 0x6aa   : > { %4785 = vmatprep.subr.msk.bf16.mxu0 %vm588_vm2, %v1713_v56  ;;  %v1727_v37 = vsel %vm588_vm2, %v1713_v56, 0 }
 0x6ab   : > { %v1560_v1 = vmul.f32 1.442695, %v1552_v57  ;;  %4591 = vmatpush3.bf16.msra.mxu0 %v1727_v37 }
 0x6ac   : > { %v1539_v60 = vpop.xlane.xlu0 %1538 }
 0x6ad   : > { %5033 = vpow2.f32 %v1560_v1  ;;  %v1555_v61 = vsub.f32 %v1523_v40, %v1539_v60  ;;  %v4878_v11 = vpop.permute.xlu1 %4877  ;;  %v4864_v1 = vunpack.i.l.bf16 %v5737_v45  ;;  %v4865_v60 = vunpack.i.h.bf16 %v5737_v45 }
 0x6af   : > { %v1566_v16 = vmul.f32 1.442695, %v1555_v61  ;;  %v4869_v61 = vunpack.i.l.bf16 %v4868_v15 }
 0x6b0   : > { %v1533_v46 = vpop.xlane.xlu0 %1532 }
 0x6b1   : > { %5035 = vpow2.f32 %v1566_v16  ;;  %v1553_v27 = vsub.f32 %v1521_v42, %v1533_v46  ;;  %v1625_v28 = vpop.permute.xlu1 %1624  ;;  %v4870_v16 = vunpack.i.h.bf16 %v4868_v15 }
 0x6b3   : > { %v1562_v3 = vmul.f32 1.442695, %v1553_v27 }
 0x6b4   : > { %v1548_v22 = vpop.xlane.xlu0 %1547 }
 0x6b5   : > { %5037 = vpow2.f32 %v1562_v3  ;;  %v1558_v30 = vsub.f32 %v1526_v59, %v1548_v22  ;;  %v1623_v20 = vpop.permute.xlu1 %1622 }
 0x6b6   : > { %v5739_v29 = vpop.eup %5031 }
 0x6b7   : > { %v1572_v10 = vmul.f32 1.442695, %v1558_v30  ;;  %v1582_v12 = vsel %vm665_vm3, %v5739_v29, 0.0  ;;  %v4879_v30 = vunpack.i.l.bf16 %v4878_v11 }
 0x6b8   : > { %1583 = vadd.xlane.f32.xlu0 %v1582_v12  ;;  %v1542_v58 = vpop.xlane.xlu0 %1541  ;;  %v4880_v12 = vunpack.i.h.bf16 %v4878_v11 }
 0x6b9   : > { %5039 = vpow2.f32 %v1572_v10  ;;  %v1556_v33 = vsub.f32 %v1524_v14, %v1542_v58 }
 0x6ba   : > { %v5743_v32 = vpop.eup %5033 }
 0x6bb   : > { %v1568_v35 = vmul.f32 1.442695, %v1556_v33  ;;  %v1576_v53 = vsel %vm665_vm3, %v5743_v32, 0.0 }
 0x6bc   : > { %1577 = vadd.xlane.f32.xlu0 %v1576_v53  ;;  %v1551_v26 = vpop.xlane.xlu0 %1550 }
 0x6bd   : > { %5041 = vpow2.f32 %v1568_v35  ;;  %v1559_v39 = vsub.f32 %v1527_v9, %v1551_v26 }
 0x6be   : > { %v5747_v40 = vpop.eup %5035 }
 0x6bf   : > { %v1574_v43 = vmul.f32 1.442695, %v1559_v39  ;;  %v1585_v19 = vsel %vm665_vm3, %v5747_v40, 0.0 }
 0x6c0   : > { %1586 = vadd.xlane.f32.xlu0 %v1585_v19  ;;  %v1545_v42 = vpop.xlane.xlu0 %1544 }
 0x6c1   : > { %5043 = vpow2.f32 %v1574_v43  ;;  %v1557_v48 = vsub.f32 %v5728_v25, %v1545_v42 }
 0x6c2   : > { %v5751_v51 = vpop.eup %5037 }
 0x6c3   : > { %v1579_v59 = vsel %vm665_vm3, %v5751_v51, 0.0  ;;  %v1570_v49 = vmul.f32 1.442695, %v1557_v48 }
 0x6c4   : > { %1580 = vadd.xlane.f32.xlu1 %v1579_v59  ;;  %v4873_v63 = vpop.permute.xlu0 %4872 }
 0x6c5   : > { %5045 = vpow2.f32 %v1570_v49  ;;  %v4874_v46 = vunpack.i.l.bf16 %v4873_v63  ;;  %v4875_v3 = vunpack.i.h.bf16 %v4873_v63 }
 0x6c6   : > { %v5755_v21 = vpop.eup %5039 }
 0x6c7   : > { %v1594_v14 = vsel %vm665_vm3, %v5755_v21, 0.0 }
 0x6c8   : > { %1595 = vadd.xlane.f32.xlu0 %v1594_v14  ;;  %v1627_v23 = vpop.permute.xlu0 %1626 }
 0x6c9   : > { %4574 = vmatprep.subr.bf16.mxu1 %v1627_v23 }
 0x6ca   : > { %v5759_v9 = vpop.eup %5041  ;;  %4575 = vmatpush3.bf16.msra.mxu1 %v1627_v23 }
 0x6cb   : > { %4576 = vmatprep.subr.bf16.mxu1 %v1625_v28  ;;  %v1588_v4 = vsel %vm665_vm3, %v5759_v9, 0.0 }
 0x6cc   : > { %1589 = vadd.xlane.f32.xlu0 %v1588_v4 }
 0x6ce   : > { %v5763_v55 = vpop.eup %5043  ;;  %4577 = vmatpush3.bf16.msra.mxu1 %v1625_v28 }
 0x6cf   : > { %4578 = vmatprep.subr.bf16.mxu1 %v1623_v20  ;;  %v1597_v44 = vsel %vm665_vm3, %v5763_v55, 0.0 }
 0x6d0   : > { %1598 = vadd.xlane.f32.xlu0 %v1597_v44 }
 0x6d2   : > { %4579 = vmatpush3.bf16.msra.mxu1 %v1623_v20  ;;  %v5787_v25 = vpop.eup %5045 }
 0x6d3   : > { %v1591_v57 = vsel %vm665_vm3, %v5787_v25, 0.0 }
 0x6d5   : > { %1859 = vrot.lane.b32.xlu1 %v5382_v38, %s5259_s24 }
 0x6d9   : > { %1863 = vrot.lane.b32.xlu1 %v5427_v5, %s5259_s24 }
 0x6e6   : > { %1620 = vrot.lane.b32.xlu0 %v5448_v8, %s5260_s28 }
 0x6ea   : > { %1861 = vrot.lane.b32.xlu0 %v5379_v36, %s5259_s24 }
 0x6ee   : > { %1865 = vrot.lane.b32.xlu0 %v5430_v6, %s5259_s24 }
 0x6f2   : > { %4882 = vrot.lane.b32.xlu0 %v5401_v52, %s5261_s11 }
 0x6f6   : > { %4892 = vrot.lane.b32.xlu0 %v5421_v0, %s5261_s11 }
 0x6fa   : > { %2053 = vrot.lane.b32.xlu0 %v5436_v7, %s5262_s13 }
 0x6fd   : > { %1592 = vadd.xlane.f32.xlu1 %v1591_v57 }
 0x730   : > { %1826 = vxpose.xlu1.b32.start [1/8] (short) (narrow) %v4864_v1, 8 }
 0x734   : > { %1827 = vxpose.xlu1.b32.cont [2/8] (short) (narrow) %v4865_v60, 8 }
 0x738   : > { %1828 = vxpose.xlu1.b32.cont [3/8] (short) (narrow) %v4869_v61, 8 }
 0x73c   : > { %1829 = vxpose.xlu1.b32.cont [4/8] (short) (narrow) %v4870_v16, 8 }
 0x740   : > { %1830 = vxpose.xlu1.b32.cont [5/8] (short) (narrow) %v4874_v46, 8 }
 0x741   : > { %v1584_v27 = vpop.xlane.xlu0 %1583 }
 0x744   : > { %1831 = vxpose.xlu1.b32.cont [6/8] (short) (narrow) %v4875_v3, 8 }
 0x745   : > { %v1578_v22 = vpop.xlane.xlu0 %1577 }
 0x746   : > { %5047 = vrcp.f32 %v1578_v22 }
 0x748   : > { %1832 = vxpose.xlu1.b32.cont [7/8] (short) (narrow) %v4879_v30, 8 }
 0x749   : > { %v1587_v10 = vpop.xlane.xlu0 %1586 }
 0x74a   : > { %5049 = vrcp.f32 %v1587_v10 }
 0x74b   : > { %5051 = vrcp.f32 %v1584_v27 }
 0x74c   : > { %1833 = vxpose.xlu1.b32.end [8/8] (short) (narrow) %v4880_v12, 8 }
 0x74d   : > { %v1581_v45 = vpop.xlane.xlu1 %1580 }
 0x74e   : > { %5053 = vrcp.f32 %v1581_v45 }
 0x751   : > { %v1596_v58 = vpop.xlane.xlu0 %1595 }
 0x753   : > { %v5048_v35 = vpop.eup %5047 }
 0x754   : > { %v1608_v19 = vmul.f32 %v5048_v35, %v5743_v32 }
 0x755   : > { %v1590_v33 = vpop.xlane.xlu0 %1589 }
 0x757   : > { %v5050_v53 = vpop.eup %5049 }
 0x758   : > { %v5052_v26 = vpop.eup %5051  ;;  %v1611_v43 = vmul.f32 %v5050_v53, %v5747_v40  ;;  %v1860_v40 = vpop.permute.xlu1 %1859 }
 0x759   : > { %v1599_v15 = vpop.xlane.xlu0 %1598  ;;  %v1610_v59 = vmul.f32 %v5052_v26, %v5739_v29 }
 0x75a   : > { %5055 = vrcp.f32 %v1599_v15 }
 0x75b   : > { %v5054_v39 = vpop.eup %5053  ;;  %v1617_v14 = vpack.c.bf16 %v1611_v43, %v1610_v59  ;;  %5057 = vrcp.f32 %v1590_v33 }
 0x75c   : > { %v1609_v42 = vmul.f32 %v5054_v39, %v5751_v51  ;;  %v1864_v51 = vpop.permute.xlu1 %1863  ;;  %5059 = vrcp.f32 %v1596_v58 }
 0x75d   : > { %v1621_v11 = vpop.permute.xlu0 %1620 }
 0x75e   : > { %4580 = vmatprep.subr.bf16.mxu1 %v1621_v11  ;;  %v1616_v63 = vpack.c.bf16 %v1609_v42, %v1608_v19 }
 0x75f   : > { %4581 = vmatpush3.bf16.msra.mxu1 %v1621_v11 }
 0x760   : > { %4582 = vmatprep.mubr.msk.bf16.mxu1 %vm665_vm3, %v1616_v63 }
 0x761   : > { %v1862_v28 = vpop.permute.xlu0 %1861 }
 0x762   : > { %4583 = vmatmul.mubr.msk.bf16.vlgmr.msra.gmra.mxu1 %vm665_vm3, %v1617_v14 }
 0x765   : > { %v1866_v23 = vpop.permute.xlu0 %1865 }
 0x767   : > { %v5056_v44 = vpop.eup %5055 }
 0x768   : > { %v5058_v48 = vpop.eup %5057  ;;  %v1615_v37 = vmul.f32 %v5056_v44, %v5763_v55 }
 0x769   : > { %v5801_v4 = vpop.permute.xlu0 %4882  ;;  %v5060_v49 = vpop.eup %5059  ;;  %v1612_v57 = vmul.f32 %v5058_v48, %v5759_v9 }
 0x76a   : > { %4887 = vrot.lane.b32.xlu1 %v5396_v50, %s5261_s11  ;;  %v1614_v60 = vmul.f32 %v5060_v49, %v5755_v21  ;;  %v5823_v21 = vpop.f32.mrf.mxu1 }
 0x76c   : > { %v1619_v16 = vpack.c.bf16 %v1615_v37, %v1614_v60 }
 0x76d   : > { %v5805_v32 = vpop.permute.xlu0 %4892 }
 0x76e   : > { %4897 = vrot.lane.b32.xlu1 %v5415_v62, %s5261_s11 }
 0x771   : > { %v2054_v29 = vpop.permute.xlu0 %2053 }
 0x772   : > { %4610 = vmatprep.subr.bf16.mxu0 %v2054_v29  ;;  %2051 = vrot.lane.b32.xlu1 %v5462_v34, %s5262_s13 }
 0x786   : > { %v1593_v20 = vpop.xlane.xlu1 %1592 }
 0x787   : > { %5061 = vrcp.f32 %v1593_v20 }
 0x794   : > { %v5062_v56 = vpop.eup %5061 }
 0x795   : > { %v1613_v1 = vmul.f32 %v5062_v56, %v5787_v25 }
 0x797   : > { %v1618_v61 = vpack.c.bf16 %v1613_v1, %v1612_v57 }
 0x799   : > { %4586 = vmatprep.mubr.msk.bf16.mxu1 %vm665_vm3, %v1618_v61 }
 0x79a   : > { %4587 = vmatmul.mubr.msk.bf16.gmra.mxu1 %vm665_vm3, %v1619_v16 }
 0x79b   : > { %4602 = vmatprep.mubr.msk.bf16.mxu1 %vm575_vm1, %v1860_v40 }
 0x7ac   : > { %v1842_v46 = vpop.trf.xlu1 }
 0x7ad   : > { %v1858_v27 = vpack.c.bf16 %v1842_v46, %v1842_v46 }
 0x7af   : > { %4786 = vmatprep.subr.msk.bf16.mxu1 %vm588_vm2, %v1858_v27  ;;  %v1880_v55 = vsel %vm588_vm2, %v1858_v27, 0 }
 0x7b0   : > { %4601 = vmatpush3.bf16.msra.mxu1 %v1880_v55 }
 0x7b3   : > { %4603 = vmatmul.mubr.msk.bf16.vlgmr.msra.gmra.mxu1 %vm575_vm1, %v1862_v28 }
 0x7b4   : > { %4606 = vmatprep.mubr.msk.bf16.mxu1 %vm575_vm1, %v1864_v51 }
 0x7bb   : > { %4607 = vmatmul.mubr.msk.bf16.gmra.mxu1 %vm575_vm1, %v1866_v23 }
 0x7dc   : > { %v5825_v9 = vpop.permute.xlu1 %4887 }
 0x7e0   : > { %v5827_v30 = vpop.permute.xlu1 %4897 }
 0x7e4   : > { %v2052_v58 = vpop.permute.xlu1 %2051 }
 0x822   : > { %v4584_v25 = vpop.f32.mrf.mxu1 }
 0x824   : > { %v1678_v3 = vpop.f32.mrf.mxu1 }
 0x826   : > { %v4585_v22 = vpop.f32.mrf.mxu1 }
 0x827   : > { %v1710_v45 = vpack.c.bf16 %v4585_v22, %v4584_v25 }
 0x828   : > { %v1681_v10 = vpop.f32.mrf.mxu1 }
 0x829   : > { %v1709_v12 = vpack.c.bf16 %v1681_v10, %v1678_v3 }
 0x82b   : > { %4592 = vmatprep.mubr.msk.bf16.mxu0 %vm575_vm1, %v1709_v12 }
 0x82c   : > { %4593 = vmatmul.mubr.msk.bf16.vlgmr.msra.gmra.mxu0 %vm575_vm1, %v1710_v45 }
 0x82d   : > { %4611 = vmatpush3.bf16.msra.mxu0 %v2054_v29 }
 0x82e   : > { %4612 = vmatprep.subr.bf16.mxu0 %v2052_v58 }
 0x831   : > { %4613 = vmatpush3.bf16.msra.mxu0 %v2052_v58 }
 0x85a   : > { %v4588_v33 = vpop.f32.mrf.mxu1 }
 0x85c   : > { %v1694_v35 = vpop.f32.mrf.mxu1 }
 0x85e   : > { %v4589_v53 = vpop.f32.mrf.mxu1 }
 0x85f   : > { %v1712_v39 = vpack.c.bf16 %v4589_v53, %v4588_v33 }
 0x860   : > { %v1697_v15 = vpop.f32.mrf.mxu1 }
 0x861   : > { %v1711_v26 = vpack.c.bf16 %v1697_v15, %v1694_v35 }
 0x863   : > { %4596 = vmatprep.mubr.msk.bf16.mxu0 %vm575_vm1, %v1711_v26 }
 0x864   : > { %4597 = vmatmul.mubr.msk.bf16.gmra.mxu0 %vm575_vm1, %v1712_v39 }
 0x873   : > { %v4604_v43 = vpop.f32.mrf.mxu1 }
 0x874   : > { %v1949_v19 = vmul.f32 0.5, %v4604_v43 }
 0x875   : > { %v1916_v42 = vpop.f32.mrf.mxu1 }
 0x876   : > { %v1947_v11 = vmul.f32 0.5, %v1916_v42  ;;  %v1961_v59 = vsel %vm665_vm3, %v1949_v19, -inf }
 0x877   : > { %1962 = vmax.xlane.f32.xlu0 %v1961_v59  ;;  %v4605_v63 = vpop.f32.mrf.mxu1 }
 0x878   : > { %v1950_v14 = vmul.f32 0.5, %v4605_v63  ;;  %v1955_v28 = vsel %vm665_vm3, %v1947_v11, -inf }
 0x879   : > { %v1919_v23 = vpop.f32.mrf.mxu1 }
 0x87a   : > { %v1948_v29 = vmul.f32 0.5, %v1919_v23  ;;  %v1964_v40 = vsel %vm665_vm3, %v1950_v14, -inf }
 0x87b   : > { %1956 = vmax.xlane.f32.xlu0 %v1955_v28  ;;  %v4608_v51 = vpop.f32.mrf.mxu1 }
 0x87c   : > { %v1953_v20 = vmul.f32 0.5, %v4608_v51  ;;  %v1958_v44 = vsel %vm665_vm3, %v1948_v29, -inf }
 0x87d   : > { %v1932_v48 = vpop.f32.mrf.mxu1 }
 0x87e   : > { %v1951_v49 = vmul.f32 0.5, %v1932_v48  ;;  %v1973_v56 = vsel %vm665_vm3, %v1953_v20, -inf }
 0x87f   : > { %1965 = vmax.xlane.f32.xlu0 %v1964_v40  ;;  %v4609_v37 = vpop.f32.mrf.mxu1 }
 0x880   : > { %v1954_v57 = vmul.f32 0.5, %v4609_v37  ;;  %v1967_v1 = vsel %vm665_vm3, %v1951_v49, -inf }
 0x881   : > { %v1935_v60 = vpop.f32.mrf.mxu1 }
 0x882   : > { %v1952_v61 = vmul.f32 0.5, %v1935_v60  ;;  %v1976_v16 = vsel %vm665_vm3, %v1954_v57, -inf }
 0x883   : > { %1959 = vmax.xlane.f32.xlu0 %v1958_v44 }
 0x884   : > { %v1970_v46 = vsel %vm665_vm3, %v1952_v61, -inf }
 0x887   : > { %1974 = vmax.xlane.f32.xlu0 %v1973_v56 }
 0x88b   : > { %1968 = vmax.xlane.f32.xlu0 %v1967_v1 }
 0x88f   : > { %1977 = vmax.xlane.f32.xlu0 %v1976_v16 }
 0x893   : > { %1971 = vmax.xlane.f32.xlu0 %v1970_v46 }
 0x8a9   : > { %2049 = vrot.lane.b32.xlu0 %v5442_v2, %s5262_s13 }
 0x8ec   : > { %v4594_v27 = vpop.f32.mrf.mxu0 }
 0x8ed   : > { %v5844_v55 = vadd.f32 %v4594_v27, %v5706_v17 }
 0x8ee   : > { %v1763_v25 = vpop.f32.mrf.mxu0 }
 0x8ef   : > { %v5847_v3 = vadd.f32 %v1763_v25, %v5708_v18 }
 0x8f0   : > { %v4595_v22 = vpop.f32.mrf.mxu0 }
 0x8f1   : > { %v5850_v10 = vadd.f32 %v4595_v22, %v5710_v24 }
 0x8f2   : > { %v1766_v12 = vpop.f32.mrf.mxu0 }
 0x8f3   : > { %v5853_v45 = vadd.f32 %v1766_v12, %v5712_v54 }
 0x900   : > { %v1963_v58 = vpop.xlane.xlu0 %1962 }
 0x901   : > { %v1981_v33 = vsub.f32 %v1949_v19, %v1963_v58 }
 0x903   : > { %v1991_v35 = vmul.f32 1.442695, %v1981_v33 }
 0x904   : > { %v1957_v53 = vpop.xlane.xlu0 %1956 }
 0x905   : > { %5063 = vpow2.f32 %v1991_v35  ;;  %v1979_v15 = vsub.f32 %v1947_v11, %v1957_v53 }
 0x907   : > { %v1987_v17 = vmul.f32 1.442695, %v1979_v15 }
 0x908   : > { %v1966_v26 = vpop.xlane.xlu0 %1965 }
 0x909   : > { %5065 = vpow2.f32 %v1987_v17  ;;  %v1982_v39 = vsub.f32 %v1950_v14, %v1966_v26 }
 0x90b   : > { %v1993_v18 = vmul.f32 1.442695, %v1982_v39  ;;  %v4889_v39 = vunpack.i.l.bf16 %v5825_v9 }
 0x90c   : > { %v1960_v43 = vpop.xlane.xlu0 %1959 }
 0x90d   : > { %5067 = vpow2.f32 %v1993_v18  ;;  %v1980_v42 = vsub.f32 %v1948_v29, %v1960_v43  ;;  %v4890_v18 = vunpack.i.h.bf16 %v5825_v9  ;;  %v4894_v43 = vunpack.i.l.bf16 %v5805_v32 }
 0x90f   : > { %v1989_v24 = vmul.f32 1.442695, %v1980_v42  ;;  %v4895_v42 = vunpack.i.h.bf16 %v5805_v32 }
 0x910   : > { %v1975_v59 = vpop.xlane.xlu0 %1974 }
 0x911   : > { %5069 = vpow2.f32 %v1989_v24  ;;  %v1985_v63 = vsub.f32 %v1953_v20, %v1975_v59  ;;  %v4899_v24 = vunpack.i.l.bf16 %v5827_v30  ;;  %v4900_v59 = vunpack.i.h.bf16 %v5827_v30 }
 0x912   : > { %v5855_v54 = vpop.eup %5063 }
 0x913   : > { %v1999_v28 = vmul.f32 1.442695, %v1985_v63  ;;  %v2009_v19 = vsel %vm665_vm3, %v5855_v54, 0.0 }
 0x914   : > { %v1969_v23 = vpop.xlane.xlu0 %1968  ;;  %2010 = vadd.xlane.f32.xlu0 %v2009_v19 }
 0x915   : > { %5071 = vpow2.f32 %v1999_v28  ;;  %v1983_v11 = vsub.f32 %v1951_v49, %v1969_v23 }
 0x916   : > { %v5859_v40 = vpop.eup %5065 }
 0x917   : > { %v1995_v14 = vmul.f32 1.442695, %v1983_v11  ;;  %v2003_v29 = vsel %vm665_vm3, %v5859_v40, 0.0 }
 0x918   : > { %v1978_v51 = vpop.xlane.xlu0 %1977  ;;  %2004 = vadd.xlane.f32.xlu0 %v2003_v29 }
 0x919   : > { %5073 = vpow2.f32 %v1995_v14  ;;  %v1986_v20 = vsub.f32 %v1954_v57, %v1978_v51 }
 0x91a   : > { %v5863_v44 = vpop.eup %5067 }
 0x91b   : > { %v2001_v48 = vmul.f32 1.442695, %v1986_v20  ;;  %v2012_v56 = vsel %vm665_vm3, %v5863_v44, 0.0 }
 0x91c   : > { %2013 = vadd.xlane.f32.xlu0 %v2012_v56  ;;  %v1972_v37 = vpop.xlane.xlu0 %1971 }
 0x91d   : > { %5075 = vpow2.f32 %v2001_v48  ;;  %v1984_v49 = vsub.f32 %v1952_v61, %v1972_v37 }
 0x91e   : > { %v5867_v1 = vpop.eup %5069 }
 0x91f   : > { %v1997_v60 = vmul.f32 1.442695, %v1984_v49  ;;  %v2006_v16 = vsel %vm665_vm3, %v5867_v1, 0.0 }
 0x920   : > { %2007 = vadd.xlane.f32.xlu1 %v2006_v16  ;;  %v2050_v46 = vpop.permute.xlu0 %2049 }
 0x921   : > { %5077 = vpow2.f32 %v1997_v60  ;;  %4614 = vmatprep.subr.bf16.mxu0 %v2050_v46 }
 0x922   : > { %v5871_v57 = vpop.eup %5071  ;;  %4615 = vmatpush3.bf16.msra.mxu0 %v2050_v46 }
 0x923   : > { %v2021_v27 = vsel %vm665_vm3, %v5871_v57, 0.0 }
 0x924   : > { %v4598_v25 = vpop.f32.mrf.mxu0  ;;  %2022 = vadd.xlane.f32.xlu0 %v2021_v27 }
 0x925   : > { %v5876_v61 = vadd.f32 %v4598_v25, %v5714_v13 }
 0x926   : > { %v5878_v22 = vpop.eup %5073  ;;  %v1779_v12 = vpop.f32.mrf.mxu0 }
 0x927   : > { %v5881_v58 = vadd.f32 %v1779_v12, %v5716_v47  ;;  %v2015_v33 = vsel %vm665_vm3, %v5878_v22, 0.0  ;;  %v4884_v47 = vunpack.i.l.bf16 %v5801_v4 }
 0x928   : > { %v4599_v35 = vpop.f32.mrf.mxu0  ;;  %2016 = vadd.xlane.f32.xlu0 %v2015_v33 }
 0x929   : > { %v5886_v53 = vadd.f32 %v4599_v35, %v5718_v31  ;;  %v4885_v31 = vunpack.i.h.bf16 %v5801_v4 }
 0x92a   : > { %v5076_v15 = vpop.eup %5075 }
 0x92b   : > { %v2024_v17 = vsel %vm665_vm3, %v5076_v15, 0.0 }
 0x92c   : > { %2025 = vadd.xlane.f32.xlu0 %v2024_v17 }
 0x92e   : > { %v5078_v13 = vpop.eup %5077 }
 0x92f   : > { %v2018_v26 = vsel %vm665_vm3, %v5078_v13, 0.0 }
 0x930   : > { %2019 = vadd.xlane.f32.xlu1 %v2018_v26 }
 0x941   : > { %2047 = vrot.lane.b32.xlu1 %v5448_v8, %s5262_s13 }
 0x942   : > { %2290 = vrot.lane.b32.xlu0 %v5382_v38, %s5261_s11 }
 0x945   : > { %2292 = vrot.lane.b32.xlu1 %v5379_v36, %s5261_s11 }
 0x946   : > { %2294 = vrot.lane.b32.xlu0 %v5427_v5, %s5261_s11 }
 0x949   : > { %2296 = vrot.lane.b32.xlu1 %v5430_v6, %s5261_s11 }
 0x964   : > { %2257 = vxpose.xlu0.b32.start [1/8] (short) (narrow) %v4884_v47, 8 }
 0x968   : > { %2258 = vxpose.xlu0.b32.cont [2/8] (short) (narrow) %v4885_v31, 8 }
 0x96c   : > { %2259 = vxpose.xlu0.b32.cont [3/8] (short) (narrow) %v4889_v39, 8 }
 0x970   : > { %2260 = vxpose.xlu0.b32.cont [4/8] (short) (narrow) %v4890_v18, 8 }
 0x974   : > { %2261 = vxpose.xlu0.b32.cont [5/8] (short) (narrow) %v4894_v43, 8  ;;  %v5929_v43 = vpop.f32.mrf.mxu0 }
 0x978   : > { %2262 = vxpose.xlu0.b32.cont [6/8] (short) (narrow) %v4895_v42, 8 }
 0x97c   : > { %2263 = vxpose.xlu0.b32.cont [7/8] (short) (narrow) %v4899_v24, 8 }
 0x980   : > { %2264 = vxpose.xlu0.b32.end [8/8] (short) (narrow) %v4900_v59, 8 }
 0x99d   : > { %v2011_v4 = vpop.xlane.xlu0 %2010 }
 0x9a1   : > { %v2005_v63 = vpop.xlane.xlu0 %2004 }
 0x9a2   : > { %5079 = vrcp.f32 %v2005_v63 }
 0x9a5   : > { %v2014_v28 = vpop.xlane.xlu0 %2013 }
 0x9a9   : > { %v2008_v19 = vpop.xlane.xlu1 %2007 }
 0x9aa   : > { %5081 = vrcp.f32 %v2008_v19 }
 0x9ab   : > { %5083 = vrcp.f32 %v2014_v28 }
 0x9ac   : > { %5085 = vrcp.f32 %v2011_v4 }
 0x9ad   : > { %v2023_v9 = vpop.xlane.xlu0 %2022 }
 0x9af   : > { %v5080_v11 = vpop.eup %5079 }
 0x9b0   : > { %v2035_v29 = vmul.f32 %v5080_v11, %v5859_v40 }
 0x9b1   : > { %v2017_v23 = vpop.xlane.xlu0 %2016 }
 0x9b5   : > { %v2026_v14 = vpop.xlane.xlu0 %2025 }
 0x9b6   : > { %5087 = vrcp.f32 %v2026_v14 }
 0x9b7   : > { %v5082_v32 = vpop.eup %5081  ;;  %5089 = vrcp.f32 %v2017_v23 }
 0x9b8   : > { %v2036_v30 = vmul.f32 %v5082_v32, %v5867_v1  ;;  %v5084_v51 = vpop.eup %5083  ;;  %5091 = vrcp.f32 %v2023_v9 }
 0x9b9   : > { %v2020_v20 = vpop.xlane.xlu1 %2019  ;;  %v5086_v56 = vpop.eup %5085  ;;  %v2038_v37 = vmul.f32 %v5084_v51, %v5863_v44 }
 0x9ba   : > { %5093 = vrcp.f32 %v2020_v20  ;;  %v2043_v48 = vpack.c.bf16 %v2036_v30, %v2035_v29  ;;  %v2037_v60 = vmul.f32 %v5086_v56, %v5855_v54  ;;  %v2291_v54 = vpop.permute.xlu0 %2290 }
 0x9bc   : > { %4618 = vmatprep.mubr.msk.bf16.mxu0 %vm665_vm3, %v2043_v48  ;;  %v2044_v16 = vpack.c.bf16 %v2038_v37, %v2037_v60 }
 0x9bd   : > { %v2048_v49 = vpop.permute.xlu1 %2047 }
 0x9be   : > { %4616 = vmatprep.subr.bf16.mxu0 %v2048_v49  ;;  %v2295_v26 = vpop.permute.xlu0 %2294 }
 0x9bf   : > { %4617 = vmatpush3.bf16.msra.mxu0 %v2048_v49 }
 0x9c2   : > { %4619 = vmatmul.mubr.msk.bf16.vlgmr.msra.gmra.mxu0 %vm665_vm3, %v2044_v16 }
 0x9c3   : > { %v5088_v40 = vpop.eup %5087 }
 0x9c4   : > { %v5090_v1 = vpop.eup %5089  ;;  %v2042_v25 = vmul.f32 %v5088_v40, %v5076_v15 }
 0x9c5   : > { %v5092_v46 = vpop.eup %5091  ;;  %v2039_v12 = vmul.f32 %v5090_v1, %v5878_v22  ;;  %v2293_v22 = vpop.permute.xlu1 %2292 }
 0x9c6   : > { %v2041_v44 = vmul.f32 %v5092_v46, %v5871_v57 }
 0x9c7   : > { %v5094_v27 = vpop.eup %5093 }
 0x9c8   : > { %v2040_v33 = vmul.f32 %v5094_v27, %v5078_v13  ;;  %v2046_v17 = vpack.c.bf16 %v2042_v25, %v2041_v44  ;;  %v4964_v13 = vld [vmem:[%s6502_s4 + $0x4] ss:$0 sps:$4 sm:$0xcc]  }
 0x9c9   : > { %v2297_v57 = vpop.permute.xlu1 %2296  ;;  %v2144_v39 = vrot.slane %v4964_v13, 2 }
 0x9ca   : > { %v2045_v35 = vpack.c.bf16 %v2040_v33, %v2039_v12 }
 0x9cb   : > { %4787 = vmatprep.subr.msk.bf16.mxu1 %vm588_vm2, %v2144_v39  ;;  %v2158_v18 = vsel %vm588_vm2, %v2144_v39, 0 }
 0x9cc   : > { %4622 = vmatprep.mubr.msk.bf16.mxu0 %vm665_vm3, %v2045_v35  ;;  %4627 = vmatpush3.bf16.msra.mxu1 %v2158_v18 }
 0x9cd   : > { %4623 = vmatmul.mubr.msk.bf16.gmra.mxu0 %vm665_vm3, %v2046_v17 }
 0x9ce   : > { %4638 = vmatprep.mubr.msk.bf16.mxu0 %vm575_vm1, %v2291_v54 }
 0x9e0   : > { %v2273_v47 = vpop.trf.xlu0 }
 0x9e1   : > { %v2289_v31 = vpack.c.bf16 %v2273_v47, %v2273_v47 }
 0x9e3   : > { %4788 = vmatprep.subr.msk.bf16.mxu0 %vm588_vm2, %v2289_v31  ;;  %v2311_v15 = vsel %vm588_vm2, %v2289_v31, 0 }
 0x9e4   : > { %4637 = vmatpush3.bf16.msra.mxu0 %v2311_v15 }
 0x9e7   : > { %4639 = vmatmul.mubr.msk.bf16.vlgmr.msra.gmra.mxu0 %vm575_vm1, %v2293_v22 }
 0x9e8   : > { %4642 = vmatprep.mubr.msk.bf16.mxu0 %vm575_vm1, %v2295_v26 }
 0x9ef   : > { %4643 = vmatmul.mubr.msk.bf16.gmra.mxu0 %vm575_vm1, %v2297_v57 }
 0xa82   : > { %v4620_v42 = vpop.f32.mrf.mxu0 }
 0xa84   : > { %v2105_v24 = vpop.f32.mrf.mxu0 }
 0xa86   : > { %v4621_v59 = vpop.f32.mrf.mxu0 }
 0xa87   : > { %v2137_v28 = vpack.c.bf16 %v4621_v59, %v4620_v42 }
 0xa88   : > { %v2108_v4 = vpop.f32.mrf.mxu0 }
 0xa89   : > { %v2136_v63 = vpack.c.bf16 %v2108_v4, %v2105_v24 }
 0xa8b   : > { %4628 = vmatprep.mubr.msk.bf16.mxu1 %vm575_vm1, %v2136_v63 }
 0xa8c   : > { %4629 = vmatmul.mubr.msk.bf16.vlgmr.msra.gmra.mxu1 %vm575_vm1, %v2137_v28 }
 0xa8d   : > { %v4624_v19 = vpop.f32.mrf.mxu0 }
 0xa8f   : > { %v2121_v9 = vpop.f32.mrf.mxu0 }
 0xa91   : > { %v4625_v23 = vpop.f32.mrf.mxu0 }
 0xa92   : > { %v2139_v32 = vpack.c.bf16 %v4625_v23, %v4624_v19 }
 0xa93   : > { %v2124_v11 = vpop.f32.mrf.mxu0 }
 0xa94   : > { %v2138_v14 = vpack.c.bf16 %v2124_v11, %v2121_v9 }
 0xa96   : > { %4632 = vmatprep.mubr.msk.bf16.mxu1 %vm575_vm1, %v2138_v14 }
 0xa97   : > { %4633 = vmatmul.mubr.msk.bf16.gmra.mxu1 %vm575_vm1, %v2139_v32 }
 0xaa7   : > { %v4640_v29 = vpop.f32.mrf.mxu0 }
 0xaa8   : > { %v2380_v30 = vmul.f32 0.5, %v4640_v29 }
 0xaa9   : > { %v2347_v51 = vpop.f32.mrf.mxu0 }
 0xaaa   : > { %v2378_v20 = vmul.f32 0.5, %v2347_v51  ;;  %v2392_v48 = vsel %vm665_vm3, %v2380_v30, -inf }
 0xaab   : > { %2393 = vmax.xlane.f32.xlu1 %v2392_v48  ;;  %v4641_v56 = vpop.f32.mrf.mxu0 }
 0xaac   : > { %v2381_v49 = vmul.f32 0.5, %v4641_v56  ;;  %v2386_v60 = vsel %vm665_vm3, %v2378_v20, -inf }
 0xaad   : > { %v2350_v37 = vpop.f32.mrf.mxu0 }
 0xaae   : > { %v2379_v1 = vmul.f32 0.5, %v2350_v37  ;;  %v2395_v46 = vsel %vm665_vm3, %v2381_v49, -inf }
 0xaaf   : > { %2387 = vmax.xlane.f32.xlu1 %v2386_v60  ;;  %v4644_v16 = vpop.f32.mrf.mxu0 }
 0xab0   : > { %v2384_v12 = vmul.f32 0.5, %v4644_v16  ;;  %v2389_v33 = vsel %vm665_vm3, %v2379_v1, -inf }
 0xab1   : > { %v2363_v40 = vpop.f32.mrf.mxu0 }
 0xab2   : > { %v2382_v35 = vmul.f32 0.5, %v2363_v40  ;;  %v2404_v17 = vsel %vm665_vm3, %v2384_v12, -inf }
 0xab3   : > { %2396 = vmax.xlane.f32.xlu1 %v2395_v46  ;;  %v4645_v27 = vpop.f32.mrf.mxu0 }
 0xab4   : > { %v2385_v25 = vmul.f32 0.5, %v4645_v27  ;;  %v2398_v54 = vsel %vm665_vm3, %v2382_v35, -inf }
 0xab5   : > { %v2366_v26 = vpop.f32.mrf.mxu0 }
 0xab6   : > { %v2407_v44 = vsel %vm665_vm3, %v2385_v25, -inf  ;;  %v5954_v47 = vmul.f32 0.5, %v2366_v26 }
 0xab7   : > { %2390 = vmax.xlane.f32.xlu1 %v2389_v33  ;;  %2408 = vmax.xlane.f32.xlu0 %v2407_v44 }
 0xab8   : > { %v2401_v31 = vsel %vm665_vm3, %v5954_v47, -inf }
 0xabb   : > { %2405 = vmax.xlane.f32.xlu1 %v2404_v17 }
 0xabf   : > { %2399 = vmax.xlane.f32.xlu1 %v2398_v54 }
 0xacd   : > { %4912 = vrot.lane.b32.xlu0 %v5421_v0, %s5263_s16 }
 0xad0   : > { %4902 = vrot.lane.b32.xlu1 %v5401_v52, %s5263_s16 }
 0xad1   : > { %2484 = vrot.lane.b32.xlu0 %v5436_v7, %s5264_s17 }
 0xad4   : > { %4907 = vrot.lane.b32.xlu1 %v5396_v50, %s5263_s16 }
 0xad8   : > { %4917 = vrot.lane.b32.xlu1 %v5415_v62, %s5263_s16 }
 0xadc   : > { %2482 = vrot.lane.b32.xlu1 %v5462_v34, %s5264_s17 }
 0xb00   : > { %2402 = vmax.xlane.f32.xlu1 %v2401_v31 }
 0xb11   : > { %2480 = vrot.lane.b32.xlu1 %v5442_v2, %s5264_s17 }
 0xb34   : > { %v2394_v15 = vpop.xlane.xlu1 %2393 }
 0xb35   : > { %v2412_v22 = vsub.f32 %v2380_v30, %v2394_v15 }
 0xb37   : > { %v2422_v57 = vmul.f32 1.442695, %v2412_v22 }
 0xb38   : > { %v2388_v13 = vpop.xlane.xlu1 %2387 }
 0xb39   : > { %5095 = vpow2.f32 %v2422_v57  ;;  %v2410_v39 = vsub.f32 %v2378_v20, %v2388_v13 }
 0xb3b   : > { %v2418_v18 = vmul.f32 1.442695, %v2410_v39 }
 0xb3c   : > { %v2397_v42 = vpop.xlane.xlu1 %2396 }
 0xb3d   : > { %5097 = vpow2.f32 %v2418_v18  ;;  %v2413_v24 = vsub.f32 %v2381_v49, %v2397_v42 }
 0xb3f   : > { %v2424_v59 = vmul.f32 1.442695, %v2413_v24 }
 0xb40   : > { %v2391_v4 = vpop.xlane.xlu1 %2390  ;;  %v2409_v63 = vpop.xlane.xlu0 %2408 }
 0xb41   : > { %5099 = vpow2.f32 %v2424_v59  ;;  %v2411_v28 = vsub.f32 %v2379_v1, %v2391_v4  ;;  %v2417_v32 = vsub.f32 %v2385_v25, %v2409_v63 }
 0xb43   : > { %v2420_v19 = vmul.f32 1.442695, %v2411_v28  ;;  %v2432_v37 = vmul.f32 1.442695, %v2417_v32 }
 0xb44   : > { %v2406_v9 = vpop.xlane.xlu1 %2405  ;;  %v5960_v23 = vpop.permute.xlu0 %4912 }
 0xb45   : > { %5101 = vpow2.f32 %v2420_v19  ;;  %v2416_v11 = vsub.f32 %v2384_v12, %v2406_v9 }
 0xb46   : > { %v5962_v14 = vpop.eup %5095 }
 0xb47   : > { %v2430_v29 = vmul.f32 1.442695, %v2416_v11  ;;  %v2440_v30 = vsel %vm665_vm3, %v5962_v14, 0.0 }
 0xb48   : > { %v2400_v51 = vpop.xlane.xlu1 %2399  ;;  %2441 = vadd.xlane.f32.xlu0 %v2440_v30  ;;  %v2485_v20 = vpop.permute.xlu0 %2484  ;;  %v4915_v30 = vunpack.i.h.bf16 %v5960_v23 }
 0xb49   : > { %5103 = vpow2.f32 %v2430_v29  ;;  %v2414_v48 = vsub.f32 %v2382_v35, %v2400_v51  ;;  %4646 = vmatprep.subr.bf16.mxu1 %v2485_v20 }
 0xb4a   : > { %v5966_v56 = vpop.eup %5097  ;;  %4647 = vmatpush3.bf16.msra.mxu1 %v2485_v20 }
 0xb4b   : > { %v2426_v49 = vmul.f32 1.442695, %v2414_v48  ;;  %v2434_v60 = vsel %vm665_vm3, %v5966_v56, 0.0 }
 0xb4c   : > { %v4630_v16 = vpop.f32.mrf.mxu1  ;;  %v4903_v40 = vpop.permute.xlu1 %4902  ;;  %2435 = vadd.xlane.f32.xlu1 %v2434_v60 }
 0xb4d   : > { %5105 = vpow2.f32 %v2426_v49  ;;  %v5971_v1 = vadd.f32 %v4630_v16, %v5844_v55  ;;  %v4904_v19 = vunpack.i.l.bf16 %v4903_v40  ;;  %v4905_v11 = vunpack.i.h.bf16 %v4903_v40 }
 0xb4e   : > { %v5973_v46 = vpop.eup %5099  ;;  %v2194_v27 = vpop.f32.mrf.mxu1  ;;  %5107 = vpow2.f32 %v2432_v37 }
 0xb4f   : > { %v5976_v25 = vadd.f32 %v2194_v27, %v5847_v3  ;;  %v2443_v12 = vsel %vm665_vm3, %v5973_v46, 0.0 }
 0xb50   : > { %v4631_v33 = vpop.f32.mrf.mxu1  ;;  %v4908_v44 = vpop.permute.xlu1 %4907  ;;  %2444 = vadd.xlane.f32.xlu0 %v2443_v12 }
 0xb51   : > { %v5981_v35 = vadd.f32 %v4631_v33, %v5850_v10  ;;  %v4909_v32 = vunpack.i.l.bf16 %v4908_v44  ;;  %v4910_v29 = vunpack.i.h.bf16 %v4908_v44 }
 0xb52   : > { %v5983_v17 = vpop.eup %5101  ;;  %v2197_v55 = vpop.f32.mrf.mxu1 }
 0xb53   : > { %v5986_v54 = vadd.f32 %v2197_v55, %v5853_v45  ;;  %v2437_v26 = vsel %vm665_vm3, %v5983_v17, 0.0 }
 0xb54   : > { %v4918_v3 = vpop.permute.xlu1 %4917  ;;  %2438 = vadd.xlane.f32.xlu0 %v2437_v26 }
 0xb55   : > { %v4919_v51 = vunpack.i.l.bf16 %v4918_v3  ;;  %v4920_v20 = vunpack.i.h.bf16 %v4918_v3 }
 0xb56   : > { %v5990_v31 = vpop.eup %5103 }
 0xb57   : > { %v4634_v15 = vpop.f32.mrf.mxu1  ;;  %v2452_v22 = vsel %vm665_vm3, %v5990_v31, 0.0 }
 0xb58   : > { %v5995_v10 = vadd.f32 %v4634_v15, %v5876_v61  ;;  %v2483_v57 = vpop.permute.xlu1 %2482  ;;  %2453 = vadd.xlane.f32.xlu0 %v2452_v22 }
 0xb59   : > { %v2210_v13 = vpop.f32.mrf.mxu1  ;;  %4648 = vmatprep.subr.bf16.mxu1 %v2483_v57 }
 0xb5a   : > { %v5997_v45 = vpop.eup %5105  ;;  %v6000_v39 = vadd.f32 %v2210_v13, %v5881_v58  ;;  %4649 = vmatpush3.bf16.msra.mxu1 %v2483_v57 }
 0xb5b   : > { %v4635_v18 = vpop.f32.mrf.mxu1  ;;  %v2446_v42 = vsel %vm665_vm3, %v5997_v45, 0.0  ;;  %v6004_v24 = vpop.eup %5107 }
 0xb5c   : > { %v6007_v59 = vadd.f32 %v4635_v18, %v5886_v53  ;;  %2447 = vadd.xlane.f32.xlu1 %v2446_v42  ;;  %v2455_v61 = vsel %vm665_vm3, %v6004_v24, 0.0 }
 0xb60   : > { %2456 = vadd.xlane.f32.xlu1 %v2455_v61 }
 0xb71   : > { %2717 = vrot.lane.b32.xlu1 %v5382_v38, %s5263_s16 }
 0xb75   : > { %2721 = vrot.lane.b32.xlu1 %v5427_v5, %s5263_s16 }
 0xb89   : > { %v2403_v58 = vpop.xlane.xlu1 %2402 }
 0xb8a   : > { %v2415_v4 = vsub.f32 %v5954_v47, %v2403_v58  ;;  %v4914_v47 = vunpack.i.l.bf16 %v5960_v23 }
 0xb8c   : > { %v2428_v63 = vmul.f32 1.442695, %v2415_v4 }
 0xb8d   : > { %v2481_v28 = vpop.permute.xlu1 %2480 }
 0xb8e   : > { %5109 = vpow2.f32 %v2428_v63  ;;  %4650 = vmatprep.subr.bf16.mxu1 %v2481_v28 }
 0xb8f   : > { %4651 = vmatpush3.bf16.msra.mxu1 %v2481_v28 }
 0xb9b   : > { %v6016_v53 = vpop.eup %5109 }
 0xb9c   : > { %v2449_v9 = vsel %vm665_vm3, %v6016_v53, 0.0 }
 0xb9d   : > { %2450 = vadd.xlane.f32.xlu0 %v2449_v9 }
 0xb9e   : > { %2684 = vxpose.xlu1.b32.start [1/8] (short) (narrow) %v4904_v19, 8 }
 0xba2   : > { %2685 = vxpose.xlu1.b32.cont [2/8] (short) (narrow) %v4905_v11, 8 }
 0xba6   : > { %2686 = vxpose.xlu1.b32.cont [3/8] (short) (narrow) %v4909_v32, 8 }
 0xbaa   : > { %2687 = vxpose.xlu1.b32.cont [4/8] (short) (narrow) %v4910_v29, 8 }
 0xbae   : > { %2688 = vxpose.xlu1.b32.cont [5/8] (short) (narrow) %v4914_v47, 8 }
 0xbb2   : > { %2689 = vxpose.xlu1.b32.cont [6/8] (short) (narrow) %v4915_v30, 8 }
 0xbb3   : > { %2478 = vrot.lane.b32.xlu0 %v5448_v8, %s5264_s17 }
 0xbb6   : > { %2690 = vxpose.xlu1.b32.cont [7/8] (short) (narrow) %v4919_v51, 8 }
 0xbb7   : > { %2719 = vrot.lane.b32.xlu0 %v5379_v36, %s5263_s16 }
 0xbba   : > { %2691 = vxpose.xlu1.b32.end [8/8] (short) (narrow) %v4920_v20, 8 }
 0xbbb   : > { %2723 = vrot.lane.b32.xlu0 %v5430_v6, %s5263_s16 }
 0xbbf   : > { %4922 = vrot.lane.b32.xlu0 %v5401_v52, %s5265_s18 }
 0xbd1   : > { %v2442_v48 = vpop.xlane.xlu0 %2441 }
 0xbd5   : > { %v2436_v23 = vpop.xlane.xlu1 %2435 }
 0xbd6   : > { %5111 = vrcp.f32 %v2436_v23 }
 0xbd8   : > { %4927 = vrot.lane.b32.xlu1 %v5396_v50, %s5265_s18 }
 0xbd9   : > { %v2445_v37 = vpop.xlane.xlu0 %2444 }
 0xbdc   : > { %4937 = vrot.lane.b32.xlu1 %v5415_v62, %s5265_s18 }
 0xbdd   : > { %v2439_v49 = vpop.xlane.xlu0 %2438 }
 0xbde   : > { %5113 = vrcp.f32 %v2439_v49 }
 0xbdf   : > { %5115 = vrcp.f32 %v2445_v37 }
 0xbe0   : > { %2909 = vrot.lane.b32.xlu1 %v5462_v34, %s5266_s19  ;;  %5117 = vrcp.f32 %v2442_v48 }
 0xbe1   : > { %v2454_v26 = vpop.xlane.xlu0 %2453 }
 0xbe3   : > { %v5112_v60 = vpop.eup %5111 }
 0xbe4   : > { %2907 = vrot.lane.b32.xlu1 %v5442_v2, %s5266_s19  ;;  %v2466_v40 = vmul.f32 %v5112_v60, %v5966_v56 }
 0xbe5   : > { %v2448_v33 = vpop.xlane.xlu1 %2447 }
 0xbe9   : > { %v2457_v44 = vpop.xlane.xlu1 %2456 }
 0xbea   : > { %5119 = vrcp.f32 %v2457_v44 }
 0xbeb   : > { %v5114_v16 = vpop.eup %5113  ;;  %5121 = vrcp.f32 %v2448_v33 }
 0xbec   : > { %v2467_v27 = vmul.f32 %v5114_v16, %v5983_v17  ;;  %v5116_v15 = vpop.eup %5115  ;;  %5123 = vrcp.f32 %v2454_v26 }
 0xbed   : > { %v2718_v55 = vpop.permute.xlu1 %2717  ;;  %v5118_v56 = vpop.eup %5117  ;;  %v2469_v17 = vmul.f32 %v5116_v15, %v5973_v46 }
 0xbee   : > { %v2474_v12 = vpack.c.bf16 %v2467_v27, %v2466_v40  ;;  %v2468_v42 = vmul.f32 %v5118_v56, %v5962_v14 }
 0xbf0   : > { %4654 = vmatprep.mubr.msk.bf16.mxu1 %vm665_vm3, %v2474_v12  ;;  %v2475_v61 = vpack.c.bf16 %v2469_v17, %v2468_v42 }
 0xbf1   : > { %v2722_v3 = vpop.permute.xlu1 %2721 }
 0xbf7   : > { %v5120_v4 = vpop.eup %5119 }
 0xbf8   : > { %v5122_v63 = vpop.eup %5121  ;;  %v2473_v46 = vmul.f32 %v5120_v4, %v6004_v24 }
 0xbf9   : > { %v5124_v28 = vpop.eup %5123  ;;  %v2470_v9 = vmul.f32 %v5122_v63, %v5997_v45 }
 0xbfa   : > { %v2472_v11 = vmul.f32 %v5124_v28, %v5990_v31  ;;  %v2571_v31 = vld [vmem:[%s6502_s4 + $0x8] sm:$0x3] }
 0xbfb   : > { %4789 = vmatprep.subr.msk.bf16.mxu0 %vm588_vm2, %v2571_v31  ;;  %v2585_v45 = vsel %vm588_vm2, %v2571_v31, 0 }
 0xbfc   : > { %v2477_v29 = vpack.c.bf16 %v2473_v46, %v2472_v11  ;;  %4663 = vmatpush3.bf16.msra.mxu0 %v2585_v45 }
 0xc1a   : > { %v2700_v57 = vpop.trf.xlu1 }
 0xc1b   : > { %v2716_v13 = vpack.c.bf16 %v2700_v57, %v2700_v57 }
 0xc1d   : > { %v2738_v58 = vsel %vm588_vm2, %v2716_v13, 0 }
 0xc26   : > { %v2451_v22 = vpop.xlane.xlu0 %2450 }
 0xc27   : > { %5125 = vrcp.f32 %v2451_v22 }
 0xc2a   : > { %v2479_v18 = vpop.permute.xlu0 %2478 }
 0xc2b   : > { %4652 = vmatprep.subr.bf16.mxu1 %v2479_v18 }
 0xc2c   : > { %4653 = vmatpush3.bf16.msra.mxu1 %v2479_v18 }
 0xc2d   : > { %4790 = vmatprep.subr.msk.bf16.mxu1 %vm588_vm2, %v2716_v13 }
 0xc2e   : > { %v2720_v47 = vpop.permute.xlu0 %2719 }
 0xc2f   : > { %4655 = vmatmul.mubr.msk.bf16.vlgmr.msra.gmra.mxu1 %vm665_vm3, %v2475_v61 }
 0xc30   : > { %4673 = vmatpush3.bf16.msra.mxu1 %v2738_v58 }
 0xc32   : > { %v2724_v24 = vpop.permute.xlu0 %2723 }
 0xc34   : > { %v5126_v19 = vpop.eup %5125 }
 0xc35   : > { %v2471_v14 = vmul.f32 %v5126_v19, %v6016_v53  ;;  %v6061_v53 = vpop.f32.mrf.mxu1 }
 0xc37   : > { %v2476_v32 = vpack.c.bf16 %v2471_v14, %v2470_v9 }
 0xc39   : > { %4658 = vmatprep.mubr.msk.bf16.mxu1 %vm665_vm3, %v2476_v32 }
 0xc3a   : > { %4659 = vmatmul.mubr.msk.bf16.gmra.mxu1 %vm665_vm3, %v2477_v29  ;;  %v6082_v29 = vpop.permute.xlu0 %4922 }
 0xc3b   : > { %4674 = vmatprep.mubr.msk.bf16.mxu1 %vm575_vm1, %v2718_v55 }
 0xc42   : > { %4675 = vmatmul.mubr.msk.bf16.vlgmr.msra.gmra.mxu1 %vm575_vm1, %v2720_v47 }
 0xc43   : > { %4678 = vmatprep.mubr.msk.bf16.mxu1 %vm575_vm1, %v2722_v3 }
 0xc4a   : > { %4679 = vmatmul.mubr.msk.bf16.gmra.mxu1 %vm575_vm1, %v2724_v24 }
 0xcef   : > { %v4656_v30 = vpop.f32.mrf.mxu1 }
 0xcf1   : > { %v2536_v51 = vpop.f32.mrf.mxu1 }
 0xcf3   : > { %v4657_v20 = vpop.f32.mrf.mxu1 }
 0xcf4   : > { %v2568_v37 = vpack.c.bf16 %v4657_v20, %v4656_v30 }
 0xcf5   : > { %v2539_v48 = vpop.f32.mrf.mxu1 }
 0xcf6   : > { %v2567_v23 = vpack.c.bf16 %v2539_v48, %v2536_v51 }
 0xcf8   : > { %4664 = vmatprep.mubr.msk.bf16.mxu0 %vm575_vm1, %v2567_v23 }
 0xcf9   : > { %4665 = vmatmul.mubr.msk.bf16.vlgmr.msra.gmra.mxu0 %vm575_vm1, %v2568_v37 }
 0xcfa   : > { %v4660_v49 = vpop.f32.mrf.mxu1 }
 0xcfc   : > { %v2552_v60 = vpop.f32.mrf.mxu1 }
 0xcfe   : > { %v4661_v16 = vpop.f32.mrf.mxu1 }
 0xcff   : > { %v2570_v12 = vpack.c.bf16 %v4661_v16, %v4660_v49 }
 0xd00   : > { %v2555_v40 = vpop.f32.mrf.mxu1 }
 0xd01   : > { %v2569_v27 = vpack.c.bf16 %v2555_v40, %v2552_v60 }
 0xd02   : > { %v4676_v33 = vpop.f32.mrf.mxu1 }
 0xd03   : > { %v2807_v44 = vmul.f32 0.5, %v4676_v33  ;;  %4668 = vmatprep.mubr.msk.bf16.mxu0 %vm575_vm1, %v2569_v27 }
 0xd04   : > { %4669 = vmatmul.mubr.msk.bf16.gmra.mxu0 %vm575_vm1, %v2570_v12  ;;  %v2774_v55 = vpop.f32.mrf.mxu1 }
 0xd05   : > { %v2805_v26 = vmul.f32 0.5, %v2774_v55  ;;  %v2819_v3 = vsel %vm665_vm3, %v2807_v44, -inf }
 0xd06   : > { %2820 = vmax.xlane.f32.xlu0 %v2819_v3  ;;  %v4677_v15 = vpop.f32.mrf.mxu1 }
 0xd07   : > { %v2808_v22 = vmul.f32 0.5, %v4677_v15  ;;  %v2813_v57 = vsel %vm665_vm3, %v2805_v26, -inf }
 0xd08   : > { %v2777_v56 = vpop.f32.mrf.mxu1 }
 0xd09   : > { %v2806_v17 = vmul.f32 0.5, %v2777_v56  ;;  %v2822_v13 = vsel %vm665_vm3, %v2808_v22, -inf }
 0xd0a   : > { %2814 = vmax.xlane.f32.xlu0 %v2813_v57  ;;  %v4680_v18 = vpop.f32.mrf.mxu1 }
 0xd0b   : > { %v2811_v42 = vmul.f32 0.5, %v4680_v18  ;;  %v2816_v61 = vsel %vm665_vm3, %v2806_v17, -inf }
 0xd0c   : > { %v2790_v58 = vpop.f32.mrf.mxu1 }
 0xd0d   : > { %v2809_v4 = vmul.f32 0.5, %v2790_v58  ;;  %v2831_v63 = vsel %vm665_vm3, %v2811_v42, -inf }
 0xd0e   : > { %2823 = vmax.xlane.f32.xlu0 %v2822_v13  ;;  %v4681_v28 = vpop.f32.mrf.mxu1 }
 0xd0f   : > { %v2812_v19 = vmul.f32 0.5, %v4681_v28  ;;  %v2825_v46 = vsel %vm665_vm3, %v2809_v4, -inf }
 0xd10   : > { %v2793_v9 = vpop.f32.mrf.mxu1 }
 0xd11   : > { %v6073_v14 = vmul.f32 0.5, %v2793_v9  ;;  %v2834_v11 = vsel %vm665_vm3, %v2812_v19, -inf }
 0xd12   : > { %2817 = vmax.xlane.f32.xlu0 %v2816_v61 }
 0xd13   : > { %v2828_v32 = vsel %vm665_vm3, %v6073_v14, -inf }
 0xd16   : > { %2832 = vmax.xlane.f32.xlu0 %v2831_v63 }
 0xd1a   : > { %2826 = vmax.xlane.f32.xlu0 %v2825_v46 }
 0xd1e   : > { %2835 = vmax.xlane.f32.xlu0 %v2834_v11 }
 0xd22   : > { %2829 = vmax.xlane.f32.xlu0 %v2828_v32 }
 0xd38   : > { %4932 = vrot.lane.b32.xlu0 %v5421_v0, %s5265_s18 }
 0xd3c   : > { %2911 = vrot.lane.b32.xlu0 %v5436_v7, %s5266_s19 }
 0xd8f   : > { %v2821_v47 = vpop.xlane.xlu0 %2820 }
 0xd90   : > { %v2839_v24 = vsub.f32 %v2807_v44, %v2821_v47 }
 0xd92   : > { %v2849_v31 = vmul.f32 1.442695, %v2839_v24 }
 0xd93   : > { %v2815_v45 = vpop.xlane.xlu0 %2814 }
 0xd94   : > { %5127 = vpow2.f32 %v2849_v31  ;;  %v2837_v30 = vsub.f32 %v2805_v26, %v2815_v45 }
 0xd96   : > { %v2845_v51 = vmul.f32 1.442695, %v2837_v30 }
 0xd97   : > { %v2824_v20 = vpop.xlane.xlu0 %2823 }
 0xd98   : > { %5129 = vpow2.f32 %v2845_v51  ;;  %v2840_v48 = vsub.f32 %v2808_v22, %v2824_v20  ;;  %v6092_v22 = vpop.permute.xlu1 %4927 }
 0xd9a   : > { %v2851_v23 = vmul.f32 1.442695, %v2840_v48 }
 0xd9b   : > { %v2818_v37 = vpop.xlane.xlu0 %2817 }
 0xd9c   : > { %5131 = vpow2.f32 %v2851_v23  ;;  %v2838_v49 = vsub.f32 %v2806_v17, %v2818_v37  ;;  %v6100_v58 = vpop.permute.xlu1 %4937 }
 0xd9e   : > { %v2847_v60 = vmul.f32 1.442695, %v2838_v49 }
 0xd9f   : > { %v2833_v16 = vpop.xlane.xlu0 %2832 }
 0xda0   : > { %5133 = vpow2.f32 %v2847_v60  ;;  %v2843_v40 = vsub.f32 %v2811_v42, %v2833_v16  ;;  %v2910_v46 = vpop.permute.xlu1 %2909 }
 0xda1   : > { %v6084_v27 = vpop.eup %5127 }
 0xda2   : > { %v2857_v12 = vmul.f32 1.442695, %v2843_v40  ;;  %v2867_v33 = vsel %vm665_vm3, %v6084_v27, 0.0 }
 0xda3   : > { %v2827_v44 = vpop.xlane.xlu0 %2826  ;;  %2868 = vadd.xlane.f32.xlu0 %v2867_v33 }
 0xda4   : > { %5135 = vpow2.f32 %v2857_v12  ;;  %v2841_v55 = vsub.f32 %v2809_v4, %v2827_v44  ;;  %v2908_v24 = vpop.permute.xlu1 %2907  ;;  %v4924_v44 = vunpack.i.l.bf16 %v6082_v29 }
 0xda5   : > { %v6088_v26 = vpop.eup %5129 }
 0xda6   : > { %v2853_v3 = vmul.f32 1.442695, %v2841_v55  ;;  %v2861_v15 = vsel %vm665_vm3, %v6088_v26, 0.0  ;;  %v4925_v55 = vunpack.i.h.bf16 %v6082_v29  ;;  %v4940_v29 = vunpack.i.h.bf16 %v6100_v58 }
 0xda7   : > { %v2836_v57 = vpop.xlane.xlu0 %2835  ;;  %2862 = vadd.xlane.f32.xlu0 %v2861_v15 }
 0xda8   : > { %5137 = vpow2.f32 %v2853_v3  ;;  %v2844_v56 = vsub.f32 %v2812_v19, %v2836_v57 }
 0xda9   : > { %v6094_v17 = vpop.eup %5131 }
 0xdaa   : > { %v2859_v13 = vmul.f32 1.442695, %v2844_v56  ;;  %v2870_v18 = vsel %vm665_vm3, %v6094_v17, 0.0 }
 0xdab   : > { %2871 = vadd.xlane.f32.xlu0 %v2870_v18  ;;  %v2830_v42 = vpop.xlane.xlu0 %2829 }
 0xdac   : > { %5139 = vpow2.f32 %v2859_v13  ;;  %v4939_v13 = vunpack.i.l.bf16 %v6100_v58 }
 0xdad   : > { %v6098_v61 = vpop.eup %5133 }
 0xdae   : > { %v2864_v4 = vsel %vm665_vm3, %v6098_v61, 0.0 }
 0xdaf   : > { %2865 = vadd.xlane.f32.xlu1 %v2864_v4  ;;  %v6104_v63 = vpop.permute.xlu0 %4932 }
 0xdb0   : > { %v4934_v3 = vunpack.i.l.bf16 %v6104_v63  ;;  %v4935_v57 = vunpack.i.h.bf16 %v6104_v63 }
 0xdb1   : > { %v6106_v28 = vpop.eup %5135 }
 0xdb2   : > { %v2879_v19 = vsel %vm665_vm3, %v6106_v28, 0.0 }
 0xdb3   : > { %2880 = vadd.xlane.f32.xlu0 %v2879_v19  ;;  %v2912_v9 = vpop.permute.xlu0 %2911 }
 0xdb4   : > { %4682 = vmatprep.subr.bf16.mxu0 %v2912_v9 }
 0xdb5   : > { %v6110_v11 = vpop.eup %5137  ;;  %4683 = vmatpush3.bf16.msra.mxu0 %v2912_v9 }
 0xdb6   : > { %4684 = vmatprep.subr.bf16.mxu0 %v2910_v46  ;;  %v2873_v32 = vsel %vm665_vm3, %v6110_v11, 0.0 }
 0xdb7   : > { %2874 = vadd.xlane.f32.xlu0 %v2873_v32 }
 0xdb9   : > { %v6114_v47 = vpop.eup %5139  ;;  %v4666_v31 = vpop.f32.mrf.mxu0  ;;  %4685 = vmatpush3.bf16.msra.mxu0 %v2910_v46 }
 0xdba   : > { %v6117_v45 = vadd.f32 %v4666_v31, %v5971_v1  ;;  %4686 = vmatprep.subr.bf16.mxu0 %v2908_v24  ;;  %v2882_v30 = vsel %vm665_vm3, %v6114_v47, 0.0 }
 0xdbb   : > { %v2621_v51 = vpop.f32.mrf.mxu0  ;;  %2883 = vadd.xlane.f32.xlu0 %v2882_v30 }
 0xdbc   : > { %v6122_v20 = vadd.f32 %v2621_v51, %v5976_v25 }
 0xdbd   : > { %v4667_v48 = vpop.f32.mrf.mxu0  ;;  %4687 = vmatpush3.bf16.msra.mxu0 %v2908_v24 }
 0xdbe   : > { %v6125_v23 = vadd.f32 %v4667_v48, %v5981_v35 }
 0xdbf   : > { %v2624_v37 = vpop.f32.mrf.mxu0 }
 0xdc0   : > { %v6128_v49 = vadd.f32 %v2624_v37, %v5986_v54  ;;  %3148 = vrot.lane.b32.xlu1 %v5382_v38, %s5265_s18  ;;  %v2842_v54 = vsub.f32 %v6073_v14, %v2830_v42 }
 0xdc2   : > { %v2855_v12 = vmul.f32 1.442695, %v2842_v54 }
 0xdc4   : > { %v4670_v1 = vpop.f32.mrf.mxu0  ;;  %3152 = vrot.lane.b32.xlu1 %v5427_v5, %s5265_s18  ;;  %5141 = vpow2.f32 %v2855_v12 }
 0xdc5   : > { %v6135_v60 = vadd.f32 %v4670_v1, %v5995_v10  ;;  %v4965_v10 = vld [vmem:[%s6502_s4 + $0x8] ss:$0 sps:$4 sm:$0xcc]  }
 0xdc6   : > { %v2637_v25 = vpop.f32.mrf.mxu0 }
 0xdc7   : > { %v6138_v16 = vadd.f32 %v2637_v25, %v6000_v39  ;;  %v3002_v39 = vrot.slane %v4965_v10, 2 }
 0xdc8   : > { %v4671_v35 = vpop.f32.mrf.mxu0 }
 0xdc9   : > { %v6141_v40 = vadd.f32 %v4671_v35, %v6007_v59  ;;  %4791 = vmatprep.subr.msk.bf16.mxu1 %vm588_vm2, %v3002_v39  ;;  %v3016_v59 = vsel %vm588_vm2, %v3002_v39, 0 }
 0xdca   : > { %4699 = vmatpush3.bf16.msra.mxu1 %v3016_v59 }
 0xdd1   : > { %2905 = vrot.lane.b32.xlu0 %v5448_v8, %s5266_s19  ;;  %v6159_v14 = vpop.eup %5141  ;;  %s6470_s19 = scalar_lea.vmem %s6506_s8, %s5330_s12 }
 0xdd2   : > { %v2876_v33 = vsel %vm665_vm3, %v6159_v14, 0.0 }
 0xdd5   : > { %3150 = vrot.lane.b32.xlu0 %v5379_v36, %s5265_s18 }
 0xdd9   : > { %3154 = vrot.lane.b32.xlu0 %v5430_v6, %s5265_s18 }
 0xddd   : > { %4942 = vrot.lane.b32.xlu0 %v5401_v52, %s5267_s25  ;;  %v4929_v52 = vunpack.i.l.bf16 %v6092_v22 }
 0xde1   : > { %4952 = vrot.lane.b32.xlu0 %v5421_v0, %s5267_s25  ;;  %v4930_v0 = vunpack.i.h.bf16 %v6092_v22 }
 0xde5   : > { %3342 = vrot.lane.b32.xlu0 %v5436_v7, %s5268_s26 }
 0xde8   : > { %2877 = vadd.xlane.f32.xlu1 %v2876_v33 }
 0xe1b   : > { %3115 = vxpose.xlu1.b32.start [1/8] (short) (narrow) %v4924_v44, 8 }
 0xe1f   : > { %3116 = vxpose.xlu1.b32.cont [2/8] (short) (narrow) %v4925_v55, 8 }
 0xe23   : > { %3117 = vxpose.xlu1.b32.cont [3/8] (short) (narrow) %v4929_v52, 8 }
 0xe27   : > { %3118 = vxpose.xlu1.b32.cont [4/8] (short) (narrow) %v4930_v0, 8 }
 0xe2b   : > { %3119 = vxpose.xlu1.b32.cont [5/8] (short) (narrow) %v4934_v3, 8 }
 0xe2c   : > { %v2869_v15 = vpop.xlane.xlu0 %2868 }
 0xe2f   : > { %3120 = vxpose.xlu1.b32.cont [6/8] (short) (narrow) %v4935_v57, 8 }
 0xe30   : > { %v2863_v56 = vpop.xlane.xlu0 %2862 }
 0xe31   : > { %5143 = vrcp.f32 %v2863_v56 }
 0xe33   : > { %3121 = vxpose.xlu1.b32.cont [7/8] (short) (narrow) %v4939_v13, 8 }
 0xe34   : > { %v2872_v18 = vpop.xlane.xlu0 %2871 }
 0xe35   : > { %5145 = vrcp.f32 %v2872_v18 }
 0xe36   : > { %5147 = vrcp.f32 %v2869_v15 }
 0xe37   : > { %3122 = vxpose.xlu1.b32.end [8/8] (short) (narrow) %v4940_v29, 8 }
 0xe38   : > { %v2866_v22 = vpop.xlane.xlu1 %2865 }
 0xe39   : > { %5149 = vrcp.f32 %v2866_v22 }
 0xe3c   : > { %v2881_v42 = vpop.xlane.xlu0 %2880 }
 0xe3e   : > { %v5144_v19 = vpop.eup %5143 }
 0xe3f   : > { %v2893_v31 = vmul.f32 %v5144_v19, %v6088_v26 }
 0xe40   : > { %v2875_v4 = vpop.xlane.xlu0 %2874 }
 0xe42   : > { %v5146_v46 = vpop.eup %5145 }
 0xe43   : > { %v5148_v63 = vpop.eup %5147  ;;  %v2896_v24 = vmul.f32 %v5146_v46, %v6094_v17  ;;  %v3149_v17 = vpop.permute.xlu1 %3148 }
 0xe44   : > { %v2884_v9 = vpop.xlane.xlu0 %2883  ;;  %v2895_v51 = vmul.f32 %v5148_v63, %v6084_v27 }
 0xe45   : > { %5151 = vrcp.f32 %v2884_v9 }
 0xe46   : > { %v5150_v32 = vpop.eup %5149  ;;  %v2902_v37 = vpack.c.bf16 %v2896_v24, %v2895_v51  ;;  %5153 = vrcp.f32 %v2875_v4 }
 0xe47   : > { %v2894_v30 = vmul.f32 %v5150_v32, %v6098_v61  ;;  %v3153_v61 = vpop.permute.xlu1 %3152  ;;  %5155 = vrcp.f32 %v2881_v42 }
 0xe48   : > { %v2906_v58 = vpop.permute.xlu0 %2905 }
 0xe49   : > { %4688 = vmatprep.subr.bf16.mxu0 %v2906_v58  ;;  %v2901_v48 = vpack.c.bf16 %v2894_v30, %v2893_v31 }
 0xe4a   : > { %4689 = vmatpush3.bf16.msra.mxu0 %v2906_v58 }
 0xe4b   : > { %4690 = vmatprep.mubr.msk.bf16.mxu0 %vm665_vm3, %v2901_v48 }
 0xe4c   : > { %v3151_v1 = vpop.permute.xlu0 %3150 }
 0xe4d   : > { %4691 = vmatmul.mubr.msk.bf16.vlgmr.msra.gmra.mxu0 %vm665_vm3, %v2902_v37 }
 0xe50   : > { %v3155_v25 = vpop.permute.xlu0 %3154 }
 0xe52   : > { %v5152_v12 = vpop.eup %5151 }
 0xe53   : > { %v5154_v10 = vpop.eup %5153  ;;  %v2900_v59 = vmul.f32 %v5152_v12, %v6114_v47 }
 0xe54   : > { %v6179_v35 = vpop.permute.xlu0 %4942 }
 0xe55   : > { %4947 = vrot.lane.b32.xlu1 %v5396_v50, %s5267_s25  ;;  %v5156_v50 = vpop.eup %5155 }
 0xe56   : > { %v2899_v44 = vmul.f32 %v5156_v50, %v6106_v28  ;;  %v6201_v28 = vpop.f32.mrf.mxu0 }
 0xe58   : > { %v6183_v26 = vpop.permute.xlu0 %4952  ;;  %v2904_v52 = vpack.c.bf16 %v2900_v59, %v2899_v44 }
 0xe59   : > { %4957 = vrot.lane.b32.xlu1 %v5415_v62, %s5267_s25  ;;  %v2897_v62 = vmul.f32 %v5154_v10, %v6110_v11 }
 0xe5c   : > { %v3343_v27 = vpop.permute.xlu0 %3342 }
 0xe5d   : > { %4718 = vmatprep.subr.bf16.mxu1 %v3343_v27  ;;  %3340 = vrot.lane.b32.xlu1 %v5462_v34, %s5268_s26 }
 0xe71   : > { %v2878_v54 = vpop.xlane.xlu1 %2877 }
 0xe72   : > { %5157 = vrcp.f32 %v2878_v54 }
 0xe7f   : > { %v5158_v39 = vpop.eup %5157 }
 0xe80   : > { %v2898_v33 = vmul.f32 %v5158_v39, %v6159_v14 }
 0xe82   : > { %v2903_v55 = vpack.c.bf16 %v2898_v33, %v2897_v62 }
 0xe84   : > { %4694 = vmatprep.mubr.msk.bf16.mxu0 %vm665_vm3, %v2903_v55 }
 0xe85   : > { %4695 = vmatmul.mubr.msk.bf16.gmra.mxu0 %vm665_vm3, %v2904_v52 }
 0xe86   : > { %4710 = vmatprep.mubr.msk.bf16.mxu0 %vm575_vm1, %v3149_v17 }
 0xe97   : > { %v3131_v0 = vpop.trf.xlu1 }
 0xe98   : > { %v3147_v3 = vpack.c.bf16 %v3131_v0, %v3131_v0 }
 0xe9a   : > { %v3169_v15 = vsel %vm588_vm2, %v3147_v3, 0  ;;  %4792 = vmatprep.subr.msk.bf16.mxu0 %vm588_vm2, %v3147_v3 }
 0xe9b   : > { %4709 = vmatpush3.bf16.msra.mxu0 %v3169_v15 }
 0xe9e   : > { %4711 = vmatmul.mubr.msk.bf16.vlgmr.msra.gmra.mxu0 %vm575_vm1, %v3151_v1 }
 0xe9f   : > { %4714 = vmatprep.mubr.msk.bf16.mxu0 %vm575_vm1, %v3153_v61 }
 0xea6   : > { %4715 = vmatmul.mubr.msk.bf16.gmra.mxu0 %vm575_vm1, %v3155_v25 }
 0xec7   : > { %v6203_v11 = vpop.permute.xlu1 %4947 }
 0xecb   : > { %v6205_v56 = vpop.permute.xlu1 %4957 }
 0xecf   : > { %v3341_v22 = vpop.permute.xlu1 %3340 }
 0xf0d   : > { %v4692_v47 = vpop.f32.mrf.mxu0 }
 0xf0f   : > { %v2963_v14 = vpop.f32.mrf.mxu0 }
 0xf11   : > { %v4693_v57 = vpop.f32.mrf.mxu0 }
 0xf12   : > { %v2995_v29 = vpack.c.bf16 %v4693_v57, %v4692_v47 }
 0xf13   : > { %v2966_v13 = vpop.f32.mrf.mxu0 }
 0xf14   : > { %v2994_v18 = vpack.c.bf16 %v2966_v13, %v2963_v14 }
 0xf16   : > { %4700 = vmatprep.mubr.msk.bf16.mxu1 %vm575_vm1, %v2994_v18 }
 0xf17   : > { %4701 = vmatmul.mubr.msk.bf16.vlgmr.msra.gmra.mxu1 %vm575_vm1, %v2995_v29 }
 0xf18   : > { %4719 = vmatpush3.bf16.msra.mxu1 %v3343_v27 }
 0xf19   : > { %4720 = vmatprep.subr.bf16.mxu1 %v3341_v22 }
 0xf1c   : > { %4721 = vmatpush3.bf16.msra.mxu1 %v3341_v22 }
 0xf45   : > { %v4696_v42 = vpop.f32.mrf.mxu0 }
 0xf47   : > { %v2979_v4 = vpop.f32.mrf.mxu0 }
 0xf49   : > { %v4697_v19 = vpop.f32.mrf.mxu0 }
 0xf4a   : > { %v2997_v63 = vpack.c.bf16 %v4697_v19, %v4696_v42 }
 0xf4b   : > { %v2982_v46 = vpop.f32.mrf.mxu0 }
 0xf4c   : > { %v2996_v9 = vpack.c.bf16 %v2982_v46, %v2979_v4 }
 0xf4e   : > { %4704 = vmatprep.mubr.msk.bf16.mxu1 %vm575_vm1, %v2996_v9 }
 0xf4f   : > { %4705 = vmatmul.mubr.msk.bf16.gmra.mxu1 %vm575_vm1, %v2997_v63 }
 0xf5e   : > { %v4712_v32 = vpop.f32.mrf.mxu0 }
 0xf5f   : > { %v3238_v24 = vmul.f32 0.5, %v4712_v32 }
 0xf60   : > { %v3205_v31 = vpop.f32.mrf.mxu0 }
 0xf61   : > { %v3236_v30 = vmul.f32 0.5, %v3205_v31  ;;  %v3250_v58 = vsel %vm665_vm3, %v3238_v24, -inf }
 0xf62   : > { %3251 = vmax.xlane.f32.xlu0 %v3250_v58  ;;  %v4713_v51 = vpop.f32.mrf.mxu0 }
 0xf63   : > { %v3239_v48 = vmul.f32 0.5, %v4713_v51  ;;  %v3244_v37 = vsel %vm665_vm3, %v3236_v30, -inf }
 0xf64   : > { %v3208_v1 = vpop.f32.mrf.mxu0 }
 0xf65   : > { %v3237_v25 = vmul.f32 0.5, %v3208_v1  ;;  %v3253_v27 = vsel %vm665_vm3, %v3239_v48, -inf }
 0xf66   : > { %3245 = vmax.xlane.f32.xlu0 %v3244_v37  ;;  %v4716_v17 = vpop.f32.mrf.mxu0 }
 0xf67   : > { %v3242_v61 = vmul.f32 0.5, %v4716_v17  ;;  %v3247_v54 = vsel %vm665_vm3, %v3237_v25, -inf }
 0xf68   : > { %v3221_v12 = vpop.f32.mrf.mxu0 }
 0xf69   : > { %v3240_v10 = vmul.f32 0.5, %v3221_v12  ;;  %v3262_v50 = vsel %vm665_vm3, %v3242_v61, -inf }
 0xf6a   : > { %3254 = vmax.xlane.f32.xlu0 %v3253_v27  ;;  %v4717_v39 = vpop.f32.mrf.mxu0 }
 0xf6b   : > { %v3243_v59 = vmul.f32 0.5, %v4717_v39  ;;  %v3256_v62 = vsel %vm665_vm3, %v3240_v10, -inf }
 0xf6c   : > { %v3224_v33 = vpop.f32.mrf.mxu0 }
 0xf6d   : > { %v3241_v44 = vmul.f32 0.5, %v3224_v33  ;;  %v3265_v55 = vsel %vm665_vm3, %v3243_v59, -inf }
 0xf6e   : > { %3248 = vmax.xlane.f32.xlu0 %v3247_v54 }
 0xf6f   : > { %v3259_v52 = vsel %vm665_vm3, %v3241_v44, -inf }
 0xf72   : > { %3263 = vmax.xlane.f32.xlu0 %v3262_v50 }
 0xf76   : > { %3257 = vmax.xlane.f32.xlu0 %v3256_v62 }
 0xf7a   : > { %3266 = vmax.xlane.f32.xlu0 %v3265_v55 }
 0xf7e   : > { %3260 = vmax.xlane.f32.xlu0 %v3259_v52 }
 0xf94   : > { %3338 = vrot.lane.b32.xlu0 %v5442_v2, %s5268_s26 }
 0xfd7   : > { %v4702_v0 = vpop.f32.mrf.mxu1 }
 0xfd8   : > { %v6222_v3 = vadd.f32 %v4702_v0, %v6117_v45 }
 0xfd9   : > { %v3052_v15 = vpop.f32.mrf.mxu1 }
 0xfda   : > { %v6225_v47 = vadd.f32 %v3052_v15, %v6122_v20 }
 0xfdb   : > { %v4703_v14 = vpop.f32.mrf.mxu1 }
 0xfdc   : > { %v6228_v57 = vadd.f32 %v4703_v14, %v6125_v23 }
 0xfdd   : > { %v3055_v13 = vpop.f32.mrf.mxu1 }
 0xfde   : > { %v6231_v18 = vadd.f32 %v3055_v13, %v6128_v49 }
 0xfeb   : > { %v3252_v29 = vpop.xlane.xlu0 %3251 }
 0xfec   : > { %v3270_v22 = vsub.f32 %v3238_v24, %v3252_v29 }
 0xfee   : > { %v3280_v42 = vmul.f32 1.442695, %v3270_v22 }
 0xfef   : > { %v3246_v4 = vpop.xlane.xlu0 %3245 }
 0xff0   : > { %5159 = vpow2.f32 %v3280_v42  ;;  %v3268_v19 = vsub.f32 %v3236_v30, %v3246_v4 }
 0xff2   : > { %v3276_v45 = vmul.f32 1.442695, %v3268_v19 }
 0xff3   : > { %v3255_v46 = vpop.xlane.xlu0 %3254 }
 0xff4   : > { %5161 = vpow2.f32 %v3276_v45  ;;  %v3271_v9 = vsub.f32 %v3239_v48, %v3255_v46  ;;  %v4949_v46 = vunpack.i.l.bf16 %v6203_v11 }
 0xff6   : > { %v3282_v20 = vmul.f32 1.442695, %v3271_v9  ;;  %v4960_v9 = vunpack.i.h.bf16 %v6205_v56 }
 0xff7   : > { %v3249_v63 = vpop.xlane.xlu0 %3248 }
 0xff8   : > { %5163 = vpow2.f32 %v3282_v20  ;;  %v3269_v32 = vsub.f32 %v3237_v25, %v3249_v63 }
 0xffa   : > { %v3278_v23 = vmul.f32 1.442695, %v3269_v32 }
 0xffb   : > { %v3264_v31 = vpop.xlane.xlu0 %3263 }
 0xffc   : > { %5165 = vpow2.f32 %v3278_v23  ;;  %v3274_v58 = vsub.f32 %v3242_v61, %v3264_v31 }
 0xffd   : > { %v6233_v49 = vpop.eup %5159 }
 0xffe   : > { %v3288_v51 = vmul.f32 1.442695, %v3274_v58  ;;  %v3298_v24 = vsel %vm665_vm3, %v6233_v49, 0.0 }
 0xfff   : > { %v3258_v37 = vpop.xlane.xlu0 %3257  ;;  %3299 = vadd.xlane.f32.xlu0 %v3298_v24 }
0x1000   : > { %5167 = vpow2.f32 %v3288_v51  ;;  %v3272_v30 = vsub.f32 %v3240_v10, %v3258_v37 }
0x1001   : > { %v6237_v1 = vpop.eup %5161 }
0x1002   : > { %v3284_v48 = vmul.f32 1.442695, %v3272_v30  ;;  %v3292_v25 = vsel %vm665_vm3, %v6237_v1, 0.0 }
0x1003   : > { %v3267_v27 = vpop.xlane.xlu0 %3266  ;;  %3293 = vadd.xlane.f32.xlu0 %v3292_v25 }
0x1004   : > { %5169 = vpow2.f32 %v3284_v48  ;;  %v3275_v17 = vsub.f32 %v3243_v59, %v3267_v27 }
0x1005   : > { %v6241_v61 = vpop.eup %5163 }
0x1006   : > { %v3290_v54 = vmul.f32 1.442695, %v3275_v17  ;;  %v3301_v12 = vsel %vm665_vm3, %v6241_v61, 0.0 }
0x1007   : > { %3302 = vadd.xlane.f32.xlu0 %v3301_v12  ;;  %v3261_v50 = vpop.xlane.xlu0 %3260 }
0x1008   : > { %5171 = vpow2.f32 %v3290_v54  ;;  %v3273_v10 = vsub.f32 %v3241_v44, %v3261_v50 }
0x1009   : > { %v6245_v39 = vpop.eup %5165 }
0x100a   : > { %v3286_v62 = vmul.f32 1.442695, %v3273_v10  ;;  %v3295_v33 = vsel %vm665_vm3, %v6245_v39, 0.0 }
0x100b   : > { %3296 = vadd.xlane.f32.xlu1 %v3295_v33  ;;  %v3339_v55 = vpop.permute.xlu0 %3338 }
0x100c   : > { %5173 = vpow2.f32 %v3286_v62  ;;  %4722 = vmatprep.subr.bf16.mxu1 %v3339_v55 }
0x100d   : > { %v6249_v59 = vpop.eup %5167  ;;  %4723 = vmatpush3.bf16.msra.mxu1 %v3339_v55 }
0x100e   : > { %v3310_v52 = vsel %vm665_vm3, %v6249_v59, 0.0 }
0x100f   : > { %v4706_v0 = vpop.f32.mrf.mxu1  ;;  %3311 = vadd.xlane.f32.xlu0 %v3310_v52 }
0x1010   : > { %v6254_v44 = vadd.f32 %v4706_v0, %v6135_v60 }
0x1011   : > { %v6256_v15 = vpop.eup %5169  ;;  %v3068_v14 = vpop.f32.mrf.mxu1 }
0x1012   : > { %v6259_v13 = vadd.f32 %v3068_v14, %v6138_v16  ;;  %v3304_v29 = vsel %vm665_vm3, %v6256_v15, 0.0  ;;  %v4944_v16 = vunpack.i.l.bf16 %v6179_v35 }
0x1013   : > { %v4707_v22 = vpop.f32.mrf.mxu1  ;;  %3305 = vadd.xlane.f32.xlu0 %v3304_v29 }
0x1014   : > { %v6264_v42 = vadd.f32 %v4707_v22, %v6141_v40  ;;  %v4945_v40 = vunpack.i.h.bf16 %v6179_v35 }
0x1015   : > { %v5172_v4 = vpop.eup %5171 }
0x1016   : > { %v3313_v19 = vsel %vm665_vm3, %v5172_v4, 0.0 }
0x1017   : > { %3314 = vadd.xlane.f32.xlu0 %v3313_v19 }
0x1019   : > { %v5174_v60 = vpop.eup %5173 }
0x101a   : > { %v3307_v45 = vsel %vm665_vm3, %v5174_v60, 0.0 }
0x101b   : > { %3308 = vadd.xlane.f32.xlu1 %v3307_v45 }
0x102c   : > { %3336 = vrot.lane.b32.xlu1 %v5448_v8, %s5268_s26 }
0x102d   : > { %3575 = vrot.lane.b32.xlu0 %v5382_v38, %s5267_s25  ;;  %v4950_v38 = vunpack.i.h.bf16 %v6203_v11 }
0x1030   : > { %3577 = vrot.lane.b32.xlu1 %v5379_v36, %s5267_s25  ;;  %v4954_v36 = vunpack.i.l.bf16 %v6183_v26 }
0x1031   : > { %3579 = vrot.lane.b32.xlu0 %v5427_v5, %s5267_s25  ;;  %v4955_v5 = vunpack.i.h.bf16 %v6183_v26 }
0x1034   : > { %3581 = vrot.lane.b32.xlu1 %v5430_v6, %s5267_s25  ;;  %v4959_v6 = vunpack.i.l.bf16 %v6205_v56 }
0x104f   : > { %3542 = vxpose.xlu0.b32.start [1/8] (short) (narrow) %v4944_v16, 8 }
0x1053   : > { %3543 = vxpose.xlu0.b32.cont [2/8] (short) (narrow) %v4945_v40, 8 }
0x1057   : > { %3544 = vxpose.xlu0.b32.cont [3/8] (short) (narrow) %v4949_v46, 8 }
0x105b   : > { %3545 = vxpose.xlu0.b32.cont [4/8] (short) (narrow) %v4950_v38, 8 }
0x105f   : > { %3546 = vxpose.xlu0.b32.cont [5/8] (short) (narrow) %v4954_v36, 8 }
0x1063   : > { %3547 = vxpose.xlu0.b32.cont [6/8] (short) (narrow) %v4955_v5, 8 }
0x1067   : > { %3548 = vxpose.xlu0.b32.cont [7/8] (short) (narrow) %v4959_v6, 8 }
0x106b   : > { %3549 = vxpose.xlu0.b32.end [8/8] (short) (narrow) %v4960_v9, 8 }
0x1088   : > { %v3300_v35 = vpop.xlane.xlu0 %3299 }
0x108c   : > { %v3294_v20 = vpop.xlane.xlu0 %3293 }
0x108d   : > { %5175 = vrcp.f32 %v3294_v20 }
0x1090   : > { %v3303_v63 = vpop.xlane.xlu0 %3302 }
0x1094   : > { %v3297_v32 = vpop.xlane.xlu1 %3296 }
0x1095   : > { %5177 = vrcp.f32 %v3297_v32 }
0x1096   : > { %5179 = vrcp.f32 %v3303_v63 }
0x1097   : > { %5181 = vrcp.f32 %v3300_v35 }
0x1098   : > { %v3312_v11 = vpop.xlane.xlu0 %3311 }
0x109a   : > { %v5176_v31 = vpop.eup %5175 }
0x109b   : > { %v3324_v51 = vmul.f32 %v5176_v31, %v6237_v1 }
0x109c   : > { %v3306_v23 = vpop.xlane.xlu0 %3305 }
0x10a0   : > { %v3315_v58 = vpop.xlane.xlu0 %3314 }
0x10a1   : > { %5183 = vrcp.f32 %v3315_v58 }
0x10a2   : > { %v5178_v26 = vpop.eup %5177  ;;  %5185 = vrcp.f32 %v3306_v23 }
0x10a3   : > { %v3325_v56 = vmul.f32 %v5178_v26, %v6245_v39  ;;  %v5180_v24 = vpop.eup %5179  ;;  %5187 = vrcp.f32 %v3312_v11 }
0x10a4   : > { %v3309_v37 = vpop.xlane.xlu1 %3308  ;;  %v5182_v48 = vpop.eup %5181  ;;  %v3327_v25 = vmul.f32 %v5180_v24, %v6241_v61 }
0x10a5   : > { %5189 = vrcp.f32 %v3309_v37  ;;  %v3332_v30 = vpack.c.bf16 %v3325_v56, %v3324_v51  ;;  %v3326_v17 = vmul.f32 %v5182_v48, %v6233_v49  ;;  %v3576_v49 = vpop.permute.xlu0 %3575 }
0x10a7   : > { %4726 = vmatprep.mubr.msk.bf16.mxu1 %vm665_vm3, %v3332_v30  ;;  %v3333_v54 = vpack.c.bf16 %v3327_v25, %v3326_v17 }
0x10a8   : > { %v3337_v27 = vpop.permute.xlu1 %3336 }
0x10a9   : > { %4724 = vmatprep.subr.bf16.mxu1 %v3337_v27  ;;  %v3580_v0 = vpop.permute.xlu0 %3579 }
0x10aa   : > { %4725 = vmatpush3.bf16.msra.mxu1 %v3337_v27 }
0x10ad   : > { %4727 = vmatmul.mubr.msk.bf16.vlgmr.msra.gmra.mxu1 %vm665_vm3, %v3333_v54 }
0x10ae   : > { %v5184_v1 = vpop.eup %5183 }
0x10af   : > { %v5186_v12 = vpop.eup %5185  ;;  %v3331_v39 = vmul.f32 %v5184_v1, %v5172_v4  ;;  %v3429_v4 = vld [vmem:[%s6502_s4 + $0xc] sm:$0x3] }
0x10b0   : > { %v5188_v50 = vpop.eup %5187  ;;  %v3328_v62 = vmul.f32 %v5186_v12, %v6256_v15  ;;  %v3578_v15 = vpop.permute.xlu1 %3577  ;;  %4793 = vmatprep.subr.msk.bf16.mxu0 %vm588_vm2, %v3429_v4  ;;  %v3443_v19 = vsel %vm588_vm2, %v3429_v4, 0 }
0x10b1   : > { %v3330_v61 = vmul.f32 %v5188_v50, %v6249_v59  ;;  %4735 = vmatpush3.bf16.msra.mxu0 %v3443_v19 }
0x10b2   : > { %v5190_v10 = vpop.eup %5189 }
0x10b3   : > { %v3329_v33 = vmul.f32 %v5190_v10, %v5174_v60  ;;  %v3335_v52 = vpack.c.bf16 %v3331_v39, %v3330_v61  ;;  %v6307_v60 = vpop.f32.mrf.mxu1 }
0x10b4   : > { %v3582_v59 = vpop.permute.xlu1 %3581 }
0x10b5   : > { %v3334_v55 = vpack.c.bf16 %v3329_v33, %v3328_v62 }
0x10b7   : > { %4730 = vmatprep.mubr.msk.bf16.mxu1 %vm665_vm3, %v3334_v55 }
0x10b8   : > { %4731 = vmatmul.mubr.msk.bf16.gmra.mxu1 %vm665_vm3, %v3335_v52 }
0x10b9   : > { %4746 = vmatprep.mubr.msk.bf16.mxu1 %vm575_vm1, %v3576_v49 }
0x10cb   : > { %v3558_v14 = vpop.trf.xlu0 }
0x10cc   : > { %v3574_v29 = vpack.c.bf16 %v3558_v14, %v3558_v14 }
0x10ce   : > { %v3596_v22 = vsel %vm588_vm2, %v3574_v29, 0  ;;  %4794 = vmatprep.subr.msk.bf16.mxu1 %vm588_vm2, %v3574_v29 }
0x10cf   : > { %4745 = vmatpush3.bf16.msra.mxu1 %v3596_v22 }
0x10d2   : > { %4747 = vmatmul.mubr.msk.bf16.vlgmr.msra.gmra.mxu1 %vm575_vm1, %v3578_v15 }
0x10d3   : > { %4750 = vmatprep.mubr.msk.bf16.mxu1 %vm575_vm1, %v3580_v0 }
0x10da   : > { %4751 = vmatmul.mubr.msk.bf16.gmra.mxu1 %vm575_vm1, %v3582_v59 }
0x116d   : > { %v4728_v45 = vpop.f32.mrf.mxu1 }
0x116f   : > { %v3394_v16 = vpop.f32.mrf.mxu1 }
0x1171   : > { %v4729_v40 = vpop.f32.mrf.mxu1 }
0x1172   : > { %v3426_v36 = vpack.c.bf16 %v4729_v40, %v4728_v45 }
0x1173   : > { %v3397_v46 = vpop.f32.mrf.mxu1 }
0x1174   : > { %v3425_v38 = vpack.c.bf16 %v3397_v46, %v3394_v16 }
0x1176   : > { %4736 = vmatprep.mubr.msk.bf16.mxu0 %vm575_vm1, %v3425_v38 }
0x1177   : > { %4737 = vmatmul.mubr.msk.bf16.vlgmr.msra.gmra.mxu0 %vm575_vm1, %v3426_v36 }
0x1178   : > { %v4732_v5 = vpop.f32.mrf.mxu1 }
0x117a   : > { %v3410_v6 = vpop.f32.mrf.mxu1 }
0x117c   : > { %v4733_v9 = vpop.f32.mrf.mxu1 }
0x117d   : > { %v3428_v63 = vpack.c.bf16 %v4733_v9, %v4732_v5 }
0x117e   : > { %v3413_v35 = vpop.f32.mrf.mxu1 }
0x117f   : > { %v3427_v20 = vpack.c.bf16 %v3413_v35, %v3410_v6 }
0x1181   : > { %4740 = vmatprep.mubr.msk.bf16.mxu0 %vm575_vm1, %v3427_v20 }
0x1182   : > { %4741 = vmatmul.mubr.msk.bf16.gmra.mxu0 %vm575_vm1, %v3428_v63 }
0x1192   : > { %v4748_v32 = vpop.f32.mrf.mxu1 }
0x1193   : > { %v3665_v11 = vmul.f32 0.5, %v4748_v32 }
0x1194   : > { %v3632_v23 = vpop.f32.mrf.mxu1 }
0x1195   : > { %v3663_v31 = vmul.f32 0.5, %v3632_v23  ;;  %v3677_v58 = vsel %vm665_vm3, %v3665_v11, -inf }
0x1196   : > { %3678 = vmax.xlane.f32.xlu1 %v3677_v58  ;;  %v4749_v26 = vpop.f32.mrf.mxu1 }
0x1197   : > { %v3666_v56 = vmul.f32 0.5, %v4749_v26  ;;  %v3671_v24 = vsel %vm665_vm3, %v3663_v31, -inf }
0x1198   : > { %v3635_v51 = vpop.f32.mrf.mxu1 }
0x1199   : > { %v3664_v48 = vmul.f32 0.5, %v3635_v51  ;;  %v3680_v25 = vsel %vm665_vm3, %v3666_v56, -inf }
0x119a   : > { %3672 = vmax.xlane.f32.xlu1 %v3671_v24  ;;  %v4752_v37 = vpop.f32.mrf.mxu1 }
0x119b   : > { %v3669_v54 = vmul.f32 0.5, %v4752_v37  ;;  %v3674_v1 = vsel %vm665_vm3, %v3664_v48, -inf }
0x119c   : > { %v3648_v30 = vpop.f32.mrf.mxu1 }
0x119d   : > { %v3667_v50 = vmul.f32 0.5, %v3648_v30  ;;  %v3689_v10 = vsel %vm665_vm3, %v3669_v54, -inf }
0x119e   : > { %3681 = vmax.xlane.f32.xlu1 %v3680_v25  ;;  %v4753_v27 = vpop.f32.mrf.mxu1 }
0x119f   : > { %v3670_v17 = vmul.f32 0.5, %v4753_v27  ;;  %v3683_v39 = vsel %vm665_vm3, %v3667_v50, -inf }
0x11a0   : > { %v3651_v62 = vpop.f32.mrf.mxu1 }
0x11a1   : > { %v3692_v12 = vsel %vm665_vm3, %v3670_v17, -inf  ;;  %v6324_v33 = vmul.f32 0.5, %v3651_v62 }
0x11a2   : > { %3675 = vmax.xlane.f32.xlu1 %v3674_v1  ;;  %3693 = vmax.xlane.f32.xlu0 %v3692_v12 }
0x11a3   : > { %v3686_v61 = vsel %vm665_vm3, %v6324_v33, -inf }
0x11a6   : > { %3690 = vmax.xlane.f32.xlu1 %v3689_v10 }
0x11aa   : > { %3684 = vmax.xlane.f32.xlu1 %v3683_v39 }
0x11b8   : > { %3767 = vrot.lane.b32.xlu0 %v5462_v34, %s5269_s30 }
0x11bb   : > { %3769 = vrot.lane.b32.xlu1 %v5436_v7, %s5269_s30 }
0x11df   : > { %3687 = vmax.xlane.f32.xlu1 %v3686_v61 }
0x11f0   : > { %3765 = vrot.lane.b32.xlu1 %v5442_v2, %s5269_s30 }
0x121f   : > { %v3679_v55 = vpop.xlane.xlu1 %3678 }
0x1220   : > { %v3697_v52 = vsub.f32 %v3665_v11, %v3679_v55 }
0x1222   : > { %v3707_v49 = vmul.f32 1.442695, %v3697_v52 }
0x1223   : > { %v3673_v0 = vpop.xlane.xlu1 %3672 }
0x1224   : > { %5191 = vpow2.f32 %v3707_v49  ;;  %v3695_v14 = vsub.f32 %v3663_v31, %v3673_v0 }
0x1226   : > { %v3703_v34 = vmul.f32 1.442695, %v3695_v14 }
0x1227   : > { %v3682_v29 = vpop.xlane.xlu1 %3681 }
0x1228   : > { %5193 = vpow2.f32 %v3703_v34  ;;  %v3698_v7 = vsub.f32 %v3666_v56, %v3682_v29 }
0x122a   : > { %v3709_v22 = vmul.f32 1.442695, %v3698_v7 }
0x122b   : > { %v3676_v15 = vpop.xlane.xlu1 %3675  ;;  %v3694_v19 = vpop.xlane.xlu0 %3693 }
0x122c   : > { %5195 = vpow2.f32 %v3709_v22  ;;  %v3696_v59 = vsub.f32 %v3664_v48, %v3676_v15  ;;  %v3702_v40 = vsub.f32 %v3670_v17, %v3694_v19 }
0x122e   : > { %v3705_v4 = vmul.f32 1.442695, %v3696_v59  ;;  %v3717_v9 = vmul.f32 1.442695, %v3702_v40 }
0x122f   : > { %v3691_v45 = vpop.xlane.xlu1 %3690  ;;  %v3768_v31 = vpop.permute.xlu0 %3767 }
0x1230   : > { %5197 = vpow2.f32 %v3705_v4  ;;  %v3701_v16 = vsub.f32 %v3669_v54, %v3691_v45 }
0x1231   : > { %v6330_v2 = vpop.eup %5191 }
0x1232   : > { %v3715_v46 = vmul.f32 1.442695, %v3701_v16  ;;  %v3725_v38 = vsel %vm665_vm3, %v6330_v2, 0.0 }
0x1233   : > { %v3685_v36 = vpop.xlane.xlu1 %3684  ;;  %3726 = vadd.xlane.f32.xlu1 %v3725_v38 }
0x1234   : > { %5199 = vpow2.f32 %v3715_v46  ;;  %v3699_v5 = vsub.f32 %v3667_v50, %v3685_v36 }
0x1235   : > { %v5194_v6 = vpop.eup %5193 }
0x1236   : > { %v3711_v35 = vmul.f32 1.442695, %v3699_v5  ;;  %v3719_v20 = vsel %vm665_vm3, %v5194_v6, 0.0 }
0x1237   : > { %v4738_v63 = vpop.f32.mrf.mxu0  ;;  %v3770_v32 = vpop.permute.xlu1 %3769  ;;  %3720 = vadd.xlane.f32.xlu1 %v3719_v20 }
0x1238   : > { %5201 = vpow2.f32 %v3711_v35  ;;  %v6336_v11 = vadd.f32 %v4738_v63, %v6222_v3  ;;  %4754 = vmatprep.subr.bf16.mxu0 %v3770_v32 }
0x1239   : > { %v6338_v23 = vpop.eup %5195  ;;  %v3479_v58 = vpop.f32.mrf.mxu0  ;;  %4755 = vmatpush3.bf16.msra.mxu0 %v3770_v32  ;;  %5203 = vpow2.f32 %v3717_v9 }
0x123a   : > { %v6341_v26 = vadd.f32 %v3479_v58, %v6225_v47  ;;  %4756 = vmatprep.subr.bf16.mxu0 %v3768_v31  ;;  %v3728_v51 = vsel %vm665_vm3, %v6338_v23, 0.0 }
0x123b   : > { %v4739_v56 = vpop.f32.mrf.mxu0  ;;  %3729 = vadd.xlane.f32.xlu1 %v3728_v51 }
0x123c   : > { %v6346_v24 = vadd.f32 %v4739_v56, %v6228_v57 }
0x123d   : > { %v5198_v3 = vpop.eup %5197  ;;  %v3482_v37 = vpop.f32.mrf.mxu0  ;;  %4757 = vmatpush3.bf16.msra.mxu0 %v3768_v31 }
0x123e   : > { %v6349_v30 = vadd.f32 %v3482_v37, %v6231_v18  ;;  %v3722_v48 = vsel %vm665_vm3, %v5198_v3, 0.0 }
0x123f   : > { %3723 = vadd.xlane.f32.xlu1 %v3722_v48 }
0x1241   : > { %v6352_v47 = vpop.eup %5199 }
0x1242   : > { %v4742_v25 = vpop.f32.mrf.mxu0  ;;  %v3737_v27 = vsel %vm665_vm3, %v6352_v47, 0.0 }
0x1243   : > { %v6357_v17 = vadd.f32 %v4742_v25, %v6254_v44  ;;  %3738 = vadd.xlane.f32.xlu1 %v3737_v27 }
0x1244   : > { %v3495_v57 = vpop.f32.mrf.mxu0 }
0x1245   : > { %v5202_v54 = vpop.eup %5201  ;;  %v6360_v1 = vadd.f32 %v3495_v57, %v6259_v13 }
0x1246   : > { %v4743_v18 = vpop.f32.mrf.mxu0  ;;  %v3731_v12 = vsel %vm665_vm3, %v5202_v54, 0.0  ;;  %v5204_v50 = vpop.eup %5203 }
0x1247   : > { %v6364_v10 = vadd.f32 %v4743_v18, %v6264_v42  ;;  %3732 = vadd.xlane.f32.xlu1 %v3731_v12  ;;  %v3740_v39 = vsel %vm665_vm3, %v5204_v50, 0.0 }
0x1248   : > { %v3498_v56 = vpop.f32.mrf.mxu0 }
0x124b   : > { %3741 = vadd.xlane.f32.xlu1 %v3740_v39 }
0x1268   : > { %v3688_v62 = vpop.xlane.xlu1 %3687 }
0x1269   : > { %v3700_v44 = vsub.f32 %v6324_v33, %v3688_v62 }
0x126b   : > { %v3713_v61 = vmul.f32 1.442695, %v3700_v44 }
0x126c   : > { %v3766_v55 = vpop.permute.xlu1 %3765 }
0x126d   : > { %5205 = vpow2.f32 %v3713_v61  ;;  %4758 = vmatprep.subr.bf16.mxu0 %v3766_v55 }
0x126e   : > { %4759 = vmatpush3.bf16.msra.mxu0 %v3766_v55  ;;  %v4304_v55 = vld [vmem:[%s6503_s5] ss:$0 sm:$0xff] }
0x127a   : > { %v5206_v13 = vpop.eup %5205 }
0x127b   : > { %v3734_v52 = vsel %vm665_vm3, %v5206_v13, 0.0 }
0x127c   : > { %3735 = vadd.xlane.f32.xlu1 %v3734_v52 }
0x128d   : > { %3763 = vrot.lane.b32.xlu1 %v5448_v8, %s5269_s30 }
0x12bc   : > { %v3727_v42 = vpop.xlane.xlu1 %3726 }
0x12c0   : > { %v3721_v49 = vpop.xlane.xlu1 %3720 }
0x12c1   : > { %5207 = vrcp.f32 %v3721_v49 }
0x12c4   : > { %v3730_v0 = vpop.xlane.xlu1 %3729 }
0x12c8   : > { %v3724_v14 = vpop.xlane.xlu1 %3723 }
0x12c9   : > { %5209 = vrcp.f32 %v3724_v14 }
0x12ca   : > { %5211 = vrcp.f32 %v3730_v0  ;;  %v5240_v0 = vld [vmem:[%s5352_s20] sm:$0xff] }
0x12cb   : > { %5213 = vrcp.f32 %v3727_v42 }
0x12cc   : > { %v3739_v15 = vpop.xlane.xlu1 %3738 }
0x12ce   : > { %v5208_v34 = vpop.eup %5207 }
0x12cf   : > { %v3751_v29 = vmul.f32 %v5208_v34, %v5194_v6 }
0x12d0   : > { %v3733_v59 = vpop.xlane.xlu1 %3732 }
0x12d4   : > { %v3742_v4 = vpop.xlane.xlu1 %3741 }
0x12d5   : > { %5215 = vrcp.f32 %v3742_v4 }
0x12d6   : > { %v5210_v33 = vpop.eup %5209  ;;  %5217 = vrcp.f32 %v3733_v59 }
0x12d7   : > { %v3752_v7 = vmul.f32 %v5210_v33, %v5198_v3  ;;  %v5212_v8 = vpop.eup %5211  ;;  %5219 = vrcp.f32 %v3739_v15 }
0x12d8   : > { %v5214_v45 = vpop.eup %5213  ;;  %v3754_v16 = vmul.f32 %v5212_v8, %v6338_v23 }
0x12d9   : > { %v3759_v22 = vpack.c.bf16 %v3752_v7, %v3751_v29  ;;  %v3753_v46 = vmul.f32 %v5214_v45, %v6330_v2  ;;  %v4966_v2 = vld [vmem:[%s6502_s4 + $0xc] ss:$0 sps:$4 sm:$0xcc]   ;;  %v1364_v29 = vadd.f32 %v5823_v21, %v5720_v41  ;;  %v5241_v7 = vld [vmem:[%s5352_s20 + $0x18] sm:$0xff] }
0x12da   : > { %v3860_v23 = vrot.slane %v4966_v2, 2 }
0x12db   : > { %4762 = vmatprep.mubr.msk.bf16.mxu0 %vm665_vm3, %v3759_v22  ;;  %v3760_v38 = vpack.c.bf16 %v3754_v16, %v3753_v46  ;;  %v1799_v8 = vadd.f32 %v5929_v43, %v1364_v29 }
0x12dc   : > { %4795 = vmatprep.subr.msk.bf16.mxu1 %vm588_vm2, %v3860_v23  ;;  %v3874_v51 = vsel %vm588_vm2, %v3860_v23, 0 }
0x12dd   : > { %4771 = vmatpush3.bf16.msra.mxu1 %v3874_v51 }
0x12e2   : > { %v5216_v36 = vpop.eup %5215 }
0x12e3   : > { %v5218_v5 = vpop.eup %5217  ;;  %v3758_v35 = vmul.f32 %v5216_v36, %v5204_v50 }
0x12e4   : > { %v5220_v6 = vpop.eup %5219  ;;  %v3755_v20 = vmul.f32 %v5218_v5, %v5202_v54 }
0x12e5   : > { %v3757_v32 = vmul.f32 %v5220_v6, %v6352_v47 }
0x12e7   : > { %v3762_v58 = vpack.c.bf16 %v3758_v35, %v3757_v32 }
0x1305   : > { %v3736_v19 = vpop.xlane.xlu1 %3735 }
0x1306   : > { %5221 = vrcp.f32 %v3736_v19 }
0x1309   : > { %v3764_v40 = vpop.permute.xlu1 %3763 }
0x130a   : > { %4760 = vmatprep.subr.bf16.mxu0 %v3764_v40 }
0x130b   : > { %4761 = vmatpush3.bf16.msra.mxu0 %v3764_v40 }
0x130e   : > { %4763 = vmatmul.mubr.msk.bf16.vlgmr.msra.gmra.mxu0 %vm665_vm3, %v3760_v38 }
0x1313   : > { %v5222_v9 = vpop.eup %5221 }
0x1314   : > { %v3756_v63 = vmul.f32 %v5222_v9, %v5206_v13  ;;  %v5239_v13 = vld [vmem:[%s5352_s20 + $0x10] sm:$0xff] }
0x1315   : > { %v5243_v9 = vld [vmem:[%s5352_s20 + $0x30] sm:$0xff] }
0x1316   : > { %v3761_v31 = vpack.c.bf16 %v3756_v63, %v3755_v20  ;;  %v5244_v20 = vld [vmem:[%s5352_s20 + $0x20] sm:$0xff] }
0x1318   : > { %4766 = vmatprep.mubr.msk.bf16.mxu0 %vm665_vm3, %v3761_v31 }
0x1319   : > { %4767 = vmatmul.mubr.msk.bf16.gmra.mxu0 %vm665_vm3, %v3762_v58  ;;  %v5245_v58 = vld [vmem:[%s5352_s20 + $0x38] sm:$0xff] }
0x13ce   : > { %v4764_v3 = vpop.f32.mrf.mxu0 }
0x13d0   : > { %v3821_v37 = vpop.f32.mrf.mxu0 }
0x13d2   : > { %v4765_v48 = vpop.f32.mrf.mxu0 }
0x13d3   : > { %v3853_v27 = vpack.c.bf16 %v4765_v48, %v4764_v3 }
0x13d4   : > { %v3824_v47 = vpop.f32.mrf.mxu0 }
0x13d5   : > { %v3852_v25 = vpack.c.bf16 %v3824_v47, %v3821_v37 }
0x13d7   : > { %4772 = vmatprep.mubr.msk.bf16.mxu1 %vm575_vm1, %v3852_v25 }
0x13d8   : > { %4773 = vmatmul.mubr.msk.bf16.vlgmr.msra.gmra.mxu1 %vm575_vm1, %v3853_v27 }
0x13d9   : > { %v4768_v57 = vpop.f32.mrf.mxu0 }
0x13db   : > { %v3837_v54 = vpop.f32.mrf.mxu0 }
0x13dd   : > { %v4769_v18 = vpop.f32.mrf.mxu0 }
0x13de   : > { %v3855_v39 = vpack.c.bf16 %v4769_v18, %v4768_v57 }
0x13df   : > { %v3840_v12 = vpop.f32.mrf.mxu0 }
0x13e0   : > { %v3854_v50 = vpack.c.bf16 %v3840_v12, %v3837_v54 }
0x13e2   : > { %4776 = vmatprep.mubr.msk.bf16.mxu1 %vm575_vm1, %v3854_v50 }
0x13e3   : > { %4777 = vmatmul.mubr.msk.bf16.gmra.mxu1 %vm575_vm1, %v3855_v39 }
0x1498   : > { %v4774_v62 = vpop.f32.mrf.mxu1 }
0x1499   : > { %v3943_v44 = vadd.f32 %v4774_v62, %v6336_v11 }
0x149a   : > { %v3910_v61 = vpop.f32.mrf.mxu1 }
0x149b   : > { %v3951_v52 = vadd.f32 %v5239_v13, %v3943_v44  ;;  %v3941_v42 = vadd.f32 %v3910_v61, %v6341_v26  ;;  %v5242_v26 = vld [vmem:[%s5352_s20 + $0x8] sm:$0xff] }
0x149c   : > { %v4775_v49 = vpop.f32.mrf.mxu1 }
0x149d   : > { %v3949_v14 = vadd.f32 %v5240_v0, %v3941_v42  ;;  %v3944_v34 = vadd.f32 %v4775_v49, %v6346_v24  ;;  %v3966_v33 = vadd.f32 %v4304_v55, %v3951_v52  ;;  %v2230_v24 = vadd.f32 %v6061_v53, %v1799_v8 }
0x149e   : > { %v3913_v11 = vpop.f32.mrf.mxu1 }
0x149f   : > { %v3952_v22 = vadd.f32 %v5241_v7, %v3944_v34  ;;  %v3942_v15 = vadd.f32 %v3913_v11, %v6349_v30  ;;  %v3978_v59 = vsel %vm370_vm0, %v3966_v33, 0.0  ;;  %v3964_v4 = vadd.f32 %v4304_v55, %v3949_v14 }
0x14a0   : > { %3979 = vadd.xlane.f32.xlu1 %v3978_v59  ;;  %v2657_v30 = vadd.f32 %v6201_v28, %v2230_v24 }
0x14a1   : > { %v3950_v19 = vadd.f32 %v5242_v26, %v3942_v15  ;;  %v3967_v45 = vadd.f32 %v4304_v55, %v3952_v22  ;;  %v3972_v41 = vsel %vm370_vm0, %v3964_v4, 0.0 }
0x14a2   : > { %v3088_v38 = vadd.f32 %v6307_v60, %v2657_v30  ;;  %v5246_v60 = vld [vmem:[%s5352_s20 + $0x28] sm:$0xff] }
0x14a3   : > { %v4778_v16 = vpop.f32.mrf.mxu1  ;;  %v3981_v21 = vsel %vm370_vm0, %v3967_v45, 0.0  ;;  %v3965_v40 = vadd.f32 %v4304_v55, %v3950_v19 }
0x14a4   : > { %v3947_v46 = vadd.f32 %v4778_v16, %v6357_v17  ;;  %3973 = vadd.xlane.f32.xlu1 %v3972_v41  ;;  %3982 = vadd.xlane.f32.xlu0 %v3981_v21  ;;  %v3515_v6 = vadd.f32 %v3498_v56, %v3088_v38 }
0x14a5   : > { %v3926_v43 = vpop.f32.mrf.mxu1  ;;  %v3975_v5 = vsel %vm370_vm0, %v3965_v40, 0.0 }
0x14a6   : > { %v3945_v53 = vadd.f32 %v3926_v43, %v6360_v1  ;;  %v3955_v35 = vadd.f32 %v5243_v9, %v3947_v46 }
0x14a7   : > { %v4779_v36 = vpop.f32.mrf.mxu1 }
0x14a8   : > { %v3953_v63 = vadd.f32 %v5244_v20, %v3945_v53  ;;  %v3948_v28 = vadd.f32 %v4779_v36, %v6364_v10  ;;  %3976 = vadd.xlane.f32.xlu0 %v3975_v5  ;;  %v3970_v51 = vadd.f32 %v4304_v55, %v3955_v35 }
0x14a9   : > { %v3929_v17 = vpop.f32.mrf.mxu1 }
0x14aa   : > { %v3946_v32 = vadd.f32 %v3929_v17, %v3515_v6  ;;  %v3968_v31 = vadd.f32 %v4304_v55, %v3953_v63  ;;  %v3956_v2 = vadd.f32 %v5245_v58, %v3948_v28  ;;  %v3990_v56 = vsel %vm370_vm0, %v3970_v51, 0.0 }
0x14ac   : > { %v3954_v23 = vadd.f32 %v5246_v60, %v3946_v32  ;;  %v3984_v1 = vsel %vm370_vm0, %v3968_v31, 0.0  ;;  %v3971_v48 = vadd.f32 %v4304_v55, %v3956_v2 }
0x14ad   : > { %3985 = vadd.xlane.f32.xlu1 %v3984_v1 }
0x14ae   : > { %v3969_v3 = vadd.f32 %v4304_v55, %v3954_v23  ;;  %v3993_v10 = vsel %vm370_vm0, %v3971_v48, 0.0 }
0x14b0   : > { %v3987_v37 = vsel %vm370_vm0, %v3969_v3, 0.0 }
0x14b1   : > { %3991 = vadd.xlane.f32.xlu1 %v3990_v56  ;;  %3988 = vadd.xlane.f32.xlu0 %v3987_v37 }
0x14b5   : > { %3994 = vadd.xlane.f32.xlu0 %v3993_v10 }
0x1529   : > { %v3980_v47 = vpop.xlane.xlu1 %3979 }
0x152a   : > { %v3999_v25 = vmul.f32 0.03125, %v3980_v47 }
0x152c   : > { %v6419_v27 = vsub.f32 %v3966_v33, %v3999_v25 }
0x152d   : > { %v3974_v57 = vpop.xlane.xlu1 %3973  ;;  %v3983_v54 = vpop.xlane.xlu0 %3982 }
0x152e   : > { %v3997_v18 = vmul.f32 0.03125, %v3974_v57  ;;  %v4000_v12 = vmul.f32 0.03125, %v3983_v54  ;;  %v4015_v50 = vmul.f32 %v6419_v27, %v6419_v27 }
0x1530   : > { %v6423_v39 = vsub.f32 %v3964_v4, %v3997_v18  ;;  %v6425_v62 = vsub.f32 %v3967_v45, %v4000_v12  ;;  %v4027_v44 = vsel %vm370_vm0, %v4015_v50, 0.0 }
0x1531   : > { %v3977_v61 = vpop.xlane.xlu0 %3976  ;;  %4028 = vadd.xlane.f32.xlu1 %v4027_v44 }
0x1532   : > { %v3998_v55 = vmul.f32 0.03125, %v3977_v61  ;;  %v4013_v13 = vmul.f32 %v6423_v39, %v6423_v39  ;;  %v4016_v52 = vmul.f32 %v6425_v62, %v6425_v62 }
0x1534   : > { %v6432_v42 = vsub.f32 %v3965_v40, %v3998_v55  ;;  %v4021_v49 = vsel %vm370_vm0, %v4013_v13, 0.0  ;;  %v4030_v0 = vsel %vm370_vm0, %v4016_v52, 0.0 }
0x1535   : > { %4022 = vadd.xlane.f32.xlu1 %v4021_v49  ;;  %4031 = vadd.xlane.f32.xlu0 %v4030_v0 }
0x1536   : > { %v3986_v14 = vpop.xlane.xlu1 %3985  ;;  %v4014_v34 = vmul.f32 %v6432_v42, %v6432_v42 }
0x1537   : > { %v4001_v33 = vmul.f32 0.03125, %v3986_v14 }
0x1538   : > { %v4024_v29 = vsel %vm370_vm0, %v4014_v34, 0.0 }
0x1539   : > { %v6439_v11 = vsub.f32 %v3968_v31, %v4001_v33  ;;  %4025 = vadd.xlane.f32.xlu0 %v4024_v29 }
0x153a   : > { %v3992_v7 = vpop.xlane.xlu1 %3991  ;;  %v3989_v22 = vpop.xlane.xlu0 %3988 }
0x153b   : > { %v4003_v15 = vmul.f32 0.03125, %v3992_v7  ;;  %v4002_v59 = vmul.f32 0.03125, %v3989_v22  ;;  %v4017_v4 = vmul.f32 %v6439_v11, %v6439_v11 }
0x153d   : > { %v6443_v8 = vsub.f32 %v3970_v51, %v4003_v15  ;;  %v6445_v26 = vsub.f32 %v3969_v3, %v4002_v59  ;;  %v4033_v19 = vsel %vm370_vm0, %v4017_v4, 0.0  ;;  %v4305_v51 = vld [vmem:[%s6504_s6] ss:$0 sm:$0xff] }
0x153e   : > { %4034 = vadd.xlane.f32.xlu1 %v4033_v19  ;;  %v3995_v45 = vpop.xlane.xlu0 %3994 }
0x153f   : > { %v4004_v24 = vmul.f32 0.03125, %v3995_v45  ;;  %v4019_v16 = vmul.f32 %v6443_v8, %v6443_v8  ;;  %v4018_v41 = vmul.f32 %v6445_v26, %v6445_v26 }
0x1541   : > { %v6452_v21 = vsub.f32 %v3971_v48, %v4004_v24  ;;  %v4039_v40 = vsel %vm370_vm0, %v4019_v16, 0.0  ;;  %v4036_v30 = vsel %vm370_vm0, %v4018_v41, 0.0  ;;  %v4306_v48 = vld [vmem:[%s6505_s7] ss:$0 sm:$0xff] }
0x1542   : > { %4040 = vadd.xlane.f32.xlu1 %v4039_v40  ;;  %4037 = vadd.xlane.f32.xlu0 %v4036_v30 }
0x1543   : > { %v4020_v46 = vmul.f32 %v6452_v21, %v6452_v21 }
0x1545   : > { %v4042_v43 = vsel %vm370_vm0, %v4020_v46, 0.0 }
0x1546   : > { %4043 = vadd.xlane.f32.xlu0 %v4042_v43 }
0x15ba   : > { %v4029_v38 = vpop.xlane.xlu1 %4028 }
0x15bb   : > { %v4047_v53 = vmul.f32 0.03125, %v4029_v38 }
0x15bd   : > { %v4055_v36 = vadd.f32 1e-05, %v4047_v53 }
0x15be   : > { %v4023_v5 = vpop.xlane.xlu1 %4022  ;;  %v4032_v6 = vpop.xlane.xlu0 %4031 }
0x15bf   : > { %5223 = vrsqrt.f32 %v4055_v36  ;;  %v4045_v9 = vmul.f32 0.03125, %v4023_v5  ;;  %v4048_v35 = vmul.f32 0.03125, %v4032_v6 }
0x15c1   : > { %v4053_v20 = vadd.f32 1e-05, %v4045_v9  ;;  %v4056_v63 = vadd.f32 1e-05, %v4048_v35 }
0x15c2   : > { %v4026_v28 = vpop.xlane.xlu0 %4025 }
0x15c3   : > { %5225 = vrsqrt.f32 %v4053_v20  ;;  %v4046_v17 = vmul.f32 0.03125, %v4026_v28 }
0x15c4   : > { %5227 = vrsqrt.f32 %v4056_v63 }
0x15c5   : > { %v4054_v32 = vadd.f32 1e-05, %v4046_v17 }
0x15c7   : > { %5229 = vrsqrt.f32 %v4054_v32  ;;  %v4035_v31 = vpop.xlane.xlu1 %4034 }
0x15c8   : > { %v4049_v58 = vmul.f32 0.03125, %v4035_v31 }
0x15ca   : > { %v4057_v2 = vadd.f32 1e-05, %v4049_v58 }
0x15cb   : > { %v4041_v60 = vpop.xlane.xlu1 %4040  ;;  %v4038_v23 = vpop.xlane.xlu0 %4037 }
0x15cc   : > { %v5224_v1 = vpop.eup %5223  ;;  %5231 = vrsqrt.f32 %v4057_v2  ;;  %v4051_v3 = vmul.f32 0.03125, %v4041_v60  ;;  %v4050_v56 = vmul.f32 0.03125, %v4038_v23 }
0x15cd   : > { %v4071_v37 = vmul.f32 %v5224_v1, %v6419_v27 }
0x15ce   : > { %v4059_v10 = vadd.f32 1e-05, %v4051_v3  ;;  %v4058_v47 = vadd.f32 1e-05, %v4050_v56 }
0x15cf   : > { %v4086_v25 = vmul.f32 %v4305_v51, %v4071_v37  ;;  %v4044_v57 = vpop.xlane.xlu0 %4043 }
0x15d0   : > { %v5226_v54 = vpop.eup %5225  ;;  %5233 = vrsqrt.f32 %v4059_v10  ;;  %v4052_v18 = vmul.f32 0.03125, %v4044_v57 }
0x15d1   : > { %v5228_v12 = vpop.eup %5227  ;;  %v4101_v27 = vadd.f32 %v4306_v48, %v4086_v25  ;;  %v4069_v50 = vmul.f32 %v5226_v54, %v6423_v39  ;;  %5235 = vrsqrt.f32 %v4058_v47 }
0x15d2   : > { %v4072_v44 = vmul.f32 %v5228_v12, %v6425_v62  ;;  %v4060_v61 = vadd.f32 1e-05, %v4052_v18 }
0x15d3   : > { %4109 = vst.msk [vmem:[%s6470_s19 + $0x10] sm:$0xff] %vm370_vm0, %v4101_v27  ;;  %v4084_v55 = vmul.f32 %v4305_v51, %v4069_v50 }
0x15d4   : > { %v5230_v13 = vpop.eup %5229  ;;  %v4087_v52 = vmul.f32 %v4305_v51, %v4072_v44  ;;  %5237 = vrsqrt.f32 %v4060_v61 }
0x15d5   : > { %v4099_v49 = vadd.f32 %v4306_v48, %v4084_v55  ;;  %v4070_v0 = vmul.f32 %v5230_v13, %v6432_v42 }
0x15d6   : > { %v4102_v14 = vadd.f32 %v4306_v48, %v4087_v52 }
0x15d7   : > { %4107 = vst.msk [vmem:[%s6470_s19] sm:$0xff] %vm370_vm0, %v4099_v49  ;;  %v4085_v34 = vmul.f32 %v4305_v51, %v4070_v0 }
0x15d8   : > { %4110 = vst.msk [vmem:[%s6470_s19 + $0x18] sm:$0xff] %vm370_vm0, %v4102_v14 }
0x15d9   : > { %v5232_v39 = vpop.eup %5231  ;;  %v4100_v62 = vadd.f32 %v4306_v48, %v4085_v34 }
0x15da   : > { %v4073_v33 = vmul.f32 %v5232_v39, %v6439_v11 }
0x15db   : > { %4108 = vst.msk [vmem:[%s6470_s19 + $0x8] sm:$0xff] %vm370_vm0, %v4100_v62 }
0x15dc   : > { %v4088_v29 = vmul.f32 %v4305_v51, %v4073_v33 }
0x15dd   : > { %v5234_v7 = vpop.eup %5233 }
0x15de   : > { %v5236_v22 = vpop.eup %5235  ;;  %v4103_v15 = vadd.f32 %v4306_v48, %v4088_v29  ;;  %v4075_v42 = vmul.f32 %v5234_v7, %v6443_v8 }
0x15df   : > { %v4074_v59 = vmul.f32 %v5236_v22, %v6445_v26 }
0x15e0   : > { %4111 = vst.msk [vmem:[%s6470_s19 + $0x20] sm:$0xff] %vm370_vm0, %v4103_v15  ;;  %v4090_v4 = vmul.f32 %v4305_v51, %v4075_v42 }
0x15e1   : > { %v5238_v19 = vpop.eup %5237  ;;  %v4089_v45 = vmul.f32 %v4305_v51, %v4074_v59 }
0x15e2   : > { %v4105_v24 = vadd.f32 %v4306_v48, %v4090_v4  ;;  %v4076_v11 = vmul.f32 %v5238_v19, %v6452_v21 }
0x15e3   : > { %v4104_v16 = vadd.f32 %v4306_v48, %v4089_v45 }
0x15e4   : > { %4113 = vst.msk [vmem:[%s6470_s19 + $0x30] sm:$0xff] %vm370_vm0, %v4105_v24  ;;  %v4091_v41 = vmul.f32 %v4305_v51, %v4076_v11 }
0x15e5   : > { %4112 = vst.msk [vmem:[%s6470_s19 + $0x28] sm:$0xff] %vm370_vm0, %v4104_v16 }
0x15e6   : > { %v4106_v40 = vadd.f32 %v4306_v48, %v4091_v41 }
0x15e8   : > { %4114 = vst.msk [vmem:[%s6470_s19 + $0x38] sm:$0xff] %vm370_vm0, %v4106_v40 }
0x15e9 PF: > { %s18_s27 = sadd.s32 1, %s5253_s27  }
0x15ea   : > { %p15_p4 = scmp.ge.s32.totalorder %s18_s27, 4  }
0x15ec   :  { %17 = sbr.rel (!%p15_p4) target bundleno = 1 (0x1), region = 85 }

</bundles_post_ra>
